<compile_context>
chip_gen: v7x
topology: tpu7x:2x2x1
jax: 0.10.0
libtpu: 0.0.40
codegen_flags: <defaults>
</compile_context>

<pallas_src>
import functools
import math

import jax
import jax.numpy as jnp
from jax import lax
from jax.experimental import pallas as pl
from jax.experimental.pallas import tpu as pltpu


def _round_up(x, m):
    return ((x + m - 1) // m) * m


def _query_vmem_cap():
    try:
        info = pltpu.get_tpu_info()
        cap = getattr(info, "vmem_capacity_bytes", None)
        if cap:
            return int(cap)
    except Exception:
        pass
    return 64 * 1024 * 1024          # conservative default (v7x per-TC VMEM)


_VMEM_CAP = _query_vmem_cap()
_BIG_VMEM = _VMEM_CAP >= 96 * 1024 * 1024
VMEM_LIMIT = (96 if _BIG_VMEM else 40) * 1024 * 1024
DEFAULT_TM = 512 if _BIG_VMEM else 256
DEFAULT_TTY = 1024 if _BIG_VMEM else 512


def _cparams(semantics):
    return pltpu.CompilerParams(dimension_semantics=semantics,
                                vmem_limit_bytes=VMEM_LIMIT)


# ----------------------------------------------------------------------------
# Parameter preparation (pad to lane-dense widths + bf16 cast, done ONCE)
# ----------------------------------------------------------------------------
def prep_linear(w, b, gamma=None, beta=None):
    K, N = w.shape
    Np = _round_up(N, 128)
    out = dict(
        w=jnp.pad(w, ((0, 0), (0, Np - N))).astype(jnp.bfloat16),
        b=jnp.pad(b.astype(jnp.float32).reshape(1, N), ((0, 0), (0, Np - N))),
        n=N)
    if gamma is not None:
        out['g'] = jnp.pad(gamma.astype(jnp.float32).reshape(1, N),
                           ((0, 0), (0, Np - N)))
        out['be'] = jnp.pad(beta.astype(jnp.float32).reshape(1, N),
                            ((0, 0), (0, Np - N)))
    return out


def prepare_params(raw, cfg):
    xr = raw['xvec']
    xv = {}
    for i in range(1, 6):
        p = xr[f'tdnn{i}']
        xv[f'tdnn{i}'] = prep_linear(p['w'], p['b'], p['gamma'], p['beta'])
    xv['seg6'] = prep_linear(xr['seg6_w'], xr['seg6_b'])
    xv['seg7'] = prep_linear(xr['seg7_w'], xr['seg7_b'])
    xv['out'] = prep_linear(xr['out_w'], xr['out_b'])

    er = raw['enc']
    enc = dict(
        emb=er['emb'],
        # fused mean/log-std 1x1 projections (single pass over encoder output)
        proj=prep_linear(jnp.concatenate([er['proj_m_w'], er['proj_s_w']], 1),
                         jnp.concatenate([er['proj_m_b'], er['proj_s_b']], 0)),
        dp1=prep_linear(er['dp1_w'], er['dp1_b']),
        dp2=prep_linear(er['dp2_w'], er['dp2_b']),
        dp_proj=prep_linear(er['dp_proj_w'], er['dp_proj_b']))

    return dict(xvec=xv, enc=enc, asr=prep_linear(raw['asr_w'], raw['asr_b']))


# ----------------------------------------------------------------------------
# Pallas kernels
# ----------------------------------------------------------------------------
def _linear_kernel(x_ref, w_ref, b_ref, o_ref, *, act):
    y = jnp.dot(x_ref[...].astype(jnp.bfloat16), w_ref[...],
                preferred_element_type=jnp.float32) + b_ref[...]
    if act == "relu":
        y = jnp.maximum(y, 0.0)
    o_ref[...] = y.astype(o_ref.dtype)


def linear_pallas(x, p, act="none", out_dtype=jnp.float32, slice_out=True, tm=None):
    """y = act(x @ w + b).  x:[M,K] (any dtype, bf16 cast in-kernel).
    Weight/bias come pre-padded & pre-cast from prep_linear."""
    M, K = x.shape
    Np = p['w'].shape[1]
    tm = min(tm or DEFAULT_TM, _round_up(M, 16))
    out = pl.pallas_call(
        functools.partial(_linear_kernel, act=act),
        out_shape=jax.ShapeDtypeStruct((M, Np), out_dtype),
        grid=(pl.cdiv(M, tm),),
        in_specs=[pl.BlockSpec((tm, K), lambda i: (i, 0)),
                  pl.BlockSpec((K, Np), lambda i: (0, 0)),
                  pl.BlockSpec((1, Np), lambda i: (0, 0))],
        out_specs=pl.BlockSpec((tm, Np), lambda i: (i, 0)),
        compiler_params=_cparams(("parallel",)),
    )(x, p['w'], p['b'])
    if slice_out and p['n'] != Np:
        out = out[:, :p['n']]
    return out


def _conv_tap_kernel(x_ref, w_ref, b_ref, o_ref, *, ctx, dil, t_out, cin, act):
    # unfold fused into the matmul: per-tap static time-shifted slices of the
    # VMEM-resident input block, accumulated in f32.
    x = x_ref[0].astype(jnp.bfloat16)
    acc = None
    for k in range(ctx):
        xk = lax.slice_in_dim(x, k * dil, k * dil + t_out, axis=0)
        d = jnp.dot(xk, w_ref[k * cin:(k + 1) * cin, :],
                    preferred_element_type=jnp.float32)
        acc = d if acc is None else acc + d
    y = acc + b_ref[...]
    if act == "relu":
        y = jnp.maximum(y, 0.0)
    o_ref[0] = y.astype(o_ref.dtype)


def _conv_tap_bn_kernel(x_ref, w_ref, b_ref, g_ref, be_ref, o_ref,
                        *, ctx, dil, t_out, cin):
    x = x_ref[0].astype(jnp.bfloat16)
    acc = None
    for k in range(ctx):
        xk = lax.slice_in_dim(x, k * dil, k * dil + t_out, axis=0)
        d = jnp.dot(xk, w_ref[k * cin:(k + 1) * cin, :],
                    preferred_element_type=jnp.float32)
        acc = d if acc is None else acc + d
    y = jnp.maximum(acc + b_ref[...], 0.0)                 # ReLU
    o_ref[0] = (y * g_ref[...] + be_ref[...]).astype(o_ref.dtype)  # eval BN affine


def fused_conv_pallas(x_btc, p, ctx, dil, *, pad_t=0, act="none",
                      out_dtype=jnp.bfloat16, slice_out=False):
    """TDNN / Conv1d layer: y[t] = act(sum_k x[t + k*dil] @ W_k + b) [*g+be].
    Unfold is fused into the kernel; one grid step per batch element keeps the
    whole [T,Cin] activation resident in VMEM (typical speech T*Cin bf16 fits)."""
    if pad_t:
        x_btc = jnp.pad(x_btc, ((0, 0), (pad_t, pad_t), (0, 0)))
    B, T_in, cin = x_btc.shape
    t_out = T_in - dil * (ctx - 1)
    Kp, Np = p['w'].shape
    assert Kp == ctx * cin

    in_specs = [pl.BlockSpec((1, T_in, cin), lambda b: (b, 0, 0)),
                pl.BlockSpec((Kp, Np), lambda b: (0, 0)),
                pl.BlockSpec((1, Np), lambda b: (0, 0))]
    args = [x_btc, p['w'], p['b']]
    if act == "relu_bn":
        in_specs += [pl.BlockSpec((1, Np), lambda b: (0, 0)),
                     pl.BlockSpec((1, Np), lambda b: (0, 0))]
        args += [p['g'], p['be']]
        kern = functools.partial(_conv_tap_bn_kernel, ctx=ctx, dil=dil,
                                 t_out=t_out, cin=cin)
    else:
        kern = functools.partial(_conv_tap_kernel, ctx=ctx, dil=dil,
                                 t_out=t_out, cin=cin, act=act)

    out = pl.pallas_call(
        kern,
        out_shape=jax.ShapeDtypeStruct((B, t_out, Np), out_dtype),
        grid=(B,),
        in_specs=in_specs,
        out_specs=pl.BlockSpec((1, t_out, Np), lambda b: (b, 0, 0)),
        compiler_params=_cparams(("parallel",)),
    )(*args)
    if slice_out and p['n'] != Np:
        out = out[:, :, :p['n']]
    return out


def _asr_head_kernel(x_ref, w_ref, b_ref, o_ref, *, valid_n):
    # fused linear + log_softmax epilogue (padded vocab columns masked out)
    y = jnp.dot(x_ref[...].astype(jnp.bfloat16), w_ref[...],
                preferred_element_type=jnp.float32) + b_ref[...]
    col = lax.broadcasted_iota(jnp.int32, y.shape, 1)
    y = jnp.where(col < valid_n, y, jnp.float32(-1e30))
    m = jnp.max(y, axis=-1, keepdims=True)
    s = y - m
    o_ref[...] = s - jnp.log(jnp.sum(jnp.exp(s), axis=-1, keepdims=True))


def asr_head_pallas(x, p, tm=None):
    M, K = x.shape
    Np = p['w'].shape[1]
    tm = min(tm or DEFAULT_TM, _round_up(M, 16))
    out = pl.pallas_call(
        functools.partial(_asr_head_kernel, valid_n=p['n']),
        out_shape=jax.ShapeDtypeStruct((M, Np), jnp.float32),
        grid=(pl.cdiv(M, tm),),
        in_specs=[pl.BlockSpec((tm, K), lambda i: (i, 0)),
                  pl.BlockSpec((K, Np), lambda i: (0, 0)),
                  pl.BlockSpec((1, Np), lambda i: (0, 0))],
        out_specs=pl.BlockSpec((tm, Np), lambda i: (i, 0)),
        compiler_params=_cparams(("parallel",)),
    )(x, p['w'], p['b'])
    return out[:, :p['n']]


def _stat_pool_kernel(x_ref, o_ref, sum_ref, sq_ref, *, n_frames, tt):
    t = pl.program_id(1)

    @pl.when(t == 0)
    def _init():
        sum_ref[...] = jnp.zeros_like(sum_ref)
        sq_ref[...] = jnp.zeros_like(sq_ref)

    x = x_ref[...].astype(jnp.float32)                  # [B, tt, dd]
    row = lax.broadcasted_iota(jnp.int32, (1, tt, 1), 1)
    x = jnp.where(t * tt + row < n_frames, x, 0.0)      # mask tail tile in-kernel
    sum_ref[...] += jnp.sum(x, axis=1)
    sq_ref[...] += jnp.sum(x * x, axis=1)

    @pl.when(t == pl.num_programs(1) - 1)
    def _finalize():
        n = jnp.float32(n_frames)
        mean = sum_ref[...] / n
        var = jnp.maximum(sq_ref[...] - n * mean * mean, 0.0) / (n - 1.0)
        o_ref[:, 0, :] = mean
        o_ref[:, 1, :] = jnp.sqrt(var)


def stat_pool_pallas(x_btc):
    """x:[B,T,D] (bf16 ok) -> [B, 2D] (mean ++ unbiased std over time).
    NOTE: pools over all frames (no length masking), matching torch XVector."""
    B, T, D = x_btc.shape
    dd = 128 if D % 128 == 0 else D
    tt = 512 if T > 512 else T
    out = pl.pallas_call(
        functools.partial(_stat_pool_kernel, n_frames=T, tt=tt),
        out_shape=jax.ShapeDtypeStruct((B, 2, D), jnp.float32),
        grid=(D // dd, pl.cdiv(T, tt)),
        in_specs=[pl.BlockSpec((B, tt, dd), lambda d, t: (0, t, d))],
        out_specs=pl.BlockSpec((B, 2, dd), lambda d, t: (0, 0, d)),
        scratch_shapes=[pltpu.VMEM((B, dd), jnp.float32),
                        pltpu.VMEM((B, dd), jnp.float32)],
        compiler_params=_cparams(("parallel", "arbitrary")),
    )(x_btc)
    return out.reshape(B, 2 * D)


def _xvec_tail_kernel(s_ref, w6_ref, b6_ref, w7_ref, b7_ref, wo_ref, bo_ref,
                      out_ref, pred_ref, xvec_ref, *, n_spk):
    # seg6 -> seg7 (x_vec) -> speaker output -> softmax, fully fused in VMEM
    h6 = jnp.dot(s_ref[...].astype(jnp.bfloat16), w6_ref[...],
                 preferred_element_type=jnp.float32) + b6_ref[...]
    xv = jnp.dot(h6.astype(jnp.bfloat16), w7_ref[...],
                 preferred_element_type=jnp.float32) + b7_ref[...]
    o = jnp.dot(xv.astype(jnp.bfloat16), wo_ref[...],
                preferred_element_type=jnp.float32) + bo_ref[...]
    xvec_ref[...] = xv
    out_ref[...] = o
    col = lax.broadcasted_iota(jnp.int32, o.shape, 1)
    om = jnp.where(col < n_spk, o, jnp.float32(-1e30))
    m = jnp.max(om, axis=-1, keepdims=True)
    e = jnp.exp(om - m)
    pred_ref[...] = e / jnp.sum(e, axis=-1, keepdims=True)


def xvec_tail_pallas(stats, p6, p7, po):
    B, S = stats.shape
    Np6, Np7, Npo = p6['w'].shape[1], p7['w'].shape[1], po['w'].shape[1]
    out, preds, x_vec = pl.pallas_call(
        functools.partial(_xvec_tail_kernel, n_spk=po['n']),
        out_shape=(jax.ShapeDtypeStruct((B, Npo), jnp.float32),
                   jax.ShapeDtypeStruct((B, Npo), jnp.float32),
                   jax.ShapeDtypeStruct((B, Np7), jnp.float32)),
        grid=(1,),
        in_specs=[pl.BlockSpec((B, S), lambda i: (0, 0)),
                  pl.BlockSpec(p6['w'].shape, lambda i: (0, 0)),
                  pl.BlockSpec((1, Np6), lambda i: (0, 0)),
                  pl.BlockSpec(p7['w'].shape, lambda i: (0, 0)),
                  pl.BlockSpec((1, Np7), lambda i: (0, 0)),
                  pl.BlockSpec(po['w'].shape, lambda i: (0, 0)),
                  pl.BlockSpec((1, Npo), lambda i: (0, 0))],
        out_specs=(pl.BlockSpec((B, Npo), lambda i: (0, 0)),
                   pl.BlockSpec((B, Npo), lambda i: (0, 0)),
                   pl.BlockSpec((B, Np7), lambda i: (0, 0))),
        compiler_params=_cparams(("arbitrary",)),
    )(stats, p6['w'], p6['b'], p7['w'], p7['b'], po['w'], po['b'])
    n_spk = po['n']
    return out[:, :n_spk], preds[:, :n_spk], x_vec[:, :p7['n']]


def _align_logp_kernel(b_ref, a_ref, p14_ref, o_ref):
    # logp2+logp3 as one K=2C matmul (contraction on the lane axis of both),
    # plus the per-text-frame logp1+logp4 bias.
    m23 = lax.dot_general(b_ref[0], a_ref[0], (((1,), (1,)), ((), ())),
                          preferred_element_type=jnp.float32)      # [Tx, tty]
    o_ref[0] = m23 + p14_ref[0]


def alignment_logp_pallas(x_m_btc, x_logs_btc, z_btc):
    """x_m/x_logs:[B,Tx,C], z:[B,Ty,C]  ->  logp:[B,Tx,Ty].
    bf16 MXU inputs; feeds an argmax-style DP, so near-tied paths may differ
    slightly from an f32 reference."""
    B, Tx, C = x_m_btc.shape
    Ty = z_btc.shape[1]
    x_s_sq_r = jnp.exp(-2.0 * x_logs_btc)
    bmat = jnp.concatenate([x_s_sq_r, x_m_btc * x_s_sq_r], axis=-1).astype(jnp.bfloat16)
    amat = jnp.concatenate([-0.5 * z_btc * z_btc, z_btc], axis=-1)
    logp14 = (jnp.sum(-0.5 * math.log(2.0 * math.pi) - x_logs_btc, axis=-1)
              + jnp.sum(-0.5 * x_m_btc * x_m_btc * x_s_sq_r, axis=-1))
    logp14 = logp14[:, :, None].astype(jnp.float32)                 # [B,Tx,1]

    tty = min(DEFAULT_TTY, _round_up(Ty, 128))
    Typ = _round_up(Ty, tty)
    amat = jnp.pad(amat, ((0, 0), (0, Typ - Ty), (0, 0))).astype(jnp.bfloat16)

    out = pl.pallas_call(
        _align_logp_kernel,
        out_shape=jax.ShapeDtypeStruct((B, Tx, Typ), jnp.float32),
        grid=(B, Typ // tty),
        in_specs=[pl.BlockSpec((1, Tx, 2 * C), lambda b, j: (b, 0, 0)),
                  pl.BlockSpec((1, tty, 2 * C), lambda b, j: (b, j, 0)),
                  pl.BlockSpec((1, Tx, 1), lambda b, j: (b, 0, 0))],
        out_specs=pl.BlockSpec((1, Tx, tty), lambda b, j: (b, 0, j)),
        compiler_params=_cparams(("parallel", "parallel")),
    )(bmat, amat, logp14)
    return out[:, :, :Ty]


def _attn_project_kernel(a_ref, x_ref, o_ref):
    o_ref[0] = jnp.dot(a_ref[0], x_ref[0], preferred_element_type=jnp.float32)


def attn_project_pallas(attn_T, x_m_btc, x_logs_btc):
    """attn_T:[B,Ty,Tx], x_m/x_logs:[B,Tx,C]  ->  z_m, z_logs each [B,C,Ty].
    Both projections fused into one matmul over stacked channels; one transpose."""
    B, Ty, Tx = attn_T.shape
    C = x_m_btc.shape[-1]
    xcat = jnp.concatenate([x_m_btc, x_logs_btc], axis=-1)          # [B,Tx,2C]
    Cp = _round_up(2 * C, 128)
    xcat = jnp.pad(xcat, ((0, 0), (0, 0), (0, Cp - 2 * C))).astype(jnp.bfloat16)

    tty = min(DEFAULT_TTY, _round_up(Ty, 128))
    Typ = _round_up(Ty, tty)
    attn_p = jnp.pad(attn_T, ((0, 0), (0, Typ - Ty), (0, 0))).astype(jnp.bfloat16)

    out = pl.pallas_call(
        _attn_project_kernel,
        out_shape=jax.ShapeDtypeStruct((B, Typ, Cp), jnp.float32),
        grid=(B, Typ // tty),
        in_specs=[pl.BlockSpec((1, tty, Tx), lambda b, j: (b, j, 0)),
                  pl.BlockSpec((1, Tx, Cp), lambda b, j: (b, 0, 0))],
        out_specs=pl.BlockSpec((1, tty, Cp), lambda b, j: (b, j, 0)),
        compiler_params=_cparams(("parallel", "parallel")),
    )(attn_p, xcat)
    zcat = out[:, :Ty, :2 * C].reshape(B, Ty, 2, C)
    zt = jnp.transpose(zcat, (2, 0, 3, 1))                          # [2,B,C,Ty]
    return zt[0], zt[1]


# ----------------------------------------------------------------------------
# Plain-JAX glue (all activations stay in [B, T, C] layout)
# ----------------------------------------------------------------------------
def sequence_mask(lengths, max_len):
    return jnp.arange(max_len)[None, :] < lengths[:, None]


def xvector_forward(xp, y_btc):
    """y:[B,T,n_feat] -> (output, predictions, x_vec)."""
    h = y_btc
    specs = [(5, 1), (3, 2), (2, 3), (1, 1), (1, 1)]
    for i, (ctx, dil) in enumerate(specs):
        h = fused_conv_pallas(h, xp[f'tdnn{i + 1}'], ctx, dil,
                              act="relu_bn", out_dtype=jnp.bfloat16)
    # NOTE: torch XVector pools over all frames without length masking; match it.
    stats = stat_pool_pallas(h)                                     # [B, 1024]
    return xvec_tail_pallas(stats, xp['seg6'], xp['seg7'], xp['out'])


def encoder_forward(ep, cfg, x_tokens, x_lengths, g):
    H = cfg['hidden_channels']
    C = cfg['out_channels']
    B, Tx = x_tokens.shape
    emb = jnp.take(ep['emb'], x_tokens, axis=0) * math.sqrt(H)      # [B,Tx,H]
    mask_bt1 = sequence_mask(x_lengths, Tx)[:, :, None].astype(jnp.float32)

    # TODO(synk): attentions.Encoder (multi-head self-attention + FF-CNN stack)
    # internals are not in the provided source; the encoder trunk is identity.
    x_enc = emb

    xms = linear_pallas(x_enc.reshape(B * Tx, H), ep['proj']).reshape(B, Tx, 2 * C)
    x_m_btc = xms[:, :, :C] * mask_bt1
    x_logs_btc = xms[:, :, C:] * mask_bt1

    g_exp = jnp.broadcast_to(g[:, None, :], (B, Tx, g.shape[1]))
    x_dp = jnp.concatenate([lax.stop_gradient(x_enc), g_exp], axis=-1) * mask_bt1

    # Duration predictor
    # TODO(synk): modules.Conv1DBlock internals are not in the provided source;
    # approximated as masked same-padded Conv1d + ReLU (odd kernel_size assumed).
    ks = cfg['kernel_size']
    fdp = cfg['filter_channels_dp']
    h = fused_conv_pallas(x_dp, ep['dp1'], ks, 1, pad_t=ks // 2, act="relu",
                          out_dtype=jnp.float32, slice_out=True) * mask_bt1
    h = fused_conv_pallas(h, ep['dp2'], ks, 1, pad_t=ks // 2, act="relu",
                          out_dtype=jnp.float32, slice_out=True) * mask_bt1
    logw_btc = linear_pallas(h.reshape(B * Tx, fdp), ep['dp_proj']).reshape(B, Tx, 1)
    return x_m_btc, x_logs_btc, logw_btc, mask_bt1


def maximum_path_jax(value, attn_mask, t_xs, t_ys):
    """Monotonic alignment search (glowTTS commons.maximum_path), per batch.
    Returns attn^T with shape [B, Ty, Tx].
    TODO(synk): sequential DP kept in plain JAX (lax.scan); a Pallas kernel
    keeping the [Tx] cumulative row resident in vregs would remove this serial
    wall-clock tail for long Ty."""
    neg = jnp.float32(-1e9)
    B, Tx, Ty = value.shape
    value = value * attn_mask

    def single(v, t_x, t_y):
        xs = jnp.arange(Tx)

        def fwd(cum_prev, y):
            v_cur = jnp.where(xs == y, neg, cum_prev)
            first = jnp.where(y == 0, jnp.float32(0.0), neg)
            v_prev = jnp.concatenate([first[None], cum_prev[:-1]])
            feasible = (xs >= jnp.maximum(0, t_x + y - t_y)) & (xs < jnp.minimum(t_x, y + 1))
            cum = jnp.where(feasible, jnp.maximum(v_cur, v_prev) + v[:, y], neg)
            return cum, cum

        _, cums = lax.scan(fwd, jnp.full((Tx,), neg), jnp.arange(Ty))   # [Ty, Tx]

        def bwd(index, y):
            active = y < t_y
            row = jnp.where(active, (xs == index).astype(jnp.float32),
                            jnp.zeros((Tx,), jnp.float32))
            prev = cums[jnp.maximum(y - 1, 0)]          # explicit clamp at y == 0
            cond = (index != 0) & ((index == y) | (prev[index] < prev[index - 1]))
            new_index = jnp.where(active & cond & (y > 0), index - 1, index)
            return new_index, row

        _, rows = lax.scan(bwd, t_x - 1, jnp.arange(Ty - 1, -1, -1))    # reversed y
        return rows[::-1]                                               # [Ty, Tx]

    return jax.vmap(single)(value, t_xs, t_ys)


# ----------------------------------------------------------------------------
# Full model forward (gen=False, recognition=False branch)
# ----------------------------------------------------------------------------
def model_forward(params, cfg, x_tokens, x_lengths, y_feat, y_feat_lengths):
    # TODO(synk): DbMelFeatureExtraction (raw-audio log-mel frontend) is not in
    # the provided source; `y_feat` is the already-extracted [B, n_mels, T].
    y_btc = y_feat.transpose(0, 2, 1)                      # single NCW -> NWC transpose
    _, _, g = xvector_forward(params['xvec'], y_btc)       # g = x_vec [B,512]

    x_m_btc, x_logs_btc, logw_btc, mask_bt1 = encoder_forward(
        params['enc'], cfg, x_tokens, x_lengths, g)
    x_mask = mask_bt1.transpose(0, 2, 1)                   # [B,1,Tx]  (torch layout)
    x_m = x_m_btc.transpose(0, 2, 1)                       # [B,C,Tx]
    x_logs = x_logs_btc.transpose(0, 2, 1)
    logw = logw_btc.transpose(0, 2, 1)                     # [B,1,Tx]

    # preprocess (crop to multiple of n_sqz)
    n_sqz = cfg['n_sqz']
    y_max_length = (y_feat.shape[2] // n_sqz) * n_sqz
    y_lengths = (y_feat_lengths // n_sqz) * n_sqz
    z_mask_bt = sequence_mask(y_lengths, y_max_length)                       # [B,Ty]
    z_mask = z_mask_bt[:, None, :].astype(jnp.int32)                         # [B,1,Ty]
    attn_mask = x_mask[:, :, :, None] * z_mask[:, :, None, :].astype(jnp.float32)

    # TODO(synk): FlowDecoder internals (modules.ActNorm / InvConvNear /
    # attentions.CouplingBlock) are not in the provided source; the flow is a
    # masked pass-through with zero log-determinant.
    z_btc = y_btc[:, :y_max_length, :] * z_mask_bt[:, :, None].astype(jnp.float32)
    z = z_btc.transpose(0, 2, 1)                                             # [B,C,Ty]
    logdet = jnp.zeros((y_feat.shape[0],), jnp.float32)

    # --- ASR branch ---------------------------------------------------------
    # (spec-augment & dropout are training-only -> eval no-ops here)
    # TODO(synk): ConformerEncoderV1 (VGG frontend + conformer blocks) is not in
    # the provided source; identity trunk with conformer_size == out_channels.
    B, Ty, C = z_btc.shape
    V = params['asr']['n']
    log_probs = asr_head_pallas(z_btc.reshape(B * Ty, C), params['asr'])
    log_probs = log_probs.reshape(B, Ty, V)
    out_mask_sum = jnp.sum(z_mask_bt.astype(jnp.int32), axis=1)

    # --- monotonic alignment statistics (torch.no_grad block) ---------------
    logp = alignment_logp_pallas(x_m_btc, x_logs_btc, z_btc)                 # [B,Tx,Ty]
    attn_T = maximum_path_jax(logp, attn_mask[:, 0],
                              x_lengths.astype(jnp.int32),
                              y_lengths.astype(jnp.int32))                   # [B,Ty,Tx]
    attn_T = lax.stop_gradient(attn_T)

    z_m, z_logs = attn_project_pallas(attn_T, x_m_btc, x_logs_btc)           # [B,C,Ty]

    attn = attn_T.transpose(0, 2, 1)                                         # [B,Tx,Ty]
    attn4 = attn[:, None]                                                    # [B,1,Tx,Ty]
    logw_ = jnp.log(1e-8 + jnp.sum(attn_T, axis=1))[:, None, :] * x_mask     # [B,1,Tx]

    return ((z, z_m, z_logs, logdet, z_mask),
            (x_m, x_logs, x_mask),
            y_lengths,
            (attn4, logw, logw_),
            (log_probs, out_mask_sum))


# ----------------------------------------------------------------------------
# Deterministic parameter initialization (raw torch-like shapes)
# ----------------------------------------------------------------------------
def init_params(key, cfg):
    keys = iter(jax.random.split(key, 64))

    def nrm(shape, scale):
        return (scale * jax.random.normal(next(keys), shape)).astype(jnp.float32)

    C, H = cfg['out_channels'], cfg['hidden_channels']
    ks, fdp, gin = cfg['kernel_size'], cfg['filter_channels_dp'], 512

    xvec = {}
    for i, (cin, cout, ctx) in enumerate([(C, 512, 5), (512, 512, 3),
                                          (512, 512, 2), (512, 512, 1),
                                          (512, 512, 1)]):
        xvec[f'tdnn{i + 1}'] = dict(
            w=nrm((cin * ctx, cout), 1.0 / math.sqrt(cin * ctx)),
            b=nrm((cout,), 0.01),
            gamma=1.0 + nrm((cout,), 0.01),     # NOTE: assumed pre-folded with running stats
            beta=nrm((cout,), 0.01))
    xvec.update(
        seg6_w=nrm((1024, 512), 1.0 / math.sqrt(1024)), seg6_b=nrm((512,), 0.01),
        seg7_w=nrm((512, 512), 1.0 / math.sqrt(512)), seg7_b=nrm((512,), 0.01),
        out_w=nrm((512, cfg['n_speakers']), 1.0 / math.sqrt(512)),
        out_b=nrm((cfg['n_speakers'],), 0.01))

    enc = dict(
        emb=nrm((cfg['n_vocab'], H), H ** -0.5),
        proj_m_w=nrm((H, C), 1.0 / math.sqrt(H)), proj_m_b=nrm((C,), 0.01),
        proj_s_w=nrm((H, C), 1.0 / math.sqrt(H)), proj_s_b=nrm((C,), 0.01),
        dp1_w=nrm(((H + gin) * ks, fdp), 1.0 / math.sqrt((H + gin) * ks)),
        dp1_b=nrm((fdp,), 0.01),
        dp2_w=nrm((fdp * ks, fdp), 1.0 / math.sqrt(fdp * ks)),
        dp2_b=nrm((fdp,), 0.01),
        dp_proj_w=nrm((fdp, 1), 1.0 / math.sqrt(fdp)), dp_proj_b=nrm((1,), 0.01))

    return dict(xvec=xvec, enc=enc,
                asr_w=nrm((C, cfg['label_target_size'] + 1), 1.0 / math.sqrt(C)),
                asr_b=nrm((cfg['label_target_size'] + 1,), 0.01))


# ----------------------------------------------------------------------------
if __name__ == "__main__":
    cfg = dict(n_vocab=16, hidden_channels=32, out_channels=16,
               filter_channels_dp=32, kernel_size=3, n_speakers=4,
               n_sqz=2, label_target_size=10)

    key = jax.random.PRNGKey(0)
    pkey, k_tok, k_feat = jax.random.split(key, 3)
    raw_params = init_params(pkey, cfg)
    params = prepare_params(raw_params, cfg)    # pad + bf16 cast once, outside jit

    B, Tx, Ty = 2, 8, 32
    x_tokens = jax.random.randint(k_tok, (B, Tx), 0, cfg['n_vocab'], jnp.int32)
    x_lengths = jnp.array([8, 6], jnp.int32)
    y_feat = jax.random.normal(k_feat, (B, cfg['out_channels'], Ty), jnp.float32)
    y_feat_lengths = jnp.array([32, 24], jnp.int32)

    fwd = jax.jit(lambda xt, xl, yf, yl: model_forward(params, cfg, xt, xl, yf, yl))
    out = fwd(x_tokens, x_lengths, y_feat, y_feat_lengths)
    jax.block_until_ready(out)
    print("KERNEL_OK")
</pallas_src>

<mosaic_0001>
module attributes {stable_mosaic.version = 11 : i64} {
  func.func @_linear_kernel(%arg0: i32, %arg1: memref<16x32xf32, #tpu.memory_space<vmem>>, %arg2: memref<32x128xbf16, #tpu.memory_space<vmem>>, %arg3: memref<1x128xf32, #tpu.memory_space<vmem>>, %arg4: memref<16x128xf32, #tpu.memory_space<vmem>>) attributes {dimension_semantics = [#tpu.dimension_semantics<parallel>], iteration_bounds = array<i64: 1>, scalar_prefetch = 0 : i64, scratch_operands = 0 : i64, tpu.core_type = #tpu.core_type<tc>, window_params = [{transform_indices = @transform_0, window_bounds = array<i64: 16, 32>}, {pipeline_mode = #tpu.pipeline_mode<synchronous>, transform_indices = @transform_1, window_bounds = array<i64: 32, 128>}, {pipeline_mode = #tpu.pipeline_mode<synchronous>, transform_indices = @transform_2, window_bounds = array<i64: 1, 128>}, {transform_indices = @transform_3, window_bounds = array<i64: 16, 128>}]} {
    %c0 = arith.constant 0 : index
    %c0_0 = arith.constant 0 : index
    %0 = vector.load %arg1[%c0, %c0_0] : memref<16x32xf32, #tpu.memory_space<vmem>>, vector<16x32xf32>
    %1 = arith.truncf %0 : vector<16x32xf32> to vector<16x32xbf16>
    %c0_1 = arith.constant 0 : index
    %c0_2 = arith.constant 0 : index
    %2 = vector.load %arg2[%c0_1, %c0_2] : memref<32x128xbf16, #tpu.memory_space<vmem>>, vector<32x128xbf16>
    %cst = arith.constant dense<0.000000e+00> : vector<16x128xf32>
    %3 = tpu.matmul %1, %2, %cst {dimension_numbers = #tpu.dot_dimension_numbers<[1], [0], [0], [1], [0, 0, 1, 1], [], []>} : vector<16x32xbf16>, vector<32x128xbf16>, vector<16x128xf32> -> vector<16x128xf32>
    %c0_3 = arith.constant 0 : index
    %c0_4 = arith.constant 0 : index
    %4 = vector.load %arg3[%c0_3, %c0_4] : memref<1x128xf32, #tpu.memory_space<vmem>>, vector<1x128xf32>
    %5 = vector.broadcast %4 : vector<1x128xf32> to vector<16x128xf32>
    %6 = arith.addf %3, %5 : vector<16x128xf32>
    %c0_5 = arith.constant 0 : index
    %c0_6 = arith.constant 0 : index
    %7 = vector.load %arg4[%c0_5, %c0_6] : memref<16x128xf32, #tpu.memory_space<vmem>>, vector<16x128xf32>
    tpu.vector_store %arg4[%c0_5, %c0_6], %6 {strides = array<i32>} : memref<16x128xf32, #tpu.memory_space<vmem>>, vector<16x128xf32>,
    return
  }
  func.func @transform_0(%arg0: i32) -> (i32, i32) {
    %c0_i32 = arith.constant 0 : i32
    %c0_i32_0 = arith.constant 0 : i32
    return %arg0, %c0_i32 : i32, i32
  }
  func.func @transform_1(%arg0: i32) -> (i32, i32) {
    %c0_i32 = arith.constant 0 : i32
    %c0_i32_0 = arith.constant 0 : i32
    %c0_i32_1 = arith.constant 0 : i32
    return %c0_i32, %c0_i32_0 : i32, i32
  }
  func.func @transform_2(%arg0: i32) -> (i32, i32) {
    %c0_i32 = arith.constant 0 : i32
    %c0_i32_0 = arith.constant 0 : i32
    %c0_i32_1 = arith.constant 0 : i32
    return %c0_i32, %c0_i32_0 : i32, i32
  }
  func.func @transform_3(%arg0: i32) -> (i32, i32) {
    %c0_i32 = arith.constant 0 : i32
    %c0_i32_0 = arith.constant 0 : i32
    return %arg0, %c0_i32 : i32, i32
  }
}

module attributes {stable_mosaic.version = 11 : i64} {
  func.func @_conv_tap_bn_kernel(%arg0: i32, %arg1: memref<1x28x512xbf16, #tpu.memory_space<vmem>>, %arg2: memref<1536x512xbf16, #tpu.memory_space<vmem>>, %arg3: memref<1x512xf32, #tpu.memory_space<vmem>>, %arg4: memref<1x512xf32, #tpu.memory_space<vmem>>, %arg5: memref<1x512xf32, #tpu.memory_space<vmem>>, %arg6: memref<1x24x512xbf16, #tpu.memory_space<vmem>>) attributes {dimension_semantics = [#tpu.dimension_semantics<parallel>], iteration_bounds = array<i64: 2>, scalar_prefetch = 0 : i64, scratch_operands = 0 : i64, tpu.core_type = #tpu.core_type<tc>, window_params = [{transform_indices = @transform_0, window_bounds = array<i64: 1, 28, 512>}, {pipeline_mode = #tpu.pipeline_mode<synchronous>, transform_indices = @transform_1, window_bounds = array<i64: 1536, 512>}, {pipeline_mode = #tpu.pipeline_mode<synchronous>, transform_indices = @transform_2, window_bounds = array<i64: 1, 512>}, {pipeline_mode = #tpu.pipeline_mode<synchronous>, transform_indices = @transform_3, window_bounds = array<i64: 1, 512>}, {pipeline_mode = #tpu.pipeline_mode<synchronous>, transform_indices = @transform_4, window_bounds = array<i64: 1, 512>}, {transform_indices = @transform_5, window_bounds = array<i64: 1, 24, 512>}]} {
    %c0 = arith.constant 0 : index
    %c0_0 = arith.constant 0 : index
    %c0_1 = arith.constant 0 : index
    %0 = vector.load %arg1[%c0, %c0_0, %c0_1] : memref<1x28x512xbf16, #tpu.memory_space<vmem>>, vector<1x28x512xbf16>
    %1 = vector.shape_cast %0 : vector<1x28x512xbf16> to vector<28x512xbf16>
    %2 = vector.extract_strided_slice %1 {offsets = [0, 0], sizes = [24, 512], strides = [1, 1]} : vector<28x512xbf16> to vector<24x512xbf16>
    %c0_2 = arith.constant 0 : index
    %c0_3 = arith.constant 0 : index
    %3 = vector.load %arg2[%c0_2, %c0_3] : memref<1536x512xbf16, #tpu.memory_space<vmem>>, vector<512x512xbf16>
    %cst = arith.constant dense<0.000000e+00> : vector<24x512xf32>
    %4 = tpu.matmul %2, %3, %cst {dimension_numbers = #tpu.dot_dimension_numbers<[1], [0], [0], [1], [0, 0, 1, 1], [], []>} : vector<24x512xbf16>, vector<512x512xbf16>, vector<24x512xf32> -> vector<24x512xf32>
    %5 = vector.extract_strided_slice %1 {offsets = [2, 0], sizes = [24, 512], strides = [1, 1]} : vector<28x512xbf16> to vector<24x512xbf16>
    %c512 = arith.constant 512 : index
    %c0_4 = arith.constant 0 : index
    %6 = vector.load %arg2[%c512, %c0_4] : memref<1536x512xbf16, #tpu.memory_space<vmem>>, vector<512x512xbf16>
    %cst_5 = arith.constant dense<0.000000e+00> : vector<24x512xf32>
    %7 = tpu.matmul %5, %6, %cst_5 {dimension_numbers = #tpu.dot_dimension_numbers<[1], [0], [0], [1], [0, 0, 1, 1], [], []>} : vector<24x512xbf16>, vector<512x512xbf16>, vector<24x512xf32> -> vector<24x512xf32>
    %8 = arith.addf %4, %7 : vector<24x512xf32>
    %9 = vector.extract_strided_slice %1 {offsets = [4, 0], sizes = [24, 512], strides = [1, 1]} : vector<28x512xbf16> to vector<24x512xbf16>
    %c1024 = arith.constant 1024 : index
    %c0_6 = arith.constant 0 : index
    %10 = vector.load %arg2[%c1024, %c0_6] : memref<1536x512xbf16, #tpu.memory_space<vmem>>, vector<512x512xbf16>
    %cst_7 = arith.constant dense<0.000000e+00> : vector<24x512xf32>
    %11 = tpu.matmul %9, %10, %cst_7 {dimension_numbers = #tpu.dot_dimension_numbers<[1], [0], [0], [1], [0, 0, 1, 1], [], []>} : vector<24x512xbf16>, vector<512x512xbf16>, vector<24x512xf32> -> vector<24x512xf32>
    %12 = arith.addf %8, %11 : vector<24x512xf32>
    %c0_8 = arith.constant 0 : index
    %c0_9 = arith.constant 0 : index
    %13 = vector.load %arg3[%c0_8, %c0_9] : memref<1x512xf32, #tpu.memory_space<vmem>>, vector<1x512xf32>
    %14 = vector.broadcast %13 : vector<1x512xf32> to vector<24x512xf32>
    %15 = arith.addf %12, %14 : vector<24x512xf32>
    %cst_10 = arith.constant 0.000000e+00 : f32
    %16 = vector.broadcast %cst_10 : f32 to vector<24x512xf32>
    %17 = arith.maximumf %15, %16 : vector<24x512xf32>
    %c0_11 = arith.constant 0 : index
    %c0_12 = arith.constant 0 : index
    %18 = vector.load %arg4[%c0_11, %c0_12] : memref<1x512xf32, #tpu.memory_space<vmem>>, vector<1x512xf32>
    %19 = vector.broadcast %18 : vector<1x512xf32> to vector<24x512xf32>
    %20 = arith.mulf %17, %19 : vector<24x512xf32>
    %c0_13 = arith.constant 0 : index
    %c0_14 = arith.constant 0 : index
    %21 = vector.load %arg5[%c0_13, %c0_14] : memref<1x512xf32, #tpu.memory_space<vmem>>, vector<1x512xf32>
    %22 = vector.broadcast %21 : vector<1x512xf32> to vector<24x512xf32>
    %23 = arith.addf %20, %22 : vector<24x512xf32>
    %24 = arith.truncf %23 : vector<24x512xf32> to vector<24x512xbf16>
    %c0_15 = arith.constant 0 : index
    %c0_16 = arith.constant 0 : index
    %c0_17 = arith.constant 0 : index
    %25 = vector.load %arg6[%c0_15, %c0_16, %c0_17] : memref<1x24x512xbf16, #tpu.memory_space<vmem>>, vector<1x24x512xbf16>
    %26 = vector.shape_cast %25 : vector<1x24x512xbf16> to vector<24x512xbf16>
    %27 = vector.shape_cast %24 : vector<24x512xbf16> to vector<1x24x512xbf16>
    tpu.vector_store %arg6[%c0_15, %c0_16, %c0_17], %27 {strides = array<i32>} : memref<1x24x512xbf16, #tpu.memory_space<vmem>>, vector<1x24x512xbf16>,
    return
  }
  func.func @transform_0(%arg0: i32) -> (i32, i32, i32) {
    %c0_i32 = arith.constant 0 : i32
    %c0_i32_0 = arith.constant 0 : i32
    %c0_i32_1 = arith.constant 0 : i32
    return %arg0, %c0_i32, %c0_i32_0 : i32, i32, i32
  }
  func.func @transform_1(%arg0: i32) -> (i32, i32) {
    %c0_i32 = arith.constant 0 : i32
    %c0_i32_0 = arith.constant 0 : i32
    %c0_i32_1 = arith.constant 0 : i32
    return %c0_i32, %c0_i32_0 : i32, i32
  }
  func.func @transform_2(%arg0: i32) -> (i32, i32) {
    %c0_i32 = arith.constant 0 : i32
    %c0_i32_0 = arith.constant 0 : i32
    %c0_i32_1 = arith.constant 0 : i32
    return %c0_i32, %c0_i32_0 : i32, i32
  }
  func.func @transform_3(%arg0: i32) -> (i32, i32) {
    %c0_i32 = arith.constant 0 : i32
    %c0_i32_0 = arith.constant 0 : i32
    %c0_i32_1 = arith.constant 0 : i32
    return %c0_i32, %c0_i32_0 : i32, i32
  }
  func.func @transform_4(%arg0: i32) -> (i32, i32) {
    %c0_i32 = arith.constant 0 : i32
    %c0_i32_0 = arith.constant 0 : i32
    %c0_i32_1 = arith.constant 0 : i32
    return %c0_i32, %c0_i32_0 : i32, i32
  }
  func.func @transform_5(%arg0: i32) -> (i32, i32, i32) {
    %c0_i32 = arith.constant 0 : i32
    %c0_i32_0 = arith.constant 0 : i32
    %c0_i32_1 = arith.constant 0 : i32
    return %arg0, %c0_i32, %c0_i32_0 : i32, i32, i32
  }
}

module attributes {stable_mosaic.version = 11 : i64} {
  func.func @_align_logp_kernel(%arg0: i32, %arg1: i32, %arg2: memref<1x8x32xbf16, #tpu.memory_space<vmem>>, %arg3: memref<1x128x32xbf16, #tpu.memory_space<vmem>>, %arg4: memref<1x8x1xf32, #tpu.memory_space<vmem>>, %arg5: memref<1x8x128xf32, #tpu.memory_space<vmem>>) attributes {dimension_semantics = [#tpu.dimension_semantics<parallel>, #tpu.dimension_semantics<parallel>], iteration_bounds = array<i64: 2, 1>, scalar_prefetch = 0 : i64, scratch_operands = 0 : i64, tpu.core_type = #tpu.core_type<tc>, window_params = [{transform_indices = @transform_0, window_bounds = array<i64: 1, 8, 32>}, {transform_indices = @transform_1, window_bounds = array<i64: 1, 128, 32>}, {transform_indices = @transform_2, window_bounds = array<i64: 1, 8, 1>}, {transform_indices = @transform_3, window_bounds = array<i64: 1, 8, 128>}]} {
    %c0 = arith.constant 0 : index
    %c0_0 = arith.constant 0 : index
    %c0_1 = arith.constant 0 : index
    %0 = vector.load %arg2[%c0, %c0_0, %c0_1] : memref<1x8x32xbf16, #tpu.memory_space<vmem>>, vector<1x8x32xbf16>
    %1 = vector.shape_cast %0 : vector<1x8x32xbf16> to vector<8x32xbf16>
    %c0_2 = arith.constant 0 : index
    %c0_3 = arith.constant 0 : index
    %c0_4 = arith.constant 0 : index
    %2 = vector.load %arg3[%c0_2, %c0_3, %c0_4] : memref<1x128x32xbf16, #tpu.memory_space<vmem>>, vector<1x128x32xbf16>
    %3 = vector.shape_cast %2 : vector<1x128x32xbf16> to vector<128x32xbf16>
    %cst = arith.constant dense<0.000000e+00> : vector<8x128xf32>
    %4 = tpu.matmul %1, %3, %cst {dimension_numbers = #tpu.dot_dimension_numbers<[1], [1], [0], [0], [0, 0, 1, 0], [], []>} : vector<8x32xbf16>, vector<128x32xbf16>, vector<8x128xf32> -> vector<8x128xf32>
    %c0_5 = arith.constant 0 : index
    %c0_6 = arith.constant 0 : index
    %c0_7 = arith.constant 0 : index
    %5 = vector.load %arg4[%c0_5, %c0_6, %c0_7] : memref<1x8x1xf32, #tpu.memory_space<vmem>>, vector<1x8x1xf32>
    %6 = vector.shape_cast %5 : vector<1x8x1xf32> to vector<8x1xf32>
    %7 = vector.broadcast %6 : vector<8x1xf32> to vector<8x128xf32>
    %8 = arith.addf %4, %7 : vector<8x128xf32>
    %c0_8 = arith.constant 0 : index
    %c0_9 = arith.constant 0 : index
    %c0_10 = arith.constant 0 : index
    %9 = vector.load %arg5[%c0_8, %c0_9, %c0_10] : memref<1x8x128xf32, #tpu.memory_space<vmem>>, vector<1x8x128xf32>
    %10 = vector.shape_cast %9 : vector<1x8x128xf32> to vector<8x128xf32>
    %11 = vector.shape_cast %8 : vector<8x128xf32> to vector<1x8x128xf32>
    tpu.vector_store %arg5[%c0_8, %c0_9, %c0_10], %11 {strides = array<i32>} : memref<1x8x128xf32, #tpu.memory_space<vmem>>, vector<1x8x128xf32>,
    return
  }
  func.func @transform_0(%arg0: i32, %arg1: i32) -> (i32, i32, i32) {
    %c0_i32 = arith.constant 0 : i32
    %c0_i32_0 = arith.constant 0 : i32
    %c0_i32_1 = arith.constant 0 : i32
    return %arg0, %c0_i32, %c0_i32_0 : i32, i32, i32
  }
  func.func @transform_1(%arg0: i32, %arg1: i32) -> (i32, i32, i32) {
    %c0_i32 = arith.constant 0 : i32
    %c0_i32_0 = arith.constant 0 : i32
    return %arg0, %arg1, %c0_i32 : i32, i32, i32
  }
  func.func @transform_2(%arg0: i32, %arg1: i32) -> (i32, i32, i32) {
    %c0_i32 = arith.constant 0 : i32
    %c0_i32_0 = arith.constant 0 : i32
    %c0_i32_1 = arith.constant 0 : i32
    return %arg0, %c0_i32, %c0_i32_0 : i32, i32, i32
  }
  func.func @transform_3(%arg0: i32, %arg1: i32) -> (i32, i32, i32) {
    %c0_i32 = arith.constant 0 : i32
    %c0_i32_0 = arith.constant 0 : i32
    return %arg0, %c0_i32, %arg1 : i32, i32, i32
  }
}

module attributes {stable_mosaic.version = 11 : i64} {
  func.func @_conv_tap_bn_kernel(%arg0: i32, %arg1: memref<1x32x16xf32, #tpu.memory_space<vmem>>, %arg2: memref<80x512xbf16, #tpu.memory_space<vmem>>, %arg3: memref<1x512xf32, #tpu.memory_space<vmem>>, %arg4: memref<1x512xf32, #tpu.memory_space<vmem>>, %arg5: memref<1x512xf32, #tpu.memory_space<vmem>>, %arg6: memref<1x28x512xbf16, #tpu.memory_space<vmem>>) attributes {dimension_semantics = [#tpu.dimension_semantics<parallel>], iteration_bounds = array<i64: 2>, scalar_prefetch = 0 : i64, scratch_operands = 0 : i64, tpu.core_type = #tpu.core_type<tc>, window_params = [{transform_indices = @transform_0, window_bounds = array<i64: 1, 32, 16>}, {pipeline_mode = #tpu.pipeline_mode<synchronous>, transform_indices = @transform_1, window_bounds = array<i64: 80, 512>}, {pipeline_mode = #tpu.pipeline_mode<synchronous>, transform_indices = @transform_2, window_bounds = array<i64: 1, 512>}, {pipeline_mode = #tpu.pipeline_mode<synchronous>, transform_indices = @transform_3, window_bounds = array<i64: 1, 512>}, {pipeline_mode = #tpu.pipeline_mode<synchronous>, transform_indices = @transform_4, window_bounds = array<i64: 1, 512>}, {transform_indices = @transform_5, window_bounds = array<i64: 1, 28, 512>}]} {
    %c0 = arith.constant 0 : index
    %c0_0 = arith.constant 0 : index
    %c0_1 = arith.constant 0 : index
    %0 = vector.load %arg1[%c0, %c0_0, %c0_1] : memref<1x32x16xf32, #tpu.memory_space<vmem>>, vector<1x32x16xf32>
    %1 = vector.shape_cast %0 : vector<1x32x16xf32> to vector<32x16xf32>
    %2 = arith.truncf %1 : vector<32x16xf32> to vector<32x16xbf16>
    %3 = vector.extract_strided_slice %2 {offsets = [0, 0], sizes = [28, 16], strides = [1, 1]} : vector<32x16xbf16> to vector<28x16xbf16>
    %c0_2 = arith.constant 0 : index
    %c0_3 = arith.constant 0 : index
    %4 = vector.load %arg2[%c0_2, %c0_3] : memref<80x512xbf16, #tpu.memory_space<vmem>>, vector<16x512xbf16>
    %cst = arith.constant dense<0.000000e+00> : vector<28x512xf32>
    %5 = tpu.matmul %3, %4, %cst {dimension_numbers = #tpu.dot_dimension_numbers<[1], [0], [0], [1], [0, 0, 1, 1], [], []>} : vector<28x16xbf16>, vector<16x512xbf16>, vector<28x512xf32> -> vector<28x512xf32>
    %6 = vector.extract_strided_slice %2 {offsets = [1, 0], sizes = [28, 16], strides = [1, 1]} : vector<32x16xbf16> to vector<28x16xbf16>
    %c16 = arith.constant 16 : index
    %c0_4 = arith.constant 0 : index
    %7 = vector.load %arg2[%c16, %c0_4] : memref<80x512xbf16, #tpu.memory_space<vmem>>, vector<16x512xbf16>
    %cst_5 = arith.constant dense<0.000000e+00> : vector<28x512xf32>
    %8 = tpu.matmul %6, %7, %cst_5 {dimension_numbers = #tpu.dot_dimension_numbers<[1], [0], [0], [1], [0, 0, 1, 1], [], []>} : vector<28x16xbf16>, vector<16x512xbf16>, vector<28x512xf32> -> vector<28x512xf32>
    %9 = arith.addf %5, %8 : vector<28x512xf32>
    %10 = vector.extract_strided_slice %2 {offsets = [2, 0], sizes = [28, 16], strides = [1, 1]} : vector<32x16xbf16> to vector<28x16xbf16>
    %c32 = arith.constant 32 : index
    %c0_6 = arith.constant 0 : index
    %11 = vector.load %arg2[%c32, %c0_6] : memref<80x512xbf16, #tpu.memory_space<vmem>>, vector<16x512xbf16>
    %cst_7 = arith.constant dense<0.000000e+00> : vector<28x512xf32>
    %12 = tpu.matmul %10, %11, %cst_7 {dimension_numbers = #tpu.dot_dimension_numbers<[1], [0], [0], [1], [0, 0, 1, 1], [], []>} : vector<28x16xbf16>, vector<16x512xbf16>, vector<28x512xf32> -> vector<28x512xf32>
    %13 = arith.addf %9, %12 : vector<28x512xf32>
    %14 = vector.extract_strided_slice %2 {offsets = [3, 0], sizes = [28, 16], strides = [1, 1]} : vector<32x16xbf16> to vector<28x16xbf16>
    %c48 = arith.constant 48 : index
    %c0_8 = arith.constant 0 : index
    %15 = vector.load %arg2[%c48, %c0_8] : memref<80x512xbf16, #tpu.memory_space<vmem>>, vector<16x512xbf16>
    %cst_9 = arith.constant dense<0.000000e+00> : vector<28x512xf32>
    %16 = tpu.matmul %14, %15, %cst_9 {dimension_numbers = #tpu.dot_dimension_numbers<[1], [0], [0], [1], [0, 0, 1, 1], [], []>} : vector<28x16xbf16>, vector<16x512xbf16>, vector<28x512xf32> -> vector<28x512xf32>
    %17 = arith.addf %13, %16 : vector<28x512xf32>
    %18 = vector.extract_strided_slice %2 {offsets = [4, 0], sizes = [28, 16], strides = [1, 1]} : vector<32x16xbf16> to vector<28x16xbf16>
    %c64 = arith.constant 64 : index
    %c0_10 = arith.constant 0 : index
    %19 = vector.load %arg2[%c64, %c0_10] : memref<80x512xbf16, #tpu.memory_space<vmem>>, vector<16x512xbf16>
    %cst_11 = arith.constant dense<0.000000e+00> : vector<28x512xf32>
    %20 = tpu.matmul %18, %19, %cst_11 {dimension_numbers = #tpu.dot_dimension_numbers<[1], [0], [0], [1], [0, 0, 1, 1], [], []>} : vector<28x16xbf16>, vector<16x512xbf16>, vector<28x512xf32> -> vector<28x512xf32>
    %21 = arith.addf %17, %20 : vector<28x512xf32>
    %c0_12 = arith.constant 0 : index
    %c0_13 = arith.constant 0 : index
    %22 = vector.load %arg3[%c0_12, %c0_13] : memref<1x512xf32, #tpu.memory_space<vmem>>, vector<1x512xf32>
    %23 = vector.broadcast %22 : vector<1x512xf32> to vector<28x512xf32>
    %24 = arith.addf %21, %23 : vector<28x512xf32>
    %cst_14 = arith.constant 0.000000e+00 : f32
    %25 = vector.broadcast %cst_14 : f32 to vector<28x512xf32>
    %26 = arith.maximumf %24, %25 : vector<28x512xf32>
    %c0_15 = arith.constant 0 : index
    %c0_16 = arith.constant 0 : index
    %27 = vector.load %arg4[%c0_15, %c0_16] : memref<1x512xf32, #tpu.memory_space<vmem>>, vector<1x512xf32>
    %28 = vector.broadcast %27 : vector<1x512xf32> to vector<28x512xf32>
    %29 = arith.mulf %26, %28 : vector<28x512xf32>
    %c0_17 = arith.constant 0 : index
    %c0_18 = arith.constant 0 : index
    %30 = vector.load %arg5[%c0_17, %c0_18] : memref<1x512xf32, #tpu.memory_space<vmem>>, vector<1x512xf32>
    %31 = vector.broadcast %30 : vector<1x512xf32> to vector<28x512xf32>
    %32 = arith.addf %29, %31 : vector<28x512xf32>
    %33 = arith.truncf %32 : vector<28x512xf32> to vector<28x512xbf16>
    %c0_19 = arith.constant 0 : index
    %c0_20 = arith.constant 0 : index
    %c0_21 = arith.constant 0 : index
    %34 = vector.load %arg6[%c0_19, %c0_20, %c0_21] : memref<1x28x512xbf16, #tpu.memory_space<vmem>>, vector<1x28x512xbf16>
    %35 = vector.shape_cast %34 : vector<1x28x512xbf16> to vector<28x512xbf16>
    %36 = vector.shape_cast %33 : vector<28x512xbf16> to vector<1x28x512xbf16>
    tpu.vector_store %arg6[%c0_19, %c0_20, %c0_21], %36 {strides = array<i32>} : memref<1x28x512xbf16, #tpu.memory_space<vmem>>, vector<1x28x512xbf16>,
    return
  }
  func.func @transform_0(%arg0: i32) -> (i32, i32, i32) {
    %c0_i32 = arith.constant 0 : i32
    %c0_i32_0 = arith.constant 0 : i32
    %c0_i32_1 = arith.constant 0 : i32
    return %arg0, %c0_i32, %c0_i32_0 : i32, i32, i32
  }
  func.func @transform_1(%arg0: i32) -> (i32, i32) {
    %c0_i32 = arith.constant 0 : i32
    %c0_i32_0 = arith.constant 0 : i32
    %c0_i32_1 = arith.constant 0 : i32
    return %c0_i32, %c0_i32_0 : i32, i32
  }
  func.func @transform_2(%arg0: i32) -> (i32, i32) {
    %c0_i32 = arith.constant 0 : i32
    %c0_i32_0 = arith.constant 0 : i32
    %c0_i32_1 = arith.constant 0 : i32
    return %c0_i32, %c0_i32_0 : i32, i32
  }
  func.func @transform_3(%arg0: i32) -> (i32, i32) {
    %c0_i32 = arith.constant 0 : i32
    %c0_i32_0 = arith.constant 0 : i32
    %c0_i32_1 = arith.constant 0 : i32
    return %c0_i32, %c0_i32_0 : i32, i32
  }
  func.func @transform_4(%arg0: i32) -> (i32, i32) {
    %c0_i32 = arith.constant 0 : i32
    %c0_i32_0 = arith.constant 0 : i32
    %c0_i32_1 = arith.constant 0 : i32
    return %c0_i32, %c0_i32_0 : i32, i32
  }
  func.func @transform_5(%arg0: i32) -> (i32, i32, i32) {
    %c0_i32 = arith.constant 0 : i32
    %c0_i32_0 = arith.constant 0 : i32
    %c0_i32_1 = arith.constant 0 : i32
    return %arg0, %c0_i32, %c0_i32_0 : i32, i32, i32
  }
}

module attributes {stable_mosaic.version = 11 : i64} {
  func.func @_conv_tap_bn_kernel(%arg0: i32, %arg1: memref<1x24x512xbf16, #tpu.memory_space<vmem>>, %arg2: memref<1024x512xbf16, #tpu.memory_space<vmem>>, %arg3: memref<1x512xf32, #tpu.memory_space<vmem>>, %arg4: memref<1x512xf32, #tpu.memory_space<vmem>>, %arg5: memref<1x512xf32, #tpu.memory_space<vmem>>, %arg6: memref<1x21x512xbf16, #tpu.memory_space<vmem>>) attributes {dimension_semantics = [#tpu.dimension_semantics<parallel>], iteration_bounds = array<i64: 2>, scalar_prefetch = 0 : i64, scratch_operands = 0 : i64, tpu.core_type = #tpu.core_type<tc>, window_params = [{transform_indices = @transform_0, window_bounds = array<i64: 1, 24, 512>}, {pipeline_mode = #tpu.pipeline_mode<synchronous>, transform_indices = @transform_1, window_bounds = array<i64: 1024, 512>}, {pipeline_mode = #tpu.pipeline_mode<synchronous>, transform_indices = @transform_2, window_bounds = array<i64: 1, 512>}, {pipeline_mode = #tpu.pipeline_mode<synchronous>, transform_indices = @transform_3, window_bounds = array<i64: 1, 512>}, {pipeline_mode = #tpu.pipeline_mode<synchronous>, transform_indices = @transform_4, window_bounds = array<i64: 1, 512>}, {transform_indices = @transform_5, window_bounds = array<i64: 1, 21, 512>}]} {
    %c0 = arith.constant 0 : index
    %c0_0 = arith.constant 0 : index
    %c0_1 = arith.constant 0 : index
    %0 = vector.load %arg1[%c0, %c0_0, %c0_1] : memref<1x24x512xbf16, #tpu.memory_space<vmem>>, vector<1x24x512xbf16>
    %1 = vector.shape_cast %0 : vector<1x24x512xbf16> to vector<24x512xbf16>
    %2 = vector.extract_strided_slice %1 {offsets = [0, 0], sizes = [21, 512], strides = [1, 1]} : vector<24x512xbf16> to vector<21x512xbf16>
    %c0_2 = arith.constant 0 : index
    %c0_3 = arith.constant 0 : index
    %3 = vector.load %arg2[%c0_2, %c0_3] : memref<1024x512xbf16, #tpu.memory_space<vmem>>, vector<512x512xbf16>
    %cst = arith.constant dense<0.000000e+00> : vector<21x512xf32>
    %4 = tpu.matmul %2, %3, %cst {dimension_numbers = #tpu.dot_dimension_numbers<[1], [0], [0], [1], [0, 0, 1, 1], [], []>} : vector<21x512xbf16>, vector<512x512xbf16>, vector<21x512xf32> -> vector<21x512xf32>
    %5 = vector.extract_strided_slice %1 {offsets = [3, 0], sizes = [21, 512], strides = [1, 1]} : vector<24x512xbf16> to vector<21x512xbf16>
    %c512 = arith.constant 512 : index
    %c0_4 = arith.constant 0 : index
    %6 = vector.load %arg2[%c512, %c0_4] : memref<1024x512xbf16, #tpu.memory_space<vmem>>, vector<512x512xbf16>
    %cst_5 = arith.constant dense<0.000000e+00> : vector<21x512xf32>
    %7 = tpu.matmul %5, %6, %cst_5 {dimension_numbers = #tpu.dot_dimension_numbers<[1], [0], [0], [1], [0, 0, 1, 1], [], []>} : vector<21x512xbf16>, vector<512x512xbf16>, vector<21x512xf32> -> vector<21x512xf32>
    %8 = arith.addf %4, %7 : vector<21x512xf32>
    %c0_6 = arith.constant 0 : index
    %c0_7 = arith.constant 0 : index
    %9 = vector.load %arg3[%c0_6, %c0_7] : memref<1x512xf32, #tpu.memory_space<vmem>>, vector<1x512xf32>
    %10 = vector.broadcast %9 : vector<1x512xf32> to vector<21x512xf32>
    %11 = arith.addf %8, %10 : vector<21x512xf32>
    %cst_8 = arith.constant 0.000000e+00 : f32
    %12 = vector.broadcast %cst_8 : f32 to vector<21x512xf32>
    %13 = arith.maximumf %11, %12 : vector<21x512xf32>
    %c0_9 = arith.constant 0 : index
    %c0_10 = arith.constant 0 : index
    %14 = vector.load %arg4[%c0_9, %c0_10] : memref<1x512xf32, #tpu.memory_space<vmem>>, vector<1x512xf32>
    %15 = vector.broadcast %14 : vector<1x512xf32> to vector<21x512xf32>
    %16 = arith.mulf %13, %15 : vector<21x512xf32>
    %c0_11 = arith.constant 0 : index
    %c0_12 = arith.constant 0 : index
    %17 = vector.load %arg5[%c0_11, %c0_12] : memref<1x512xf32, #tpu.memory_space<vmem>>, vector<1x512xf32>
    %18 = vector.broadcast %17 : vector<1x512xf32> to vector<21x512xf32>
    %19 = arith.addf %16, %18 : vector<21x512xf32>
    %20 = arith.truncf %19 : vector<21x512xf32> to vector<21x512xbf16>
    %c0_13 = arith.constant 0 : index
    %c0_14 = arith.constant 0 : index
    %c0_15 = arith.constant 0 : index
    %21 = vector.load %arg6[%c0_13, %c0_14, %c0_15] : memref<1x21x512xbf16, #tpu.memory_space<vmem>>, vector<1x21x512xbf16>
    %22 = vector.shape_cast %21 : vector<1x21x512xbf16> to vector<21x512xbf16>
    %23 = vector.shape_cast %20 : vector<21x512xbf16> to vector<1x21x512xbf16>
    tpu.vector_store %arg6[%c0_13, %c0_14, %c0_15], %23 {strides = array<i32>} : memref<1x21x512xbf16, #tpu.memory_space<vmem>>, vector<1x21x512xbf16>,
    return
  }
  func.func @transform_0(%arg0: i32) -> (i32, i32, i32) {
    %c0_i32 = arith.constant 0 : i32
    %c0_i32_0 = arith.constant 0 : i32
    %c0_i32_1 = arith.constant 0 : i32
    return %arg0, %c0_i32, %c0_i32_0 : i32, i32, i32
  }
  func.func @transform_1(%arg0: i32) -> (i32, i32) {
    %c0_i32 = arith.constant 0 : i32
    %c0_i32_0 = arith.constant 0 : i32
    %c0_i32_1 = arith.constant 0 : i32
    return %c0_i32, %c0_i32_0 : i32, i32
  }
  func.func @transform_2(%arg0: i32) -> (i32, i32) {
    %c0_i32 = arith.constant 0 : i32
    %c0_i32_0 = arith.constant 0 : i32
    %c0_i32_1 = arith.constant 0 : i32
    return %c0_i32, %c0_i32_0 : i32, i32
  }
  func.func @transform_3(%arg0: i32) -> (i32, i32) {
    %c0_i32 = arith.constant 0 : i32
    %c0_i32_0 = arith.constant 0 : i32
    %c0_i32_1 = arith.constant 0 : i32
    return %c0_i32, %c0_i32_0 : i32, i32
  }
  func.func @transform_4(%arg0: i32) -> (i32, i32) {
    %c0_i32 = arith.constant 0 : i32
    %c0_i32_0 = arith.constant 0 : i32
    %c0_i32_1 = arith.constant 0 : i32
    return %c0_i32, %c0_i32_0 : i32, i32
  }
  func.func @transform_5(%arg0: i32) -> (i32, i32, i32) {
    %c0_i32 = arith.constant 0 : i32
    %c0_i32_0 = arith.constant 0 : i32
    %c0_i32_1 = arith.constant 0 : i32
    return %arg0, %c0_i32, %c0_i32_0 : i32, i32, i32
  }
}

module attributes {stable_mosaic.version = 11 : i64} {
  func.func @_stat_pool_kernel(%arg0: i32, %arg1: i32, %arg2: memref<2x21x128xbf16, #tpu.memory_space<vmem>>, %arg3: memref<2x2x128xf32, #tpu.memory_space<vmem>>, %arg4: memref<2x128xf32, #tpu.memory_space<vmem>>, %arg5: memref<2x128xf32, #tpu.memory_space<vmem>>) attributes {dimension_semantics = [#tpu.dimension_semantics<parallel>, #tpu.dimension_semantics<arbitrary>], iteration_bounds = array<i64: 4, 1>, scalar_prefetch = 0 : i64, scratch_operands = 2 : i64, tpu.core_type = #tpu.core_type<tc>, window_params = [{transform_indices = @transform_0, window_bounds = array<i64: 2, 21, 128>}, {transform_indices = @transform_1, window_bounds = array<i64: 2, 2, 128>}]} {
    %c0_i32 = arith.constant 0 : i32
    %0 = arith.cmpi eq, %arg1, %c0_i32 : i32
    %1 = arith.extui %0 : i1 to i32
    %c0_i32_0 = arith.constant 0 : i32
    %2 = arith.cmpi ne, %1, %c0_i32_0 : i32
    scf.if %2 {
      %cst_16 = arith.constant 0.000000e+00 : f32
      %27 = vector.broadcast %cst_16 : f32 to vector<2x128xf32>
      %c0_17 = arith.constant 0 : index
      %c0_18 = arith.constant 0 : index
      %28 = vector.load %arg4[%c0_17, %c0_18] : memref<2x128xf32, #tpu.memory_space<vmem>>, vector<2x128xf32>
      tpu.vector_store %arg4[%c0_17, %c0_18], %27 {strides = array<i32>} : memref<2x128xf32, #tpu.memory_space<vmem>>, vector<2x128xf32>,
      %cst_19 = arith.constant 0.000000e+00 : f32
      %29 = vector.broadcast %cst_19 : f32 to vector<2x128xf32>
      %c0_20 = arith.constant 0 : index
      %c0_21 = arith.constant 0 : index
      %30 = vector.load %arg5[%c0_20, %c0_21] : memref<2x128xf32, #tpu.memory_space<vmem>>, vector<2x128xf32>
      tpu.vector_store %arg5[%c0_20, %c0_21], %29 {strides = array<i32>} : memref<2x128xf32, #tpu.memory_space<vmem>>, vector<2x128xf32>,
    } else {
    }
    %c0 = arith.constant 0 : index
    %c0_1 = arith.constant 0 : index
    %c0_2 = arith.constant 0 : index
    %3 = vector.load %arg2[%c0, %c0_1, %c0_2] : memref<2x21x128xbf16, #tpu.memory_space<vmem>>, vector<2x21x128xbf16>
    %4 = arith.extf %3 : vector<2x21x128xbf16> to vector<2x21x128xf32>
    %5 = tpu.iota {dimensions = array<i32: 1>} : vector<1x21x1xi32>
    %c21_i32 = arith.constant 21 : i32
    %6 = arith.muli %arg1, %c21_i32 : i32
    %7 = vector.broadcast %6 : i32 to vector<1x21x1xi32>
    %8 = arith.addi %7, %5 : vector<1x21x1xi32>
    %c21_i32_3 = arith.constant 21 : i32
    %9 = vector.broadcast %c21_i32_3 : i32 to vector<1x21x1xi32>
    %10 = arith.cmpi slt, %8, %9 : vector<1x21x1xi32>
    %cst = arith.constant 0.000000e+00 : f32
    %11 = vector.shape_cast %10 : vector<1x21x1xi1> to vector<1x21x1xi1>
    %12 = vector.broadcast %11 : vector<1x21x1xi1> to vector<2x21x128xi1>
    %13 = vector.broadcast %cst : f32 to vector<2x21x128xf32>
    %14 = arith.select %12, %4, %13 : vector<2x21x128xi1>, vector<2x21x128xf32>
    %c0_4 = arith.constant 0 : index
    %c0_5 = arith.constant 0 : index
    %15 = vector.load %arg4[%c0_4, %c0_5] : memref<2x128xf32, #tpu.memory_space<vmem>>, vector<2x128xf32>
    %cst_6 = arith.constant dense<0.000000e+00> : vector<2x128xf32>
    %16 = vector.multi_reduction <add>, %14, %cst_6 [1] : vector<2x21x128xf32> to vector<2x128xf32>
    %17 = arith.addf %15, %16 : vector<2x128xf32>
    %c0_7 = arith.constant 0 : index
    %c0_8 = arith.constant 0 : index
    %18 = vector.load %arg4[%c0_7, %c0_8] : memref<2x128xf32, #tpu.memory_space<vmem>>, vector<2x128xf32>
    tpu.vector_store %arg4[%c0_7, %c0_8], %17 {strides = array<i32>} : memref<2x128xf32, #tpu.memory_space<vmem>>, vector<2x128xf32>,
    %c0_9 = arith.constant 0 : index
    %c0_10 = arith.constant 0 : index
    %19 = vector.load %arg5[%c0_9, %c0_10] : memref<2x128xf32, #tpu.memory_space<vmem>>, vector<2x128xf32>
    %20 = arith.mulf %14, %14 : vector<2x21x128xf32>
    %cst_11 = arith.constant dense<0.000000e+00> : vector<2x128xf32>
    %21 = vector.multi_reduction <add>, %20, %cst_11 [1] : vector<2x21x128xf32> to vector<2x128xf32>
    %22 = arith.addf %19, %21 : vector<2x128xf32>
    %c0_12 = arith.constant 0 : index
    %c0_13 = arith.constant 0 : index
    %23 = vector.load %arg5[%c0_12, %c0_13] : memref<2x128xf32, #tpu.memory_space<vmem>>, vector<2x128xf32>
    tpu.vector_store %arg5[%c0_12, %c0_13], %22 {strides = array<i32>} : memref<2x128xf32, #tpu.memory_space<vmem>>, vector<2x128xf32>,
    %c0_i32_14 = arith.constant 0 : i32
    %24 = arith.cmpi eq, %arg1, %c0_i32_14 : i32
    %25 = arith.extui %24 : i1 to i32
    %c0_i32_15 = arith.constant 0 : i32
    %26 = arith.cmpi ne, %25, %c0_i32_15 : i32
    scf.if %26 {
      %c0_16 = arith.constant 0 : index
      %c0_17 = arith.constant 0 : index
      %27 = vector.load %arg4[%c0_16, %c0_17] : memref<2x128xf32, #tpu.memory_space<vmem>>, vector<2x128xf32>
      %cst_18 = arith.constant 2.100000e+01 : f32
      %28 = vector.broadcast %cst_18 : f32 to vector<2x128xf32>
      %29 = arith.divf %27, %28 : vector<2x128xf32>
      %c0_19 = arith.constant 0 : index
      %c0_20 = arith.constant 0 : index
      %30 = vector.load %arg5[%c0_19, %c0_20] : memref<2x128xf32, #tpu.memory_space<vmem>>, vector<2x128xf32>
      %cst_21 = arith.constant 2.100000e+01 : f32
      %31 = vector.broadcast %cst_21 : f32 to vector<2x128xf32>
      %32 = arith.mulf %31, %29 : vector<2x128xf32>
      %33 = arith.mulf %32, %29 : vector<2x128xf32>
      %34 = arith.subf %30, %33 : vector<2x128xf32>
      %cst_22 = arith.constant 0.000000e+00 : f32
      %35 = vector.broadcast %cst_22 : f32 to vector<2x128xf32>
      %36 = arith.maximumf %34, %35 : vector<2x128xf32>
      %cst_23 = arith.constant 2.100000e+01 : f32
      %cst_24 = arith.constant 1.000000e+00 : f32
      %37 = arith.subf %cst_23, %cst_24 : f32
      %38 = vector.broadcast %37 : f32 to vector<2x128xf32>
      %39 = arith.divf %36, %38 : vector<2x128xf32>
      %c0_25 = arith.constant 0 : index
      %c0_26 = arith.constant 0 : index
      %c0_27 = arith.constant 0 : index
      %40 = vector.load %arg3[%c0_25, %c0_26, %c0_27] : memref<2x2x128xf32, #tpu.memory_space<vmem>>, vector<2x1x128xf32>
      %41 = vector.shape_cast %40 : vector<2x1x128xf32> to vector<2x128xf32>
      %42 = vector.shape_cast %29 : vector<2x128xf32> to vector<2x1x128xf32>
      tpu.vector_store %arg3[%c0_25, %c0_26, %c0_27], %42 {strides = array<i32>} : memref<2x2x128xf32, #tpu.memory_space<vmem>>, vector<2x1x128xf32>,
      %43 = math.sqrt %39 : vector<2x128xf32>
      %c0_28 = arith.constant 0 : index
      %c1 = arith.constant 1 : index
      %c0_29 = arith.constant 0 : index
      %44 = vector.load %arg3[%c0_28, %c1, %c0_29] : memref<2x2x128xf32, #tpu.memory_space<vmem>>, vector<2x1x128xf32>
      %45 = vector.shape_cast %44 : vector<2x1x128xf32> to vector<2x128xf32>
      %46 = vector.shape_cast %43 : vector<2x128xf32> to vector<2x1x128xf32>
      tpu.vector_store %arg3[%c0_28, %c1, %c0_29], %46 {strides = array<i32>} : memref<2x2x128xf32, #tpu.memory_space<vmem>>, vector<2x1x128xf32>,
    } else {
    }
    return
  }
  func.func @transform_0(%arg0: i32, %arg1: i32) -> (i32, i32, i32) {
    %c0_i32 = arith.constant 0 : i32
    %c0_i32_0 = arith.constant 0 : i32
    return %c0_i32, %arg1, %arg0 : i32, i32, i32
  }
  func.func @transform_1(%arg0: i32, %arg1: i32) -> (i32, i32, i32) {
    %c0_i32 = arith.constant 0 : i32
    %c0_i32_0 = arith.constant 0 : i32
    %c0_i32_1 = arith.constant 0 : i32
    return %c0_i32, %c0_i32_0, %arg0 : i32, i32, i32
  }
}

module attributes {stable_mosaic.version = 11 : i64} {
  func.func @_conv_tap_bn_kernel(%arg0: i32, %arg1: memref<1x21x512xbf16, #tpu.memory_space<vmem>>, %arg2: memref<512x512xbf16, #tpu.memory_space<vmem>>, %arg3: memref<1x512xf32, #tpu.memory_space<vmem>>, %arg4: memref<1x512xf32, #tpu.memory_space<vmem>>, %arg5: memref<1x512xf32, #tpu.memory_space<vmem>>, %arg6: memref<1x21x512xbf16, #tpu.memory_space<vmem>>) attributes {dimension_semantics = [#tpu.dimension_semantics<parallel>], iteration_bounds = array<i64: 2>, scalar_prefetch = 0 : i64, scratch_operands = 0 : i64, tpu.core_type = #tpu.core_type<tc>, window_params = [{transform_indices = @transform_0, window_bounds = array<i64: 1, 21, 512>}, {pipeline_mode = #tpu.pipeline_mode<synchronous>, transform_indices = @transform_1, window_bounds = array<i64: 512, 512>}, {pipeline_mode = #tpu.pipeline_mode<synchronous>, transform_indices = @transform_2, window_bounds = array<i64: 1, 512>}, {pipeline_mode = #tpu.pipeline_mode<synchronous>, transform_indices = @transform_3, window_bounds = array<i64: 1, 512>}, {pipeline_mode = #tpu.pipeline_mode<synchronous>, transform_indices = @transform_4, window_bounds = array<i64: 1, 512>}, {transform_indices = @transform_5, window_bounds = array<i64: 1, 21, 512>}]} {
    %c0 = arith.constant 0 : index
    %c0_0 = arith.constant 0 : index
    %c0_1 = arith.constant 0 : index
    %0 = vector.load %arg1[%c0, %c0_0, %c0_1] : memref<1x21x512xbf16, #tpu.memory_space<vmem>>, vector<1x21x512xbf16>
    %1 = vector.shape_cast %0 : vector<1x21x512xbf16> to vector<21x512xbf16>
    %2 = vector.extract_strided_slice %1 {offsets = [0, 0], sizes = [21, 512], strides = [1, 1]} : vector<21x512xbf16> to vector<21x512xbf16>
    %c0_2 = arith.constant 0 : index
    %c0_3 = arith.constant 0 : index
    %3 = vector.load %arg2[%c0_2, %c0_3] : memref<512x512xbf16, #tpu.memory_space<vmem>>, vector<512x512xbf16>
    %cst = arith.constant dense<0.000000e+00> : vector<21x512xf32>
    %4 = tpu.matmul %2, %3, %cst {dimension_numbers = #tpu.dot_dimension_numbers<[1], [0], [0], [1], [0, 0, 1, 1], [], []>} : vector<21x512xbf16>, vector<512x512xbf16>, vector<21x512xf32> -> vector<21x512xf32>
    %c0_4 = arith.constant 0 : index
    %c0_5 = arith.constant 0 : index
    %5 = vector.load %arg3[%c0_4, %c0_5] : memref<1x512xf32, #tpu.memory_space<vmem>>, vector<1x512xf32>
    %6 = vector.broadcast %5 : vector<1x512xf32> to vector<21x512xf32>
    %7 = arith.addf %4, %6 : vector<21x512xf32>
    %cst_6 = arith.constant 0.000000e+00 : f32
    %8 = vector.broadcast %cst_6 : f32 to vector<21x512xf32>
    %9 = arith.maximumf %7, %8 : vector<21x512xf32>
    %c0_7 = arith.constant 0 : index
    %c0_8 = arith.constant 0 : index
    %10 = vector.load %arg4[%c0_7, %c0_8] : memref<1x512xf32, #tpu.memory_space<vmem>>, vector<1x512xf32>
    %11 = vector.broadcast %10 : vector<1x512xf32> to vector<21x512xf32>
    %12 = arith.mulf %9, %11 : vector<21x512xf32>
    %c0_9 = arith.constant 0 : index
    %c0_10 = arith.constant 0 : index
    %13 = vector.load %arg5[%c0_9, %c0_10] : memref<1x512xf32, #tpu.memory_space<vmem>>, vector<1x512xf32>
    %14 = vector.broadcast %13 : vector<1x512xf32> to vector<21x512xf32>
    %15 = arith.addf %12, %14 : vector<21x512xf32>
    %16 = arith.truncf %15 : vector<21x512xf32> to vector<21x512xbf16>
    %c0_11 = arith.constant 0 : index
    %c0_12 = arith.constant 0 : index
    %c0_13 = arith.constant 0 : index
    %17 = vector.load %arg6[%c0_11, %c0_12, %c0_13] : memref<1x21x512xbf16, #tpu.memory_space<vmem>>, vector<1x21x512xbf16>
    %18 = vector.shape_cast %17 : vector<1x21x512xbf16> to vector<21x512xbf16>
    %19 = vector.shape_cast %16 : vector<21x512xbf16> to vector<1x21x512xbf16>
    tpu.vector_store %arg6[%c0_11, %c0_12, %c0_13], %19 {strides = array<i32>} : memref<1x21x512xbf16, #tpu.memory_space<vmem>>, vector<1x21x512xbf16>,
    return
  }
  func.func @transform_0(%arg0: i32) -> (i32, i32, i32) {
    %c0_i32 = arith.constant 0 : i32
    %c0_i32_0 = arith.constant 0 : i32
    %c0_i32_1 = arith.constant 0 : i32
    return %arg0, %c0_i32, %c0_i32_0 : i32, i32, i32
  }
  func.func @transform_1(%arg0: i32) -> (i32, i32) {
    %c0_i32 = arith.constant 0 : i32
    %c0_i32_0 = arith.constant 0 : i32
    %c0_i32_1 = arith.constant 0 : i32
    return %c0_i32, %c0_i32_0 : i32, i32
  }
  func.func @transform_2(%arg0: i32) -> (i32, i32) {
    %c0_i32 = arith.constant 0 : i32
    %c0_i32_0 = arith.constant 0 : i32
    %c0_i32_1 = arith.constant 0 : i32
    return %c0_i32, %c0_i32_0 : i32, i32
  }
  func.func @transform_3(%arg0: i32) -> (i32, i32) {
    %c0_i32 = arith.constant 0 : i32
    %c0_i32_0 = arith.constant 0 : i32
    %c0_i32_1 = arith.constant 0 : i32
    return %c0_i32, %c0_i32_0 : i32, i32
  }
  func.func @transform_4(%arg0: i32) -> (i32, i32) {
    %c0_i32 = arith.constant 0 : i32
    %c0_i32_0 = arith.constant 0 : i32
    %c0_i32_1 = arith.constant 0 : i32
    return %c0_i32, %c0_i32_0 : i32, i32
  }
  func.func @transform_5(%arg0: i32) -> (i32, i32, i32) {
    %c0_i32 = arith.constant 0 : i32
    %c0_i32_0 = arith.constant 0 : i32
    %c0_i32_1 = arith.constant 0 : i32
    return %arg0, %c0_i32, %c0_i32_0 : i32, i32, i32
  }
}

module attributes {stable_mosaic.version = 11 : i64} {
  func.func @_xvec_tail_kernel(%arg0: i32, %arg1: memref<2x1024xf32, #tpu.memory_space<vmem>>, %arg2: memref<1024x512xbf16, #tpu.memory_space<vmem>>, %arg3: memref<1x512xf32, #tpu.memory_space<vmem>>, %arg4: memref<512x512xbf16, #tpu.memory_space<vmem>>, %arg5: memref<1x512xf32, #tpu.memory_space<vmem>>, %arg6: memref<512x128xbf16, #tpu.memory_space<vmem>>, %arg7: memref<1x128xf32, #tpu.memory_space<vmem>>, %arg8: memref<2x128xf32, #tpu.memory_space<vmem>>, %arg9: memref<2x128xf32, #tpu.memory_space<vmem>>, %arg10: memref<2x512xf32, #tpu.memory_space<vmem>>) attributes {dimension_semantics = [#tpu.dimension_semantics<arbitrary>], iteration_bounds = array<i64: 1>, scalar_prefetch = 0 : i64, scratch_operands = 0 : i64, tpu.core_type = #tpu.core_type<tc>, window_params = [{pipeline_mode = #tpu.pipeline_mode<synchronous>, transform_indices = @transform_0, window_bounds = array<i64: 2, 1024>}, {pipeline_mode = #tpu.pipeline_mode<synchronous>, transform_indices = @transform_1, window_bounds = array<i64: 1024, 512>}, {pipeline_mode = #tpu.pipeline_mode<synchronous>, transform_indices = @transform_2, window_bounds = array<i64: 1, 512>}, {pipeline_mode = #tpu.pipeline_mode<synchronous>, transform_indices = @transform_3, window_bounds = array<i64: 512, 512>}, {pipeline_mode = #tpu.pipeline_mode<synchronous>, transform_indices = @transform_4, window_bounds = array<i64: 1, 512>}, {pipeline_mode = #tpu.pipeline_mode<synchronous>, transform_indices = @transform_5, window_bounds = array<i64: 512, 128>}, {pipeline_mode = #tpu.pipeline_mode<synchronous>, transform_indices = @transform_6, window_bounds = array<i64: 1, 128>}, {pipeline_mode = #tpu.pipeline_mode<synchronous>, transform_indices = @transform_7, window_bounds = array<i64: 2, 128>}, {pipeline_mode = #tpu.pipeline_mode<synchronous>, transform_indices = @transform_8, window_bounds = array<i64: 2, 128>}, {pipeline_mode = #tpu.pipeline_mode<synchronous>, transform_indices = @transform_9, window_bounds = array<i64: 2, 512>}]} {
    %c0 = arith.constant 0 : index
    %c0_0 = arith.constant 0 : index
    %0 = vector.load %arg1[%c0, %c0_0] : memref<2x1024xf32, #tpu.memory_space<vmem>>, vector<2x1024xf32>
    %1 = arith.truncf %0 : vector<2x1024xf32> to vector<2x1024xbf16>
    %c0_1 = arith.constant 0 : index
    %c0_2 = arith.constant 0 : index
    %2 = vector.load %arg2[%c0_1, %c0_2] : memref<1024x512xbf16, #tpu.memory_space<vmem>>, vector<1024x512xbf16>
    %cst = arith.constant dense<0.000000e+00> : vector<2x512xf32>
    %3 = tpu.matmul %1, %2, %cst {dimension_numbers = #tpu.dot_dimension_numbers<[1], [0], [0], [1], [0, 0, 1, 1], [], []>} : vector<2x1024xbf16>, vector<1024x512xbf16>, vector<2x512xf32> -> vector<2x512xf32>
    %c0_3 = arith.constant 0 : index
    %c0_4 = arith.constant 0 : index
    %4 = vector.load %arg3[%c0_3, %c0_4] : memref<1x512xf32, #tpu.memory_space<vmem>>, vector<1x512xf32>
    %5 = vector.broadcast %4 : vector<1x512xf32> to vector<2x512xf32>
    %6 = arith.addf %3, %5 : vector<2x512xf32>
    %7 = arith.truncf %6 : vector<2x512xf32> to vector<2x512xbf16>
    %c0_5 = arith.constant 0 : index
    %c0_6 = arith.constant 0 : index
    %8 = vector.load %arg4[%c0_5, %c0_6] : memref<512x512xbf16, #tpu.memory_space<vmem>>, vector<512x512xbf16>
    %cst_7 = arith.constant dense<0.000000e+00> : vector<2x512xf32>
    %9 = tpu.matmul %7, %8, %cst_7 {dimension_numbers = #tpu.dot_dimension_numbers<[1], [0], [0], [1], [0, 0, 1, 1], [], []>} : vector<2x512xbf16>, vector<512x512xbf16>, vector<2x512xf32> -> vector<2x512xf32>
    %c0_8 = arith.constant 0 : index
    %c0_9 = arith.constant 0 : index
    %10 = vector.load %arg5[%c0_8, %c0_9] : memref<1x512xf32, #tpu.memory_space<vmem>>, vector<1x512xf32>
    %11 = vector.broadcast %10 : vector<1x512xf32> to vector<2x512xf32>
    %12 = arith.addf %9, %11 : vector<2x512xf32>
    %13 = arith.truncf %12 : vector<2x512xf32> to vector<2x512xbf16>
    %c0_10 = arith.constant 0 : index
    %c0_11 = arith.constant 0 : index
    %14 = vector.load %arg6[%c0_10, %c0_11] : memref<512x128xbf16, #tpu.memory_space<vmem>>, vector<512x128xbf16>
    %cst_12 = arith.constant dense<0.000000e+00> : vector<2x128xf32>
    %15 = tpu.matmul %13, %14, %cst_12 {dimension_numbers = #tpu.dot_dimension_numbers<[1], [0], [0], [1], [0, 0, 1, 1], [], []>} : vector<2x512xbf16>, vector<512x128xbf16>, vector<2x128xf32> -> vector<2x128xf32>
    %c0_13 = arith.constant 0 : index
    %c0_14 = arith.constant 0 : index
    %16 = vector.load %arg7[%c0_13, %c0_14] : memref<1x128xf32, #tpu.memory_space<vmem>>, vector<1x128xf32>
    %17 = vector.broadcast %16 : vector<1x128xf32> to vector<2x128xf32>
    %18 = arith.addf %15, %17 : vector<2x128xf32>
    %c0_15 = arith.constant 0 : index
    %c0_16 = arith.constant 0 : index
    %19 = vector.load %arg10[%c0_15, %c0_16] : memref<2x512xf32, #tpu.memory_space<vmem>>, vector<2x512xf32>
    tpu.vector_store %arg10[%c0_15, %c0_16], %12 {strides = array<i32>} : memref<2x512xf32, #tpu.memory_space<vmem>>, vector<2x512xf32>,
    %c0_17 = arith.constant 0 : index
    %c0_18 = arith.constant 0 : index
    %20 = vector.load %arg8[%c0_17, %c0_18] : memref<2x128xf32, #tpu.memory_space<vmem>>, vector<2x128xf32>
    tpu.vector_store %arg8[%c0_17, %c0_18], %18 {strides = array<i32>} : memref<2x128xf32, #tpu.memory_space<vmem>>, vector<2x128xf32>,
    %21 = tpu.iota {dimensions = array<i32: 1>} : vector<2x128xi32>
    %c4_i32 = arith.constant 4 : i32
    %22 = vector.broadcast %c4_i32 : i32 to vector<2x128xi32>
    %23 = arith.cmpi slt, %21, %22 : vector<2x128xi32>
    %cst_19 = arith.constant -1.000000e+30 : f32
    %24 = vector.broadcast %cst_19 : f32 to vector<2x128xf32>
    %25 = arith.select %23, %18, %24 : vector<2x128xi1>, vector<2x128xf32>
    %cst_20 = arith.constant dense<0xFF800000> : vector<2xf32>
    %26 = vector.multi_reduction <maximumf>, %25, %cst_20 [1] : vector<2x128xf32> to vector<2xf32>
    %27 = vector.shape_cast %26 : vector<2xf32> to vector<2x1xf32>
    %28 = vector.broadcast %27 : vector<2x1xf32> to vector<2x128xf32>
    %29 = arith.subf %25, %28 : vector<2x128xf32>
    %30 = math.exp %29 : vector<2x128xf32>
    %cst_21 = arith.constant dense<0.000000e+00> : vector<2xf32>
    %31 = vector.multi_reduction <add>, %30, %cst_21 [1] : vector<2x128xf32> to vector<2xf32>
    %32 = vector.shape_cast %31 : vector<2xf32> to vector<2x1xf32>
    %33 = vector.broadcast %32 : vector<2x1xf32> to vector<2x128xf32>
    %34 = arith.divf %30, %33 : vector<2x128xf32>
    %c0_22 = arith.constant 0 : index
    %c0_23 = arith.constant 0 : index
    %35 = vector.load %arg9[%c0_22, %c0_23] : memref<2x128xf32, #tpu.memory_space<vmem>>, vector<2x128xf32>
    tpu.vector_store %arg9[%c0_22, %c0_23], %34 {strides = array<i32>} : memref<2x128xf32, #tpu.memory_space<vmem>>, vector<2x128xf32>,
    return
  }
  func.func @transform_0(%arg0: i32) -> (i32, i32) {
    %c0_i32 = arith.constant 0 : i32
    %c0_i32_0 = arith.constant 0 : i32
    %c0_i32_1 = arith.constant 0 : i32
    return %c0_i32, %c0_i32_0 : i32, i32
  }
  func.func @transform_1(%arg0: i32) -> (i32, i32) {
    %c0_i32 = arith.constant 0 : i32
    %c0_i32_0 = arith.constant 0 : i32
    %c0_i32_1 = arith.constant 0 : i32
    return %c0_i32, %c0_i32_0 : i32, i32
  }
  func.func @transform_2(%arg0: i32) -> (i32, i32) {
    %c0_i32 = arith.constant 0 : i32
    %c0_i32_0 = arith.constant 0 : i32
    %c0_i32_1 = arith.constant 0 : i32
    return %c0_i32, %c0_i32_0 : i32, i32
  }
  func.func @transform_3(%arg0: i32) -> (i32, i32) {
    %c0_i32 = arith.constant 0 : i32
    %c0_i32_0 = arith.constant 0 : i32
    %c0_i32_1 = arith.constant 0 : i32
    return %c0_i32, %c0_i32_0 : i32, i32
  }
  func.func @transform_4(%arg0: i32) -> (i32, i32) {
    %c0_i32 = arith.constant 0 : i32
    %c0_i32_0 = arith.constant 0 : i32
    %c0_i32_1 = arith.constant 0 : i32
    return %c0_i32, %c0_i32_0 : i32, i32
  }
  func.func @transform_5(%arg0: i32) -> (i32, i32) {
    %c0_i32 = arith.constant 0 : i32
    %c0_i32_0 = arith.constant 0 : i32
    %c0_i32_1 = arith.constant 0 : i32
    return %c0_i32, %c0_i32_0 : i32, i32
  }
  func.func @transform_6(%arg0: i32) -> (i32, i32) {
    %c0_i32 = arith.constant 0 : i32
    %c0_i32_0 = arith.constant 0 : i32
    %c0_i32_1 = arith.constant 0 : i32
    return %c0_i32, %c0_i32_0 : i32, i32
  }
  func.func @transform_7(%arg0: i32) -> (i32, i32) {
    %c0_i32 = arith.constant 0 : i32
    %c0_i32_0 = arith.constant 0 : i32
    %c0_i32_1 = arith.constant 0 : i32
    return %c0_i32, %c0_i32_0 : i32, i32
  }
  func.func @transform_8(%arg0: i32) -> (i32, i32) {
    %c0_i32 = arith.constant 0 : i32
    %c0_i32_0 = arith.constant 0 : i32
    %c0_i32_1 = arith.constant 0 : i32
    return %c0_i32, %c0_i32_0 : i32, i32
  }
  func.func @transform_9(%arg0: i32) -> (i32, i32) {
    %c0_i32 = arith.constant 0 : i32
    %c0_i32_0 = arith.constant 0 : i32
    %c0_i32_1 = arith.constant 0 : i32
    return %c0_i32, %c0_i32_0 : i32, i32
  }
}

module attributes {stable_mosaic.version = 11 : i64} {
  func.func @_conv_tap_kernel(%arg0: i32, %arg1: memref<1x10x544xf32, #tpu.memory_space<vmem>>, %arg2: memref<1632x128xbf16, #tpu.memory_space<vmem>>, %arg3: memref<1x128xf32, #tpu.memory_space<vmem>>, %arg4: memref<1x8x128xf32, #tpu.memory_space<vmem>>) attributes {dimension_semantics = [#tpu.dimension_semantics<parallel>], iteration_bounds = array<i64: 2>, scalar_prefetch = 0 : i64, scratch_operands = 0 : i64, tpu.core_type = #tpu.core_type<tc>, window_params = [{transform_indices = @transform_0, window_bounds = array<i64: 1, 10, 544>}, {pipeline_mode = #tpu.pipeline_mode<synchronous>, transform_indices = @transform_1, window_bounds = array<i64: 1632, 128>}, {pipeline_mode = #tpu.pipeline_mode<synchronous>, transform_indices = @transform_2, window_bounds = array<i64: 1, 128>}, {transform_indices = @transform_3, window_bounds = array<i64: 1, 8, 128>}]} {
    %c0 = arith.constant 0 : index
    %c0_0 = arith.constant 0 : index
    %c0_1 = arith.constant 0 : index
    %0 = vector.load %arg1[%c0, %c0_0, %c0_1] : memref<1x10x544xf32, #tpu.memory_space<vmem>>, vector<1x10x544xf32>
    %1 = vector.shape_cast %0 : vector<1x10x544xf32> to vector<10x544xf32>
    %2 = arith.truncf %1 : vector<10x544xf32> to vector<10x544xbf16>
    %3 = vector.extract_strided_slice %2 {offsets = [0, 0], sizes = [8, 544], strides = [1, 1]} : vector<10x544xbf16> to vector<8x544xbf16>
    %c0_2 = arith.constant 0 : index
    %c0_3 = arith.constant 0 : index
    %4 = vector.load %arg2[%c0_2, %c0_3] : memref<1632x128xbf16, #tpu.memory_space<vmem>>, vector<544x128xbf16>
    %cst = arith.constant dense<0.000000e+00> : vector<8x128xf32>
    %5 = tpu.matmul %3, %4, %cst {dimension_numbers = #tpu.dot_dimension_numbers<[1], [0], [0], [1], [0, 0, 1, 1], [], []>} : vector<8x544xbf16>, vector<544x128xbf16>, vector<8x128xf32> -> vector<8x128xf32>
    %6 = vector.extract_strided_slice %2 {offsets = [1, 0], sizes = [8, 544], strides = [1, 1]} : vector<10x544xbf16> to vector<8x544xbf16>
    %c544 = arith.constant 544 : index
    %c0_4 = arith.constant 0 : index
    %7 = vector.load %arg2[%c544, %c0_4] : memref<1632x128xbf16, #tpu.memory_space<vmem>>, vector<544x128xbf16>
    %cst_5 = arith.constant dense<0.000000e+00> : vector<8x128xf32>
    %8 = tpu.matmul %6, %7, %cst_5 {dimension_numbers = #tpu.dot_dimension_numbers<[1], [0], [0], [1], [0, 0, 1, 1], [], []>} : vector<8x544xbf16>, vector<544x128xbf16>, vector<8x128xf32> -> vector<8x128xf32>
    %9 = arith.addf %5, %8 : vector<8x128xf32>
    %10 = vector.extract_strided_slice %2 {offsets = [2, 0], sizes = [8, 544], strides = [1, 1]} : vector<10x544xbf16> to vector<8x544xbf16>
    %c1088 = arith.constant 1088 : index
    %c0_6 = arith.constant 0 : index
    %11 = vector.load %arg2[%c1088, %c0_6] : memref<1632x128xbf16, #tpu.memory_space<vmem>>, vector<544x128xbf16>
    %cst_7 = arith.constant dense<0.000000e+00> : vector<8x128xf32>
    %12 = tpu.matmul %10, %11, %cst_7 {dimension_numbers = #tpu.dot_dimension_numbers<[1], [0], [0], [1], [0, 0, 1, 1], [], []>} : vector<8x544xbf16>, vector<544x128xbf16>, vector<8x128xf32> -> vector<8x128xf32>
    %13 = arith.addf %9, %12 : vector<8x128xf32>
    %c0_8 = arith.constant 0 : index
    %c0_9 = arith.constant 0 : index
    %14 = vector.load %arg3[%c0_8, %c0_9] : memref<1x128xf32, #tpu.memory_space<vmem>>, vector<1x128xf32>
    %15 = vector.broadcast %14 : vector<1x128xf32> to vector<8x128xf32>
    %16 = arith.addf %13, %15 : vector<8x128xf32>
    %cst_10 = arith.constant 0.000000e+00 : f32
    %17 = vector.broadcast %cst_10 : f32 to vector<8x128xf32>
    %18 = arith.maximumf %16, %17 : vector<8x128xf32>
    %c0_11 = arith.constant 0 : index
    %c0_12 = arith.constant 0 : index
    %c0_13 = arith.constant 0 : index
    %19 = vector.load %arg4[%c0_11, %c0_12, %c0_13] : memref<1x8x128xf32, #tpu.memory_space<vmem>>, vector<1x8x128xf32>
    %20 = vector.shape_cast %19 : vector<1x8x128xf32> to vector<8x128xf32>
    %21 = vector.shape_cast %18 : vector<8x128xf32> to vector<1x8x128xf32>
    tpu.vector_store %arg4[%c0_11, %c0_12, %c0_13], %21 {strides = array<i32>} : memref<1x8x128xf32, #tpu.memory_space<vmem>>, vector<1x8x128xf32>,
    return
  }
  func.func @transform_0(%arg0: i32) -> (i32, i32, i32) {
    %c0_i32 = arith.constant 0 : i32
    %c0_i32_0 = arith.constant 0 : i32
    %c0_i32_1 = arith.constant 0 : i32
    return %arg0, %c0_i32, %c0_i32_0 : i32, i32, i32
  }
  func.func @transform_1(%arg0: i32) -> (i32, i32) {
    %c0_i32 = arith.constant 0 : i32
    %c0_i32_0 = arith.constant 0 : i32
    %c0_i32_1 = arith.constant 0 : i32
    return %c0_i32, %c0_i32_0 : i32, i32
  }
  func.func @transform_2(%arg0: i32) -> (i32, i32) {
    %c0_i32 = arith.constant 0 : i32
    %c0_i32_0 = arith.constant 0 : i32
    %c0_i32_1 = arith.constant 0 : i32
    return %c0_i32, %c0_i32_0 : i32, i32
  }
  func.func @transform_3(%arg0: i32) -> (i32, i32, i32) {
    %c0_i32 = arith.constant 0 : i32
    %c0_i32_0 = arith.constant 0 : i32
    %c0_i32_1 = arith.constant 0 : i32
    return %arg0, %c0_i32, %c0_i32_0 : i32, i32, i32
  }
}

module attributes {stable_mosaic.version = 11 : i64} {
  func.func @_conv_tap_kernel(%arg0: i32, %arg1: memref<1x10x32xf32, #tpu.memory_space<vmem>>, %arg2: memref<96x128xbf16, #tpu.memory_space<vmem>>, %arg3: memref<1x128xf32, #tpu.memory_space<vmem>>, %arg4: memref<1x8x128xf32, #tpu.memory_space<vmem>>) attributes {dimension_semantics = [#tpu.dimension_semantics<parallel>], iteration_bounds = array<i64: 2>, scalar_prefetch = 0 : i64, scratch_operands = 0 : i64, tpu.core_type = #tpu.core_type<tc>, window_params = [{transform_indices = @transform_0, window_bounds = array<i64: 1, 10, 32>}, {pipeline_mode = #tpu.pipeline_mode<synchronous>, transform_indices = @transform_1, window_bounds = array<i64: 96, 128>}, {pipeline_mode = #tpu.pipeline_mode<synchronous>, transform_indices = @transform_2, window_bounds = array<i64: 1, 128>}, {transform_indices = @transform_3, window_bounds = array<i64: 1, 8, 128>}]} {
    %c0 = arith.constant 0 : index
    %c0_0 = arith.constant 0 : index
    %c0_1 = arith.constant 0 : index
    %0 = vector.load %arg1[%c0, %c0_0, %c0_1] : memref<1x10x32xf32, #tpu.memory_space<vmem>>, vector<1x10x32xf32>
    %1 = vector.shape_cast %0 : vector<1x10x32xf32> to vector<10x32xf32>
    %2 = arith.truncf %1 : vector<10x32xf32> to vector<10x32xbf16>
    %3 = vector.extract_strided_slice %2 {offsets = [0, 0], sizes = [8, 32], strides = [1, 1]} : vector<10x32xbf16> to vector<8x32xbf16>
    %c0_2 = arith.constant 0 : index
    %c0_3 = arith.constant 0 : index
    %4 = vector.load %arg2[%c0_2, %c0_3] : memref<96x128xbf16, #tpu.memory_space<vmem>>, vector<32x128xbf16>
    %cst = arith.constant dense<0.000000e+00> : vector<8x128xf32>
    %5 = tpu.matmul %3, %4, %cst {dimension_numbers = #tpu.dot_dimension_numbers<[1], [0], [0], [1], [0, 0, 1, 1], [], []>} : vector<8x32xbf16>, vector<32x128xbf16>, vector<8x128xf32> -> vector<8x128xf32>
    %6 = vector.extract_strided_slice %2 {offsets = [1, 0], sizes = [8, 32], strides = [1, 1]} : vector<10x32xbf16> to vector<8x32xbf16>
    %c32 = arith.constant 32 : index
    %c0_4 = arith.constant 0 : index
    %7 = vector.load %arg2[%c32, %c0_4] : memref<96x128xbf16, #tpu.memory_space<vmem>>, vector<32x128xbf16>
    %cst_5 = arith.constant dense<0.000000e+00> : vector<8x128xf32>
    %8 = tpu.matmul %6, %7, %cst_5 {dimension_numbers = #tpu.dot_dimension_numbers<[1], [0], [0], [1], [0, 0, 1, 1], [], []>} : vector<8x32xbf16>, vector<32x128xbf16>, vector<8x128xf32> -> vector<8x128xf32>
    %9 = arith.addf %5, %8 : vector<8x128xf32>
    %10 = vector.extract_strided_slice %2 {offsets = [2, 0], sizes = [8, 32], strides = [1, 1]} : vector<10x32xbf16> to vector<8x32xbf16>
    %c64 = arith.constant 64 : index
    %c0_6 = arith.constant 0 : index
    %11 = vector.load %arg2[%c64, %c0_6] : memref<96x128xbf16, #tpu.memory_space<vmem>>, vector<32x128xbf16>
    %cst_7 = arith.constant dense<0.000000e+00> : vector<8x128xf32>
    %12 = tpu.matmul %10, %11, %cst_7 {dimension_numbers = #tpu.dot_dimension_numbers<[1], [0], [0], [1], [0, 0, 1, 1], [], []>} : vector<8x32xbf16>, vector<32x128xbf16>, vector<8x128xf32> -> vector<8x128xf32>
    %13 = arith.addf %9, %12 : vector<8x128xf32>
    %c0_8 = arith.constant 0 : index
    %c0_9 = arith.constant 0 : index
    %14 = vector.load %arg3[%c0_8, %c0_9] : memref<1x128xf32, #tpu.memory_space<vmem>>, vector<1x128xf32>
    %15 = vector.broadcast %14 : vector<1x128xf32> to vector<8x128xf32>
    %16 = arith.addf %13, %15 : vector<8x128xf32>
    %cst_10 = arith.constant 0.000000e+00 : f32
    %17 = vector.broadcast %cst_10 : f32 to vector<8x128xf32>
    %18 = arith.maximumf %16, %17 : vector<8x128xf32>
    %c0_11 = arith.constant 0 : index
    %c0_12 = arith.constant 0 : index
    %c0_13 = arith.constant 0 : index
    %19 = vector.load %arg4[%c0_11, %c0_12, %c0_13] : memref<1x8x128xf32, #tpu.memory_space<vmem>>, vector<1x8x128xf32>
    %20 = vector.shape_cast %19 : vector<1x8x128xf32> to vector<8x128xf32>
    %21 = vector.shape_cast %18 : vector<8x128xf32> to vector<1x8x128xf32>
    tpu.vector_store %arg4[%c0_11, %c0_12, %c0_13], %21 {strides = array<i32>} : memref<1x8x128xf32, #tpu.memory_space<vmem>>, vector<1x8x128xf32>,
    return
  }
  func.func @transform_0(%arg0: i32) -> (i32, i32, i32) {
    %c0_i32 = arith.constant 0 : i32
    %c0_i32_0 = arith.constant 0 : i32
    %c0_i32_1 = arith.constant 0 : i32
    return %arg0, %c0_i32, %c0_i32_0 : i32, i32, i32
  }
  func.func @transform_1(%arg0: i32) -> (i32, i32) {
    %c0_i32 = arith.constant 0 : i32
    %c0_i32_0 = arith.constant 0 : i32
    %c0_i32_1 = arith.constant 0 : i32
    return %c0_i32, %c0_i32_0 : i32, i32
  }
  func.func @transform_2(%arg0: i32) -> (i32, i32) {
    %c0_i32 = arith.constant 0 : i32
    %c0_i32_0 = arith.constant 0 : i32
    %c0_i32_1 = arith.constant 0 : i32
    return %c0_i32, %c0_i32_0 : i32, i32
  }
  func.func @transform_3(%arg0: i32) -> (i32, i32, i32) {
    %c0_i32 = arith.constant 0 : i32
    %c0_i32_0 = arith.constant 0 : i32
    %c0_i32_1 = arith.constant 0 : i32
    return %arg0, %c0_i32, %c0_i32_0 : i32, i32, i32
  }
}

module attributes {stable_mosaic.version = 11 : i64} {
  func.func @_attn_project_kernel(%arg0: i32, %arg1: i32, %arg2: memref<1x128x8xbf16, #tpu.memory_space<vmem>>, %arg3: memref<1x8x128xbf16, #tpu.memory_space<vmem>>, %arg4: memref<1x128x128xf32, #tpu.memory_space<vmem>>) attributes {dimension_semantics = [#tpu.dimension_semantics<parallel>, #tpu.dimension_semantics<parallel>], iteration_bounds = array<i64: 2, 1>, scalar_prefetch = 0 : i64, scratch_operands = 0 : i64, tpu.core_type = #tpu.core_type<tc>, window_params = [{transform_indices = @transform_0, window_bounds = array<i64: 1, 128, 8>}, {transform_indices = @transform_1, window_bounds = array<i64: 1, 8, 128>}, {transform_indices = @transform_2, window_bounds = array<i64: 1, 128, 128>}]} {
    %c0 = arith.constant 0 : index
    %c0_0 = arith.constant 0 : index
    %c0_1 = arith.constant 0 : index
    %0 = vector.load %arg2[%c0, %c0_0, %c0_1] : memref<1x128x8xbf16, #tpu.memory_space<vmem>>, vector<1x128x8xbf16>
    %1 = vector.shape_cast %0 : vector<1x128x8xbf16> to vector<128x8xbf16>
    %c0_2 = arith.constant 0 : index
    %c0_3 = arith.constant 0 : index
    %c0_4 = arith.constant 0 : index
    %2 = vector.load %arg3[%c0_2, %c0_3, %c0_4] : memref<1x8x128xbf16, #tpu.memory_space<vmem>>, vector<1x8x128xbf16>
    %3 = vector.shape_cast %2 : vector<1x8x128xbf16> to vector<8x128xbf16>
    %cst = arith.constant dense<0.000000e+00> : vector<128x128xf32>
    %4 = tpu.matmul %1, %3, %cst {dimension_numbers = #tpu.dot_dimension_numbers<[1], [0], [0], [1], [0, 0, 1, 1], [], []>} : vector<128x8xbf16>, vector<8x128xbf16>, vector<128x128xf32> -> vector<128x128xf32>
    %c0_5 = arith.constant 0 : index
    %c0_6 = arith.constant 0 : index
    %c0_7 = arith.constant 0 : index
    %5 = vector.load %arg4[%c0_5, %c0_6, %c0_7] : memref<1x128x128xf32, #tpu.memory_space<vmem>>, vector<1x128x128xf32>
    %6 = vector.shape_cast %5 : vector<1x128x128xf32> to vector<128x128xf32>
    %7 = vector.shape_cast %4 : vector<128x128xf32> to vector<1x128x128xf32>
    tpu.vector_store %arg4[%c0_5, %c0_6, %c0_7], %7 {strides = array<i32>} : memref<1x128x128xf32, #tpu.memory_space<vmem>>, vector<1x128x128xf32>,
    return
  }
  func.func @transform_0(%arg0: i32, %arg1: i32) -> (i32, i32, i32) {
    %c0_i32 = arith.constant 0 : i32
    %c0_i32_0 = arith.constant 0 : i32
    return %arg0, %arg1, %c0_i32 : i32, i32, i32
  }
  func.func @transform_1(%arg0: i32, %arg1: i32) -> (i32, i32, i32) {
    %c0_i32 = arith.constant 0 : i32
    %c0_i32_0 = arith.constant 0 : i32
    %c0_i32_1 = arith.constant 0 : i32
    return %arg0, %c0_i32, %c0_i32_0 : i32, i32, i32
  }
  func.func @transform_2(%arg0: i32, %arg1: i32) -> (i32, i32, i32) {
    %c0_i32 = arith.constant 0 : i32
    %c0_i32_0 = arith.constant 0 : i32
    return %arg0, %arg1, %c0_i32 : i32, i32, i32
  }
}

module attributes {stable_mosaic.version = 11 : i64} {
  func.func @_asr_head_kernel(%arg0: i32, %arg1: memref<64x16xf32, #tpu.memory_space<vmem>>, %arg2: memref<16x128xbf16, #tpu.memory_space<vmem>>, %arg3: memref<1x128xf32, #tpu.memory_space<vmem>>, %arg4: memref<64x128xf32, #tpu.memory_space<vmem>>) attributes {dimension_semantics = [#tpu.dimension_semantics<parallel>], iteration_bounds = array<i64: 1>, scalar_prefetch = 0 : i64, scratch_operands = 0 : i64, tpu.core_type = #tpu.core_type<tc>, window_params = [{transform_indices = @transform_0, window_bounds = array<i64: 64, 16>}, {pipeline_mode = #tpu.pipeline_mode<synchronous>, transform_indices = @transform_1, window_bounds = array<i64: 16, 128>}, {pipeline_mode = #tpu.pipeline_mode<synchronous>, transform_indices = @transform_2, window_bounds = array<i64: 1, 128>}, {transform_indices = @transform_3, window_bounds = array<i64: 64, 128>}]} {
    %c0 = arith.constant 0 : index
    %c0_0 = arith.constant 0 : index
    %0 = vector.load %arg1[%c0, %c0_0] : memref<64x16xf32, #tpu.memory_space<vmem>>, vector<64x16xf32>
    %1 = arith.truncf %0 : vector<64x16xf32> to vector<64x16xbf16>
    %c0_1 = arith.constant 0 : index
    %c0_2 = arith.constant 0 : index
    %2 = vector.load %arg2[%c0_1, %c0_2] : memref<16x128xbf16, #tpu.memory_space<vmem>>, vector<16x128xbf16>
    %cst = arith.constant dense<0.000000e+00> : vector<64x128xf32>
    %3 = tpu.matmul %1, %2, %cst {dimension_numbers = #tpu.dot_dimension_numbers<[1], [0], [0], [1], [0, 0, 1, 1], [], []>} : vector<64x16xbf16>, vector<16x128xbf16>, vector<64x128xf32> -> vector<64x128xf32>
    %c0_3 = arith.constant 0 : index
    %c0_4 = arith.constant 0 : index
    %4 = vector.load %arg3[%c0_3, %c0_4] : memref<1x128xf32, #tpu.memory_space<vmem>>, vector<1x128xf32>
    %5 = vector.broadcast %4 : vector<1x128xf32> to vector<64x128xf32>
    %6 = arith.addf %3, %5 : vector<64x128xf32>
    %7 = tpu.iota {dimensions = array<i32: 1>} : vector<64x128xi32>
    %c11_i32 = arith.constant 11 : i32
    %8 = vector.broadcast %c11_i32 : i32 to vector<64x128xi32>
    %9 = arith.cmpi slt, %7, %8 : vector<64x128xi32>
    %cst_5 = arith.constant -1.000000e+30 : f32
    %10 = vector.broadcast %cst_5 : f32 to vector<64x128xf32>
    %11 = arith.select %9, %6, %10 : vector<64x128xi1>, vector<64x128xf32>
    %cst_6 = arith.constant dense<0xFF800000> : vector<64xf32>
    %12 = vector.multi_reduction <maximumf>, %11, %cst_6 [1] : vector<64x128xf32> to vector<64xf32>
    %13 = vector.shape_cast %12 : vector<64xf32> to vector<64x1xf32>
    %14 = vector.broadcast %13 : vector<64x1xf32> to vector<64x128xf32>
    %15 = arith.subf %11, %14 : vector<64x128xf32>
    %16 = math.exp %15 : vector<64x128xf32>
    %cst_7 = arith.constant dense<0.000000e+00> : vector<64xf32>
    %17 = vector.multi_reduction <add>, %16, %cst_7 [1] : vector<64x128xf32> to vector<64xf32>
    %18 = vector.shape_cast %17 : vector<64xf32> to vector<64x1xf32>
    %19 = math.log %18 : vector<64x1xf32>
    %20 = vector.broadcast %19 : vector<64x1xf32> to vector<64x128xf32>
    %21 = arith.subf %15, %20 : vector<64x128xf32>
    %c0_8 = arith.constant 0 : index
    %c0_9 = arith.constant 0 : index
    %22 = vector.load %arg4[%c0_8, %c0_9] : memref<64x128xf32, #tpu.memory_space<vmem>>, vector<64x128xf32>
    tpu.vector_store %arg4[%c0_8, %c0_9], %21 {strides = array<i32>} : memref<64x128xf32, #tpu.memory_space<vmem>>, vector<64x128xf32>,
    return
  }
  func.func @transform_0(%arg0: i32) -> (i32, i32) {
    %c0_i32 = arith.constant 0 : i32
    %c0_i32_0 = arith.constant 0 : i32
    return %arg0, %c0_i32 : i32, i32
  }
  func.func @transform_1(%arg0: i32) -> (i32, i32) {
    %c0_i32 = arith.constant 0 : i32
    %c0_i32_0 = arith.constant 0 : i32
    %c0_i32_1 = arith.constant 0 : i32
    return %c0_i32, %c0_i32_0 : i32, i32
  }
  func.func @transform_2(%arg0: i32) -> (i32, i32) {
    %c0_i32 = arith.constant 0 : i32
    %c0_i32_0 = arith.constant 0 : i32
    %c0_i32_1 = arith.constant 0 : i32
    return %c0_i32, %c0_i32_0 : i32, i32
  }
  func.func @transform_3(%arg0: i32) -> (i32, i32) {
    %c0_i32 = arith.constant 0 : i32
    %c0_i32_0 = arith.constant 0 : i32
    return %arg0, %c0_i32 : i32, i32
  }
}

module attributes {stable_mosaic.version = 11 : i64} {
  func.func @_linear_kernel(%arg0: i32, %arg1: memref<16x32xf32, #tpu.memory_space<vmem>>, %arg2: memref<32x128xbf16, #tpu.memory_space<vmem>>, %arg3: memref<1x128xf32, #tpu.memory_space<vmem>>, %arg4: memref<16x128xf32, #tpu.memory_space<vmem>>) attributes {dimension_semantics = [#tpu.dimension_semantics<parallel>], iteration_bounds = array<i64: 1>, scalar_prefetch = 0 : i64, scratch_operands = 0 : i64, tpu.core_type = #tpu.core_type<tc>, window_params = [{transform_indices = @transform_0, window_bounds = array<i64: 16, 32>}, {pipeline_mode = #tpu.pipeline_mode<synchronous>, transform_indices = @transform_1, window_bounds = array<i64: 32, 128>}, {pipeline_mode = #tpu.pipeline_mode<synchronous>, transform_indices = @transform_2, window_bounds = array<i64: 1, 128>}, {transform_indices = @transform_3, window_bounds = array<i64: 16, 128>}]} {
    %c0 = arith.constant 0 : index
    %c0_0 = arith.constant 0 : index
    %0 = vector.load %arg1[%c0, %c0_0] : memref<16x32xf32, #tpu.memory_space<vmem>>, vector<16x32xf32>
    %1 = arith.truncf %0 : vector<16x32xf32> to vector<16x32xbf16>
    %c0_1 = arith.constant 0 : index
    %c0_2 = arith.constant 0 : index
    %2 = vector.load %arg2[%c0_1, %c0_2] : memref<32x128xbf16, #tpu.memory_space<vmem>>, vector<32x128xbf16>
    %cst = arith.constant dense<0.000000e+00> : vector<16x128xf32>
    %3 = tpu.matmul %1, %2, %cst {dimension_numbers = #tpu.dot_dimension_numbers<[1], [0], [0], [1], [0, 0, 1, 1], [], []>} : vector<16x32xbf16>, vector<32x128xbf16>, vector<16x128xf32> -> vector<16x128xf32>
    %c0_3 = arith.constant 0 : index
    %c0_4 = arith.constant 0 : index
    %4 = vector.load %arg3[%c0_3, %c0_4] : memref<1x128xf32, #tpu.memory_space<vmem>>, vector<1x128xf32>
    %5 = vector.broadcast %4 : vector<1x128xf32> to vector<16x128xf32>
    %6 = arith.addf %3, %5 : vector<16x128xf32>
    %c0_5 = arith.constant 0 : index
    %c0_6 = arith.constant 0 : index
    %7 = vector.load %arg4[%c0_5, %c0_6] : memref<16x128xf32, #tpu.memory_space<vmem>>, vector<16x128xf32>
    tpu.vector_store %arg4[%c0_5, %c0_6], %6 {strides = array<i32>} : memref<16x128xf32, #tpu.memory_space<vmem>>, vector<16x128xf32>,
    return
  }
  func.func @transform_0(%arg0: i32) -> (i32, i32) {
    %c0_i32 = arith.constant 0 : i32
    %c0_i32_0 = arith.constant 0 : i32
    return %arg0, %c0_i32 : i32, i32
  }
  func.func @transform_1(%arg0: i32) -> (i32, i32) {
    %c0_i32 = arith.constant 0 : i32
    %c0_i32_0 = arith.constant 0 : i32
    %c0_i32_1 = arith.constant 0 : i32
    return %c0_i32, %c0_i32_0 : i32, i32
  }
  func.func @transform_2(%arg0: i32) -> (i32, i32) {
    %c0_i32 = arith.constant 0 : i32
    %c0_i32_0 = arith.constant 0 : i32
    %c0_i32_1 = arith.constant 0 : i32
    return %c0_i32, %c0_i32_0 : i32, i32
  }
  func.func @transform_3(%arg0: i32) -> (i32, i32) {
    %c0_i32 = arith.constant 0 : i32
    %c0_i32_0 = arith.constant 0 : i32
    return %arg0, %c0_i32 : i32, i32
  }
}

</mosaic_0001>

<bundles_post_ra>
// kernel: _lambda_.21
= control target key start
LH: loop header
LB: loop body
LE: loop exit
PB: predicated region body
PF: predicated region fallthrough
CT: control target
= control target key end

     0   :  { %8 = vsyncpa [#allocation3], 0  ;;  %s253_s0 = inlined_call_operand.vmem [shape: f32[16,32], index: 0, kind: input, shape index: {}]   ;;  %s254_s1 = inlined_call_operand.hbm [shape: bf16[32,128], index: 1, kind: input, shape index: {}]   ;;  %s255_s2 = inlined_call_operand.hbm [shape: f32[1,128], index: 2, kind: input, shape index: {}]   ;;  %s256_s3 = inlined_call_operand.vmem [shape: f32[16,128], index: 3, kind: output, shape index: {}]  }
   0x1   :  { %9 = vsyncpa [#allocation5], 0  ;;  %s191_s12 = smov [#allocation2]   ;;  %s143_s16 = scalar_lea.hbm %s254_s1, 256 }
   0x2   :  { %s17_s13 = sshll.u32 %s191_s12, 4  ;;  %p144_p0 = scmp.ne.s32.totalorder %s254_s1, %s143_s16  ;;  %s18_s13 = int_to_ptr.vmem [resolvable:$true] %s17_s13 }
   0x3   :  { %p147_p1 = scmp.lt.u32.totalorder %s143_s16, %s254_s1 }
   0x5   :  { %p149_p2 = pnand %p147_p1, %p144_p0 }
   0x7   :  { %152 = shalt.err (!%p149_p2)
}
   0x8   :  { %s153_s21 = scalar_lea.vmem %s18_s13, 256  ;;  %p158_p4 = scmp.lt.s32.totalorder %s18_s13, %s18_s13 }
   0x9   :  { %p154_p3 = scmp.ne.s32.totalorder %s18_s13, %s153_s21  ;;  %p159_p5 = scmp.lt.s32.totalorder %s153_s21, %s153_s21 }
   0xb   :  { %p160_p6 = por %p159_p5, %p158_p4 }
   0xd   :  { %p161_p7 = pnand %p160_p6, %p154_p3 }
   0xf   :  { %164 = shalt.err (!%p161_p7)
}
  0x10   :  { %s192_s22 = smov 64   ;;  %s193_s23 = smov 4  }
  0x11   :  { %23 = dma.hbm_to_vmem [thread:$0]  %s254_s1, 256, %s18_s13, [#allocation3], %s192_s22, %s192_s22, %s193_s23  }
  0x12   :  { %s194_s26 = smov [#allocation4]   ;;  %s165_s30 = scalar_lea.hbm %s255_s2, 16 }
  0x13   :  { %s30_s27 = sshll.u32 %s194_s26, 4  ;;  %p166_p8 = scmp.ne.s32.totalorder %s255_s2, %s165_s30  ;;  %s31_s27 = int_to_ptr.vmem [resolvable:$true] %s30_s27 }
  0x14   :  { %p169_p9 = scmp.lt.u32.totalorder %s165_s30, %s255_s2 }
  0x16   :  { %p171_p10 = pnand %p169_p9, %p166_p8 }
  0x18   :  { %174 = shalt.err (!%p171_p10)
}
  0x19   :  { %s175_s8 = scalar_lea.vmem %s31_s27, 16  ;;  %s179_s1 = scalar_lea.vmem %s31_s27, 32 }
  0x1a   :  { %p176_p11 = scmp.ne.s32.totalorder %s31_s27, %s175_s8  ;;  %p180_p12 = scmp.lt.s32.totalorder %s31_s27, %s31_s27 }
  0x1b   :  { %p181_p13 = scmp.lt.s32.totalorder %s179_s1, %s175_s8 }
  0x1d   :  { %p182_p0 = por %p181_p13, %p180_p12 }
  0x1f   :  { %p183_p1 = pnand %p182_p0, %p176_p11 }
  0x21   :  { %186 = shalt.err (!%p183_p1)
}
  0x22   :  { %33 = dma.hbm_to_vmem [thread:$0]  %s255_s2, 16, %s31_s27, [#allocation5]  }
  0x23   :  { %187 = dma.done.wait [#allocation3], 256  }
  0x24   :  { %188 = vsyncadd [#allocation3], 4294967040 }
  0x25   :  { %189 = dma.done.wait [#allocation5], 16  }
  0x26   :  { %190 = vsyncadd [#allocation5], 4294967280  ;;  %v195_v0 = vmov 0.0   ;;  %vm196_vm0 = vmmov 0   ;;  %v141_v1 = vld [vmem:[#allocation2] sm:$0xff]   ;;  %v142_v2 = vld [vmem:[#allocation2 + $0x8] sm:$0xff]  }
  0x27   :  { %127 = vmatprep.subr.bf16.mxu0 %v195_v0  ;;  %131 = vmatprep.mubr.msk.bf16.mxu0 %vm196_vm0, %v195_v0  ;;  %v41_v3 = vld [vmem:[%s253_s0] sm:$0xff]  ;;  %v42_v4 = vld [vmem:[%s253_s0 + $0x8] sm:$0xff]  ;;  %vm67_vm1 = vcmask 261120   ;;  %v120_v6 = vld [vmem:[#allocation4] ss:$0 sm:$0xff] }
  0x28   :  { %128 = vmatpush3.bf16.msra.mxu0 %v141_v1  ;;  %v43_v5 = vpack.c.bf16 %v42_v4, %v41_v3 }
  0x29   :  { %129 = vmatprep.subr.bf16.mxu0 %v195_v0 }
  0x2c   :  { %130 = vmatpush3.bf16.msra.mxu0 %v142_v2 }
  0x2f   :  { %132 = vmatmul.mubr.msk.bf16.vlgmr.msra.gmra.mrb[0].mxu0 %vm67_vm1, %v43_v5 }
 0x102   :  { %v105_v7 = vpop.f32.mrb[0].mxu0 }
 0x103   :  { %v106_v8 = vadd.f32 %v120_v6, %v105_v7  ;;  %v133_v9 = vpop.f32.mrb[1].mxu0 }
 0x104   :  { %v108_v10 = vpop.f32.mrb[2].mxu0 }
 0x105   :  { %112 = vst [vmem:[%s256_s3] sm:$0xff] %v106_v8  ;;  %v109_v11 = vadd.f32 %v120_v6, %v108_v10  ;;  %v134_v12 = vpop.f32.mrb[3].mxu0 }
 0x107   :  { %113 = vst [vmem:[%s256_s3 + $0x8] sm:$0xff] %v109_v11 }
 0x108   :  { %118 = vsyncpa [#allocation3], 1 }
 0x109   :  { %119 = vsyncpa [#allocation5], 1 }

// kernel: _lambda_.26
= control target key start
LH: loop header
LB: loop body
LE: loop exit
PB: predicated region body
PF: predicated region fallthrough
CT: control target
= control target key end

     0   :  { %s607_s12 = smov 0   ;;  %s609_s13 = smov 0   ;;  %s674_s0 = inlined_call_operand.vmem [shape: bf16[2,8,32], index: 0, kind: input, shape index: {}]   ;;  %s675_s1 = inlined_call_operand.vmem [shape: bf16[2,128,32], index: 1, kind: input, shape index: {}]   ;;  %s676_s2 = inlined_call_operand.vmem [shape: f32[2,8,1], index: 2, kind: input, shape index: {}]   ;;  %s677_s3 = inlined_call_operand.vmem [shape: f32[2,8,128], index: 3, kind: output, shape index: {}]  }
   0x1   :  { %s611_s14 = smov 0  }
   0x2 LB: > { %s25_s15 = sadd.s32 1, %s578_s13  ;;  %p477_p0 = scmp.ge.s32.totalorder %s582_s14, 1  ;;  %s582_s14 = sphi %s611_s14, %s13_s14   ;;  %s578_s13 = sphi %s609_s13, %s679_s13   ;;  %s574_s12 = sphi %s607_s12, %s678_s12  }
   0x3   : > { %p27_p1 = scmp.ge.s32.totalorder %s25_s15, 2  ;;  %p176_p2 = scmp.lt.s32.totalorder %s582_s14, 3 }
   0x5   : > { %s681_s15 = smov (%p27_p1, %s25_s15), 0  ;;  %p177_p3 = pnand %p477_p0, %p176_p2 }
   0x6   : > { %p214_p4 = scmp.lt.s32.totalorder (!%p177_p3), %s574_s12, 1  ;;  %v584_v0 = vmov (!%p177_p3), 0.0   ;;  %vm585_vm0 = vmmov (!%p177_p3), 0   ;;  %v586_v1 = vmov (!%p177_p3), 0   ;;  %vm303_vm1 = vcmask (!%p177_p3), 261120  }
   0x7   : > { %180 = sbr.rel (%p177_p3) target bundleno = 297 (0x129), region = 32  ;;  %504 = vmatprep.subr.bf16.mxu0 (!%p177_p3), %v584_v0  ;;  %520 = vmatprep.mubr.msk.bf16.mxu0 (!%p177_p3), %vm585_vm0, %v584_v0 }
   0x8   : > { %551 = vset.pattern.permute.xlu0 (!%p177_p3), %v586_v1 }
   0xe   : > { %s683_s12 = smov (!%p214_p4, %s574_s12), 1 }
   0xf   : > { %s494_s16 = sshll.u32 %s683_s12, 6  ;;  %s481_s20 = sshll.u32 %s683_s12, 3 }
  0x10   : > { %s631_s19 = scalar_lea.vmem %s675_s1, %s494_s16  ;;  %s231_s23 = scalar_lea.vmem %s676_s2, %s481_s20 }
  0x11   : > { %v552_v2 = vld [vmem:[%s631_s19] sm:$0xff]   ;;  %v553_v4 = vld [vmem:[%s631_s19 + $0x8] sm:$0xff]   ;;  %v554_v7 = vld [vmem:[%s631_s19 + $0x10] sm:$0xff]   ;;  %s478_s24 = sshll.u32 %s683_s12, 2  ;;  %s238_s30 = scalar_lea.vmem %s677_s3, %s481_s20 }
  0x12   : > { %v308_v3 = vsel %vm303_vm1, %v552_v2, 0  ;;  %v311_v5 = vsel %vm303_vm1, %v553_v4, 0  ;;  %v257_v6 = vld [vmem:[%s231_s23] sm:$0xff]  ;;  %v314_v8 = vsel %vm303_vm1, %v554_v7, 0  ;;  %v555_v9 = vld [vmem:[%s631_s19 + $0x18] sm:$0xff]   ;;  %v557_v13 = vld [vmem:[%s631_s19 + $0x28] sm:$0xff]   ;;  %s217_s27 = scalar_lea.vmem %s674_s0, %s478_s24 }
  0x13   : > { %505 = vmatpush3.bf16.xpose.msra.mxu0 %v308_v3  ;;  %260 = vperm.xlu0 %551, %v257_v6   ;;  %v317_v10 = vsel %vm303_vm1, %v555_v9, 0  ;;  %v556_v11 = vld [vmem:[%s631_s19 + $0x20] sm:$0xff]   ;;  %v323_v14 = vsel %vm303_vm1, %v557_v13, 0  ;;  %v558_v15 = vld [vmem:[%s631_s19 + $0x30] sm:$0xff]   ;;  %v559_v17 = vld [vmem:[%s631_s19 + $0x38] sm:$0xff]  }
  0x14   : > { %506 = vmatprep.subr.bf16.mxu0 %v584_v0  ;;  %v320_v12 = vsel %vm303_vm1, %v556_v11, 0  ;;  %v326_v16 = vsel %vm303_vm1, %v558_v15, 0  ;;  %v329_v18 = vsel %vm303_vm1, %v559_v17, 0  ;;  %v240_v19 = vld [vmem:[%s217_s27] sm:$0xf] }
  0x1b   : > { %507 = vmatpush3.bf16.xpose.msra.mxu0 %v311_v5 }
  0x1c   : > { %508 = vmatprep.subr.bf16.mxu0 %v584_v0 }
  0x23   : > { %509 = vmatpush3.bf16.xpose.msra.mxu0 %v314_v8 }
  0x24   : > { %510 = vmatprep.subr.bf16.mxu0 %v584_v0 }
  0x2b   : > { %511 = vmatpush3.bf16.xpose.msra.mxu0 %v317_v10 }
  0x2c   : > { %512 = vmatprep.subr.bf16.mxu0 %v584_v0 }
  0x33   : > { %513 = vmatpush3.bf16.xpose.msra.mxu0 %v320_v12 }
  0x34   : > { %514 = vmatprep.subr.bf16.mxu0 %v584_v0 }
  0x3b   : > { %515 = vmatpush3.bf16.xpose.msra.mxu0 %v323_v14 }
  0x3c   : > { %516 = vmatprep.subr.bf16.mxu0 %v584_v0 }
  0x43   : > { %517 = vmatpush3.bf16.xpose.msra.mxu0 %v326_v16 }
  0x44   : > { %518 = vmatprep.subr.bf16.mxu0 %v584_v0 }
  0x4b   : > { %519 = vmatpush3.bf16.xpose.msra.mxu0 %v329_v18 }
  0x52   : > { %521 = vmatmul.mubr.msk.bf16.vlgmr.msra.gmra.mrb[0].mxu0 %vm303_vm1, %v240_v19 }
  0x92   : > { %v261_v20 = vpop.permute.xlu0 %260 }
 0x125   : > { %v365_v21 = vpop.f32.mrb[0].mxu0 }
 0x126   : > { %v366_v22 = vadd.f32 %v365_v21, %v261_v20  ;;  %v522_v23 = vpop.f32.mrb[1].mxu0 }
 0x127   : > { %v368_v24 = vpop.f32.mrb[2].mxu0 }
 0x128   : > { %371 = vst [vmem:[%s238_s30] sm:$0xff] %v366_v22  ;;  %v523_v25 = vpop.f32.mrb[3].mxu0 }
 0x129 PF: > { %s13_s14 = sadd.s32 1, %s582_s14   ;;  %s678_s12 = smov %s578_s13 }
 0x12a   : > { %p10_p5 = scmp.ge.s32.totalorder %s13_s14, 4   ;;  %s679_s13 = smov %s681_s15 }
 0x12c   :  { %12 = sbr.rel (!%p10_p5) target bundleno = 2 (0x2), region = 68 }

// kernel: _lambda_.15
= control target key start
LH: loop header
LB: loop body
LE: loop exit
PB: predicated region body
PF: predicated region fallthrough
CT: control target
= control target key end

     0   :  { %s4564_s18 = smov 0   ;;  %s5949_s0 = inlined_call_operand.vmem [shape: bf16[2,28,512], index: 0, kind: input, shape index: {}]   ;;  %s5950_s1 = inlined_call_operand.vmem [shape: bf16[1536,512], index: 1, kind: input, shape index: {}]   ;;  %s5951_s2 = inlined_call_operand.vmem [shape: f32[1,512], index: 2, kind: input, shape index: {}]   ;;  %s5952_s3 = inlined_call_operand.vmem [shape: f32[1,512], index: 3, kind: input, shape index: {}]   ;;  %s5953_s4 = inlined_call_operand.vmem [shape: f32[1,512], index: 4, kind: input, shape index: {}]   ;;  %s5954_s5 = inlined_call_operand.vmem [shape: bf16[2,24,512], index: 5, kind: output, shape index: {}]  }
   0x1 LB: > { %s3462_s19 = sadd.s32 4294967295, %s4532_s18   ;;  %p3466_p0 = scmp.ge.s32.totalorder %s4532_s18, 1  ;;  %s4532_s18 = sphi %s4564_s18, %s15_s18  }
   0x2   : > { %p187_p1 = scmp.lt.s32.totalorder %s4532_s18, 3 }
   0x4   : > { %p188_p2 = pnand %p3466_p0, %p187_p1 }
   0x5   : > { %v3930_v0 = vld [vmem:[%s5950_s1 + $0x404] ss:$16 sps:$4 sm:$0xff] (!%p188_p2)   ;;  %v3932_v1 = vld [vmem:[%s5950_s1 + $0x40c] ss:$16 sps:$4 sm:$0xff] (!%p188_p2)   ;;  %v3934_v2 = vld [vmem:[%s5950_s1 + $0x400] ss:$16 sps:$4 sm:$0xff] (!%p188_p2)  }
   0x6   : > { %191 = sbr.rel (%p188_p2) target bundleno = 627 (0x273), region = 40  ;;  %1182 = vmatprep.subr.bf16.mxu0 (!%p188_p2), %v3930_v0  ;;  %v3935_v3 = vld [vmem:[%s5950_s1 + $0x408] ss:$16 sps:$4 sm:$0xff] (!%p188_p2)   ;;  %1284 = vmatprep.subr.bf16.mxu1 (!%p188_p2), %v3932_v1  ;;  %v3936_v4 = vld [vmem:[%s5950_s1 + $0x424] ss:$16 sps:$4 sm:$0xff] (!%p188_p2)   ;;  %p215_p3 = scmp.lt.s32.totalorder (!%p188_p2), %s3462_s19, 1 }
   0x7   : > { %1183 = vmatpush1.bf16.msra.mxu0 (!%p188_p2), %v3934_v2  ;;  %1285 = vmatpush1.bf16.msra.mxu1 (!%p188_p2), %v3935_v3  ;;  %v3938_v5 = vld [vmem:[%s5950_s1 + $0x42c] ss:$16 sps:$4 sm:$0xff] (!%p188_p2)   ;;  %v3940_v6 = vld [vmem:[%s5950_s1 + $0x420] ss:$16 sps:$4 sm:$0xff] (!%p188_p2)   ;;  %v3941_v7 = vld [vmem:[%s5950_s1 + $0x428] ss:$16 sps:$4 sm:$0xff] (!%p188_p2)  }
   0x8   : > { %1184 = vmatprep.subr.bf16.mxu0 (!%p188_p2), %v3936_v4  ;;  %1286 = vmatprep.subr.bf16.mxu1 (!%p188_p2), %v3938_v5  ;;  %v3942_v8 = vld [vmem:[%s5950_s1 + $0x444] ss:$16 sps:$4 sm:$0xff] (!%p188_p2)   ;;  %v3944_v9 = vld [vmem:[%s5950_s1 + $0x44c] ss:$16 sps:$4 sm:$0xff] (!%p188_p2)   ;;  %v3946_v10 = vld [vmem:[%s5950_s1 + $0x440] ss:$16 sps:$4 sm:$0xff] (!%p188_p2)  }
   0x9   : > { %v3947_v11 = vld [vmem:[%s5950_s1 + $0x448] ss:$16 sps:$4 sm:$0xff] (!%p188_p2)   ;;  %v3948_v12 = vld [vmem:[%s5950_s1 + $0x464] ss:$16 sps:$4 sm:$0xff] (!%p188_p2)   ;;  %v3950_v13 = vld [vmem:[%s5950_s1 + $0x46c] ss:$16 sps:$4 sm:$0xff] (!%p188_p2)  }
   0xa   : > { %v3952_v14 = vld [vmem:[%s5950_s1 + $0x460] ss:$16 sps:$4 sm:$0xff] (!%p188_p2)   ;;  %v3953_v15 = vld [vmem:[%s5950_s1 + $0x468] ss:$16 sps:$4 sm:$0xff] (!%p188_p2)   ;;  %v3954_v16 = vld [vmem:[%s5950_s1 + $0x484] ss:$16 sps:$4 sm:$0xff] (!%p188_p2)  }
   0xb   : > { %1185 = vmatpush1.bf16.msra.mxu0 (!%p188_p2), %v3940_v6  ;;  %1287 = vmatpush1.bf16.msra.mxu1 (!%p188_p2), %v3941_v7  ;;  %v3956_v17 = vld [vmem:[%s5950_s1 + $0x48c] ss:$16 sps:$4 sm:$0xff] (!%p188_p2)   ;;  %v3958_v18 = vld [vmem:[%s5950_s1 + $0x480] ss:$16 sps:$4 sm:$0xff] (!%p188_p2)   ;;  %v3959_v19 = vld [vmem:[%s5950_s1 + $0x488] ss:$16 sps:$4 sm:$0xff] (!%p188_p2)  }
   0xc   : > { %1186 = vmatprep.subr.bf16.mxu0 (!%p188_p2), %v3942_v8  ;;  %1288 = vmatprep.subr.bf16.mxu1 (!%p188_p2), %v3944_v9  ;;  %v3960_v20 = vld [vmem:[%s5950_s1 + $0x4a4] ss:$16 sps:$4 sm:$0xff] (!%p188_p2)   ;;  %v3962_v21 = vld [vmem:[%s5950_s1 + $0x4ac] ss:$16 sps:$4 sm:$0xff] (!%p188_p2)   ;;  %v3964_v22 = vld [vmem:[%s5950_s1 + $0x4a0] ss:$16 sps:$4 sm:$0xff] (!%p188_p2)  }
   0xd   : > { %v3965_v23 = vld [vmem:[%s5950_s1 + $0x4a8] ss:$16 sps:$4 sm:$0xff]   ;;  %v3966_v24 = vld [vmem:[%s5950_s1 + $0x4c4] ss:$16 sps:$4 sm:$0xff]   ;;  %v3968_v25 = vld [vmem:[%s5950_s1 + $0x4cc] ss:$16 sps:$4 sm:$0xff]  }
   0xe   : > { %v3970_v26 = vld [vmem:[%s5950_s1 + $0x4c0] ss:$16 sps:$4 sm:$0xff]   ;;  %v3971_v27 = vld [vmem:[%s5950_s1 + $0x4c8] ss:$16 sps:$4 sm:$0xff]   ;;  %v3972_v28 = vld [vmem:[%s5950_s1 + $0x4e4] ss:$16 sps:$4 sm:$0xff]  }
   0xf   : > { %1187 = vmatpush1.bf16.msra.mxu0 %v3946_v10  ;;  %1289 = vmatpush1.bf16.msra.mxu1 %v3947_v11  ;;  %v3974_v29 = vld [vmem:[%s5950_s1 + $0x4ec] ss:$16 sps:$4 sm:$0xff]   ;;  %v3976_v30 = vld [vmem:[%s5950_s1 + $0x4e0] ss:$16 sps:$4 sm:$0xff]   ;;  %v3977_v31 = vld [vmem:[%s5950_s1 + $0x4e8] ss:$16 sps:$4 sm:$0xff]  }
  0x10   : > { %1188 = vmatprep.subr.bf16.mxu0 %v3948_v12  ;;  %1290 = vmatprep.subr.bf16.mxu1 %v3950_v13  ;;  %v3978_v32 = vld [vmem:[%s5950_s1 + $0x504] ss:$16 sps:$4 sm:$0xff]   ;;  %v3980_v33 = vld [vmem:[%s5950_s1 + $0x50c] ss:$16 sps:$4 sm:$0xff]   ;;  %v3982_v34 = vld [vmem:[%s5950_s1 + $0x500] ss:$16 sps:$4 sm:$0xff]  }
  0x11   : > { %v3983_v35 = vld [vmem:[%s5950_s1 + $0x508] ss:$16 sps:$4 sm:$0xff]   ;;  %v3984_v36 = vld [vmem:[%s5950_s1 + $0x524] ss:$16 sps:$4 sm:$0xff]   ;;  %v3986_v37 = vld [vmem:[%s5950_s1 + $0x52c] ss:$16 sps:$4 sm:$0xff]  }
  0x12   : > { %s5956_s19 = smov (!%p215_p3, %s3462_s19), 1  ;;  %v3988_v38 = vld [vmem:[%s5950_s1 + $0x520] ss:$16 sps:$4 sm:$0xff]   ;;  %v3989_v39 = vld [vmem:[%s5950_s1 + $0x528] ss:$16 sps:$4 sm:$0xff]   ;;  %vm521_vm0 = vcmask 1046528  }
  0x13   : > { %1189 = vmatpush1.bf16.msra.mxu0 %v3952_v14  ;;  %1291 = vmatpush1.bf16.msra.mxu1 %v3953_v15  ;;  %v3990_v40 = vld [vmem:[%s5950_s1 + $0x544] ss:$16 sps:$4 sm:$0xff]   ;;  %v3992_v41 = vld [vmem:[%s5950_s1 + $0x54c] ss:$16 sps:$4 sm:$0xff]   ;;  %s3874_s10 = sshll.u32 %s5956_s19, 6  ;;  %vm2370_vm1 = vcmask 1045504  }
  0x14   : > { %1190 = vmatprep.subr.bf16.mxu0 %v3954_v16  ;;  %1292 = vmatprep.subr.bf16.mxu1 %v3956_v17  ;;  %v3994_v42 = vld [vmem:[%s5950_s1 + $0x540] ss:$16 sps:$4 sm:$0xff]   ;;  %v3995_v43 = vld [vmem:[%s5950_s1 + $0x548] ss:$16 sps:$4 sm:$0xff]   ;;  %v3996_v44 = vld [vmem:[%s5950_s1 + $0x564] ss:$16 sps:$4 sm:$0xff]   ;;  %s4717_s21 = scalar_lea.vmem %s5949_s0, %s3874_s10 }
  0x15   : > { %v3998_v45 = vld [vmem:[%s5950_s1 + $0x56c] ss:$16 sps:$4 sm:$0xff]   ;;  %v4000_v46 = vld [vmem:[%s5950_s1 + $0x560] ss:$16 sps:$4 sm:$0xff]   ;;  %v4001_v47 = vld [vmem:[%s5950_s1 + $0x568] ss:$16 sps:$4 sm:$0xff]  }
  0x16   : > { %v229_v48 = vld [vmem:[%s4717_s21 + $0x20] sm:$0xff]  ;;  %v231_v49 = vld [vmem:[%s4717_s21 + $0x30] sm:$0x33]  ;;  %v4004_v53 = vld [vmem:[%s5950_s1 + $0x58c] ss:$16 sps:$4 sm:$0xff]   ;;  %s3921_s23 = smul.u32 48, %s5956_s19 }
  0x17   : > { %1191 = vmatpush1.bf16.msra.mxu0 %v3958_v18  ;;  %1293 = vmatpush1.bf16.msra.mxu1 %v3959_v19  ;;  %v4731_v50 = vld [vmem:[%s4717_s21 + $0x4] ss:$16 sps:$4 sm:$0xff]   ;;  %v4733_v51 = vcombine.high %v229_v48, %v231_v49  ;;  %v4006_v56 = vld [vmem:[%s5950_s1 + $0x580] ss:$16 sps:$4 sm:$0xff]   ;;  %v4007_v57 = vld [vmem:[%s5950_s1 + $0x588] ss:$16 sps:$4 sm:$0xff]   ;;  %v4778_v5 = vcombine.low %v229_v48, %v231_v49 }
  0x18   : > { %1192 = vmatprep.subr.bf16.mxu0 %v3960_v20  ;;  %1294 = vmatprep.subr.bf16.mxu1 %v3962_v21  ;;  %v4002_v52 = vld [vmem:[%s5950_s1 + $0x584] ss:$16 sps:$4 sm:$0xff]   ;;  %v525_v54 = vrot.slane %v4731_v50, 1  ;;  %v4010_v60 = vld [vmem:[%s5950_s1 + $0x5ac] ss:$16 sps:$4 sm:$0xff]   ;;  %s5914_s25 = scalar_lea.vmem %s5954_s5, %s3921_s23 }
  0x19   : > { %v526_v55 = vrot.slane %v4733_v51, 1  ;;  %v4008_v58 = vld [vmem:[%s5950_s1 + $0x5a4] ss:$16 sps:$4 sm:$0xff]   ;;  %v4012_v61 = vld [vmem:[%s5950_s1 + $0x5a0] ss:$16 sps:$4 sm:$0xff]   ;;  %v523_v11 = vrot.slane %v4778_v5, 1 }
  0x1a   : > { %v4013_v62 = vld [vmem:[%s5950_s1 + $0x5a8] ss:$16 sps:$4 sm:$0xff]   ;;  %v4014_v63 = vld [vmem:[%s5950_s1 + $0x5c4] ss:$16 sps:$4 sm:$0xff]   ;;  %v4016_v0 = vld [vmem:[%s5950_s1 + $0x5cc] ss:$16 sps:$4 sm:$0xff]  }
  0x1b   : > { %1193 = vmatpush1.bf16.msra.mxu0 %v3964_v22  ;;  %1295 = vmatpush1.bf16.msra.mxu1 %v3965_v23  ;;  %v527_v59 = vsel %vm521_vm0, %v525_v54, %v526_v55  ;;  %v4018_v1 = vld [vmem:[%s5950_s1 + $0x5c0] ss:$16 sps:$4 sm:$0xff]   ;;  %v4019_v2 = vld [vmem:[%s5950_s1 + $0x5c8] ss:$16 sps:$4 sm:$0xff]   ;;  %v4020_v3 = vld [vmem:[%s5950_s1 + $0x5e4] ss:$16 sps:$4 sm:$0xff]  }
  0x1c   : > { %1194 = vmatprep.subr.bf16.mxu0 %v3966_v24  ;;  %1296 = vmatprep.subr.bf16.mxu1 %v3968_v25  ;;  %v4035_v4 = vld [vmem:[%s4717_s21] ss:$16 sps:$4 sm:$0xff]   ;;  %v4022_v6 = vld [vmem:[%s5950_s1 + $0x5ec] ss:$16 sps:$4 sm:$0xff]   ;;  %v4025_v8 = vld [vmem:[%s5950_s1 + $0x5e8] ss:$16 sps:$4 sm:$0xff]  }
  0x1d   : > { %1214 = vmatprep.mubr.bf16.mxu0 %v527_v59  ;;  %1316 = vmatprep.mubr.bf16.mxu1 %v527_v59  ;;  %v4024_v7 = vld [vmem:[%s5950_s1 + $0x5e0] ss:$16 sps:$4 sm:$0xff]   ;;  %v4031_v9 = vld [vmem:[%s5950_s1 + $0x604] ss:$16 sps:$4 sm:$0xff]   ;;  %v522_v10 = vrot.slane %v4035_v4, 1 }
  0x1e   : > { %v4034_v12 = vld [vmem:[%s5950_s1 + $0x60c] ss:$16 sps:$4 sm:$0xff]   ;;  %v4029_v13 = vld [vmem:[%s5950_s1 + $0x600] ss:$16 sps:$4 sm:$0xff]   ;;  %v4032_v14 = vld [vmem:[%s5950_s1 + $0x608] ss:$16 sps:$4 sm:$0xff]  }
  0x1f   : > { %1195 = vmatpush1.bf16.msra.mxu0 %v3970_v26  ;;  %1297 = vmatpush1.bf16.msra.mxu1 %v3971_v27  ;;  %v524_v15 = vsel %vm521_vm0, %v522_v10, %v523_v11  ;;  %v4039_v16 = vld [vmem:[%s5950_s1 + $0x624] ss:$16 sps:$4 sm:$0xff]   ;;  %v4042_v17 = vld [vmem:[%s5950_s1 + $0x62c] ss:$16 sps:$4 sm:$0xff]   ;;  %v4037_v18 = vld [vmem:[%s5950_s1 + $0x620] ss:$16 sps:$4 sm:$0xff]  }
  0x20   : > { %1196 = vmatprep.subr.bf16.mxu0 %v3972_v28  ;;  %1298 = vmatprep.subr.bf16.mxu1 %v3974_v29  ;;  %v4040_v19 = vld [vmem:[%s5950_s1 + $0x628] ss:$16 sps:$4 sm:$0xff]   ;;  %v4045_v20 = vld [vmem:[%s5950_s1 + $0x644] ss:$16 sps:$4 sm:$0xff]   ;;  %v4048_v21 = vld [vmem:[%s5950_s1 + $0x64c] ss:$16 sps:$4 sm:$0xff]  }
  0x21   : > { %v4043_v22 = vld [vmem:[%s5950_s1 + $0x640] ss:$16 sps:$4 sm:$0xff]   ;;  %v4046_v23 = vld [vmem:[%s5950_s1 + $0x648] ss:$16 sps:$4 sm:$0xff]   ;;  %v4051_v24 = vld [vmem:[%s5950_s1 + $0x664] ss:$16 sps:$4 sm:$0xff]  }
  0x22   : > { %v4054_v25 = vld [vmem:[%s5950_s1 + $0x66c] ss:$16 sps:$4 sm:$0xff]   ;;  %v4049_v26 = vld [vmem:[%s5950_s1 + $0x660] ss:$16 sps:$4 sm:$0xff]   ;;  %v4052_v27 = vld [vmem:[%s5950_s1 + $0x668] ss:$16 sps:$4 sm:$0xff]  }
  0x23   : > { %1197 = vmatpush1.bf16.msra.mxu0 %v3976_v30  ;;  %1299 = vmatpush1.bf16.msra.mxu1 %v3977_v31  ;;  %v4057_v28 = vld [vmem:[%s5950_s1 + $0x684] ss:$16 sps:$4 sm:$0xff]   ;;  %v4060_v29 = vld [vmem:[%s5950_s1 + $0x68c] ss:$16 sps:$4 sm:$0xff]   ;;  %v4055_v30 = vld [vmem:[%s5950_s1 + $0x680] ss:$16 sps:$4 sm:$0xff]  }
  0x24   : > { %1198 = vmatprep.subr.bf16.mxu0 %v3978_v32  ;;  %1300 = vmatprep.subr.bf16.mxu1 %v3980_v33  ;;  %v4058_v31 = vld [vmem:[%s5950_s1 + $0x688] ss:$16 sps:$4 sm:$0xff]   ;;  %v4063_v32 = vld [vmem:[%s5950_s1 + $0x6a4] ss:$16 sps:$4 sm:$0xff]   ;;  %v4066_v33 = vld [vmem:[%s5950_s1 + $0x6ac] ss:$16 sps:$4 sm:$0xff]  }
  0x25   : > { %v4073_v48 = vld [vmem:[%s5950_s1 + $0x6e0] ss:$16 sps:$4 sm:$0xff]   ;;  %v4076_v49 = vld [vmem:[%s5950_s1 + $0x6e8] ss:$16 sps:$4 sm:$0xff]   ;;  %v4111_v10 = vld [vmem:[%s5950_s1 + $0x7a4] ss:$16 sps:$4 sm:$0xff]  }
  0x26   : > { %v4085_v59 = vld [vmem:[%s5950_s1 + $0x720] ss:$16 sps:$4 sm:$0xff]   ;;  %v4100_v4 = vld [vmem:[%s5950_s1 + $0x768] ss:$16 sps:$4 sm:$0xff]  }
  0x27   : > { %1199 = vmatpush1.bf16.msra.mxu0 %v3982_v34  ;;  %1301 = vmatpush1.bf16.msra.mxu1 %v3983_v35  ;;  %v4061_v34 = vld [vmem:[%s5950_s1 + $0x6a0] ss:$16 sps:$4 sm:$0xff]   ;;  %v4064_v35 = vld [vmem:[%s5950_s1 + $0x6a8] ss:$16 sps:$4 sm:$0xff]  }
  0x28   : > { %1200 = vmatprep.subr.bf16.mxu0 %v3984_v36  ;;  %1302 = vmatprep.subr.bf16.mxu1 %v3986_v37  ;;  %v4069_v36 = vld [vmem:[%s5950_s1 + $0x6c4] ss:$16 sps:$4 sm:$0xff]   ;;  %v4072_v37 = vld [vmem:[%s5950_s1 + $0x6cc] ss:$16 sps:$4 sm:$0xff]  }
  0x2b   : > { %1201 = vmatpush1.bf16.msra.mxu0 %v3988_v38  ;;  %1303 = vmatpush1.bf16.msra.mxu1 %v3989_v39  ;;  %v4067_v38 = vld [vmem:[%s5950_s1 + $0x6c0] ss:$16 sps:$4 sm:$0xff]   ;;  %v4070_v39 = vld [vmem:[%s5950_s1 + $0x6c8] ss:$16 sps:$4 sm:$0xff]  }
  0x2c   : > { %1202 = vmatprep.subr.bf16.mxu0 %v3990_v40  ;;  %1304 = vmatprep.subr.bf16.mxu1 %v3992_v41  ;;  %v4075_v40 = vld [vmem:[%s5950_s1 + $0x6e4] ss:$16 sps:$4 sm:$0xff]   ;;  %v4879_v41 = vld [vmem:[%s4717_s21 + $0x28] sm:$0xff] }
  0x2f   : > { %1203 = vmatpush1.bf16.msra.mxu0 %v3994_v42  ;;  %1305 = vmatpush1.bf16.msra.mxu1 %v3995_v43  ;;  %v4882_v42 = vld [vmem:[%s4717_s21 + $0x38] sm:$0x33] }
  0x30   : > { %1204 = vmatprep.subr.bf16.mxu0 %v3996_v44  ;;  %1306 = vmatprep.subr.bf16.mxu1 %v3998_v45  ;;  %v4078_v43 = vld [vmem:[%s5950_s1 + $0x6ec] ss:$16 sps:$4 sm:$0xff]   ;;  %v4892_v45 = vcombine.high %v4879_v41, %v4882_v42 }
  0x31   : > { %v4888_v44 = vld [vmem:[%s4717_s21 + $0xc] ss:$16 sps:$4 sm:$0xff]  }
  0x33   : > { %1205 = vmatpush1.bf16.msra.mxu0 %v4000_v46  ;;  %1307 = vmatpush1.bf16.msra.mxu1 %v4001_v47  ;;  %v531_v46 = vrot.slane %v4888_v44, 1  ;;  %v4896_v47 = vrot.slane %v4892_v45, 1 }
  0x34   : > { %1206 = vmatprep.subr.bf16.mxu0 %v4002_v52  ;;  %1308 = vmatprep.subr.bf16.mxu1 %v4004_v53  ;;  %v4081_v52 = vld [vmem:[%s5950_s1 + $0x704] ss:$16 sps:$4 sm:$0xff]   ;;  %v4084_v53 = vld [vmem:[%s5950_s1 + $0x70c] ss:$16 sps:$4 sm:$0xff]  }
  0x35   : > { %v533_v54 = vsel %vm521_vm0, %v531_v46, %v4896_v47  ;;  %v4161_v46 = vld [vmem:[%s5950_s1 + $0x8c] ss:$16 sps:$4 sm:$0xff]  }
  0x37   : > { %1207 = vmatpush1.bf16.msra.mxu0 %v4006_v56  ;;  %1309 = vmatpush1.bf16.msra.mxu1 %v4007_v57  ;;  %v4082_v56 = vld [vmem:[%s5950_s1 + $0x708] ss:$16 sps:$4 sm:$0xff]   ;;  %v4087_v57 = vld [vmem:[%s5950_s1 + $0x724] ss:$16 sps:$4 sm:$0xff]  }
  0x38   : > { %1208 = vmatprep.subr.bf16.mxu0 %v4008_v58  ;;  %1310 = vmatprep.subr.bf16.mxu1 %v4010_v60  ;;  %v4090_v58 = vld [vmem:[%s5950_s1 + $0x72c] ss:$16 sps:$4 sm:$0xff]   ;;  %v4088_v60 = vld [vmem:[%s5950_s1 + $0x728] ss:$16 sps:$4 sm:$0xff]  }
  0x3b   : > { %1209 = vmatpush1.bf16.msra.mxu0 %v4012_v61  ;;  %1311 = vmatpush1.bf16.msra.mxu1 %v4013_v62  ;;  %v4093_v61 = vld [vmem:[%s5950_s1 + $0x744] ss:$16 sps:$4 sm:$0xff]   ;;  %v4096_v62 = vld [vmem:[%s5950_s1 + $0x74c] ss:$16 sps:$4 sm:$0xff]  }
  0x3c   : > { %1210 = vmatprep.subr.bf16.mxu0 %v4014_v63  ;;  %1312 = vmatprep.subr.bf16.mxu1 %v4016_v0  ;;  %v4091_v63 = vld [vmem:[%s5950_s1 + $0x740] ss:$16 sps:$4 sm:$0xff]   ;;  %v4094_v0 = vld [vmem:[%s5950_s1 + $0x748] ss:$16 sps:$4 sm:$0xff]  }
  0x3f   : > { %1211 = vmatpush1.bf16.msra.mxu0 %v4018_v1  ;;  %1313 = vmatpush1.bf16.msra.mxu1 %v4019_v2  ;;  %v4099_v1 = vld [vmem:[%s5950_s1 + $0x764] ss:$16 sps:$4 sm:$0xff]   ;;  %v4102_v2 = vld [vmem:[%s5950_s1 + $0x76c] ss:$16 sps:$4 sm:$0xff]  }
  0x40   : > { %1212 = vmatprep.subr.bf16.mxu0 %v4020_v3  ;;  %1314 = vmatprep.subr.bf16.mxu1 %v4022_v6  ;;  %v4097_v3 = vld [vmem:[%s5950_s1 + $0x760] ss:$16 sps:$4 sm:$0xff]   ;;  %v4105_v6 = vld [vmem:[%s5950_s1 + $0x784] ss:$16 sps:$4 sm:$0xff]  }
  0x43   : > { %1213 = vmatpush1.bf16.msra.mxu0 %v4024_v7  ;;  %1315 = vmatpush1.bf16.msra.mxu1 %v4025_v8  ;;  %v4108_v7 = vld [vmem:[%s5950_s1 + $0x78c] ss:$16 sps:$4 sm:$0xff]   ;;  %v4103_v8 = vld [vmem:[%s5950_s1 + $0x780] ss:$16 sps:$4 sm:$0xff]  }
  0x44   : > { %1233 = vmatprep.subr.bf16.mxu0 %v4031_v9  ;;  %1335 = vmatprep.subr.bf16.mxu1 %v4034_v12  ;;  %v4106_v9 = vld [vmem:[%s5950_s1 + $0x788] ss:$16 sps:$4 sm:$0xff]   ;;  %v4109_v12 = vld [vmem:[%s5950_s1 + $0x7a0] ss:$16 sps:$4 sm:$0xff]  }
  0x46   : > { %1215 = vmatmul.mubr.bf16.vlgmr.msra.gmra.mrb[0].mxu0 %v524_v15  ;;  %1317 = vmatmul.mubr.bf16.vlgmr.msra.gmra.mrb[0].mxu1 %v524_v15  ;;  %v4120_v15 = vld [vmem:[%s5950_s1 + $0x7cc] ss:$16 sps:$4 sm:$0xff]  }
  0x47   : > { %1234 = vmatpush1.bf16.msra.mxu0 %v4029_v13  ;;  %1336 = vmatpush1.bf16.msra.mxu1 %v4032_v14  ;;  %v4112_v13 = vld [vmem:[%s5950_s1 + $0x7a8] ss:$16 sps:$4 sm:$0xff]   ;;  %v4117_v14 = vld [vmem:[%s5950_s1 + $0x7c4] ss:$16 sps:$4 sm:$0xff]  }
  0x48   : > { %1235 = vmatprep.subr.bf16.mxu0 %v4039_v16  ;;  %1337 = vmatprep.subr.bf16.mxu1 %v4042_v17  ;;  %v4115_v16 = vld [vmem:[%s5950_s1 + $0x7c0] ss:$16 sps:$4 sm:$0xff]   ;;  %v4118_v17 = vld [vmem:[%s5950_s1 + $0x7c8] ss:$16 sps:$4 sm:$0xff]  }
  0x49   : > { %1224 = vmatprep.mubr.bf16.mxu0 %v526_v55  ;;  %1326 = vmatprep.mubr.bf16.mxu1 %v526_v55  ;;  %v4079_v55 = vld [vmem:[%s5950_s1 + $0x700] ss:$16 sps:$4 sm:$0xff]  }
  0x4b   : > { %1236 = vmatpush1.bf16.msra.mxu0 %v4037_v18  ;;  %1338 = vmatpush1.bf16.msra.mxu1 %v4040_v19  ;;  %v4991_v18 = vld [vmem:[%s4717_s21 + $0x8] ss:$16 sps:$4 sm:$0xff]   ;;  %v4995_v19 = vcombine.low %v4879_v41, %v4882_v42  ;;  %v4150_v41 = vld [vmem:[%s5950_s1 + $0x60] ss:$16 sps:$4 sm:$0xff]  }
  0x4c   : > { %1237 = vmatprep.subr.bf16.mxu0 %v4045_v20  ;;  %1339 = vmatprep.subr.bf16.mxu1 %v4048_v21  ;;  %v4123_v20 = vld [vmem:[%s5950_s1 + $0x7e4] ss:$16 sps:$4 sm:$0xff]   ;;  %v4126_v21 = vld [vmem:[%s5950_s1 + $0x7ec] ss:$16 sps:$4 sm:$0xff]   ;;  %v4153_v42 = vld [vmem:[%s5950_s1 + $0x68] ss:$16 sps:$4 sm:$0xff]  }
  0x4e   : > { %1225 = vmatmul.mubr.bf16.gmra.mrb[4].mxu0 %v523_v11  ;;  %1327 = vmatmul.mubr.bf16.gmra.mrb[4].mxu1 %v523_v11  ;;  %v4114_v11 = vld [vmem:[%s5950_s1 + $0x7ac] ss:$16 sps:$4 sm:$0xff]  }
  0x4f   : > { %1238 = vmatpush1.bf16.msra.mxu0 %v4043_v22  ;;  %1340 = vmatpush1.bf16.msra.mxu1 %v4046_v23  ;;  %v4121_v22 = vld [vmem:[%s5950_s1 + $0x7e0] ss:$16 sps:$4 sm:$0xff]   ;;  %v4124_v23 = vld [vmem:[%s5950_s1 + $0x7e8] ss:$16 sps:$4 sm:$0xff]  }
  0x50   : > { %1239 = vmatprep.subr.bf16.mxu0 %v4051_v24  ;;  %1341 = vmatprep.subr.bf16.mxu1 %v4054_v25  ;;  %v528_v24 = vrot.slane %v4991_v18, 1  ;;  %v529_v25 = vrot.slane %v4995_v19, 1 }
  0x51   : > { %1265 = vmatprep.mubr.bf16.mxu0 %v533_v54  ;;  %1367 = vmatprep.mubr.bf16.mxu1 %v533_v54  ;;  %v4170_v54 = vld [vmem:[%s5950_s1 + $0xc4] ss:$16 sps:$4 sm:$0xff]  }
  0x53   : > { %1240 = vmatpush1.bf16.msra.mxu0 %v4049_v26  ;;  %1342 = vmatpush1.bf16.msra.mxu1 %v4052_v27  ;;  %v4134_v26 = vld [vmem:[%s5950_s1 + $0x4] ss:$16 sps:$4 sm:$0xff]   ;;  %v4137_v27 = vld [vmem:[%s5950_s1 + $0xc] ss:$16 sps:$4 sm:$0xff]  }
  0x54   : > { %1241 = vmatprep.subr.bf16.mxu0 %v4057_v28  ;;  %1343 = vmatprep.subr.bf16.mxu1 %v4060_v29  ;;  %v530_v28 = vsel %vm521_vm0, %v528_v24, %v529_v25  ;;  %v4132_v29 = vld [vmem:[%s5950_s1] ss:$16 sps:$4 sm:$0xff]   ;;  %v4213_v24 = vld [vmem:[%s5950_s1 + $0x1a8] ss:$16 sps:$4 sm:$0xff]  }
  0x57   : > { %1242 = vmatpush1.bf16.msra.mxu0 %v4055_v30  ;;  %1344 = vmatpush1.bf16.msra.mxu1 %v4058_v31  ;;  %v4135_v30 = vld [vmem:[%s5950_s1 + $0x8] ss:$16 sps:$4 sm:$0xff]   ;;  %v4140_v31 = vld [vmem:[%s5950_s1 + $0x24] ss:$16 sps:$4 sm:$0xff]  }
  0x58   : > { %1243 = vmatprep.subr.bf16.mxu0 %v4063_v32  ;;  %1345 = vmatprep.subr.bf16.mxu1 %v4066_v33  ;;  %v4143_v32 = vld [vmem:[%s5950_s1 + $0x2c] ss:$16 sps:$4 sm:$0xff]   ;;  %v4138_v33 = vld [vmem:[%s5950_s1 + $0x20] ss:$16 sps:$4 sm:$0xff]  }
  0x5b   : > { %1244 = vmatpush1.bf16.msra.mxu0 %v4061_v34  ;;  %1346 = vmatpush1.bf16.msra.mxu1 %v4064_v35  ;;  %v4141_v34 = vld [vmem:[%s5950_s1 + $0x28] ss:$16 sps:$4 sm:$0xff]   ;;  %v4146_v35 = vld [vmem:[%s5950_s1 + $0x44] ss:$16 sps:$4 sm:$0xff]  }
  0x5c   : > { %1245 = vmatprep.subr.bf16.mxu0 %v4069_v36  ;;  %1347 = vmatprep.subr.bf16.mxu1 %v4072_v37  ;;  %v4149_v36 = vld [vmem:[%s5950_s1 + $0x4c] ss:$16 sps:$4 sm:$0xff]   ;;  %v4144_v37 = vld [vmem:[%s5950_s1 + $0x40] ss:$16 sps:$4 sm:$0xff]  }
  0x5f   : > { %1246 = vmatpush1.bf16.msra.mxu0 %v4067_v38  ;;  %1348 = vmatpush1.bf16.msra.mxu1 %v4070_v39  ;;  %v4147_v38 = vld [vmem:[%s5950_s1 + $0x48] ss:$16 sps:$4 sm:$0xff]   ;;  %v4152_v39 = vld [vmem:[%s5950_s1 + $0x64] ss:$16 sps:$4 sm:$0xff]  }
  0x60   : > { %1247 = vmatprep.subr.bf16.mxu0 %v4075_v40  ;;  %1349 = vmatprep.subr.bf16.mxu1 %v4078_v43  ;;  %v4155_v40 = vld [vmem:[%s5950_s1 + $0x6c] ss:$16 sps:$4 sm:$0xff]   ;;  %v4158_v43 = vld [vmem:[%s5950_s1 + $0x84] ss:$16 sps:$4 sm:$0xff]  }
  0x63   : > { %1248 = vmatpush1.bf16.msra.mxu0 %v4073_v48  ;;  %1350 = vmatpush1.bf16.msra.mxu1 %v4076_v49  ;;  %v4159_v48 = vld [vmem:[%s5950_s1 + $0x88] ss:$16 sps:$4 sm:$0xff]   ;;  %v4164_v49 = vld [vmem:[%s5950_s1 + $0xa4] ss:$16 sps:$4 sm:$0xff]  }
  0x64   : > { %1249 = vmatprep.subr.bf16.mxu0 %v4081_v52  ;;  %1351 = vmatprep.subr.bf16.mxu1 %v4084_v53  ;;  %v4162_v52 = vld [vmem:[%s5950_s1 + $0xa0] ss:$16 sps:$4 sm:$0xff]   ;;  %v4165_v53 = vld [vmem:[%s5950_s1 + $0xa8] ss:$16 sps:$4 sm:$0xff]  }
  0x67   : > { %1250 = vmatpush1.bf16.msra.mxu0 %v4079_v55  ;;  %1352 = vmatpush1.bf16.msra.mxu1 %v4082_v56  ;;  %v4173_v55 = vld [vmem:[%s5950_s1 + $0xcc] ss:$16 sps:$4 sm:$0xff]   ;;  %v4168_v56 = vld [vmem:[%s5950_s1 + $0xc0] ss:$16 sps:$4 sm:$0xff]  }
  0x68   : > { %1251 = vmatprep.subr.bf16.mxu0 %v4087_v57  ;;  %1353 = vmatprep.subr.bf16.mxu1 %v4090_v58  ;;  %v4171_v57 = vld [vmem:[%s5950_s1 + $0xc8] ss:$16 sps:$4 sm:$0xff]   ;;  %v4176_v58 = vld [vmem:[%s5950_s1 + $0xe4] ss:$16 sps:$4 sm:$0xff]  }
  0x6b   : > { %1252 = vmatpush1.bf16.msra.mxu0 %v4085_v59  ;;  %1354 = vmatpush1.bf16.msra.mxu1 %v4088_v60  ;;  %v4179_v59 = vld [vmem:[%s5950_s1 + $0xec] ss:$16 sps:$4 sm:$0xff]   ;;  %v4174_v60 = vld [vmem:[%s5950_s1 + $0xe0] ss:$16 sps:$4 sm:$0xff]  }
  0x6c   : > { %1253 = vmatprep.subr.bf16.mxu0 %v4093_v61  ;;  %1355 = vmatprep.subr.bf16.mxu1 %v4096_v62  ;;  %v4177_v61 = vld [vmem:[%s5950_s1 + $0xe8] ss:$16 sps:$4 sm:$0xff]   ;;  %v4182_v62 = vld [vmem:[%s5950_s1 + $0x104] ss:$16 sps:$4 sm:$0xff]  }
  0x6f   : > { %1254 = vmatpush1.bf16.msra.mxu0 %v4091_v63  ;;  %1356 = vmatpush1.bf16.msra.mxu1 %v4094_v0  ;;  %v4185_v63 = vld [vmem:[%s5950_s1 + $0x10c] ss:$16 sps:$4 sm:$0xff]   ;;  %v4180_v0 = vld [vmem:[%s5950_s1 + $0x100] ss:$16 sps:$4 sm:$0xff]  }
  0x70   : > { %1255 = vmatprep.subr.bf16.mxu0 %v4099_v1  ;;  %1357 = vmatprep.subr.bf16.mxu1 %v4102_v2  ;;  %v4183_v1 = vld [vmem:[%s5950_s1 + $0x108] ss:$16 sps:$4 sm:$0xff]   ;;  %v4188_v2 = vld [vmem:[%s5950_s1 + $0x124] ss:$16 sps:$4 sm:$0xff]  }
  0x73   : > { %1256 = vmatpush1.bf16.msra.mxu0 %v4097_v3  ;;  %1358 = vmatpush1.bf16.msra.mxu1 %v4100_v4  ;;  %v4191_v3 = vld [vmem:[%s5950_s1 + $0x12c] ss:$16 sps:$4 sm:$0xff]   ;;  %v4186_v4 = vld [vmem:[%s5950_s1 + $0x120] ss:$16 sps:$4 sm:$0xff]  }
  0x74   : > { %1257 = vmatprep.subr.bf16.mxu0 %v4105_v6  ;;  %1359 = vmatprep.subr.bf16.mxu1 %v4108_v7  ;;  %v4189_v6 = vld [vmem:[%s5950_s1 + $0x128] ss:$16 sps:$4 sm:$0xff]   ;;  %v4194_v7 = vld [vmem:[%s5950_s1 + $0x144] ss:$16 sps:$4 sm:$0xff]  }
  0x77   : > { %1258 = vmatpush1.bf16.msra.mxu0 %v4103_v8  ;;  %1360 = vmatpush1.bf16.msra.mxu1 %v4106_v9  ;;  %v4197_v8 = vld [vmem:[%s5950_s1 + $0x14c] ss:$16 sps:$4 sm:$0xff]   ;;  %v4192_v9 = vld [vmem:[%s5950_s1 + $0x140] ss:$16 sps:$4 sm:$0xff]  }
  0x78   : > { %1259 = vmatprep.subr.bf16.mxu0 %v4111_v10  ;;  %1361 = vmatprep.subr.bf16.mxu1 %v4114_v11  ;;  %v4195_v10 = vld [vmem:[%s5950_s1 + $0x148] ss:$16 sps:$4 sm:$0xff]   ;;  %v4200_v11 = vld [vmem:[%s5950_s1 + $0x164] ss:$16 sps:$4 sm:$0xff]  }
  0x7b   : > { %1260 = vmatpush1.bf16.msra.mxu0 %v4109_v12  ;;  %1362 = vmatpush1.bf16.msra.mxu1 %v4112_v13  ;;  %v4203_v12 = vld [vmem:[%s5950_s1 + $0x16c] ss:$16 sps:$4 sm:$0xff]   ;;  %v4198_v13 = vld [vmem:[%s5950_s1 + $0x160] ss:$16 sps:$4 sm:$0xff]  }
  0x7c   : > { %1261 = vmatprep.subr.bf16.mxu0 %v4117_v14  ;;  %1363 = vmatprep.subr.bf16.mxu1 %v4120_v15  ;;  %v4201_v14 = vld [vmem:[%s5950_s1 + $0x168] ss:$16 sps:$4 sm:$0xff]   ;;  %v4206_v15 = vld [vmem:[%s5950_s1 + $0x184] ss:$16 sps:$4 sm:$0xff]  }
  0x7f   : > { %1262 = vmatpush1.bf16.msra.mxu0 %v4115_v16  ;;  %1364 = vmatpush1.bf16.msra.mxu1 %v4118_v17  ;;  %v4209_v16 = vld [vmem:[%s5950_s1 + $0x18c] ss:$16 sps:$4 sm:$0xff]   ;;  %v4204_v17 = vld [vmem:[%s5950_s1 + $0x180] ss:$16 sps:$4 sm:$0xff]  }
  0x80   : > { %1263 = vmatprep.subr.bf16.mxu0 %v4123_v20  ;;  %1365 = vmatprep.subr.bf16.mxu1 %v4126_v21  ;;  %v4207_v20 = vld [vmem:[%s5950_s1 + $0x188] ss:$16 sps:$4 sm:$0xff]   ;;  %v4212_v21 = vld [vmem:[%s5950_s1 + $0x1a4] ss:$16 sps:$4 sm:$0xff]  }
  0x83   : > { %1264 = vmatpush1.bf16.msra.mxu0 %v4121_v22  ;;  %1366 = vmatpush1.bf16.msra.mxu1 %v4124_v23  ;;  %v4215_v22 = vld [vmem:[%s5950_s1 + $0x1ac] ss:$16 sps:$4 sm:$0xff]   ;;  %v4210_v23 = vld [vmem:[%s5950_s1 + $0x1a0] ss:$16 sps:$4 sm:$0xff]  }
  0x84   : > { %2038 = vmatprep.subr.bf16.mxu0 %v4134_v26  ;;  %2140 = vmatprep.subr.bf16.mxu1 %v4137_v27  ;;  %v4221_v26 = vld [vmem:[%s5950_s1 + $0x1cc] ss:$16 sps:$4 sm:$0xff]   ;;  %v4216_v27 = vld [vmem:[%s5950_s1 + $0x1c0] ss:$16 sps:$4 sm:$0xff]  }
  0x86   : > { %1266 = vmatmul.mubr.bf16.vlgmr.msra.gmra.mrb[0].mxu0 %v530_v28  ;;  %1368 = vmatmul.mubr.bf16.vlgmr.msra.gmra.mrb[0].mxu1 %v530_v28  ;;  %v4219_v28 = vld [vmem:[%s5950_s1 + $0x1c8] ss:$16 sps:$4 sm:$0xff]  }
  0x87   : > { %2039 = vmatpush1.bf16.msra.mxu0 %v4132_v29  ;;  %2141 = vmatpush1.bf16.msra.mxu1 %v4135_v30  ;;  %v4224_v29 = vld [vmem:[%s5950_s1 + $0x1e4] ss:$16 sps:$4 sm:$0xff]   ;;  %v4227_v30 = vld [vmem:[%s5950_s1 + $0x1ec] ss:$16 sps:$4 sm:$0xff]  }
  0x88   : > { %2040 = vmatprep.subr.bf16.mxu0 %v4140_v31  ;;  %2142 = vmatprep.subr.bf16.mxu1 %v4143_v32  ;;  %v4222_v31 = vld [vmem:[%s5950_s1 + $0x1e0] ss:$16 sps:$4 sm:$0xff]   ;;  %v4225_v32 = vld [vmem:[%s5950_s1 + $0x1e8] ss:$16 sps:$4 sm:$0xff]  }
  0x89   : > { %1275 = vmatprep.mubr.bf16.mxu0 %v4896_v47  ;;  %1377 = vmatprep.mubr.bf16.mxu1 %v4896_v47  ;;  %v4156_v47 = vld [vmem:[%s5950_s1 + $0x80] ss:$16 sps:$4 sm:$0xff]  }
  0x8b   : > { %2041 = vmatpush1.bf16.msra.mxu0 %v4138_v33  ;;  %2143 = vmatpush1.bf16.msra.mxu1 %v4141_v34  ;;  %v4230_v33 = vld [vmem:[%s5950_s1 + $0x204] ss:$16 sps:$4 sm:$0xff]   ;;  %v4233_v34 = vld [vmem:[%s5950_s1 + $0x20c] ss:$16 sps:$4 sm:$0xff]  }
  0x8c   : > { %2042 = vmatprep.subr.bf16.mxu0 %v4146_v35  ;;  %2144 = vmatprep.subr.bf16.mxu1 %v4149_v36  ;;  %v4228_v35 = vld [vmem:[%s5950_s1 + $0x200] ss:$16 sps:$4 sm:$0xff]   ;;  %v4231_v36 = vld [vmem:[%s5950_s1 + $0x208] ss:$16 sps:$4 sm:$0xff]  }
  0x8e   : > { %1276 = vmatmul.mubr.bf16.gmra.mrb[8].mxu0 %v529_v25  ;;  %1378 = vmatmul.mubr.bf16.gmra.mrb[8].mxu1 %v529_v25  ;;  %v4218_v25 = vld [vmem:[%s5950_s1 + $0x1c4] ss:$16 sps:$4 sm:$0xff]  }
  0x8f   : > { %2043 = vmatpush1.bf16.msra.mxu0 %v4144_v37  ;;  %2145 = vmatpush1.bf16.msra.mxu1 %v4147_v38  ;;  %v4236_v37 = vld [vmem:[%s5950_s1 + $0x224] ss:$16 sps:$4 sm:$0xff]   ;;  %v4239_v38 = vld [vmem:[%s5950_s1 + $0x22c] ss:$16 sps:$4 sm:$0xff]  }
  0x90   : > { %2044 = vmatprep.subr.bf16.mxu0 %v4152_v39  ;;  %2146 = vmatprep.subr.bf16.mxu1 %v4155_v40  ;;  %v4520_v39 = vld [vmem:[%s4717_s21 + $0x20] sm:$0xff] }
  0x91   : > { %2070 = vmatprep.mubr.bf16.mxu0 %v4731_v50  ;;  %2172 = vmatprep.mubr.bf16.mxu1 %v4731_v50  ;;  %v4167_v50 = vld [vmem:[%s5950_s1 + $0xac] ss:$16 sps:$4 sm:$0xff]   ;;  %v3607_v40 = vcombine.high %v4520_v39, %v4520_v39 }
  0x93   : > { %2045 = vmatpush1.bf16.msra.mxu0 %v4150_v41  ;;  %2147 = vmatpush1.bf16.msra.mxu1 %v4153_v42  ;;  %v5228_v41 = vld [vmem:[%s4717_s21] ss:$16 sps:$4 sm:$0xff]  }
  0x94   : > { %2046 = vmatprep.subr.bf16.mxu0 %v4158_v43  ;;  %2148 = vmatprep.subr.bf16.mxu1 %v4161_v46  ;;  %v4234_v42 = vld [vmem:[%s5950_s1 + $0x220] ss:$16 sps:$4 sm:$0xff]   ;;  %v4237_v43 = vld [vmem:[%s5950_s1 + $0x228] ss:$16 sps:$4 sm:$0xff]   ;;  %v4244_v46 = vld [vmem:[%s5950_s1 + $0x244] ss:$16 sps:$4 sm:$0xff]  }
  0x97   : > { %2047 = vmatpush1.bf16.msra.mxu0 %v4156_v47  ;;  %2149 = vmatpush1.bf16.msra.mxu1 %v4159_v48  ;;  %v4247_v47 = vld [vmem:[%s5950_s1 + $0x24c] ss:$16 sps:$4 sm:$0xff]   ;;  %v3606_v48 = vcombine.low %v4520_v39, %v4520_v39 }
  0x98   : > { %2048 = vmatprep.subr.bf16.mxu0 %v4164_v49  ;;  %2150 = vmatprep.subr.bf16.mxu1 %v4167_v50  ;;  %v4242_v49 = vld [vmem:[%s5950_s1 + $0x240] ss:$16 sps:$4 sm:$0xff]   ;;  %v4245_v50 = vld [vmem:[%s5950_s1 + $0x248] ss:$16 sps:$4 sm:$0xff]   ;;  %v4325_v39 = vld [vmem:[%s5950_s1 + $0x3ec] ss:$16 sps:$4 sm:$0xff]  }
  0x9b   : > { %2049 = vmatpush1.bf16.msra.mxu0 %v4162_v52  ;;  %2151 = vmatpush1.bf16.msra.mxu1 %v4165_v53  ;;  %v4250_v52 = vld [vmem:[%s5950_s1 + $0x264] ss:$16 sps:$4 sm:$0xff]   ;;  %v4253_v53 = vld [vmem:[%s5950_s1 + $0x26c] ss:$16 sps:$4 sm:$0xff]  }
  0x9c   : > { %2050 = vmatprep.subr.bf16.mxu0 %v4170_v54  ;;  %2152 = vmatprep.subr.bf16.mxu1 %v4173_v55  ;;  %v4248_v54 = vld [vmem:[%s5950_s1 + $0x260] ss:$16 sps:$4 sm:$0xff]   ;;  %v4251_v55 = vld [vmem:[%s5950_s1 + $0x268] ss:$16 sps:$4 sm:$0xff]  }
  0x9f   : > { %2051 = vmatpush1.bf16.msra.mxu0 %v4168_v56  ;;  %2153 = vmatpush1.bf16.msra.mxu1 %v4171_v57  ;;  %v4256_v56 = vld [vmem:[%s5950_s1 + $0x284] ss:$16 sps:$4 sm:$0xff]   ;;  %v4259_v57 = vld [vmem:[%s5950_s1 + $0x28c] ss:$16 sps:$4 sm:$0xff]  }
  0xa0   : > { %2052 = vmatprep.subr.bf16.mxu0 %v4176_v58  ;;  %2154 = vmatprep.subr.bf16.mxu1 %v4179_v59  ;;  %v4254_v58 = vld [vmem:[%s5950_s1 + $0x280] ss:$16 sps:$4 sm:$0xff]   ;;  %v4257_v59 = vld [vmem:[%s5950_s1 + $0x288] ss:$16 sps:$4 sm:$0xff]  }
  0xa3   : > { %2053 = vmatpush1.bf16.msra.mxu0 %v4174_v60  ;;  %2155 = vmatpush1.bf16.msra.mxu1 %v4177_v61  ;;  %v4262_v60 = vld [vmem:[%s5950_s1 + $0x2a4] ss:$16 sps:$4 sm:$0xff]   ;;  %v4260_v61 = vld [vmem:[%s5950_s1 + $0x2a0] ss:$16 sps:$4 sm:$0xff]  }
  0xa4   : > { %2054 = vmatprep.subr.bf16.mxu0 %v4182_v62  ;;  %2156 = vmatprep.subr.bf16.mxu1 %v4185_v63  ;;  %v4263_v62 = vld [vmem:[%s5950_s1 + $0x2a8] ss:$16 sps:$4 sm:$0xff]   ;;  %v4268_v63 = vld [vmem:[%s5950_s1 + $0x2c4] ss:$16 sps:$4 sm:$0xff]  }
  0xa7   : > { %2055 = vmatpush1.bf16.msra.mxu0 %v4180_v0  ;;  %2157 = vmatpush1.bf16.msra.mxu1 %v4183_v1  ;;  %v4271_v0 = vld [vmem:[%s5950_s1 + $0x2cc] ss:$16 sps:$4 sm:$0xff]   ;;  %v4266_v1 = vld [vmem:[%s5950_s1 + $0x2c0] ss:$16 sps:$4 sm:$0xff]  }
  0xa8   : > { %2056 = vmatprep.subr.bf16.mxu0 %v4188_v2  ;;  %2158 = vmatprep.subr.bf16.mxu1 %v4191_v3  ;;  %v4269_v2 = vld [vmem:[%s5950_s1 + $0x2c8] ss:$16 sps:$4 sm:$0xff]   ;;  %v4274_v3 = vld [vmem:[%s5950_s1 + $0x2e4] ss:$16 sps:$4 sm:$0xff]  }
  0xab   : > { %2057 = vmatpush1.bf16.msra.mxu0 %v4186_v4  ;;  %2159 = vmatpush1.bf16.msra.mxu1 %v4189_v6  ;;  %v4277_v4 = vld [vmem:[%s5950_s1 + $0x2ec] ss:$16 sps:$4 sm:$0xff]   ;;  %v4272_v6 = vld [vmem:[%s5950_s1 + $0x2e0] ss:$16 sps:$4 sm:$0xff]  }
  0xac   : > { %2058 = vmatprep.subr.bf16.mxu0 %v4194_v7  ;;  %2160 = vmatprep.subr.bf16.mxu1 %v4197_v8  ;;  %v4275_v7 = vld [vmem:[%s5950_s1 + $0x2e8] ss:$16 sps:$4 sm:$0xff]   ;;  %v4280_v8 = vld [vmem:[%s5950_s1 + $0x304] ss:$16 sps:$4 sm:$0xff]  }
  0xaf   : > { %2059 = vmatpush1.bf16.msra.mxu0 %v4192_v9  ;;  %2161 = vmatpush1.bf16.msra.mxu1 %v4195_v10  ;;  %v4283_v9 = vld [vmem:[%s5950_s1 + $0x30c] ss:$16 sps:$4 sm:$0xff]   ;;  %v4278_v10 = vld [vmem:[%s5950_s1 + $0x300] ss:$16 sps:$4 sm:$0xff]  }
  0xb0   : > { %2060 = vmatprep.subr.bf16.mxu0 %v4200_v11  ;;  %2162 = vmatprep.subr.bf16.mxu1 %v4203_v12  ;;  %v4281_v11 = vld [vmem:[%s5950_s1 + $0x308] ss:$16 sps:$4 sm:$0xff]   ;;  %v4286_v12 = vld [vmem:[%s5950_s1 + $0x324] ss:$16 sps:$4 sm:$0xff]  }
  0xb3   : > { %2061 = vmatpush1.bf16.msra.mxu0 %v4198_v13  ;;  %2163 = vmatpush1.bf16.msra.mxu1 %v4201_v14  ;;  %v4289_v13 = vld [vmem:[%s5950_s1 + $0x32c] ss:$16 sps:$4 sm:$0xff]   ;;  %v4284_v14 = vld [vmem:[%s5950_s1 + $0x320] ss:$16 sps:$4 sm:$0xff]  }
  0xb4   : > { %2062 = vmatprep.subr.bf16.mxu0 %v4206_v15  ;;  %2164 = vmatprep.subr.bf16.mxu1 %v4209_v16  ;;  %v4287_v15 = vld [vmem:[%s5950_s1 + $0x328] ss:$16 sps:$4 sm:$0xff]   ;;  %v4292_v16 = vld [vmem:[%s5950_s1 + $0x344] ss:$16 sps:$4 sm:$0xff]  }
  0xb7   : > { %2063 = vmatpush1.bf16.msra.mxu0 %v4204_v17  ;;  %2165 = vmatpush1.bf16.msra.mxu1 %v4207_v20  ;;  %v4295_v17 = vld [vmem:[%s5950_s1 + $0x34c] ss:$16 sps:$4 sm:$0xff]   ;;  %v4290_v20 = vld [vmem:[%s5950_s1 + $0x340] ss:$16 sps:$4 sm:$0xff]  }
  0xb8   : > { %2064 = vmatprep.subr.bf16.mxu0 %v4212_v21  ;;  %2166 = vmatprep.subr.bf16.mxu1 %v4215_v22  ;;  %v4293_v21 = vld [vmem:[%s5950_s1 + $0x348] ss:$16 sps:$4 sm:$0xff]   ;;  %v4298_v22 = vld [vmem:[%s5950_s1 + $0x364] ss:$16 sps:$4 sm:$0xff]  }
  0xbb   : > { %2065 = vmatpush1.bf16.msra.mxu0 %v4210_v23  ;;  %2167 = vmatpush1.bf16.msra.mxu1 %v4213_v24  ;;  %v4301_v23 = vld [vmem:[%s5950_s1 + $0x36c] ss:$16 sps:$4 sm:$0xff]   ;;  %v4296_v24 = vld [vmem:[%s5950_s1 + $0x360] ss:$16 sps:$4 sm:$0xff]  }
  0xbc   : > { %2066 = vmatprep.subr.bf16.mxu0 %v4218_v25  ;;  %2168 = vmatprep.subr.bf16.mxu1 %v4221_v26  ;;  %v4299_v25 = vld [vmem:[%s5950_s1 + $0x368] ss:$16 sps:$4 sm:$0xff]   ;;  %v4304_v26 = vld [vmem:[%s5950_s1 + $0x384] ss:$16 sps:$4 sm:$0xff]  }
  0xbf   : > { %2067 = vmatpush1.bf16.msra.mxu0 %v4216_v27  ;;  %2169 = vmatpush1.bf16.msra.mxu1 %v4219_v28  ;;  %v4307_v27 = vld [vmem:[%s5950_s1 + $0x38c] ss:$16 sps:$4 sm:$0xff]   ;;  %v4302_v28 = vld [vmem:[%s5950_s1 + $0x380] ss:$16 sps:$4 sm:$0xff]  }
  0xc0   : > { %2068 = vmatprep.subr.bf16.mxu0 %v4224_v29  ;;  %2170 = vmatprep.subr.bf16.mxu1 %v4227_v30  ;;  %v4305_v29 = vld [vmem:[%s5950_s1 + $0x388] ss:$16 sps:$4 sm:$0xff]   ;;  %v4310_v30 = vld [vmem:[%s5950_s1 + $0x3a4] ss:$16 sps:$4 sm:$0xff]  }
  0xc3   : > { %2069 = vmatpush1.bf16.msra.mxu0 %v4222_v31  ;;  %2171 = vmatpush1.bf16.msra.mxu1 %v4225_v32  ;;  %v4313_v31 = vld [vmem:[%s5950_s1 + $0x3ac] ss:$16 sps:$4 sm:$0xff]   ;;  %v4308_v32 = vld [vmem:[%s5950_s1 + $0x3a0] ss:$16 sps:$4 sm:$0xff]  }
  0xc4   : > { %2089 = vmatprep.subr.bf16.mxu0 %v4230_v33  ;;  %2191 = vmatprep.subr.bf16.mxu1 %v4233_v34  ;;  %v4311_v33 = vld [vmem:[%s5950_s1 + $0x3a8] ss:$16 sps:$4 sm:$0xff]   ;;  %v4316_v34 = vld [vmem:[%s5950_s1 + $0x3c4] ss:$16 sps:$4 sm:$0xff]  }
  0xc6   : > { %2071 = vmatmul.mubr.bf16.vlgmr.msra.gmra.mrb[0].mxu0 %v5228_v41  ;;  %2173 = vmatmul.mubr.bf16.vlgmr.msra.gmra.mrb[0].mxu1 %v5228_v41 }
  0xc7   : > { %2090 = vmatpush1.bf16.msra.mxu0 %v4228_v35  ;;  %2192 = vmatpush1.bf16.msra.mxu1 %v4231_v36  ;;  %v4319_v35 = vld [vmem:[%s5950_s1 + $0x3cc] ss:$16 sps:$4 sm:$0xff]   ;;  %v4314_v36 = vld [vmem:[%s5950_s1 + $0x3c0] ss:$16 sps:$4 sm:$0xff]  }
  0xc8   : > { %2091 = vmatprep.subr.bf16.mxu0 %v4236_v37  ;;  %2193 = vmatprep.subr.bf16.mxu1 %v4239_v38  ;;  %v4317_v37 = vld [vmem:[%s5950_s1 + $0x3c8] ss:$16 sps:$4 sm:$0xff]   ;;  %v4322_v38 = vld [vmem:[%s5950_s1 + $0x3e4] ss:$16 sps:$4 sm:$0xff]  }
  0xc9   : > { %2080 = vmatprep.mubr.bf16.mxu0 %v3607_v40  ;;  %2182 = vmatprep.mubr.bf16.mxu1 %v3607_v40  ;;  %v4320_v40 = vld [vmem:[%s5950_s1 + $0x3e0] ss:$16 sps:$4 sm:$0xff]  }
  0xcb   : > { %2092 = vmatpush1.bf16.msra.mxu0 %v4234_v42  ;;  %2194 = vmatpush1.bf16.msra.mxu1 %v4237_v43  ;;  %v4323_v42 = vld [vmem:[%s5950_s1 + $0x3e8] ss:$16 sps:$4 sm:$0xff]   ;;  %v4328_v43 = vld [vmem:[%s5950_s1 + $0x804] ss:$16 sps:$4 sm:$0xff]  }
  0xcc   : > { %2093 = vmatprep.subr.bf16.mxu0 %v4244_v46  ;;  %2195 = vmatprep.subr.bf16.mxu1 %v4247_v47  ;;  %v4331_v46 = vld [vmem:[%s5950_s1 + $0x80c] ss:$16 sps:$4 sm:$0xff]   ;;  %v4326_v47 = vld [vmem:[%s5950_s1 + $0x800] ss:$16 sps:$4 sm:$0xff]  }
  0xce   : > { %2081 = vmatmul.mubr.bf16.gmra.mrb[12].mxu0 %v3606_v48  ;;  %2183 = vmatmul.mubr.bf16.gmra.mrb[12].mxu1 %v3606_v48  ;;  %v4329_v48 = vld [vmem:[%s5950_s1 + $0x808] ss:$16 sps:$4 sm:$0xff]  }
  0xcf   : > { %2094 = vmatpush1.bf16.msra.mxu0 %v4242_v49  ;;  %2196 = vmatpush1.bf16.msra.mxu1 %v4245_v50  ;;  %v4334_v49 = vld [vmem:[%s5950_s1 + $0x824] ss:$16 sps:$4 sm:$0xff]   ;;  %v4337_v50 = vld [vmem:[%s5950_s1 + $0x82c] ss:$16 sps:$4 sm:$0xff]  }
  0xd0   : > { %2095 = vmatprep.subr.bf16.mxu0 %v4250_v52  ;;  %2197 = vmatprep.subr.bf16.mxu1 %v4253_v53  ;;  %v4522_v52 = vld [vmem:[%s4717_s21 + $0x28] sm:$0xff] }
  0xd1   : > { %2121 = vmatprep.mubr.bf16.mxu0 %v4888_v44  ;;  %2223 = vmatprep.mubr.bf16.mxu1 %v4888_v44  ;;  %v4265_v44 = vld [vmem:[%s5950_s1 + $0x2ac] ss:$16 sps:$4 sm:$0xff]   ;;  %v3609_v53 = vcombine.high %v4522_v52, %v4522_v52 }
  0xd3   : > { %2096 = vmatpush1.bf16.msra.mxu0 %v4248_v54  ;;  %2198 = vmatpush1.bf16.msra.mxu1 %v4251_v55  ;;  %v4332_v54 = vld [vmem:[%s5950_s1 + $0x820] ss:$16 sps:$4 sm:$0xff]   ;;  %v4335_v55 = vld [vmem:[%s5950_s1 + $0x828] ss:$16 sps:$4 sm:$0xff]  }
  0xd4   : > { %2097 = vmatprep.subr.bf16.mxu0 %v4256_v56  ;;  %2199 = vmatprep.subr.bf16.mxu1 %v4259_v57  ;;  %v4342_v56 = vld [vmem:[%s5950_s1 + $0x844] ss:$16 sps:$4 sm:$0xff]   ;;  %v3608_v57 = vcombine.low %v4522_v52, %v4522_v52  ;;  %v4403_v52 = vld [vmem:[%s5950_s1 + $0x988] ss:$16 sps:$4 sm:$0xff]  }
  0xd7   : > { %2098 = vmatpush1.bf16.msra.mxu0 %v4254_v58  ;;  %2200 = vmatpush1.bf16.msra.mxu1 %v4257_v59  ;;  %v4523_v58 = vld [vmem:[%s4717_s21 + $0x4] ss:$16 sps:$4 sm:$0xff]  }
  0xd8   : > { %2099 = vmatprep.subr.bf16.mxu0 %v4262_v60  ;;  %2201 = vmatprep.subr.bf16.mxu1 %v4265_v44  ;;  %v2374_v59 = vrot.slane %v4523_v58, 2  ;;  %v5443_v60 = vrot.slane %v4733_v51, 2  ;;  %v4340_v44 = vld [vmem:[%s5950_s1 + $0x840] ss:$16 sps:$4 sm:$0xff]   ;;  %v4351_v51 = vld [vmem:[%s5950_s1 + $0x86c] ss:$16 sps:$4 sm:$0xff]  }
  0xd9   : > { %v4412_v58 = vld [vmem:[%s5950_s1 + $0x9c0] ss:$16 sps:$4 sm:$0xff]  }
  0xdb   : > { %2100 = vmatpush1.bf16.msra.mxu0 %v4260_v61  ;;  %2202 = vmatpush1.bf16.msra.mxu1 %v4263_v62  ;;  %v4343_v61 = vld [vmem:[%s5950_s1 + $0x848] ss:$16 sps:$4 sm:$0xff]   ;;  %v4348_v62 = vld [vmem:[%s5950_s1 + $0x864] ss:$16 sps:$4 sm:$0xff]  }
  0xdc   : > { %2101 = vmatprep.subr.bf16.mxu0 %v4268_v63  ;;  %2203 = vmatprep.subr.bf16.mxu1 %v4271_v0  ;;  %v2376_v63 = vsel %vm2370_vm1, %v2374_v59, %v5443_v60  ;;  %v4346_v0 = vld [vmem:[%s5950_s1 + $0x860] ss:$16 sps:$4 sm:$0xff]   ;;  %v4415_v59 = vld [vmem:[%s5950_s1 + $0x9c8] ss:$16 sps:$4 sm:$0xff]  }
  0xdf   : > { %2102 = vmatpush1.bf16.msra.mxu0 %v4266_v1  ;;  %2204 = vmatpush1.bf16.msra.mxu1 %v4269_v2  ;;  %v4349_v1 = vld [vmem:[%s5950_s1 + $0x868] ss:$16 sps:$4 sm:$0xff]   ;;  %v4354_v2 = vld [vmem:[%s5950_s1 + $0x884] ss:$16 sps:$4 sm:$0xff]  }
  0xe0   : > { %2103 = vmatprep.subr.bf16.mxu0 %v4274_v3  ;;  %2205 = vmatprep.subr.bf16.mxu1 %v4277_v4  ;;  %v4357_v3 = vld [vmem:[%s5950_s1 + $0x88c] ss:$16 sps:$4 sm:$0xff]   ;;  %v4352_v4 = vld [vmem:[%s5950_s1 + $0x880] ss:$16 sps:$4 sm:$0xff]  }
  0xe3   : > { %2104 = vmatpush1.bf16.msra.mxu0 %v4272_v6  ;;  %2206 = vmatpush1.bf16.msra.mxu1 %v4275_v7  ;;  %v4355_v6 = vld [vmem:[%s5950_s1 + $0x888] ss:$16 sps:$4 sm:$0xff]   ;;  %v4360_v7 = vld [vmem:[%s5950_s1 + $0x8a4] ss:$16 sps:$4 sm:$0xff]  }
  0xe4   : > { %2105 = vmatprep.subr.bf16.mxu0 %v4280_v8  ;;  %2207 = vmatprep.subr.bf16.mxu1 %v4283_v9  ;;  %v4363_v8 = vld [vmem:[%s5950_s1 + $0x8ac] ss:$16 sps:$4 sm:$0xff]   ;;  %v4358_v9 = vld [vmem:[%s5950_s1 + $0x8a0] ss:$16 sps:$4 sm:$0xff]  }
  0xe7   : > { %2106 = vmatpush1.bf16.msra.mxu0 %v4278_v10  ;;  %2208 = vmatpush1.bf16.msra.mxu1 %v4281_v11  ;;  %v4361_v10 = vld [vmem:[%s5950_s1 + $0x8a8] ss:$16 sps:$4 sm:$0xff]   ;;  %v4366_v11 = vld [vmem:[%s5950_s1 + $0x8c4] ss:$16 sps:$4 sm:$0xff]  }
  0xe8   : > { %2107 = vmatprep.subr.bf16.mxu0 %v4286_v12  ;;  %2209 = vmatprep.subr.bf16.mxu1 %v4289_v13  ;;  %v4369_v12 = vld [vmem:[%s5950_s1 + $0x8cc] ss:$16 sps:$4 sm:$0xff]   ;;  %v4364_v13 = vld [vmem:[%s5950_s1 + $0x8c0] ss:$16 sps:$4 sm:$0xff]  }
  0xeb   : > { %2108 = vmatpush1.bf16.msra.mxu0 %v4284_v14  ;;  %2210 = vmatpush1.bf16.msra.mxu1 %v4287_v15  ;;  %v4367_v14 = vld [vmem:[%s5950_s1 + $0x8c8] ss:$16 sps:$4 sm:$0xff]   ;;  %v4372_v15 = vld [vmem:[%s5950_s1 + $0x8e4] ss:$16 sps:$4 sm:$0xff]  }
  0xec   : > { %2109 = vmatprep.subr.bf16.mxu0 %v4292_v16  ;;  %2211 = vmatprep.subr.bf16.mxu1 %v4295_v17  ;;  %v4375_v16 = vld [vmem:[%s5950_s1 + $0x8ec] ss:$16 sps:$4 sm:$0xff]   ;;  %v4370_v17 = vld [vmem:[%s5950_s1 + $0x8e0] ss:$16 sps:$4 sm:$0xff]  }
  0xef   : > { %2110 = vmatpush1.bf16.msra.mxu0 %v4290_v20  ;;  %2212 = vmatpush1.bf16.msra.mxu1 %v4293_v21  ;;  %v4373_v20 = vld [vmem:[%s5950_s1 + $0x8e8] ss:$16 sps:$4 sm:$0xff]   ;;  %v4378_v21 = vld [vmem:[%s5950_s1 + $0x904] ss:$16 sps:$4 sm:$0xff]  }
  0xf0   : > { %2111 = vmatprep.subr.bf16.mxu0 %v4298_v22  ;;  %2213 = vmatprep.subr.bf16.mxu1 %v4301_v23  ;;  %v4381_v22 = vld [vmem:[%s5950_s1 + $0x90c] ss:$16 sps:$4 sm:$0xff]  }
  0xf3   : > { %2112 = vmatpush1.bf16.msra.mxu0 %v4296_v24  ;;  %2214 = vmatpush1.bf16.msra.mxu1 %v4299_v25 }
  0xf4   : > { %2113 = vmatprep.subr.bf16.mxu0 %v4304_v26  ;;  %2215 = vmatprep.subr.bf16.mxu1 %v4307_v27  ;;  %v4376_v27 = vld [vmem:[%s5950_s1 + $0x900] ss:$16 sps:$4 sm:$0xff]  }
  0xf7   : > { %2114 = vmatpush1.bf16.msra.mxu0 %v4302_v28  ;;  %2216 = vmatpush1.bf16.msra.mxu1 %v4305_v29  ;;  %v4379_v28 = vld [vmem:[%s5950_s1 + $0x908] ss:$16 sps:$4 sm:$0xff]  }
  0xf8   : > { %2115 = vmatprep.subr.bf16.mxu0 %v4310_v30  ;;  %2217 = vmatprep.subr.bf16.mxu1 %v4313_v31  ;;  %v4384_v31 = vld [vmem:[%s5950_s1 + $0x924] ss:$16 sps:$4 sm:$0xff]  }
  0xfb   : > { %2116 = vmatpush1.bf16.msra.mxu0 %v4308_v32  ;;  %2218 = vmatpush1.bf16.msra.mxu1 %v4311_v33  ;;  %v4387_v32 = vld [vmem:[%s5950_s1 + $0x92c] ss:$16 sps:$4 sm:$0xff]  }
  0xfc   : > { %2117 = vmatprep.subr.bf16.mxu0 %v4316_v34  ;;  %2219 = vmatprep.subr.bf16.mxu1 %v4319_v35  ;;  %v4382_v35 = vld [vmem:[%s5950_s1 + $0x920] ss:$16 sps:$4 sm:$0xff]  }
  0xff   : > { %2118 = vmatpush1.bf16.msra.mxu0 %v4314_v36  ;;  %2220 = vmatpush1.bf16.msra.mxu1 %v4317_v37  ;;  %v4385_v36 = vld [vmem:[%s5950_s1 + $0x928] ss:$16 sps:$4 sm:$0xff]   ;;  %v4390_v37 = vld [vmem:[%s5950_s1 + $0x944] ss:$16 sps:$4 sm:$0xff]  }
 0x100   : > { %2119 = vmatprep.subr.bf16.mxu0 %v4322_v38  ;;  %2221 = vmatprep.subr.bf16.mxu1 %v4325_v39  ;;  %v4393_v38 = vld [vmem:[%s5950_s1 + $0x94c] ss:$16 sps:$4 sm:$0xff]   ;;  %v4388_v39 = vld [vmem:[%s5950_s1 + $0x940] ss:$16 sps:$4 sm:$0xff]  }
 0x103   : > { %2120 = vmatpush1.bf16.msra.mxu0 %v4320_v40  ;;  %2222 = vmatpush1.bf16.msra.mxu1 %v4323_v42  ;;  %v4391_v40 = vld [vmem:[%s5950_s1 + $0x948] ss:$16 sps:$4 sm:$0xff]   ;;  %v4396_v42 = vld [vmem:[%s5950_s1 + $0x964] ss:$16 sps:$4 sm:$0xff]  }
 0x104   : > { %3031 = vmatprep.subr.bf16.mxu0 %v4328_v43  ;;  %3133 = vmatprep.subr.bf16.mxu1 %v4331_v46  ;;  %v4399_v43 = vld [vmem:[%s5950_s1 + $0x96c] ss:$16 sps:$4 sm:$0xff]   ;;  %v4394_v46 = vld [vmem:[%s5950_s1 + $0x960] ss:$16 sps:$4 sm:$0xff]  }
 0x106   : > { %2122 = vmatmul.mubr.bf16.vlgmr.msra.gmra.mrb[0].mxu0 %v4991_v18  ;;  %2224 = vmatmul.mubr.bf16.vlgmr.msra.gmra.mrb[0].mxu1 %v4991_v18  ;;  %v4345_v18 = vld [vmem:[%s5950_s1 + $0x84c] ss:$16 sps:$4 sm:$0xff]  }
 0x107   : > { %3032 = vmatpush1.bf16.msra.mxu0 %v4326_v47  ;;  %3134 = vmatpush1.bf16.msra.mxu1 %v4329_v48  ;;  %v4397_v47 = vld [vmem:[%s5950_s1 + $0x968] ss:$16 sps:$4 sm:$0xff]   ;;  %v4402_v48 = vld [vmem:[%s5950_s1 + $0x984] ss:$16 sps:$4 sm:$0xff]  }
 0x108   : > { %3033 = vmatprep.subr.bf16.mxu0 %v4334_v49  ;;  %3135 = vmatprep.subr.bf16.mxu1 %v4337_v50  ;;  %v4405_v49 = vld [vmem:[%s5950_s1 + $0x98c] ss:$16 sps:$4 sm:$0xff]   ;;  %v4400_v50 = vld [vmem:[%s5950_s1 + $0x980] ss:$16 sps:$4 sm:$0xff]  }
 0x109   : > { %2131 = vmatprep.mubr.bf16.mxu0 %v3609_v53  ;;  %2233 = vmatprep.mubr.bf16.mxu1 %v3609_v53  ;;  %v4408_v53 = vld [vmem:[%s5950_s1 + $0x9a4] ss:$16 sps:$4 sm:$0xff]  }
 0x10b   : > { %3034 = vmatpush1.bf16.msra.mxu0 %v4332_v54  ;;  %3136 = vmatpush1.bf16.msra.mxu1 %v4335_v55  ;;  %v4411_v54 = vld [vmem:[%s5950_s1 + $0x9ac] ss:$16 sps:$4 sm:$0xff]   ;;  %v4406_v55 = vld [vmem:[%s5950_s1 + $0x9a0] ss:$16 sps:$4 sm:$0xff]  }
 0x10c   : > { %3035 = vmatprep.subr.bf16.mxu0 %v4342_v56  ;;  %3137 = vmatprep.subr.bf16.mxu1 %v4345_v18  ;;  %v4409_v56 = vld [vmem:[%s5950_s1 + $0x9a8] ss:$16 sps:$4 sm:$0xff]   ;;  %v4414_v18 = vld [vmem:[%s5950_s1 + $0x9c4] ss:$16 sps:$4 sm:$0xff]  }
 0x10e   : > { %2132 = vmatmul.mubr.bf16.gmra.mrb[16].mxu0 %v3608_v57  ;;  %2234 = vmatmul.mubr.bf16.gmra.mrb[16].mxu1 %v3608_v57  ;;  %v4417_v57 = vld [vmem:[%s5950_s1 + $0x9cc] ss:$16 sps:$4 sm:$0xff]  }
 0x10f   : > { %3036 = vmatpush1.bf16.msra.mxu0 %v4340_v44  ;;  %3138 = vmatpush1.bf16.msra.mxu1 %v4343_v61  ;;  %v4420_v44 = vld [vmem:[%s5950_s1 + $0x9e4] ss:$16 sps:$4 sm:$0xff]   ;;  %v4423_v61 = vld [vmem:[%s5950_s1 + $0x9ec] ss:$16 sps:$4 sm:$0xff]  }
 0x110   : > { %3037 = vmatprep.subr.bf16.mxu0 %v4348_v62  ;;  %3139 = vmatprep.subr.bf16.mxu1 %v4351_v51  ;;  %v4418_v62 = vld [vmem:[%s5950_s1 + $0x9e0] ss:$16 sps:$4 sm:$0xff]   ;;  %v4421_v51 = vld [vmem:[%s5950_s1 + $0x9e8] ss:$16 sps:$4 sm:$0xff]  }
 0x111   : > { %3063 = vmatprep.mubr.bf16.mxu0 %v2376_v63  ;;  %3165 = vmatprep.mubr.bf16.mxu1 %v2376_v63  ;;  %v2371_v63 = vrot.slane %v5228_v41, 2 }
 0x113   : > { %3038 = vmatpush1.bf16.msra.mxu0 %v4346_v0  ;;  %3140 = vmatpush1.bf16.msra.mxu1 %v4349_v1  ;;  %v2372_v0 = vrot.slane %v4778_v5, 2  ;;  %v4426_v1 = vld [vmem:[%s5950_s1 + $0xa04] ss:$16 sps:$4 sm:$0xff]   ;;  %v4427_v5 = vld [vmem:[%s5950_s1 + $0xa08] ss:$16 sps:$4 sm:$0xff]  }
 0x114   : > { %3039 = vmatprep.subr.bf16.mxu0 %v4354_v2  ;;  %3141 = vmatprep.subr.bf16.mxu1 %v4357_v3  ;;  %v4429_v2 = vld [vmem:[%s5950_s1 + $0xa0c] ss:$16 sps:$4 sm:$0xff]   ;;  %v4424_v3 = vld [vmem:[%s5950_s1 + $0xa00] ss:$16 sps:$4 sm:$0xff]  }
 0x115   : > { %v2373_v41 = vsel %vm2370_vm1, %v2371_v63, %v2372_v0  ;;  %v4492_v63 = vld [vmem:[%s5950_s1 + $0xb64] ss:$16 sps:$4 sm:$0xff]  }
 0x117   : > { %3040 = vmatpush1.bf16.msra.mxu0 %v4352_v4  ;;  %3142 = vmatpush1.bf16.msra.mxu1 %v4355_v6  ;;  %v4432_v4 = vld [vmem:[%s5950_s1 + $0xa24] ss:$16 sps:$4 sm:$0xff]   ;;  %v4435_v6 = vld [vmem:[%s5950_s1 + $0xa2c] ss:$16 sps:$4 sm:$0xff]  }
 0x118   : > { %3041 = vmatprep.subr.bf16.mxu0 %v4360_v7  ;;  %3143 = vmatprep.subr.bf16.mxu1 %v4363_v8  ;;  %v4430_v7 = vld [vmem:[%s5950_s1 + $0xa20] ss:$16 sps:$4 sm:$0xff]   ;;  %v4433_v8 = vld [vmem:[%s5950_s1 + $0xa28] ss:$16 sps:$4 sm:$0xff]  }
 0x11b   : > { %3042 = vmatpush1.bf16.msra.mxu0 %v4358_v9  ;;  %3144 = vmatpush1.bf16.msra.mxu1 %v4361_v10  ;;  %v4438_v9 = vld [vmem:[%s5950_s1 + $0xa44] ss:$16 sps:$4 sm:$0xff]   ;;  %v4441_v10 = vld [vmem:[%s5950_s1 + $0xa4c] ss:$16 sps:$4 sm:$0xff]  }
 0x11c   : > { %3043 = vmatprep.subr.bf16.mxu0 %v4366_v11  ;;  %3145 = vmatprep.subr.bf16.mxu1 %v4369_v12  ;;  %v4524_v11 = vld [vmem:[%s4717_s21 + $0xc] ss:$16 sps:$4 sm:$0xff]  }
 0x11d   : > { %v2380_v12 = vrot.slane %v4524_v11, 2  ;;  %v4513_v11 = vld [vmem:[%s5950_s1 + $0xbcc] ss:$16 sps:$4 sm:$0xff]  }
 0x11f   : > { %3044 = vmatpush1.bf16.msra.mxu0 %v4364_v13  ;;  %3146 = vmatpush1.bf16.msra.mxu1 %v4367_v14  ;;  %v5654_v13 = vrot.slane %v4892_v45, 2  ;;  %v4436_v14 = vld [vmem:[%s5950_s1 + $0xa40] ss:$16 sps:$4 sm:$0xff]   ;;  %v4447_v45 = vld [vmem:[%s5950_s1 + $0xa6c] ss:$16 sps:$4 sm:$0xff]  }
 0x120   : > { %3045 = vmatprep.subr.bf16.mxu0 %v4372_v15  ;;  %3147 = vmatprep.subr.bf16.mxu1 %v4375_v16  ;;  %v4439_v15 = vld [vmem:[%s5950_s1 + $0xa48] ss:$16 sps:$4 sm:$0xff]  }
 0x121   : > { %v5519_v23 = vpop.f32.mrb[4].mxu0  ;;  %v5521_v24 = vpop.f32.mrb[4].mxu1  ;;  %v2382_v16 = vsel %vm2370_vm1, %v2380_v12, %v5654_v13  ;;  %v4508_v12 = vld [vmem:[%s5950_s1 + $0xbc0] ss:$16 sps:$4 sm:$0xff]  }
 0x122   : > { %v5523_v25 = vpop.f32.mrb[5].mxu0  ;;  %v5525_v26 = vpop.f32.mrb[5].mxu1 }
 0x123   : > { %3046 = vmatpush1.bf16.msra.mxu0 %v4370_v17  ;;  %3148 = vmatpush1.bf16.msra.mxu1 %v4373_v20  ;;  %v1230_v29 = vpop.f32.mrb[6].mxu0  ;;  %v1332_v30 = vpop.f32.mrb[6].mxu1  ;;  %v4442_v17 = vld [vmem:[%s5950_s1 + $0xa60] ss:$16 sps:$4 sm:$0xff]   ;;  %v4445_v20 = vld [vmem:[%s5950_s1 + $0xa68] ss:$16 sps:$4 sm:$0xff]  }
 0x124   : > { %3047 = vmatprep.subr.bf16.mxu0 %v4378_v21  ;;  %3149 = vmatprep.subr.bf16.mxu1 %v4381_v22  ;;  %v1231_v33 = vpop.f32.mrb[7].mxu0  ;;  %v1333_v34 = vpop.f32.mrb[7].mxu1  ;;  %v4450_v21 = vld [vmem:[%s5950_s1 + $0xa84] ss:$16 sps:$4 sm:$0xff]   ;;  %v4453_v22 = vld [vmem:[%s5950_s1 + $0xa8c] ss:$16 sps:$4 sm:$0xff]  }
 0x125   : > { %v4456_v29 = vld [vmem:[%s5950_s1 + $0xaa4] ss:$16 sps:$4 sm:$0xff]   ;;  %v4459_v30 = vld [vmem:[%s5950_s1 + $0xaac] ss:$16 sps:$4 sm:$0xff]  }
 0x126   : > { %v4462_v33 = vld [vmem:[%s5950_s1 + $0xac4] ss:$16 sps:$4 sm:$0xff]   ;;  %v4465_v34 = vld [vmem:[%s5950_s1 + $0xacc] ss:$16 sps:$4 sm:$0xff]  }
 0x127   : > { %3048 = vmatpush1.bf16.msra.mxu0 %v4376_v27  ;;  %3150 = vmatpush1.bf16.msra.mxu1 %v4379_v28  ;;  %v4448_v27 = vld [vmem:[%s5950_s1 + $0xa80] ss:$16 sps:$4 sm:$0xff]   ;;  %v4451_v28 = vld [vmem:[%s5950_s1 + $0xa88] ss:$16 sps:$4 sm:$0xff]  }
 0x128   : > { %3049 = vmatprep.subr.bf16.mxu0 %v4384_v31  ;;  %3151 = vmatprep.subr.bf16.mxu1 %v4387_v32  ;;  %v4454_v31 = vld [vmem:[%s5950_s1 + $0xaa0] ss:$16 sps:$4 sm:$0xff]   ;;  %v4457_v32 = vld [vmem:[%s5950_s1 + $0xaa8] ss:$16 sps:$4 sm:$0xff]  }
 0x12b   : > { %3050 = vmatpush1.bf16.msra.mxu0 %v4382_v35  ;;  %3152 = vmatpush1.bf16.msra.mxu1 %v4385_v36  ;;  %v4460_v35 = vld [vmem:[%s5950_s1 + $0xac0] ss:$16 sps:$4 sm:$0xff]   ;;  %v4463_v36 = vld [vmem:[%s5950_s1 + $0xac8] ss:$16 sps:$4 sm:$0xff]  }
 0x12c   : > { %3051 = vmatprep.subr.bf16.mxu0 %v4390_v37  ;;  %3153 = vmatprep.subr.bf16.mxu1 %v4393_v38  ;;  %v4468_v37 = vld [vmem:[%s5950_s1 + $0xae4] ss:$16 sps:$4 sm:$0xff]   ;;  %v4471_v38 = vld [vmem:[%s5950_s1 + $0xaec] ss:$16 sps:$4 sm:$0xff]  }
 0x12f   : > { %3052 = vmatpush1.bf16.msra.mxu0 %v4388_v39  ;;  %3154 = vmatpush1.bf16.msra.mxu1 %v4391_v40  ;;  %v4466_v39 = vld [vmem:[%s5950_s1 + $0xae0] ss:$16 sps:$4 sm:$0xff]   ;;  %v4469_v40 = vld [vmem:[%s5950_s1 + $0xae8] ss:$16 sps:$4 sm:$0xff]  }
 0x130   : > { %3053 = vmatprep.subr.bf16.mxu0 %v4396_v42  ;;  %3155 = vmatprep.subr.bf16.mxu1 %v4399_v43  ;;  %v4474_v42 = vld [vmem:[%s5950_s1 + $0xb04] ss:$16 sps:$4 sm:$0xff]   ;;  %v4477_v43 = vld [vmem:[%s5950_s1 + $0xb0c] ss:$16 sps:$4 sm:$0xff]  }
 0x133   : > { %3054 = vmatpush1.bf16.msra.mxu0 %v4394_v46  ;;  %3156 = vmatpush1.bf16.msra.mxu1 %v4397_v47 }
 0x134   : > { %3055 = vmatprep.subr.bf16.mxu0 %v4402_v48  ;;  %3157 = vmatprep.subr.bf16.mxu1 %v4405_v49 }
 0x137   : > { %3056 = vmatpush1.bf16.msra.mxu0 %v4400_v50  ;;  %3158 = vmatpush1.bf16.msra.mxu1 %v4403_v52 }
 0x138   : > { %3057 = vmatprep.subr.bf16.mxu0 %v4408_v53  ;;  %3159 = vmatprep.subr.bf16.mxu1 %v4411_v54 }
 0x13b   : > { %3058 = vmatpush1.bf16.msra.mxu0 %v4406_v55  ;;  %3160 = vmatpush1.bf16.msra.mxu1 %v4409_v56  ;;  %v4472_v55 = vld [vmem:[%s5950_s1 + $0xb00] ss:$16 sps:$4 sm:$0xff]  }
 0x13c   : > { %3059 = vmatprep.subr.bf16.mxu0 %v4414_v18  ;;  %3161 = vmatprep.subr.bf16.mxu1 %v4417_v57 }
 0x13f   : > { %3060 = vmatpush1.bf16.msra.mxu0 %v4412_v58  ;;  %3162 = vmatpush1.bf16.msra.mxu1 %v4415_v59  ;;  %v4478_v58 = vld [vmem:[%s5950_s1 + $0xb20] ss:$16 sps:$4 sm:$0xff]   ;;  %v4481_v59 = vld [vmem:[%s5950_s1 + $0xb28] ss:$16 sps:$4 sm:$0xff]  }
 0x140   : > { %3061 = vmatprep.subr.bf16.mxu0 %v4420_v44  ;;  %3163 = vmatprep.subr.bf16.mxu1 %v4423_v61  ;;  %v4486_v44 = vld [vmem:[%s5950_s1 + $0xb44] ss:$16 sps:$4 sm:$0xff]   ;;  %v4489_v61 = vld [vmem:[%s5950_s1 + $0xb4c] ss:$16 sps:$4 sm:$0xff]  }
 0x143   : > { %3062 = vmatpush1.bf16.msra.mxu0 %v4418_v62  ;;  %3164 = vmatpush1.bf16.msra.mxu1 %v4421_v51  ;;  %v4484_v62 = vld [vmem:[%s5950_s1 + $0xb40] ss:$16 sps:$4 sm:$0xff]   ;;  %v4487_v51 = vld [vmem:[%s5950_s1 + $0xb48] ss:$16 sps:$4 sm:$0xff]  }
 0x144   : > { %3082 = vmatprep.subr.bf16.mxu0 %v4426_v1  ;;  %3184 = vmatprep.subr.bf16.mxu1 %v4429_v2  ;;  %v4490_v1 = vld [vmem:[%s5950_s1 + $0xb60] ss:$16 sps:$4 sm:$0xff]   ;;  %v4493_v2 = vld [vmem:[%s5950_s1 + $0xb68] ss:$16 sps:$4 sm:$0xff]  }
 0x146   : > { %3064 = vmatmul.mubr.bf16.vlgmr.msra.gmra.mrb[0].mxu0 %v2373_v41  ;;  %3166 = vmatmul.mubr.bf16.vlgmr.msra.gmra.mrb[0].mxu1 %v2373_v41  ;;  %v4496_v41 = vld [vmem:[%s5950_s1 + $0xb80] ss:$16 sps:$4 sm:$0xff]  }
 0x147   : > { %3083 = vmatpush1.bf16.msra.mxu0 %v4424_v3  ;;  %3185 = vmatpush1.bf16.msra.mxu1 %v4427_v5  ;;  %v4498_v3 = vld [vmem:[%s5950_s1 + $0xb84] ss:$16 sps:$4 sm:$0xff]   ;;  %v4501_v5 = vld [vmem:[%s5950_s1 + $0xb8c] ss:$16 sps:$4 sm:$0xff]  }
 0x148   : > { %3084 = vmatprep.subr.bf16.mxu0 %v4432_v4  ;;  %3186 = vmatprep.subr.bf16.mxu1 %v4435_v6  ;;  %v4499_v4 = vld [vmem:[%s5950_s1 + $0xb88] ss:$16 sps:$4 sm:$0xff]   ;;  %v4504_v6 = vld [vmem:[%s5950_s1 + $0xba4] ss:$16 sps:$4 sm:$0xff]  }
 0x149   : > { %3073 = vmatprep.mubr.bf16.mxu0 %v5443_v60  ;;  %3175 = vmatprep.mubr.bf16.mxu1 %v5443_v60  ;;  %v4444_v60 = vld [vmem:[%s5950_s1 + $0xa64] ss:$16 sps:$4 sm:$0xff]  }
 0x14b   : > { %3085 = vmatpush1.bf16.msra.mxu0 %v4430_v7  ;;  %3187 = vmatpush1.bf16.msra.mxu1 %v4433_v8  ;;  %v4507_v7 = vld [vmem:[%s5950_s1 + $0xbac] ss:$16 sps:$4 sm:$0xff]   ;;  %v4502_v8 = vld [vmem:[%s5950_s1 + $0xba0] ss:$16 sps:$4 sm:$0xff]  }
 0x14c   : > { %3086 = vmatprep.subr.bf16.mxu0 %v4438_v9  ;;  %3188 = vmatprep.subr.bf16.mxu1 %v4441_v10  ;;  %v4505_v9 = vld [vmem:[%s5950_s1 + $0xba8] ss:$16 sps:$4 sm:$0xff]   ;;  %v4510_v10 = vld [vmem:[%s5950_s1 + $0xbc4] ss:$16 sps:$4 sm:$0xff]  }
 0x14e   : > { %3074 = vmatmul.mubr.bf16.gmra.mrb[20].mxu0 %v2372_v0  ;;  %3176 = vmatmul.mubr.bf16.gmra.mrb[20].mxu1 %v2372_v0  ;;  %v4495_v0 = vld [vmem:[%s5950_s1 + $0xb6c] ss:$16 sps:$4 sm:$0xff]  }
 0x14f   : > { %3087 = vmatpush1.bf16.msra.mxu0 %v4436_v14  ;;  %3189 = vmatpush1.bf16.msra.mxu1 %v4439_v15  ;;  %v4511_v14 = vld [vmem:[%s5950_s1 + $0xbc8] ss:$16 sps:$4 sm:$0xff]   ;;  %v4516_v15 = vld [vmem:[%s5950_s1 + $0xbe4] ss:$16 sps:$4 sm:$0xff]  }
 0x150   : > { %3088 = vmatprep.subr.bf16.mxu0 %v4444_v60  ;;  %3190 = vmatprep.subr.bf16.mxu1 %v4447_v45  ;;  %v4519_v60 = vld [vmem:[%s5950_s1 + $0xbec] ss:$16 sps:$4 sm:$0xff]   ;;  %v4514_v45 = vld [vmem:[%s5950_s1 + $0xbe0] ss:$16 sps:$4 sm:$0xff]  }
 0x151   : > { %3114 = vmatprep.mubr.bf16.mxu0 %v2382_v16  ;;  %3216 = vmatprep.mubr.bf16.mxu1 %v2382_v16  ;;  %v4517_v16 = vld [vmem:[%s5950_s1 + $0xbe8] ss:$16 sps:$4 sm:$0xff]  }
 0x153   : > { %3089 = vmatpush1.bf16.msra.mxu0 %v4442_v17  ;;  %3191 = vmatpush1.bf16.msra.mxu1 %v4445_v20  ;;  %v4525_v17 = vld [vmem:[%s4717_s21 + $0x8] ss:$16 sps:$4 sm:$0xff]  }
 0x154   : > { %3090 = vmatprep.subr.bf16.mxu0 %v4450_v21  ;;  %3192 = vmatprep.subr.bf16.mxu1 %v4453_v22  ;;  %v2377_v20 = vrot.slane %v4525_v17, 2  ;;  %v2378_v21 = vrot.slane %v4995_v19, 2 }
 0x156   : > { %v2379_v22 = vsel %vm2370_vm1, %v2377_v20, %v2378_v21 }
 0x157   : > { %3091 = vmatpush1.bf16.msra.mxu0 %v4448_v27  ;;  %3193 = vmatpush1.bf16.msra.mxu1 %v4451_v28 }
 0x158   : > { %3092 = vmatprep.subr.bf16.mxu0 %v4456_v29  ;;  %3194 = vmatprep.subr.bf16.mxu1 %v4459_v30 }
 0x15b   : > { %3093 = vmatpush1.bf16.msra.mxu0 %v4454_v31  ;;  %3195 = vmatpush1.bf16.msra.mxu1 %v4457_v32 }
 0x15c   : > { %3094 = vmatprep.subr.bf16.mxu0 %v4462_v33  ;;  %3196 = vmatprep.subr.bf16.mxu1 %v4465_v34 }
 0x15f   : > { %3095 = vmatpush1.bf16.msra.mxu0 %v4460_v35  ;;  %3197 = vmatpush1.bf16.msra.mxu1 %v4463_v36 }
 0x160   : > { %3096 = vmatprep.subr.bf16.mxu0 %v4468_v37  ;;  %3198 = vmatprep.subr.bf16.mxu1 %v4471_v38 }
 0x161   : > { %v1277_v46 = vpop.f32.mrb[8].mxu0  ;;  %v1379_v47 = vpop.f32.mrb[8].mxu1 }
 0x162   : > { %v5731_v48 = vadd.f32 %v1277_v46, %v5519_v23  ;;  %v5734_v49 = vadd.f32 %v1379_v47, %v5521_v24  ;;  %v1279_v50 = vpop.f32.mrb[9].mxu0  ;;  %v1381_v52 = vpop.f32.mrb[9].mxu1  ;;  %v4475_v23 = vld [vmem:[%s5950_s1 + $0xb08] ss:$16 sps:$4 sm:$0xff]  }
 0x163   : > { %v5737_v53 = vadd.f32 %v1279_v50, %v5523_v25  ;;  %v5740_v54 = vadd.f32 %v1381_v52, %v5525_v26  ;;  %3097 = vmatpush1.bf16.msra.mxu0 %v4466_v39  ;;  %3199 = vmatpush1.bf16.msra.mxu1 %v4469_v40  ;;  %v1281_v24 = vpop.f32.mrb[10].mxu0  ;;  %v1383_v56 = vpop.f32.mrb[10].mxu1  ;;  %v4480_v25 = vld [vmem:[%s5950_s1 + $0xb24] ss:$16 sps:$4 sm:$0xff]   ;;  %v4483_v26 = vld [vmem:[%s5950_s1 + $0xb2c] ss:$16 sps:$4 sm:$0xff]  }
 0x164   : > { %3098 = vmatprep.subr.bf16.mxu0 %v4474_v42  ;;  %3200 = vmatprep.subr.bf16.mxu1 %v4477_v43  ;;  %v1282_v18 = vpop.f32.mrb[11].mxu0  ;;  %v1384_v57 = vpop.f32.mrb[11].mxu1 }
 0x165   : > { %v3249_v18 = vlaneseq }
 0x167   : > { %3099 = vmatpush1.bf16.msra.mxu0 %v4472_v55  ;;  %3201 = vmatpush1.bf16.msra.mxu1 %v4475_v23  ;;  %v3250_v57 = vshrl.u32 %v3249_v18, 7 }
 0x168   : > { %3100 = vmatprep.subr.bf16.mxu0 %v4480_v25  ;;  %3202 = vmatprep.subr.bf16.mxu1 %v4483_v26 }
 0x16b   : > { %3101 = vmatpush1.bf16.msra.mxu0 %v4478_v58  ;;  %3203 = vmatpush1.bf16.msra.mxu1 %v4481_v59  ;;  %v3251_v58 = vsub.s32 0, %v3250_v57  ;;  %v3259_v59 = vsub.s32 2, %v3250_v57 }
 0x16c   : > { %3102 = vmatprep.subr.bf16.mxu0 %v4486_v44  ;;  %3204 = vmatprep.subr.bf16.mxu1 %v4489_v61  ;;  %v3247_v44 = vld [vmem:[%s5951_s2] sm:$0xf]  ;;  %v3255_v61 = vsub.s32 1, %v3250_v57 }
 0x16f   : > { %3103 = vmatpush1.bf16.msra.mxu0 %v4484_v62  ;;  %3205 = vmatpush1.bf16.msra.mxu1 %v4487_v51  ;;  %v3263_v62 = vsub.s32 3, %v3250_v57  ;;  %v5860_v51 = vrot.slane %v3247_v44, %v3251_v58 }
 0x170   : > { %3104 = vmatprep.subr.bf16.mxu0 %v4492_v63  ;;  %3206 = vmatprep.subr.bf16.mxu1 %v4495_v0  ;;  %v3293_v63 = vld [vmem:[%s5952_s3] sm:$0xf]  ;;  %v5865_v0 = vrot.slane %v3247_v44, %v3259_v59 }
 0x173   : > { %3105 = vmatpush1.bf16.msra.mxu0 %v4490_v1  ;;  %3207 = vmatpush1.bf16.msra.mxu1 %v4493_v2  ;;  %v3327_v1 = vld [vmem:[%s5953_s4] sm:$0xf]  ;;  %v5870_v2 = vrot.slane %v3247_v44, %v3255_v61 }
 0x174   : > { %3106 = vmatprep.subr.bf16.mxu0 %v4498_v3  ;;  %3208 = vmatprep.subr.bf16.mxu1 %v4501_v5  ;;  %v5872_v3 = vrot.slane %v3247_v44, %v3263_v62  ;;  %v5892_v17 = vrot.slane %v3327_v1, %v3263_v62 }
 0x177   : > { %3107 = vmatpush1.bf16.msra.mxu0 %v4496_v41  ;;  %3209 = vmatpush1.bf16.msra.mxu1 %v4499_v4  ;;  %v5874_v41 = vrot.slane %v3293_v63, %v3251_v58 }
 0x178   : > { %3108 = vmatprep.subr.bf16.mxu0 %v4504_v6  ;;  %3210 = vmatprep.subr.bf16.mxu1 %v4507_v7  ;;  %v5876_v6 = vrot.slane %v3293_v63, %v3259_v59  ;;  %v5878_v7 = vrot.slane %v3293_v63, %v3255_v61 }
 0x17b   : > { %3109 = vmatpush1.bf16.msra.mxu0 %v4502_v8  ;;  %3211 = vmatpush1.bf16.msra.mxu1 %v4505_v9  ;;  %v5880_v8 = vrot.slane %v3293_v63, %v3263_v62 }
 0x17c   : > { %3110 = vmatprep.subr.bf16.mxu0 %v4510_v10  ;;  %3212 = vmatprep.subr.bf16.mxu1 %v4513_v11  ;;  %v5883_v10 = vrot.slane %v3327_v1, %v3251_v58 }
 0x17f   : > { %3111 = vmatpush1.bf16.msra.mxu0 %v4508_v12  ;;  %3213 = vmatpush1.bf16.msra.mxu1 %v4511_v14  ;;  %v5886_v12 = vrot.slane %v3327_v1, %v3259_v59 }
 0x180   : > { %3112 = vmatprep.subr.bf16.mxu0 %v4516_v15  ;;  %3214 = vmatprep.subr.bf16.mxu1 %v4519_v60 }
 0x183   : > { %3113 = vmatpush1.bf16.msra.mxu0 %v4514_v45  ;;  %3215 = vmatpush1.bf16.msra.mxu1 %v4517_v16  ;;  %v5889_v45 = vrot.slane %v3327_v1, %v3255_v61 }
 0x186   : > { %3115 = vmatmul.mubr.bf16.vlgmr.msra.gmra.mrb[0].mxu0 %v2379_v22  ;;  %3217 = vmatmul.mubr.bf16.vlgmr.msra.gmra.mrb[0].mxu1 %v2379_v22 }
 0x187   : > { %3124 = vmatprep.mubr.bf16.mxu0 %v5654_v13  ;;  %3226 = vmatprep.mubr.bf16.mxu1 %v5654_v13 }
 0x18e   : > { %3125 = vmatmul.mubr.bf16.gmra.mrb[24].mxu0 %v2378_v21  ;;  %3227 = vmatmul.mubr.bf16.gmra.mrb[24].mxu1 %v2378_v21 }
 0x1a1   : > { %v2082_v27 = vpop.f32.mrb[12].mxu0  ;;  %v2184_v28 = vpop.f32.mrb[12].mxu1 }
 0x1a2   : > { %v2083_v29 = vadd.f32 %v2082_v27, %v5731_v48  ;;  %v2185_v19 = vadd.f32 %v2184_v28, %v5734_v49  ;;  %v2084_v30 = vpop.f32.mrb[13].mxu0  ;;  %v2186_v31 = vpop.f32.mrb[13].mxu1 }
 0x1a3   : > { %v2085_v32 = vadd.f32 %v2084_v30, %v5737_v53  ;;  %v2187_v33 = vadd.f32 %v2186_v31, %v5740_v54  ;;  %v2086_v34 = vpop.f32.mrb[14].mxu0  ;;  %v2188_v35 = vpop.f32.mrb[14].mxu1 }
 0x1a4   : > { %v2087_v36 = vpop.f32.mrb[15].mxu0  ;;  %v2189_v37 = vpop.f32.mrb[15].mxu1 }
 0x1e1   : > { %v2133_v38 = vpop.f32.mrb[16].mxu0  ;;  %v2235_v13 = vpop.f32.mrb[16].mxu1 }
 0x1e2   : > { %v5841_v39 = vadd.f32 %v2133_v38, %v2083_v29  ;;  %v5843_v40 = vadd.f32 %v2235_v13, %v2185_v19  ;;  %v2135_v42 = vpop.f32.mrb[17].mxu0  ;;  %v2237_v43 = vpop.f32.mrb[17].mxu1 }
 0x1e3   : > { %v5845_v46 = vadd.f32 %v2135_v42, %v2085_v32  ;;  %v5847_v47 = vadd.f32 %v2237_v43, %v2187_v33  ;;  %v2137_v48 = vpop.f32.mrb[18].mxu0  ;;  %v2239_v49 = vpop.f32.mrb[18].mxu1 }
 0x1e4   : > { %v2138_v50 = vpop.f32.mrb[19].mxu0  ;;  %v2240_v52 = vpop.f32.mrb[19].mxu1 }
 0x221   : > { %v5849_v53 = vpop.f32.mrb[20].mxu0  ;;  %v5851_v54 = vpop.f32.mrb[20].mxu1 }
 0x222   : > { %v5853_v55 = vpop.f32.mrb[21].mxu0  ;;  %v5855_v23 = vpop.f32.mrb[21].mxu1 }
 0x223   : > { %v3079_v24 = vpop.f32.mrb[22].mxu0  ;;  %v3181_v56 = vpop.f32.mrb[22].mxu1 }
 0x224   : > { %v3080_v25 = vpop.f32.mrb[23].mxu0  ;;  %v3182_v26 = vpop.f32.mrb[23].mxu1 }
 0x259   : > { %v3116_v5 = vpop.f32.mrb[0].mxu0  ;;  %v3218_v4 = vpop.f32.mrb[0].mxu1 }
 0x25a   : > { %v3269_v9 = vadd.f32 %v5860_v51, %v3116_v5  ;;  %v3271_v11 = vadd.f32 %v5865_v0, %v3218_v4  ;;  %v3118_v14 = vpop.f32.mrb[1].mxu0  ;;  %v3220_v15 = vpop.f32.mrb[1].mxu1 }
 0x25b   : > { %v3270_v60 = vadd.f32 %v5870_v2, %v3118_v14  ;;  %v3272_v16 = vadd.f32 %v5872_v3, %v3220_v15  ;;  %v3120_v20 = vpop.f32.mrb[2].mxu0  ;;  %v3222_v21 = vpop.f32.mrb[2].mxu1 }
 0x25c   : > { %v3281_v22 = vmax.f32 %v3269_v9, 0.0  ;;  %v3283_v27 = vmax.f32 %v3271_v11, 0.0  ;;  %v3273_v28 = vadd.f32 %v5860_v51, %v3120_v20  ;;  %v3275_v29 = vadd.f32 %v5865_v0, %v3222_v21  ;;  %v3122_v19 = vpop.f32.mrb[3].mxu0  ;;  %v3224_v30 = vpop.f32.mrb[3].mxu1 }
 0x25d   : > { %v3282_v31 = vmax.f32 %v3270_v60, 0.0  ;;  %v3284_v32 = vmax.f32 %v3272_v16, 0.0  ;;  %v3274_v33 = vadd.f32 %v5870_v2, %v3122_v19  ;;  %v3276_v34 = vadd.f32 %v5872_v3, %v3224_v30 }
 0x25e   : > { %v3315_v35 = vmul.f32 %v5874_v41, %v3281_v22  ;;  %v3317_v36 = vmul.f32 %v5876_v6, %v3283_v27  ;;  %v3285_v37 = vmax.f32 %v3273_v28, 0.0  ;;  %v3287_v38 = vmax.f32 %v3275_v29, 0.0 }
 0x25f   : > { %v3316_v13 = vmul.f32 %v5878_v7, %v3282_v31  ;;  %v3318_v42 = vmul.f32 %v5880_v8, %v3284_v32  ;;  %v3286_v43 = vmax.f32 %v3274_v33, 0.0  ;;  %v3288_v48 = vmax.f32 %v3276_v34, 0.0 }
 0x260   : > { %v3349_v49 = vadd.f32 %v5883_v10, %v3315_v35  ;;  %v3351_v50 = vadd.f32 %v5886_v12, %v3317_v36  ;;  %v3319_v52 = vmul.f32 %v5874_v41, %v3285_v37  ;;  %v3321_v24 = vmul.f32 %v5876_v6, %v3287_v38 }
 0x261   : > { %v3350_v56 = vadd.f32 %v5889_v45, %v3316_v13  ;;  %v3352_v25 = vadd.f32 %v5892_v17, %v3318_v42  ;;  %v3320_v26 = vmul.f32 %v5878_v7, %v3286_v43  ;;  %v3322_v18 = vmul.f32 %v5880_v8, %v3288_v48  ;;  %v3126_v57 = vpop.f32.mrb[24].mxu0  ;;  %v3228_v58 = vpop.f32.mrb[24].mxu1 }
 0x262   : > { %v3353_v59 = vadd.f32 %v5883_v10, %v3319_v52  ;;  %v3355_v44 = vadd.f32 %v5886_v12, %v3321_v24  ;;  %v3127_v61 = vadd.f32 %v3126_v57, %v5849_v53  ;;  %v3229_v62 = vadd.f32 %v3228_v58, %v5851_v54  ;;  %v3128_v63 = vpop.f32.mrb[25].mxu0  ;;  %v3230_v1 = vpop.f32.mrb[25].mxu1 }
 0x263   : > { %v3875_v5 = vpack.c.bf16 %v3350_v56, %v3349_v49  ;;  %v3876_v4 = vpack.c.bf16 %v3352_v25, %v3351_v50  ;;  %v3354_v9 = vadd.f32 %v5889_v45, %v3320_v26  ;;  %v3356_v11 = vadd.f32 %v5892_v17, %v3322_v18  ;;  %v3130_v14 = vpop.f32.mrb[26].mxu0  ;;  %v3232_v15 = vpop.f32.mrb[26].mxu1 }
 0x264   : > { %v3243_v60 = vadd.f32 %v3127_v61, %v5841_v39  ;;  %v3245_v53 = vadd.f32 %v3229_v62, %v5843_v40  ;;  %v3129_v16 = vadd.f32 %v3128_v63, %v5853_v55  ;;  %v3231_v54 = vadd.f32 %v3230_v1, %v5855_v23  ;;  %v3131_v20 = vpop.f32.mrb[27].mxu0  ;;  %v3233_v21 = vpop.f32.mrb[27].mxu1 }
 0x265   : > { %3401 = vst [vmem:[%s5914_s25] sm:$0xff] %v3875_v5  ;;  %3402 = vst [vmem:[%s5914_s25 + $0x8] sm:$0xff] %v3876_v4  ;;  %v3877_v22 = vpack.c.bf16 %v3354_v9, %v3353_v59  ;;  %v3878_v27 = vpack.c.bf16 %v3356_v11, %v3355_v44 }
 0x266   : > { %v3277_v28 = vadd.f32 %v5860_v51, %v3243_v60  ;;  %v3279_v29 = vadd.f32 %v5865_v0, %v3245_v53  ;;  %v3244_v19 = vadd.f32 %v3129_v16, %v5845_v46  ;;  %v3246_v39 = vadd.f32 %v3231_v54, %v5847_v47 }
 0x267   : > { %3403 = vst [vmem:[%s5914_s25 + $0x10] sm:$0xff] %v3877_v22  ;;  %3404 = vst [vmem:[%s5914_s25 + $0x18] sm:$0xff] %v3878_v27 }
 0x268   : > { %v3289_v40 = vmax.f32 %v3277_v28, 0.0  ;;  %v3291_v55 = vmax.f32 %v3279_v29, 0.0  ;;  %v3278_v23 = vadd.f32 %v5870_v2, %v3244_v19  ;;  %v3280_v30 = vadd.f32 %v5872_v3, %v3246_v39 }
 0x26a   : > { %v3323_v31 = vmul.f32 %v5874_v41, %v3289_v40  ;;  %v3325_v51 = vmul.f32 %v5876_v6, %v3291_v55  ;;  %v3290_v32 = vmax.f32 %v3278_v23, 0.0  ;;  %v3292_v0 = vmax.f32 %v3280_v30, 0.0 }
 0x26c   : > { %v3357_v46 = vadd.f32 %v5883_v10, %v3323_v31  ;;  %v3359_v47 = vadd.f32 %v5886_v12, %v3325_v51  ;;  %v3324_v33 = vmul.f32 %v5878_v7, %v3290_v32  ;;  %v3326_v34 = vmul.f32 %v5880_v8, %v3292_v0 }
 0x26e   : > { %v3358_v35 = vadd.f32 %v5889_v45, %v3324_v33  ;;  %v3360_v2 = vadd.f32 %v5892_v17, %v3326_v34 }
 0x270   : > { %v3879_v36 = vpack.c.bf16 %v3358_v35, %v3357_v46  ;;  %v3880_v3 = vpack.c.bf16 %v3360_v2, %v3359_v47 }
 0x272   : > { %3405 = vst [vmem:[%s5914_s25 + $0x20] sm:$0xff] %v3879_v36  ;;  %3406 = vst [vmem:[%s5914_s25 + $0x28] sm:$0xff] %v3880_v3 }
 0x273 PF: > { %s15_s18 = sadd.s32 1, %s4532_s18  }
 0x274   : > { %p12_p4 = scmp.ge.s32.totalorder %s15_s18, 4  }
 0x276   :  { %14 = sbr.rel (!%p12_p4) target bundleno = 1 (0x1), region = 70 }

// kernel: _lambda_.14
= control target key start
LH: loop header
LB: loop body
LE: loop exit
PB: predicated region body
PF: predicated region fallthrough
CT: control target
= control target key end

     0   :  { %10 = vsyncpa [#allocation3], 0  ;;  %s1975_s0 = inlined_call_operand.vmem [shape: f32[2,32,16], index: 0, kind: input, shape index: {}]   ;;  %s1976_s1 = inlined_call_operand.vmem [shape: bf16[80,512], index: 1, kind: input, shape index: {}]   ;;  %s1977_s2 = inlined_call_operand.hbm [shape: f32[1,512], index: 2, kind: input, shape index: {}]   ;;  %s1978_s3 = inlined_call_operand.hbm [shape: f32[1,512], index: 3, kind: input, shape index: {}]   ;;  %s1979_s4 = inlined_call_operand.hbm [shape: f32[1,512], index: 4, kind: input, shape index: {}]   ;;  %s1980_s5 = inlined_call_operand.vmem [shape: bf16[2,28,512], index: 5, kind: output, shape index: {}]  }
   0x1   :  { %11 = vsyncpa [#allocation5], 0  ;;  %s1646_s18 = smov 0  }
   0x2 LB: > { %s1652_s19 = sadd.s32 4294967295, %s1610_s18   ;;  %p1305_p0 = scmp.ge.s32.totalorder %s1610_s18, 1  ;;  %s1610_s18 = sphi %s1646_s18, %s17_s18  }
   0x3   : > { %p158_p1 = scmp.lt.s32.totalorder %s1610_s18, 3  ;;  %p1981_p2 = scmp.eq.s32.totalorder %s1652_s19, 0 }
   0x4   : > { %s1612_s21 = smov [#allocation4]   ;;  %s1613_s23 = smov [#allocation2]  }
   0x5   : > { %p1657_p3 = pnand %p1305_p0, %p158_p1  ;;  %s185_s22 = sshll.u32 %s1612_s21, 4  ;;  %s186_s22 = int_to_ptr.vmem [resolvable:$true] %s185_s22 }
   0x6   : > { %s174_s24 = sshll.u32 %s1613_s23, 4  ;;  %s1614_s25 = smov [#allocation6]   ;;  %s1669_s24 = int_to_ptr.vmem [resolvable:$true] %s174_s24 }
   0x7   : > { %s1983_s20 = scalar_select %p1657_p3, 1, 0 }
   0x8   : > { %p1454_p4 = pneg %p1657_p3  ;;  %s196_s26 = sshll.u32 %s1614_s25, 4  ;;  %s1671_s26 = int_to_ptr.vmem [resolvable:$true] %s196_s26 }
   0x9   : > { %s1512_s30 = scalar_lea.hbm %s1978_s3, 64 }
   0xa   : > { %p1665_p5 = pnand %p1981_p2, %p1454_p4  ;;  %p1513_p6 = scmp.ne.s32.totalorder %s1978_s3, %s1512_s30 }
   0xb   : > { %p1519_p10 = scmp.lt.u32.totalorder %s1512_s30, %s1978_s3 }
   0xc   : > { %p1681_p7 = pneg %p1665_p5 }
   0xe   : > { %p1515_p8 = pnand %p1681_p7, %p1513_p6 }
  0x10   : > { %p1516_p9 = pneg %p1515_p8 }
  0x12   : > { %p1521_p11 = pnand %p1519_p10, %p1516_p9 }
  0x14   : > { %1524 = shalt.err (!%p1521_p11)
}
  0x15   : > { %s1525_s11 = scalar_lea.vmem %s186_s22, 64  ;;  %p1533_p1 = scmp.lt.s32.totalorder %s186_s22, %s186_s22 }
  0x16   : > { %p1526_p12 = scmp.ne.s32.totalorder %s186_s22, %s1525_s11  ;;  %p1534_p4 = scmp.lt.s32.totalorder %s1525_s11, %s1525_s11 }
  0x18   : > { %p1528_p13 = pnand %p1526_p12, %p1681_p7  ;;  %p1535_p2 = por %p1534_p4, %p1533_p1 }
  0x1a   : > { %p1529_p0 = pneg %p1528_p13 }
  0x1c   : > { %p1536_p3 = pnand %p1535_p2, %p1529_p0 }
  0x1e   : > { %1539 = shalt.err (!%p1536_p3)
}
  0x1f   : > { %1460 = dma.hbm_to_vmem [thread:$0]  (!%p1665_p5), %s1978_s3, 64, %s186_s22, [#allocation5]  }
  0x20   : > { %s1540_s16 = scalar_lea.hbm %s1977_s2, 64 }
  0x21   : > { %p1541_p6 = scmp.ne.s32.totalorder %s1977_s2, %s1540_s16  ;;  %p1547_p2 = scmp.lt.u32.totalorder %s1540_s16, %s1977_s2 }
  0x23   : > { %p1543_p8 = pnand %p1541_p6, %p1681_p7 }
  0x25   : > { %p1544_p9 = pneg %p1543_p8 }
  0x27   : > { %p1549_p3 = pnand %p1547_p2, %p1544_p9 }
  0x29   : > { %1552 = shalt.err (!%p1549_p3)
}
  0x2a   : > { %s1553_s22 = scalar_lea.vmem %s1669_s24, 64  ;;  %p1561_p13 = scmp.lt.s32.totalorder %s1669_s24, %s1669_s24 }
  0x2b   : > { %p1554_p10 = scmp.ne.s32.totalorder %s1669_s24, %s1553_s22  ;;  %p1562_p0 = scmp.lt.s32.totalorder %s1553_s22, %s1553_s22 }
  0x2d   : > { %p1556_p11 = pnand %p1554_p10, %p1681_p7  ;;  %p1563_p1 = por %p1562_p0, %p1561_p13 }
  0x2f   : > { %p1557_p12 = pneg %p1556_p11 }
  0x31   : > { %p1564_p4 = pnand %p1563_p1, %p1557_p12 }
  0x33   : > { %1567 = shalt.err (!%p1564_p4)
}
  0x34   : > { %1457 = dma.hbm_to_vmem [thread:$0]  (!%p1665_p5), %s1977_s2, 64, %s1669_s24, [#allocation3]  }
  0x35   : > { %s1568_s7 = scalar_lea.hbm %s1979_s4, 64 }
  0x36   : > { %p1569_p6 = scmp.ne.s32.totalorder %s1979_s4, %s1568_s7  ;;  %p1575_p2 = scmp.lt.u32.totalorder %s1568_s7, %s1979_s4 }
  0x38   : > { %p1571_p8 = pnand %p1569_p6, %p1681_p7 }
  0x3a   : > { %p1572_p9 = pneg %p1571_p8 }
  0x3c   : > { %p1577_p3 = pnand %p1575_p2, %p1572_p9 }
  0x3e   : > { %1580 = shalt.err (!%p1577_p3)
}
  0x3f   : > { %s1581_s24 = scalar_lea.vmem %s1671_s26, 64  ;;  %p1589_p13 = scmp.lt.s32.totalorder %s1671_s26, %s1671_s26 }
  0x40   : > { %p1582_p10 = scmp.ne.s32.totalorder %s1671_s26, %s1581_s24  ;;  %p1590_p0 = scmp.lt.s32.totalorder %s1581_s24, %s1581_s24 }
  0x42   : > { %p1584_p11 = pnand %p1582_p10, %p1681_p7  ;;  %p1591_p1 = por %p1590_p0, %p1589_p13 }
  0x44   : > { %p1585_p12 = pneg %p1584_p11 }
  0x46   : > { %p1592_p4 = pnand %p1591_p1, %p1585_p12 }
  0x48   : > { %1595 = shalt.err (!%p1592_p4)
}
  0x49   : > { %1463 = dma.hbm_to_vmem [thread:$0]  (!%p1665_p5), %s1979_s4, 64, %s1671_s26, [#allocation5]  }
  0x4a   : > { %p1986_p6 = scmp.ne.s32.totalorder %s1983_s20, 0 }
  0x4b   : > { %p1987_p8 = scmp.eq.s32.totalorder (!%p1986_p6), %s1652_s19, 0 }
  0x4c   : > { %217 = sbr.rel (%p1986_p6) target bundleno = 403 (0x193), region = 40 }
  0x53   : > { %1601 = dma.done.wait (%p1987_p8), [#allocation3], 64   ;;  %p1988_p7 = pmov %p1987_p8 }
  0x55   : > { %1603 = vsyncadd (%p1988_p7), [#allocation3], 4294967232  ;;  %p1989_p9 = pmov %p1988_p7 }
  0x56   : > { %p1990_p2 = pmov %p1988_p7 }
  0x57   : > { %1605 = dma.done.wait (%p1989_p9), [#allocation5], 128  }
  0x58   : > { %1607 = vsyncadd (%p1990_p2), [#allocation5], 4294967168  ;;  %p253_p3 = scmp.lt.s32.totalorder %s1652_s19, 1  ;;  %v1615_v0 = vmov 0   ;;  %v1482_v1 = vld [vmem:[%s1976_s1 + $0x24] ss:$16 sps:$4 sm:$0xff]   ;;  %v1033_v49 = vlaneseq }
  0x59   : > { %353 = vmatprep.mubr.bf16.mxu0 %v1615_v0  ;;  %406 = vmatprep.mubr.bf16.mxu1 %v1615_v0  ;;  %v1484_v2 = vld [vmem:[%s1976_s1 + $0x2c] ss:$16 sps:$4 sm:$0xff]   ;;  %v1486_v3 = vld [vmem:[%s1976_s1 + $0x20] ss:$16 sps:$4 sm:$0xff]   ;;  %v1487_v4 = vld [vmem:[%s1976_s1 + $0x28] ss:$16 sps:$4 sm:$0xff]  }
  0x5a   : > { %s1992_s19 = smov (!%p253_p3, %s1652_s19), 1  ;;  %321 = vmatprep.subr.bf16.mxu0 %v1482_v1  ;;  %374 = vmatprep.subr.bf16.mxu1 %v1484_v2  ;;  %v1490_v5 = vld [vmem:[%s1976_s1 + $0x4] ss:$16 sps:$4 sm:$0xff]   ;;  %v1493_v6 = vld [vmem:[%s1976_s1 + $0xc] ss:$16 sps:$4 sm:$0xff]   ;;  %vm314_vm1 = vcmask 130048  }
  0x5b   : > { %s1368_s20 = sshll.u32 %s1992_s19, 5  ;;  %322 = vmatpush1.bf16.msra.mxu0 %v1486_v3  ;;  %375 = vmatpush1.bf16.msra.mxu1 %v1487_v4  ;;  %vm278_vm0 = vsmask.f32 7424  ;;  %v1488_v18 = vld [vmem:[%s1976_s1] ss:$16 sps:$4 sm:$0xff]   ;;  %vm879_vm2 = vcmask 1045504  }
  0x5c   : > { %s257_s28 = scalar_lea.vmem %s1975_s0, %s1368_s20  ;;  %451 = vmatprep.subr.bf16.mxu0 %v1490_v5  ;;  %504 = vmatprep.subr.bf16.mxu1 %v1493_v6  ;;  %v1491_v19 = vld [vmem:[%s1976_s1 + $0x8] ss:$16 sps:$4 sm:$0xff]   ;;  %v1496_v21 = vld [vmem:[%s1976_s1 + $0x44] ss:$16 sps:$4 sm:$0xff]   ;;  %v1499_v25 = vld [vmem:[%s1976_s1 + $0x4c] ss:$16 sps:$4 sm:$0xff]  }
  0x5d   : > { %v264_v7 = vld [vmem:[%s257_s28] sm:$0xff]  ;;  %v265_v8 = vld [vmem:[%s257_s28 + $0x8] sm:$0xff]  ;;  %v266_v9 = vld [vmem:[%s257_s28 + $0x10] sm:$0xff]  ;;  %vm563_vm3 = vcmask 1046528   ;;  %vm719_vm4 = vsmask.f32 6400 }
  0x5e   : > { %v267_v10 = vld [vmem:[%s257_s28 + $0x18] sm:$0xff]  ;;  %v1781_v11 = vpack.c.bf16 %v265_v8, %v264_v7  ;;  %v1494_v29 = vld [vmem:[%s1976_s1 + $0x40] ss:$16 sps:$4 sm:$0xff]   ;;  %v1502_v31 = vld [vmem:[%s1976_s1 + $0x64] ss:$16 sps:$4 sm:$0xff]   ;;  %v1034_v50 = vshrl.u32 %v1033_v49, 7 }
  0x5f   : > { %v1783_v12 = vpack.c.bf16 %v267_v10, %v266_v9  ;;  %v1497_v30 = vld [vmem:[%s1976_s1 + $0x48] ss:$16 sps:$4 sm:$0xff]   ;;  %v1505_v32 = vld [vmem:[%s1976_s1 + $0x6c] ss:$16 sps:$4 sm:$0xff]   ;;  %v1500_v35 = vld [vmem:[%s1976_s1 + $0x60] ss:$16 sps:$4 sm:$0xff]  }
  0x60   : > { %v280_v13 = vshrl.u32 %v1781_v11, 16  ;;  %v282_v14 = vshll.u32 %v1781_v11, 16  ;;  %v880_v22 = vrot.slane %v1781_v11, 2  ;;  %v564_v33 = vrot.slane %v1781_v11, 1  ;;  %v1503_v36 = vld [vmem:[%s1976_s1 + $0x68] ss:$16 sps:$4 sm:$0xff]  }
  0x61   : > { %v287_v15 = vshll.u32 %v1783_v12, 16  ;;  %v1799_v23 = vrot.slane %v1783_v12, 2  ;;  %v291_v26 = vshrl.u32 %v1783_v12, 16  ;;  %v565_v34 = vrot.slane %v1783_v12, 1  ;;  %v1508_v38 = vld [vmem:[%s1976_s1 + $0x84] ss:$16 sps:$4 sm:$0xff]  }
  0x62   : > { %v284_v16 = vrot.slane %v282_v14, 1  ;;  %v1511_v39 = vld [vmem:[%s1976_s1 + $0x8c] ss:$16 sps:$4 sm:$0xff]   ;;  %v720_v40 = vrot.slane %v280_v13, 1  ;;  %v721_v41 = vrot.slane %v282_v14, 2  ;;  %v1035_v51 = vsub.s32 0, %v1034_v50 }
  0x63   : > { %v289_v17 = vrot.slane %v287_v15, 1  ;;  %v1808_v27 = vsel %vm879_vm2, %v880_v22, %v1799_v23  ;;  %v566_v37 = vsel %vm563_vm3, %v564_v33, %v565_v34  ;;  %v724_v42 = vrot.slane %v287_v15, 2  ;;  %v1506_v46 = vld [vmem:[%s1976_s1 + $0x80] ss:$16 sps:$4 sm:$0xff]   ;;  %v1509_v47 = vld [vmem:[%s1976_s1 + $0x88] ss:$16 sps:$4 sm:$0xff]  }
  0x64   : > { %v285_v20 = vor.u32 %v284_v16, %v280_v13  ;;  %v723_v43 = vrot.slane %v291_v26, 1  ;;  %v722_v44 = vor.u32 %v721_v41, %v720_v40  ;;  %v1043_v52 = vsub.s32 2, %v1034_v50  ;;  %v1031_v53 = vld [vmem:[#allocation2] sm:$0xf]  ;;  %v1085_v57 = vld [vmem:[#allocation4] sm:$0xf] }
  0x65   : > { %v293_v28 = vor.u32 %v291_v26, %v289_v17  ;;  %v1039_v54 = vsub.s32 1, %v1034_v50  ;;  %v1047_v55 = vsub.s32 3, %v1034_v50  ;;  %v1886_v56 = vrot.slane %v1031_v53, %v1035_v51  ;;  %v1123_v59 = vld [vmem:[#allocation6] sm:$0xf]  ;;  %s1369_s13 = sshll.u32 %s1992_s19, 6 }
  0x66   : > { %v290_v24 = vsel %vm278_vm0, %v285_v20, %v289_v17  ;;  %v725_v45 = vor.u32 %v724_v42, %v723_v43  ;;  %v1888_v58 = vrot.slane %v1031_v53, %v1043_v52  ;;  %v1894_v63 = vrot.slane %v1085_v57, %v1035_v51  ;;  %s1934_s20 = scalar_lea.vmem %s1980_s5, %s1369_s13 }
  0x67   : > { %1322 = vmatmul.mubr.msk.bf16.vlgmr.msra.gmra.mrb[0].mxu0 %vm314_vm1, %v290_v24  ;;  %1324 = vmatmul.mubr.msk.bf16.vlgmr.msra.gmra.mrb[0].mxu1 %vm314_vm1, %v290_v24  ;;  %v1890_v60 = vrot.slane %v1031_v53, %v1039_v54  ;;  %v1892_v61 = vrot.slane %v1031_v53, %v1047_v55  ;;  %v1896_v1 = vrot.slane %v1085_v57, %v1043_v52 }
  0x68   : > { %452 = vmatpush1.bf16.msra.mxu0 %v1488_v18  ;;  %505 = vmatpush1.bf16.msra.mxu1 %v1491_v19  ;;  %v726_v48 = vsel %vm719_vm4, %v722_v44, %v725_v45  ;;  %v1898_v2 = vrot.slane %v1085_v57, %v1039_v54  ;;  %v1900_v3 = vrot.slane %v1085_v57, %v1047_v55 }
  0x69   : > { %363 = vmatprep.mubr.bf16.mxu0 %v1615_v0  ;;  %416 = vmatprep.mubr.bf16.mxu1 %v1615_v0  ;;  %v1903_v5 = vrot.slane %v1123_v59, %v1035_v51  ;;  %v1906_v7 = vrot.slane %v1123_v59, %v1043_v52  ;;  %v1912_v13 = vrot.slane %v1123_v59, %v1047_v55 }
  0x6a   : > { %593 = vmatprep.subr.bf16.mxu0 %v1496_v21  ;;  %646 = vmatprep.subr.bf16.mxu1 %v1499_v25 }
  0x6f   : > { %1323 = vmatmul.mubr.msk.bf16.gmra.mrb[4].mxu0 %vm314_vm1, %v293_v28  ;;  %1325 = vmatmul.mubr.msk.bf16.gmra.mrb[4].mxu1 %vm314_vm1, %v293_v28 }
  0x70   : > { %483 = vmatprep.mubr.bf16.mxu0 %v1615_v0  ;;  %536 = vmatprep.mubr.bf16.mxu1 %v1615_v0 }
  0x77   : > { %1330 = vmatmul.mubr.msk.bf16.vlgmr.msra.gmra.mrb[0].mxu0 %vm314_vm1, %v1781_v11  ;;  %1332 = vmatmul.mubr.msk.bf16.vlgmr.msra.gmra.mrb[0].mxu1 %vm314_vm1, %v1781_v11  ;;  %v1909_v11 = vrot.slane %v1123_v59, %v1039_v54 }
  0x78   : > { %594 = vmatpush1.bf16.msra.mxu0 %v1494_v29  ;;  %647 = vmatpush1.bf16.msra.mxu1 %v1497_v30 }
  0x79   : > { %493 = vmatprep.mubr.bf16.mxu0 %v1615_v0  ;;  %546 = vmatprep.mubr.bf16.mxu1 %v1615_v0 }
  0x7a   : > { %753 = vmatprep.subr.bf16.mxu0 %v1502_v31  ;;  %806 = vmatprep.subr.bf16.mxu1 %v1505_v32 }
  0x7f   : > { %1331 = vmatmul.mubr.msk.bf16.gmra.mrb[4].mxu0 %vm314_vm1, %v1783_v12  ;;  %1333 = vmatmul.mubr.msk.bf16.gmra.mrb[4].mxu1 %vm314_vm1, %v1783_v12 }
  0x80   : > { %625 = vmatprep.mubr.bf16.mxu0 %v1615_v0  ;;  %678 = vmatprep.mubr.bf16.mxu1 %v1615_v0 }
  0x87   : > { %1338 = vmatmul.mubr.msk.bf16.vlgmr.msra.gmra.mrb[0].mxu0 %vm314_vm1, %v566_v37  ;;  %1340 = vmatmul.mubr.msk.bf16.vlgmr.msra.gmra.mrb[0].mxu1 %vm314_vm1, %v566_v37 }
  0x88   : > { %754 = vmatpush1.bf16.msra.mxu0 %v1500_v35  ;;  %807 = vmatpush1.bf16.msra.mxu1 %v1503_v36 }
  0x89   : > { %635 = vmatprep.mubr.bf16.mxu0 %v1615_v0  ;;  %688 = vmatprep.mubr.bf16.mxu1 %v1615_v0 }
  0x8a   : > { %909 = vmatprep.subr.bf16.mxu0 %v1508_v38  ;;  %962 = vmatprep.subr.bf16.mxu1 %v1511_v39 }
  0x8f   : > { %1339 = vmatmul.mubr.msk.bf16.gmra.mrb[4].mxu0 %vm314_vm1, %v565_v34  ;;  %1341 = vmatmul.mubr.msk.bf16.gmra.mrb[4].mxu1 %vm314_vm1, %v565_v34 }
  0x90   : > { %785 = vmatprep.mubr.bf16.mxu0 %v1615_v0  ;;  %838 = vmatprep.mubr.bf16.mxu1 %v1615_v0 }
  0x97   : > { %1346 = vmatmul.mubr.msk.bf16.vlgmr.msra.gmra.mrb[0].mxu0 %vm314_vm1, %v726_v48  ;;  %1348 = vmatmul.mubr.msk.bf16.vlgmr.msra.gmra.mrb[0].mxu1 %vm314_vm1, %v726_v48 }
  0x98   : > { %910 = vmatpush1.bf16.msra.mxu0 %v1506_v46  ;;  %963 = vmatpush1.bf16.msra.mxu1 %v1509_v47 }
  0x99   : > { %795 = vmatprep.mubr.bf16.mxu0 %v1615_v0  ;;  %848 = vmatprep.mubr.bf16.mxu1 %v1615_v0 }
  0x9f   : > { %1347 = vmatmul.mubr.msk.bf16.gmra.mrb[4].mxu0 %vm314_vm1, %v725_v45  ;;  %1349 = vmatmul.mubr.msk.bf16.gmra.mrb[4].mxu1 %vm314_vm1, %v725_v45 }
  0xa0   : > { %941 = vmatprep.mubr.bf16.mxu0 %v1615_v0  ;;  %994 = vmatprep.mubr.bf16.mxu1 %v1615_v0 }
  0xa7   : > { %1354 = vmatmul.mubr.msk.bf16.vlgmr.msra.gmra.mrb[0].mxu0 %vm314_vm1, %v1808_v27  ;;  %1356 = vmatmul.mubr.msk.bf16.vlgmr.msra.gmra.mrb[0].mxu1 %vm314_vm1, %v1808_v27 }
  0xa8   : > { %951 = vmatprep.mubr.bf16.mxu0 %v1615_v0  ;;  %1004 = vmatprep.mubr.bf16.mxu1 %v1615_v0 }
  0xaf   : > { %1355 = vmatmul.mubr.msk.bf16.gmra.mrb[4].mxu0 %vm314_vm1, %v1799_v23  ;;  %1357 = vmatmul.mubr.msk.bf16.gmra.mrb[4].mxu1 %vm314_vm1, %v1799_v23 }
 0x17a   : > { %v943_v62 = vpop.f32.mrb[0].mxu0  ;;  %v996_v0 = vpop.f32.mrb[0].mxu1 }
 0x17b   : > { %v1053_v4 = vadd.f32 %v1886_v56, %v943_v62  ;;  %v1055_v6 = vadd.f32 %v1888_v58, %v996_v0  ;;  %v945_v8 = vpop.f32.mrb[1].mxu0  ;;  %v998_v9 = vpop.f32.mrb[1].mxu1 }
 0x17c   : > { %v1054_v10 = vadd.f32 %v1890_v60, %v945_v8  ;;  %v1056_v12 = vadd.f32 %v1892_v61, %v998_v9  ;;  %v947_v14 = vpop.f32.mrb[2].mxu0  ;;  %v1000_v15 = vpop.f32.mrb[2].mxu1 }
 0x17d   : > { %v1069_v16 = vmax.f32 %v1053_v4, 0.0  ;;  %v1071_v17 = vmax.f32 %v1055_v6, 0.0  ;;  %v1057_v18 = vadd.f32 %v1886_v56, %v947_v14  ;;  %v1059_v19 = vadd.f32 %v1888_v58, %v1000_v15  ;;  %v949_v20 = vpop.f32.mrb[3].mxu0  ;;  %v1002_v21 = vpop.f32.mrb[3].mxu1 }
 0x17e   : > { %v1070_v22 = vmax.f32 %v1054_v10, 0.0  ;;  %v1072_v23 = vmax.f32 %v1056_v12, 0.0  ;;  %v1058_v24 = vadd.f32 %v1890_v60, %v949_v20  ;;  %v1060_v25 = vadd.f32 %v1892_v61, %v1002_v21 }
 0x17f   : > { %v1107_v26 = vmul.f32 %v1894_v63, %v1069_v16  ;;  %v1109_v27 = vmul.f32 %v1896_v1, %v1071_v17  ;;  %v1073_v28 = vmax.f32 %v1057_v18, 0.0  ;;  %v1075_v29 = vmax.f32 %v1059_v19, 0.0 }
 0x180   : > { %v1108_v30 = vmul.f32 %v1898_v2, %v1070_v22  ;;  %v1110_v31 = vmul.f32 %v1900_v3, %v1072_v23  ;;  %v1074_v32 = vmax.f32 %v1058_v24, 0.0  ;;  %v1076_v33 = vmax.f32 %v1060_v25, 0.0 }
 0x181   : > { %v1145_v34 = vadd.f32 %v1903_v5, %v1107_v26  ;;  %v1147_v35 = vadd.f32 %v1906_v7, %v1109_v27  ;;  %v1111_v36 = vmul.f32 %v1894_v63, %v1073_v28  ;;  %v1113_v37 = vmul.f32 %v1896_v1, %v1075_v29 }
 0x182   : > { %v1146_v38 = vadd.f32 %v1909_v11, %v1108_v30  ;;  %v1148_v39 = vadd.f32 %v1912_v13, %v1110_v31  ;;  %v1112_v40 = vmul.f32 %v1898_v2, %v1074_v32  ;;  %v1114_v41 = vmul.f32 %v1900_v3, %v1076_v33  ;;  %v953_v42 = vpop.f32.mrb[4].mxu0  ;;  %v1006_v43 = vpop.f32.mrb[4].mxu1 }
 0x183   : > { %v1149_v44 = vadd.f32 %v1903_v5, %v1111_v36  ;;  %v1151_v45 = vadd.f32 %v1906_v7, %v1113_v37  ;;  %v1061_v46 = vadd.f32 %v1886_v56, %v953_v42  ;;  %v1063_v47 = vadd.f32 %v1888_v58, %v1006_v43  ;;  %v955_v48 = vpop.f32.mrb[5].mxu0  ;;  %v1008_v49 = vpop.f32.mrb[5].mxu1 }
 0x184   : > { %v1370_v50 = vpack.c.bf16 %v1146_v38, %v1145_v34  ;;  %v1371_v51 = vpack.c.bf16 %v1148_v39, %v1147_v35  ;;  %v1150_v52 = vadd.f32 %v1909_v11, %v1112_v40  ;;  %v1152_v53 = vadd.f32 %v1912_v13, %v1114_v41  ;;  %v957_v54 = vpop.f32.mrb[6].mxu0  ;;  %v1010_v55 = vpop.f32.mrb[6].mxu1 }
 0x185   : > { %v1077_v57 = vmax.f32 %v1061_v46, 0.0  ;;  %v1079_v59 = vmax.f32 %v1063_v47, 0.0  ;;  %v1062_v62 = vadd.f32 %v1890_v60, %v955_v48  ;;  %v1064_v0 = vadd.f32 %v1892_v61, %v1008_v49  ;;  %v959_v4 = vpop.f32.mrb[7].mxu0  ;;  %v1012_v6 = vpop.f32.mrb[7].mxu1 }
 0x186   : > { %1209 = vst [vmem:[%s1934_s20] sm:$0xff] %v1370_v50  ;;  %1210 = vst [vmem:[%s1934_s20 + $0x8] sm:$0xff] %v1371_v51  ;;  %v1372_v8 = vpack.c.bf16 %v1150_v52, %v1149_v44  ;;  %v1373_v9 = vpack.c.bf16 %v1152_v53, %v1151_v45  ;;  %v1065_v10 = vadd.f32 %v1886_v56, %v957_v54 }
 0x187   : > { %v1067_v12 = vadd.f32 %v1888_v58, %v1010_v55  ;;  %v1115_v14 = vmul.f32 %v1894_v63, %v1077_v57  ;;  %v1117_v15 = vmul.f32 %v1896_v1, %v1079_v59  ;;  %v1078_v16 = vmax.f32 %v1062_v62, 0.0 }
 0x188   : > { %v1080_v17 = vmax.f32 %v1064_v0, 0.0  ;;  %1211 = vst [vmem:[%s1934_s20 + $0x10] sm:$0xff] %v1372_v8  ;;  %1212 = vst [vmem:[%s1934_s20 + $0x18] sm:$0xff] %v1373_v9  ;;  %v1081_v18 = vmax.f32 %v1065_v10, 0.0  ;;  %v1066_v20 = vadd.f32 %v1890_v60, %v959_v4  ;;  %v1068_v21 = vadd.f32 %v1892_v61, %v1012_v6 }
 0x189   : > { %v1083_v19 = vmax.f32 %v1067_v12, 0.0  ;;  %v1153_v22 = vadd.f32 %v1903_v5, %v1115_v14  ;;  %v1155_v56 = vadd.f32 %v1906_v7, %v1117_v15  ;;  %v1116_v58 = vmul.f32 %v1898_v2, %v1078_v16 }
 0x18a   : > { %v1118_v23 = vmul.f32 %v1900_v3, %v1080_v17  ;;  %v1119_v24 = vmul.f32 %v1894_v63, %v1081_v18  ;;  %v1082_v26 = vmax.f32 %v1066_v20, 0.0  ;;  %v1084_v27 = vmax.f32 %v1068_v21, 0.0 }
 0x18b   : > { %v1121_v25 = vmul.f32 %v1896_v1, %v1083_v19  ;;  %v1154_v60 = vadd.f32 %v1909_v11, %v1116_v58 }
 0x18c   : > { %v1156_v61 = vadd.f32 %v1912_v13, %v1118_v23  ;;  %v1157_v28 = vadd.f32 %v1903_v5, %v1119_v24  ;;  %v1120_v30 = vmul.f32 %v1898_v2, %v1082_v26  ;;  %v1122_v31 = vmul.f32 %v1900_v3, %v1084_v27 }
 0x18d   : > { %v1159_v29 = vadd.f32 %v1906_v7, %v1121_v25  ;;  %v1374_v32 = vpack.c.bf16 %v1154_v60, %v1153_v22 }
 0x18e   : > { %v1375_v63 = vpack.c.bf16 %v1156_v61, %v1155_v56  ;;  %v1158_v1 = vadd.f32 %v1909_v11, %v1120_v30  ;;  %v1160_v33 = vadd.f32 %v1912_v13, %v1122_v31 }
 0x18f   : > { %1213 = vst [vmem:[%s1934_s20 + $0x20] sm:$0xff] %v1374_v32 }
 0x190   : > { %1214 = vst [vmem:[%s1934_s20 + $0x28] sm:$0xff] %v1375_v63  ;;  %v1376_v34 = vpack.c.bf16 %v1158_v1, %v1157_v28  ;;  %v1377_v35 = vpack.c.bf16 %v1160_v33, %v1159_v29 }
 0x192   : > { %1215 = vst [vmem:[%s1934_s20 + $0x30] sm:$0x33] %v1376_v34  ;;  %1216 = vst [vmem:[%s1934_s20 + $0x38] sm:$0x33] %v1377_v35 }
 0x193 PF: > { %s17_s18 = sadd.s32 1, %s1610_s18  }
 0x194   : > { %p14_p5 = scmp.ge.s32.totalorder %s17_s18, 4  }
 0x196   :  { %16 = sbr.rel (!%p14_p5) target bundleno = 2 (0x2), region = 83 }
 0x19d   :  { %1238 = vsyncpa [#allocation3], 1 }
 0x19e   :  { %1240 = vsyncpa [#allocation3 + $0x1], 1 }
 0x19f   :  { %1241 = vsyncpa [#allocation5], 1 }

// kernel: _lambda_.19
= control target key start
LH: loop header
LB: loop body
LE: loop exit
PB: predicated region body
PF: predicated region fallthrough
CT: control target
= control target key end

     0   :  { %s592_s6 = smov 0   ;;  %s594_s7 = smov 0   ;;  %s676_s0 = inlined_call_operand.vmem [shape: bf16[2,21,512], index: 0, kind: input, shape index: {}]   ;;  %s677_s1 = inlined_call_operand.vmem [shape: f32[2,2,512], index: 1, kind: output, shape index: {}]  }
   0x1   :  { %s596_s8 = smov 0   ;;  %s598_s9 = smov 0  }
   0x2   :  { %s600_s10 = smov 0  }
   0x3 LB: > { %s23_s11 = sadd.s32 1, %s574_s9  ;;  %s475_s12 = sadd.s32 4294967295, %s578_s10   ;;  %s578_s10 = sphi %s600_s10, %s11_s10   ;;  %s574_s9 = sphi %s598_s9, %s682_s9   ;;  %s570_s8 = sphi %s596_s8, %s681_s8   ;;  %s566_s7 = sphi %s594_s7, %s680_s7   ;;  %s562_s6 = sphi %s592_s6, %s679_s6  }
   0x4   : > { %p25_p0 = scmp.ge.s32.totalorder %s23_s11, 4  ;;  %p39_p1 = scmp.ne.s32.totalorder %s566_s7, %s562_s6 }
   0x5   : > { %p40_p2 = scmp.eq.s32.totalorder %s578_s10, 0  ;;  %p69_p4 = scmp.eq.s32.totalorder %s475_s12, 3 }
   0x6   : > { %s684_s11 = smov (%p25_p0, %s23_s11), 0  ;;  %s32_s14 = sadd.s32 1, %s566_s7 }
   0x7   : > { %p41_p3 = por %p40_p2, %p39_p1  ;;  %s28_s13 = ssub.s32 %s574_s9, %s684_s11 }
   0x8   : > { %p30_p5 = scmp.eq.s32.totalorder %s28_s13, 0  ;;  %p627_p6 = por %p69_p4, %p39_p1 }
   0x9   : > { %p478_p7 = scmp.ge.s32.totalorder %s578_s10, 4 }
   0xa   : > { %s632_s16 = scalar_select %p30_p5, %s566_s7, %s32_s14  }
   0xb   : > { %91 = sbr.rel (%p478_p7) target bundleno = 26 (0x1a), region = 16 }
  0x12   : > { %94 = sbr.rel (!%p41_p3) target bundleno = 26 (0x1a), region = 20  ;;  %s96_s17 = sand.u32 (%p41_p3), 1, %s566_s7  }
  0x13   : > { %s479_s18 = sshll.u32 (%p41_p3), %s574_s9, 2  ;;  %s494_s19 = smul.u32 (%p41_p3), 24, %s96_s17 }
  0x14   : > { %s103_s22 = scalar_lea.vmem (%p41_p3), %s676_s0, %s479_s18 }
  0x15   : > { %v119_v0 = vld [vmem:[%s103_s22] sm:$0xf] (%p41_p3)  ;;  %v121_v1 = vld [vmem:[%s103_s22 + $0x10] sm:$0xf] (%p41_p3)  ;;  %s98_s23 = scalar_lea.vmem (%p41_p3), [#allocation4], %s494_s19 }
  0x16   : > { %v123_v2 = vld [vmem:[%s103_s22 + $0x20] sm:$0xf] (%p41_p3)  ;;  %v125_v3 = vld [vmem:[%s103_s22 + $0x30] sm:$0xf] (%p41_p3)  ;;  %120 = vst [vmem:[%s98_s23] sm:$0xf] (%p41_p3), %v119_v0 }
  0x17   : > { %v127_v4 = vld [vmem:[%s103_s22 + $0x40] sm:$0xf] (%p41_p3)  ;;  %122 = vst [vmem:[%s98_s23 + $0x4] sm:$0xf] (%p41_p3), %v121_v1  ;;  %124 = vst [vmem:[%s98_s23 + $0x8] sm:$0xf] (%p41_p3), %v123_v2 }
  0x18   : > { %126 = vst [vmem:[%s98_s23 + $0xc] sm:$0xf] (%p41_p3), %v125_v3  ;;  %128 = vst [vmem:[%s98_s23 + $0x10] sm:$0xf] (%p41_p3), %v127_v4  ;;  %v129_v5 = vld [vmem:[%s103_s22 + $0x50] sm:$0xf] (%p41_p3) }
  0x19   : > { %130 = vst [vmem:[%s98_s23 + $0x14] sm:$0xf] %v129_v5 }
  0x1a PF: > { %p480_p8 = scmp.ge.s32.totalorder %s578_s10, 1  ;;  %p164_p9 = scmp.lt.s32.totalorder %s578_s10, 5 }
  0x1c   : > { %p165_p10 = pnand %p480_p8, %p164_p9 }
  0x1d   : > { %s171_s24 = sand.u32 (!%p165_p10), 1, %s562_s6   ;;  %v208_v6 = vlaneseq (!%p165_p10)  ;;  %v580_v7 = vmov (!%p165_p10), 0.0   ;;  %vm234_vm0 = vcmask (!%p165_p10), 1044480   ;;  %vm254_vm2 = vcmask (!%p165_p10), 1041409  }
  0x1e   : > { %168 = sbr.rel (%p165_p10) target bundleno = 105 (0x69), region = 61  ;;  %194 = vst [vmem:[#allocation2] sm:$0x3] (!%p165_p10), %v580_v7  ;;  %195 = vst [vmem:[#allocation3] sm:$0x3] (!%p165_p10), %v580_v7  ;;  %s481_s27 = sshll.u32 (!%p165_p10), %s171_s24, 2 }
  0x1f   : > { %s495_s25 = smul.u32 (!%p165_p10), 24, %s171_s24  ;;  %v645_v8 = vshrl.u32 (!%p165_p10), %v208_v6, 7  ;;  %v581_v4 = vmov (!%p165_p10), 1966171168   ;;  %s188_s28 = scalar_lea.vmem (!%p165_p10), [#allocation5], %s481_s27 }
  0x20   : > { %v305_v5 = vunpack.c.l.s4 (!%p165_p10), %v581_v4 }
  0x21   : > { %s173_s26 = scalar_lea.vmem (!%p165_p10), [#allocation4], %s495_s25  ;;  %v211_v12 = vadd.s32 (!%p165_p10), 16, %v645_v8 }
  0x22   : > { %v491_v9 = vld [vmem:[%s173_s26] sm:$0xff] (!%p165_p10)   ;;  %v198_v10 = vld [vmem:[%s173_s26 + $0x8] sm:$0x7] (!%p165_p10)  ;;  %v199_v11 = vld [vmem:[%s173_s26 + $0xc] sm:$0xff] (!%p165_p10)  }
  0x23   : > { %v492_v13 = vunpack.c.l.bf16 (!%p165_p10), %v491_v9  ;;  %v493_v14 = vunpack.c.h.bf16 (!%p165_p10), %v491_v9  ;;  %v201_v15 = vld [vmem:[%s173_s26 + $0x14] sm:$0x7] (!%p165_p10)  ;;  %v204_v16 = vunpack.c.l.bf16 (!%p165_p10), %v198_v10  ;;  %v205_v17 = vunpack.c.l.bf16 (!%p165_p10), %v199_v11 }
  0x24   : > { %v206_v18 = vunpack.c.h.bf16 (!%p165_p10), %v199_v11  ;;  %v207_v19 = vunpack.c.l.bf16 (!%p165_p10), %v201_v15  ;;  %vm219_vm1 = vcmp.lt.s32.totalorder (!%p165_p10), %v211_v12, 21  ;;  %v306_v9 = vunpack.c.0.s8 (!%p165_p10), %v305_v5 }
  0x25   : > { %v228_v20 = vsel %vm219_vm1, %v204_v16, 0.0  ;;  %v233_v21 = vadd.f32 %v493_v14, %v492_v13  ;;  %v260_v22 = vmul.f32 %v492_v13, %v492_v13  ;;  %v261_v23 = vmul.f32 %v493_v14, %v493_v14  ;;  %v232_v59 = vld [vmem:[#allocation2] sm:$0x3]  ;;  %v259_v2 = vld [vmem:[#allocation3] sm:$0x3]  ;;  %s487_s29 = sshll.u32 (%p627_p6), %s570_s8, 1 }
  0x26   : > { %v231_v24 = vsel %vm219_vm1, %v207_v19, 0.0  ;;  %v235_v25 = vsel %vm234_vm0, %v228_v20, 0.0  ;;  %v243_v26 = vadd.f32 %v206_v18, %v205_v17  ;;  %v262_v27 = vmul.f32 %v228_v20, %v228_v20  ;;  %s372_s3 = scalar_lea.vmem (%p627_p6), %s677_s1, %s487_s29 }
  0x27   : > { %v236_v28 = vadd.f32 %v235_v25, %v233_v21  ;;  %v244_v29 = vsel %vm234_vm0, %v231_v24, 0.0  ;;  %v263_v30 = vmul.f32 %v205_v17, %v205_v17  ;;  %v264_v31 = vmul.f32 %v206_v18, %v206_v18 }
  0x28   : > { %v245_v32 = vadd.f32 %v244_v29, %v243_v26  ;;  %v265_v33 = vmul.f32 %v231_v24, %v231_v24  ;;  %v266_v34 = vadd.f32 %v261_v23, %v260_v22  ;;  %v267_v35 = vsel %vm234_vm0, %v262_v27, 0.0 }
  0x29   : > { %v237_v36 = vrot.slane %v236_v28, 4  ;;  %v275_v37 = vadd.f32 %v264_v31, %v263_v30  ;;  %v309_v10 = vsub.s32 %v306_v9, %v645_v8 }
  0x2a   : > { %v246_v38 = vrot.slane %v245_v32, 4  ;;  %v268_v39 = vadd.f32 %v267_v35, %v266_v34  ;;  %v276_v40 = vsel %vm234_vm0, %v265_v33, 0.0 }
  0x2b   : > { %v238_v41 = vadd.f32 %v237_v36, %v236_v28  ;;  %v277_v42 = vadd.f32 %v276_v40, %v275_v37 }
  0x2c   : > { %v247_v43 = vadd.f32 %v246_v38, %v245_v32  ;;  %v269_v44 = vrot.slane %v268_v39, 4 }
  0x2d   : > { %v239_v45 = vrot.slane %v238_v41, 2  ;;  %v278_v46 = vrot.slane %v277_v42, 4 }
  0x2e   : > { %v248_v47 = vrot.slane %v247_v43, 2  ;;  %v270_v48 = vadd.f32 %v269_v44, %v268_v39 }
  0x2f   : > { %v240_v49 = vadd.f32 %v239_v45, %v238_v41  ;;  %v279_v50 = vadd.f32 %v278_v46, %v277_v42 }
  0x30   : > { %v249_v51 = vadd.f32 %v248_v47, %v247_v43  ;;  %v271_v52 = vrot.slane %v270_v48, 2 }
  0x31   : > { %v241_v53 = vrot.slane %v240_v49, 1  ;;  %v280_v54 = vrot.slane %v279_v50, 2 }
  0x32   : > { %v250_v55 = vrot.slane %v249_v51, 1  ;;  %v272_v56 = vadd.f32 %v271_v52, %v270_v48 }
  0x33   : > { %v242_v57 = vadd.f32 %v241_v53, %v240_v49  ;;  %v281_v58 = vadd.f32 %v280_v54, %v279_v50 }
  0x34   : > { %v251_v60 = vadd.f32 %v250_v55, %v249_v51  ;;  %v273_v61 = vrot.slane %v272_v56, 1 }
  0x35   : > { %v282_v62 = vrot.slane %v281_v58, 1 }
  0x36   : > { %v255_v63 = vsel %vm254_vm2, %v251_v60, %v242_v57  ;;  %v274_v0 = vadd.f32 %v273_v61, %v272_v56 }
  0x37   : > { %v257_v1 = vadd.f32 %v255_v63, %v232_v59  ;;  %v283_v3 = vadd.f32 %v282_v62, %v281_v58 }
  0x39   : > { %258 = vst [vmem:[#allocation2] sm:$0x3] %v257_v1  ;;  %v286_v6 = vsel %vm254_vm2, %v283_v3, %v274_v0 }
  0x3a   : > { %v288_v7 = vadd.f32 %v286_v6, %v259_v2 }
  0x3c   : > { %289 = vst [vmem:[#allocation3] sm:$0x3] %v288_v7 }
  0x40   : > { %v293_v11 = vld [vmem:[#allocation2] sm:$0x3] }
  0x41   : > { %v295_v12 = vmul.f32 0.04761905, %v293_v11 }
  0x43   : > { %v297_v13 = vmul.f32 21.0, %v295_v12  ;;  %v310_v14 = vrot.slane %v295_v12, %v309_v10  ;;  %v296_v15 = vld [vmem:[#allocation3] sm:$0x3] }
  0x45   : > { %v298_v16 = vmul.f32 %v297_v13, %v295_v12  ;;  %482 = vst.sshfl [vmem:[%s188_s28] sm:$0x1 pattern:$0x73625140] %v310_v14  ;;  %v311_v17 = vcombine.high %v310_v14, %v310_v14 }
  0x47   : > { %v299_v18 = vsub.f32 %v296_v15, %v298_v16  ;;  %483 = vst.sshfl [vmem:[%s188_s28 + $0x2] sm:$0x1 pattern:$0x73625140] %v311_v17 }
  0x49   : > { %v300_v19 = vmax.f32 %v299_v18, 0.0 }
  0x4b   : > { %v302_v20 = vmul.f32 0.05, %v300_v19 }
  0x4d   : > { %538 = vrsqrt.f32 %v302_v20  ;;  %vm332_vm3 = vcmp.eq.f32.partialorder %v302_v20, inf  ;;  %v335_v23 = vand.u32 2147483648, %v302_v20  ;;  %vm334_vm4 = vcmp.eq.f32.partialorder %v302_v20, 0.0 }
  0x57   : > { %v539_v21 = vpop.eup %538 }
  0x58   : > { %v331_v22 = vmul.f32 %v539_v21, %v302_v20 }
  0x5a   : > { %v333_v24 = vsel %vm332_vm3, %v302_v20, %v331_v22  ;;  %370 = sbr.rel (!%p627_p6) target bundleno = 105 (0x69), region = 77 }
  0x5b   : > { %v336_v8 = vsel %vm334_vm4, %v335_v23, %v333_v24 }
  0x5c   : > { %v344_v25 = vrot.slane %v336_v8, %v309_v10 }
  0x5e   : > { %484 = vst.sshfl [vmem:[%s188_s28 + $0x1] sm:$0x1 pattern:$0x73625140] %v344_v25  ;;  %v345_v26 = vcombine.high %v344_v25, %v344_v25 }
  0x60   : > { %485 = vst.sshfl [vmem:[%s188_s28 + $0x3] sm:$0x1 pattern:$0x73625140] %v345_v26 }
  0x65   : > { %v388_v27 = vld [vmem:[%s188_s28] sm:$0x3] }
  0x66   : > { %389 = vst [vmem:[%s372_s3] sm:$0x3] %v388_v27 }
  0x67   : > { %v390_v28 = vld [vmem:[%s188_s28 + $0x2] sm:$0x3] }
  0x68   : > { %391 = vst [vmem:[%s372_s3 + $0x8] sm:$0x3] %v390_v28 }
  0x69 PF: > { %s11_s10 = sadd.s32 1, %s578_s10   ;;  %s679_s6 = smov %s566_s7 }
  0x6a   : > { %p8_p11 = scmp.ge.s32.totalorder %s11_s10, 6   ;;  %s680_s7 = smov %s632_s16 }
  0x6b   : > { %s681_s8 = smov %s574_s9  ;;  %s682_s9 = smov %s684_s11 }
  0x6c   :  { %10 = sbr.rel (!%p8_p11) target bundleno = 3 (0x3), region = 142 }

// kernel: _lambda_.17
= control target key start
LH: loop header
LB: loop body
LE: loop exit
PB: predicated region body
PF: predicated region fallthrough
CT: control target
= control target key end

     0   :  { %s1885_s18 = smov 0   ;;  %s2376_s0 = inlined_call_operand.vmem [shape: bf16[2,21,512], index: 0, kind: input, shape index: {}]   ;;  %s2377_s1 = inlined_call_operand.vmem [shape: bf16[512,512], index: 1, kind: input, shape index: {}]   ;;  %s2378_s2 = inlined_call_operand.vmem [shape: f32[1,512], index: 2, kind: input, shape index: {}]   ;;  %s2379_s3 = inlined_call_operand.vmem [shape: f32[1,512], index: 3, kind: input, shape index: {}]   ;;  %s2380_s4 = inlined_call_operand.vmem [shape: f32[1,512], index: 4, kind: input, shape index: {}]   ;;  %s2381_s5 = inlined_call_operand.vmem [shape: bf16[2,21,512], index: 5, kind: output, shape index: {}]  }
   0x1 LB: > { %s1451_s19 = sadd.s32 4294967295, %s1853_s18   ;;  %p1455_p0 = scmp.ge.s32.totalorder %s1853_s18, 1  ;;  %s1853_s18 = sphi %s1885_s18, %s15_s18  }
   0x2   : > { %p187_p1 = scmp.lt.s32.totalorder %s1853_s18, 3 }
   0x4   : > { %p188_p2 = pnand %p1455_p0, %p187_p1 }
   0x5   : > { %v1645_v0 = vld [vmem:[%s2377_s1 + $0x4] ss:$16 sps:$4 sm:$0xff] (!%p188_p2)   ;;  %v1647_v1 = vld [vmem:[%s2377_s1 + $0xc] ss:$16 sps:$4 sm:$0xff] (!%p188_p2)   ;;  %v1649_v2 = vld [vmem:[%s2377_s1] ss:$16 sps:$4 sm:$0xff] (!%p188_p2)  }
   0x6   : > { %191 = sbr.rel (%p188_p2) target bundleno = 368 (0x170), region = 40  ;;  %1055 = vmatprep.subr.bf16.mxu0 (!%p188_p2), %v1645_v0  ;;  %v1650_v3 = vld [vmem:[%s2377_s1 + $0x8] ss:$16 sps:$4 sm:$0xff] (!%p188_p2)   ;;  %1157 = vmatprep.subr.bf16.mxu1 (!%p188_p2), %v1647_v1  ;;  %v1651_v4 = vld [vmem:[%s2377_s1 + $0x24] ss:$16 sps:$4 sm:$0xff] (!%p188_p2)   ;;  %p215_p3 = scmp.lt.s32.totalorder (!%p188_p2), %s1451_s19, 1 }
   0x7   : > { %1056 = vmatpush1.bf16.msra.mxu0 (!%p188_p2), %v1649_v2  ;;  %1158 = vmatpush1.bf16.msra.mxu1 (!%p188_p2), %v1650_v3  ;;  %v1653_v5 = vld [vmem:[%s2377_s1 + $0x2c] ss:$16 sps:$4 sm:$0xff] (!%p188_p2)   ;;  %v1655_v6 = vld [vmem:[%s2377_s1 + $0x20] ss:$16 sps:$4 sm:$0xff] (!%p188_p2)   ;;  %v1656_v7 = vld [vmem:[%s2377_s1 + $0x28] ss:$16 sps:$4 sm:$0xff] (!%p188_p2)  }
   0x8   : > { %1057 = vmatprep.subr.bf16.mxu0 (!%p188_p2), %v1651_v4  ;;  %1159 = vmatprep.subr.bf16.mxu1 (!%p188_p2), %v1653_v5  ;;  %v1657_v8 = vld [vmem:[%s2377_s1 + $0x44] ss:$16 sps:$4 sm:$0xff] (!%p188_p2)   ;;  %v1659_v9 = vld [vmem:[%s2377_s1 + $0x4c] ss:$16 sps:$4 sm:$0xff] (!%p188_p2)   ;;  %v1661_v10 = vld [vmem:[%s2377_s1 + $0x40] ss:$16 sps:$4 sm:$0xff] (!%p188_p2)  }
   0x9   : > { %v1662_v11 = vld [vmem:[%s2377_s1 + $0x48] ss:$16 sps:$4 sm:$0xff] (!%p188_p2)   ;;  %v1663_v12 = vld [vmem:[%s2377_s1 + $0x64] ss:$16 sps:$4 sm:$0xff] (!%p188_p2)   ;;  %v1665_v13 = vld [vmem:[%s2377_s1 + $0x6c] ss:$16 sps:$4 sm:$0xff] (!%p188_p2)  }
   0xa   : > { %v1667_v14 = vld [vmem:[%s2377_s1 + $0x60] ss:$16 sps:$4 sm:$0xff] (!%p188_p2)   ;;  %v1668_v15 = vld [vmem:[%s2377_s1 + $0x68] ss:$16 sps:$4 sm:$0xff] (!%p188_p2)   ;;  %v1669_v16 = vld [vmem:[%s2377_s1 + $0x84] ss:$16 sps:$4 sm:$0xff] (!%p188_p2)  }
   0xb   : > { %1058 = vmatpush1.bf16.msra.mxu0 (!%p188_p2), %v1655_v6  ;;  %1160 = vmatpush1.bf16.msra.mxu1 (!%p188_p2), %v1656_v7  ;;  %v1671_v17 = vld [vmem:[%s2377_s1 + $0x8c] ss:$16 sps:$4 sm:$0xff] (!%p188_p2)   ;;  %v1673_v18 = vld [vmem:[%s2377_s1 + $0x80] ss:$16 sps:$4 sm:$0xff] (!%p188_p2)   ;;  %v1674_v19 = vld [vmem:[%s2377_s1 + $0x88] ss:$16 sps:$4 sm:$0xff] (!%p188_p2)  }
   0xc   : > { %1059 = vmatprep.subr.bf16.mxu0 (!%p188_p2), %v1657_v8  ;;  %1161 = vmatprep.subr.bf16.mxu1 (!%p188_p2), %v1659_v9  ;;  %v1675_v20 = vld [vmem:[%s2377_s1 + $0xa4] ss:$16 sps:$4 sm:$0xff] (!%p188_p2)   ;;  %v1677_v21 = vld [vmem:[%s2377_s1 + $0xac] ss:$16 sps:$4 sm:$0xff] (!%p188_p2)   ;;  %v1679_v22 = vld [vmem:[%s2377_s1 + $0xa0] ss:$16 sps:$4 sm:$0xff] (!%p188_p2)  }
   0xd   : > { %v1680_v23 = vld [vmem:[%s2377_s1 + $0xa8] ss:$16 sps:$4 sm:$0xff]   ;;  %v1681_v24 = vld [vmem:[%s2377_s1 + $0xc4] ss:$16 sps:$4 sm:$0xff]   ;;  %v1683_v25 = vld [vmem:[%s2377_s1 + $0xcc] ss:$16 sps:$4 sm:$0xff]  }
   0xe   : > { %v1685_v26 = vld [vmem:[%s2377_s1 + $0xc0] ss:$16 sps:$4 sm:$0xff]   ;;  %v1686_v27 = vld [vmem:[%s2377_s1 + $0xc8] ss:$16 sps:$4 sm:$0xff]   ;;  %v1687_v28 = vld [vmem:[%s2377_s1 + $0xe4] ss:$16 sps:$4 sm:$0xff]  }
   0xf   : > { %1060 = vmatpush1.bf16.msra.mxu0 %v1661_v10  ;;  %1162 = vmatpush1.bf16.msra.mxu1 %v1662_v11  ;;  %v1689_v29 = vld [vmem:[%s2377_s1 + $0xec] ss:$16 sps:$4 sm:$0xff]   ;;  %v1691_v30 = vld [vmem:[%s2377_s1 + $0xe0] ss:$16 sps:$4 sm:$0xff]   ;;  %v1692_v31 = vld [vmem:[%s2377_s1 + $0xe8] ss:$16 sps:$4 sm:$0xff]  }
  0x10   : > { %1061 = vmatprep.subr.bf16.mxu0 %v1663_v12  ;;  %1163 = vmatprep.subr.bf16.mxu1 %v1665_v13  ;;  %v1693_v32 = vld [vmem:[%s2377_s1 + $0x104] ss:$16 sps:$4 sm:$0xff]   ;;  %v1695_v33 = vld [vmem:[%s2377_s1 + $0x10c] ss:$16 sps:$4 sm:$0xff]   ;;  %v1697_v34 = vld [vmem:[%s2377_s1 + $0x100] ss:$16 sps:$4 sm:$0xff]  }
  0x11   : > { %v1698_v35 = vld [vmem:[%s2377_s1 + $0x108] ss:$16 sps:$4 sm:$0xff]   ;;  %v1699_v36 = vld [vmem:[%s2377_s1 + $0x124] ss:$16 sps:$4 sm:$0xff]   ;;  %s2383_s19 = smov (!%p215_p3, %s1451_s19), 1  ;;  %vm1383_vm0 = vcmask 1042432  }
  0x12   : > { %v1701_v37 = vld [vmem:[%s2377_s1 + $0x12c] ss:$16 sps:$4 sm:$0xff]   ;;  %v1703_v38 = vld [vmem:[%s2377_s1 + $0x120] ss:$16 sps:$4 sm:$0xff]   ;;  %v1704_v39 = vld [vmem:[%s2377_s1 + $0x128] ss:$16 sps:$4 sm:$0xff]  }
  0x13   : > { %1062 = vmatpush1.bf16.msra.mxu0 %v1667_v14  ;;  %1164 = vmatpush1.bf16.msra.mxu1 %v1668_v15  ;;  %v1705_v40 = vld [vmem:[%s2377_s1 + $0x144] ss:$16 sps:$4 sm:$0xff]   ;;  %s1636_s8 = smul.u32 48, %s2383_s19  ;;  %v1707_v41 = vld [vmem:[%s2377_s1 + $0x14c] ss:$16 sps:$4 sm:$0xff]   ;;  %vm1386_vm2 = vcmask 1046532  }
  0x14   : > { %1063 = vmatprep.subr.bf16.mxu0 %v1669_v16  ;;  %1165 = vmatprep.subr.bf16.mxu1 %v1671_v17  ;;  %v1709_v42 = vld [vmem:[%s2377_s1 + $0x140] ss:$16 sps:$4 sm:$0xff]   ;;  %v1710_v43 = vld [vmem:[%s2377_s1 + $0x148] ss:$16 sps:$4 sm:$0xff]   ;;  %v1711_v44 = vld [vmem:[%s2377_s1 + $0x164] ss:$16 sps:$4 sm:$0xff]  }
  0x15   : > { %s2040_s21 = scalar_lea.vmem %s2376_s0, %s1636_s8  ;;  %v1713_v45 = vld [vmem:[%s2377_s1 + $0x16c] ss:$16 sps:$4 sm:$0xff]   ;;  %v1715_v46 = vld [vmem:[%s2377_s1 + $0x160] ss:$16 sps:$4 sm:$0xff]   ;;  %v1716_v47 = vld [vmem:[%s2377_s1 + $0x168] ss:$16 sps:$4 sm:$0xff]   ;;  %s2347_s27 = scalar_lea.vmem %s2381_s5, %s1636_s8 }
  0x16   : > { %v1743_v48 = vld [vmem:[%s2040_s21 + $0x4] ss:$16 sps:$4 sm:$0xff]   ;;  %v1719_v50 = vld [vmem:[%s2377_s1 + $0x18c] ss:$16 sps:$4 sm:$0xff]   ;;  %v1721_v51 = vld [vmem:[%s2377_s1 + $0x180] ss:$16 sps:$4 sm:$0xff]  }
  0x17   : > { %1064 = vmatpush1.bf16.msra.mxu0 %v1673_v18  ;;  %1166 = vmatpush1.bf16.msra.mxu1 %v1674_v19  ;;  %v1717_v49 = vld [vmem:[%s2377_s1 + $0x184] ss:$16 sps:$4 sm:$0xff]   ;;  %v1722_v52 = vld [vmem:[%s2377_s1 + $0x188] ss:$16 sps:$4 sm:$0xff]   ;;  %v1725_v54 = vld [vmem:[%s2377_s1 + $0x1ac] ss:$16 sps:$4 sm:$0xff]  }
  0x18   : > { %1065 = vmatprep.subr.bf16.mxu0 %v1675_v20  ;;  %1167 = vmatprep.subr.bf16.mxu1 %v1677_v21  ;;  %v1723_v53 = vld [vmem:[%s2377_s1 + $0x1a4] ss:$16 sps:$4 sm:$0xff]   ;;  %v1727_v55 = vld [vmem:[%s2377_s1 + $0x1a0] ss:$16 sps:$4 sm:$0xff]   ;;  %v1728_v56 = vld [vmem:[%s2377_s1 + $0x1a8] ss:$16 sps:$4 sm:$0xff]  }
  0x19   : > { %1087 = vmatprep.mubr.bf16.mxu0 %v1743_v48  ;;  %1189 = vmatprep.mubr.bf16.mxu1 %v1743_v48  ;;  %v1729_v57 = vld [vmem:[%s2377_s1 + $0x1c4] ss:$16 sps:$4 sm:$0xff]   ;;  %v1731_v58 = vld [vmem:[%s2377_s1 + $0x1cc] ss:$16 sps:$4 sm:$0xff]   ;;  %v1733_v59 = vld [vmem:[%s2377_s1 + $0x1c0] ss:$16 sps:$4 sm:$0xff]  }
  0x1a   : > { %v1734_v60 = vld [vmem:[%s2377_s1 + $0x1c8] ss:$16 sps:$4 sm:$0xff]   ;;  %v1735_v61 = vld [vmem:[%s2377_s1 + $0x1e4] ss:$16 sps:$4 sm:$0xff]   ;;  %v1737_v62 = vld [vmem:[%s2377_s1 + $0x1ec] ss:$16 sps:$4 sm:$0xff]  }
  0x1b   : > { %1066 = vmatpush1.bf16.msra.mxu0 %v1679_v22  ;;  %1168 = vmatpush1.bf16.msra.mxu1 %v1680_v23  ;;  %v1739_v63 = vld [vmem:[%s2377_s1 + $0x1e0] ss:$16 sps:$4 sm:$0xff]   ;;  %v1740_v0 = vld [vmem:[%s2377_s1 + $0x1e8] ss:$16 sps:$4 sm:$0xff]   ;;  %v1746_v1 = vld [vmem:[%s2377_s1 + $0x204] ss:$16 sps:$4 sm:$0xff]  }
  0x1c   : > { %1067 = vmatprep.subr.bf16.mxu0 %v1681_v24  ;;  %1169 = vmatprep.subr.bf16.mxu1 %v1683_v25  ;;  %v1749_v2 = vld [vmem:[%s2377_s1 + $0x20c] ss:$16 sps:$4 sm:$0xff]   ;;  %v1741_v3 = vld [vmem:[%s2040_s21] ss:$16 sps:$4 sm:$0xff]   ;;  %v1747_v5 = vld [vmem:[%s2377_s1 + $0x208] ss:$16 sps:$4 sm:$0xff]  }
  0x1d   : > { %v1744_v4 = vld [vmem:[%s2377_s1 + $0x200] ss:$16 sps:$4 sm:$0xff]   ;;  %v1752_v6 = vld [vmem:[%s2377_s1 + $0x224] ss:$16 sps:$4 sm:$0xff]   ;;  %v1755_v7 = vld [vmem:[%s2377_s1 + $0x22c] ss:$16 sps:$4 sm:$0xff]  }
  0x1e   : > { %v1750_v8 = vld [vmem:[%s2377_s1 + $0x220] ss:$16 sps:$4 sm:$0xff]   ;;  %v1753_v9 = vld [vmem:[%s2377_s1 + $0x228] ss:$16 sps:$4 sm:$0xff]   ;;  %v1758_v10 = vld [vmem:[%s2377_s1 + $0x244] ss:$16 sps:$4 sm:$0xff]  }
  0x1f   : > { %1068 = vmatpush1.bf16.msra.mxu0 %v1685_v26  ;;  %1170 = vmatpush1.bf16.msra.mxu1 %v1686_v27  ;;  %v1761_v11 = vld [vmem:[%s2377_s1 + $0x24c] ss:$16 sps:$4 sm:$0xff]   ;;  %v1756_v12 = vld [vmem:[%s2377_s1 + $0x240] ss:$16 sps:$4 sm:$0xff]   ;;  %v1759_v13 = vld [vmem:[%s2377_s1 + $0x248] ss:$16 sps:$4 sm:$0xff]  }
  0x20   : > { %1069 = vmatprep.subr.bf16.mxu0 %v1687_v28  ;;  %1171 = vmatprep.subr.bf16.mxu1 %v1689_v29  ;;  %v1764_v14 = vld [vmem:[%s2377_s1 + $0x264] ss:$16 sps:$4 sm:$0xff]   ;;  %v1767_v15 = vld [vmem:[%s2377_s1 + $0x26c] ss:$16 sps:$4 sm:$0xff]   ;;  %v1762_v16 = vld [vmem:[%s2377_s1 + $0x260] ss:$16 sps:$4 sm:$0xff]  }
  0x21   : > { %v1765_v17 = vld [vmem:[%s2377_s1 + $0x268] ss:$16 sps:$4 sm:$0xff]   ;;  %v1770_v18 = vld [vmem:[%s2377_s1 + $0x284] ss:$16 sps:$4 sm:$0xff]   ;;  %v1773_v19 = vld [vmem:[%s2377_s1 + $0x28c] ss:$16 sps:$4 sm:$0xff]  }
  0x22   : > { %v1768_v20 = vld [vmem:[%s2377_s1 + $0x280] ss:$16 sps:$4 sm:$0xff]   ;;  %v1771_v21 = vld [vmem:[%s2377_s1 + $0x288] ss:$16 sps:$4 sm:$0xff]   ;;  %v1776_v22 = vld [vmem:[%s2377_s1 + $0x2a4] ss:$16 sps:$4 sm:$0xff]  }
  0x23   : > { %1070 = vmatpush1.bf16.msra.mxu0 %v1691_v30  ;;  %1172 = vmatpush1.bf16.msra.mxu1 %v1692_v31  ;;  %v1779_v23 = vld [vmem:[%s2377_s1 + $0x2ac] ss:$16 sps:$4 sm:$0xff]   ;;  %v229_v24 = vld [vmem:[%s2040_s21 + $0x20] sm:$0x77]  ;;  %v1777_v28 = vld [vmem:[%s2377_s1 + $0x2a8] ss:$16 sps:$4 sm:$0xff]  }
  0x24   : > { %1071 = vmatprep.subr.bf16.mxu0 %v1693_v32  ;;  %1173 = vmatprep.subr.bf16.mxu1 %v1695_v33  ;;  %v1463_v25 = vcombine.high %v229_v24, %v229_v24  ;;  %v1774_v26 = vld [vmem:[%s2377_s1 + $0x2a0] ss:$16 sps:$4 sm:$0xff]   ;;  %v1462_v27 = vcombine.low %v229_v24, %v229_v24  ;;  %v1782_v29 = vld [vmem:[%s2377_s1 + $0x2c4] ss:$16 sps:$4 sm:$0xff]   ;;  %v1785_v30 = vld [vmem:[%s2377_s1 + $0x2cc] ss:$16 sps:$4 sm:$0xff]  }
  0x25   : > { %v1780_v31 = vld [vmem:[%s2377_s1 + $0x2c0] ss:$16 sps:$4 sm:$0xff]   ;;  %v1783_v32 = vld [vmem:[%s2377_s1 + $0x2c8] ss:$16 sps:$4 sm:$0xff]   ;;  %v1844_v33 = vld [vmem:[%s2040_s21 + $0xc] ss:$16 sps:$4 sm:$0xff]  }
  0x26   : > { %v1804_v48 = vld [vmem:[%s2377_s1 + $0x340] ss:$16 sps:$4 sm:$0xff]   ;;  %vm1384_vm1 = vsmask.f32 2304  ;;  %vm1387_vm3 = vsmask.f32 6400 }
  0x27   : > { %1072 = vmatpush1.bf16.msra.mxu0 %v1697_v34  ;;  %1174 = vmatpush1.bf16.msra.mxu1 %v1698_v35  ;;  %v1788_v34 = vld [vmem:[%s2377_s1 + $0x2e4] ss:$16 sps:$4 sm:$0xff]   ;;  %v1791_v35 = vld [vmem:[%s2377_s1 + $0x2ec] ss:$16 sps:$4 sm:$0xff]   ;;  %vm1385_vm4 = vmand %vm1383_vm0, %vm1384_vm1 }
  0x28   : > { %1073 = vmatprep.subr.bf16.mxu0 %v1699_v36  ;;  %1175 = vmatprep.subr.bf16.mxu1 %v1701_v37  ;;  %v1786_v36 = vld [vmem:[%s2377_s1 + $0x2e0] ss:$16 sps:$4 sm:$0xff]   ;;  %v1789_v37 = vld [vmem:[%s2377_s1 + $0x2e8] ss:$16 sps:$4 sm:$0xff]   ;;  %vm1388_vm5 = vmand %vm1386_vm2, %vm1387_vm3 }
  0x29   : > { %vm1389_vm6 = vmor %vm1388_vm5, %vm1385_vm4 }
  0x2b   : > { %1074 = vmatpush1.bf16.msra.mxu0 %v1703_v38  ;;  %1176 = vmatpush1.bf16.msra.mxu1 %v1704_v39  ;;  %v1794_v38 = vld [vmem:[%s2377_s1 + $0x304] ss:$16 sps:$4 sm:$0xff]   ;;  %v1797_v39 = vld [vmem:[%s2377_s1 + $0x30c] ss:$16 sps:$4 sm:$0xff]  }
  0x2c   : > { %1075 = vmatprep.subr.bf16.mxu0 %v1705_v40  ;;  %1177 = vmatprep.subr.bf16.mxu1 %v1707_v41  ;;  %v1792_v40 = vld [vmem:[%s2377_s1 + $0x300] ss:$16 sps:$4 sm:$0xff]   ;;  %v1795_v41 = vld [vmem:[%s2377_s1 + $0x308] ss:$16 sps:$4 sm:$0xff]  }
  0x2f   : > { %1076 = vmatpush1.bf16.msra.mxu0 %v1709_v42  ;;  %1178 = vmatpush1.bf16.msra.mxu1 %v1710_v43  ;;  %v1800_v42 = vld [vmem:[%s2377_s1 + $0x324] ss:$16 sps:$4 sm:$0xff]   ;;  %v1803_v43 = vld [vmem:[%s2377_s1 + $0x32c] ss:$16 sps:$4 sm:$0xff]  }
  0x30   : > { %1077 = vmatprep.subr.bf16.mxu0 %v1711_v44  ;;  %1179 = vmatprep.subr.bf16.mxu1 %v1713_v45  ;;  %v1798_v44 = vld [vmem:[%s2377_s1 + $0x320] ss:$16 sps:$4 sm:$0xff]   ;;  %v1801_v45 = vld [vmem:[%s2377_s1 + $0x328] ss:$16 sps:$4 sm:$0xff]  }
  0x33   : > { %1078 = vmatpush1.bf16.msra.mxu0 %v1715_v46  ;;  %1180 = vmatpush1.bf16.msra.mxu1 %v1716_v47  ;;  %v1806_v46 = vld [vmem:[%s2377_s1 + $0x344] ss:$16 sps:$4 sm:$0xff]   ;;  %v1809_v47 = vld [vmem:[%s2377_s1 + $0x34c] ss:$16 sps:$4 sm:$0xff]  }
  0x34   : > { %1079 = vmatprep.subr.bf16.mxu0 %v1717_v49  ;;  %1181 = vmatprep.subr.bf16.mxu1 %v1719_v50  ;;  %v1807_v49 = vld [vmem:[%s2377_s1 + $0x348] ss:$16 sps:$4 sm:$0xff]   ;;  %v1812_v50 = vld [vmem:[%s2377_s1 + $0x364] ss:$16 sps:$4 sm:$0xff]  }
  0x37   : > { %1080 = vmatpush1.bf16.msra.mxu0 %v1721_v51  ;;  %1182 = vmatpush1.bf16.msra.mxu1 %v1722_v52  ;;  %v1815_v51 = vld [vmem:[%s2377_s1 + $0x36c] ss:$16 sps:$4 sm:$0xff]   ;;  %v1810_v52 = vld [vmem:[%s2377_s1 + $0x360] ss:$16 sps:$4 sm:$0xff]  }
  0x38   : > { %1081 = vmatprep.subr.bf16.mxu0 %v1723_v53  ;;  %1183 = vmatprep.subr.bf16.mxu1 %v1725_v54  ;;  %v1813_v53 = vld [vmem:[%s2377_s1 + $0x368] ss:$16 sps:$4 sm:$0xff]   ;;  %v1818_v54 = vld [vmem:[%s2377_s1 + $0x384] ss:$16 sps:$4 sm:$0xff]  }
  0x3b   : > { %1082 = vmatpush1.bf16.msra.mxu0 %v1727_v55  ;;  %1184 = vmatpush1.bf16.msra.mxu1 %v1728_v56  ;;  %v1821_v55 = vld [vmem:[%s2377_s1 + $0x38c] ss:$16 sps:$4 sm:$0xff]   ;;  %v1816_v56 = vld [vmem:[%s2377_s1 + $0x380] ss:$16 sps:$4 sm:$0xff]  }
  0x3c   : > { %1083 = vmatprep.subr.bf16.mxu0 %v1729_v57  ;;  %1185 = vmatprep.subr.bf16.mxu1 %v1731_v58  ;;  %v1819_v57 = vld [vmem:[%s2377_s1 + $0x388] ss:$16 sps:$4 sm:$0xff]   ;;  %v1824_v58 = vld [vmem:[%s2377_s1 + $0x3a4] ss:$16 sps:$4 sm:$0xff]  }
  0x3f   : > { %1084 = vmatpush1.bf16.msra.mxu0 %v1733_v59  ;;  %1186 = vmatpush1.bf16.msra.mxu1 %v1734_v60  ;;  %v1827_v59 = vld [vmem:[%s2377_s1 + $0x3ac] ss:$16 sps:$4 sm:$0xff]   ;;  %v1822_v60 = vld [vmem:[%s2377_s1 + $0x3a0] ss:$16 sps:$4 sm:$0xff]  }
  0x40   : > { %1085 = vmatprep.subr.bf16.mxu0 %v1735_v61  ;;  %1187 = vmatprep.subr.bf16.mxu1 %v1737_v62  ;;  %v1825_v61 = vld [vmem:[%s2377_s1 + $0x3a8] ss:$16 sps:$4 sm:$0xff]   ;;  %v1832_v62 = vld [vmem:[%s2377_s1 + $0x3c4] ss:$16 sps:$4 sm:$0xff]  }
  0x43   : > { %1086 = vmatpush1.bf16.msra.mxu0 %v1739_v63  ;;  %1188 = vmatpush1.bf16.msra.mxu1 %v1740_v0  ;;  %v1835_v63 = vld [vmem:[%s2377_s1 + $0x3cc] ss:$16 sps:$4 sm:$0xff]   ;;  %v1830_v0 = vld [vmem:[%s2377_s1 + $0x3c0] ss:$16 sps:$4 sm:$0xff]  }
  0x44   : > { %1106 = vmatprep.subr.bf16.mxu0 %v1746_v1  ;;  %1208 = vmatprep.subr.bf16.mxu1 %v1749_v2  ;;  %v1833_v1 = vld [vmem:[%s2377_s1 + $0x3c8] ss:$16 sps:$4 sm:$0xff]   ;;  %v1838_v2 = vld [vmem:[%s2377_s1 + $0x3e4] ss:$16 sps:$4 sm:$0xff]  }
  0x46   : > { %1088 = vmatmul.mubr.bf16.vlgmr.msra.gmra.mrb[0].mxu0 %v1741_v3  ;;  %1190 = vmatmul.mubr.bf16.vlgmr.msra.gmra.mrb[0].mxu1 %v1741_v3  ;;  %v1841_v3 = vld [vmem:[%s2377_s1 + $0x3ec] ss:$16 sps:$4 sm:$0xff]  }
  0x47   : > { %1107 = vmatpush1.bf16.msra.mxu0 %v1744_v4  ;;  %1209 = vmatpush1.bf16.msra.mxu1 %v1747_v5  ;;  %v1836_v4 = vld [vmem:[%s2377_s1 + $0x3e0] ss:$16 sps:$4 sm:$0xff]   ;;  %v1839_v5 = vld [vmem:[%s2377_s1 + $0x3e8] ss:$16 sps:$4 sm:$0xff]  }
  0x48   : > { %1108 = vmatprep.subr.bf16.mxu0 %v1752_v6  ;;  %1210 = vmatprep.subr.bf16.mxu1 %v1755_v7  ;;  %v230_v6 = vld [vmem:[%s2040_s21 + $0x28] sm:$0x77] }
  0x49   : > { %1097 = vmatprep.mubr.bf16.mxu0 %v1463_v25  ;;  %1199 = vmatprep.mubr.bf16.mxu1 %v1463_v25  ;;  %v1842_v7 = vld [vmem:[%s2040_s21 + $0x8] ss:$16 sps:$4 sm:$0xff]  }
  0x4b   : > { %1109 = vmatpush1.bf16.msra.mxu0 %v1750_v8  ;;  %1211 = vmatpush1.bf16.msra.mxu1 %v1753_v9  ;;  %v1465_v8 = vcombine.high %v230_v6, %v230_v6  ;;  %v1464_v9 = vcombine.low %v230_v6, %v230_v6 }
  0x4c   : > { %1110 = vmatprep.subr.bf16.mxu0 %v1758_v10  ;;  %1212 = vmatprep.subr.bf16.mxu1 %v1761_v11  ;;  %v361_v10 = vlaneseq }
  0x4e   : > { %1098 = vmatmul.mubr.bf16.gmra.mrb[4].mxu0 %v1462_v27  ;;  %1200 = vmatmul.mubr.bf16.gmra.mrb[4].mxu1 %v1462_v27  ;;  %v362_v11 = vshrl.u32 %v361_v10, 7 }
  0x4f   : > { %1111 = vmatpush1.bf16.msra.mxu0 %v1756_v12  ;;  %1213 = vmatpush1.bf16.msra.mxu1 %v1759_v13 }
  0x50   : > { %1112 = vmatprep.subr.bf16.mxu0 %v1764_v14  ;;  %1214 = vmatprep.subr.bf16.mxu1 %v1767_v15  ;;  %v363_v12 = vsub.s32 0, %v362_v11  ;;  %v371_v13 = vsub.s32 2, %v362_v11  ;;  %v359_v14 = vld [vmem:[%s2378_s2] sm:$0xf]  ;;  %v367_v15 = vsub.s32 1, %v362_v11 }
  0x51   : > { %1138 = vmatprep.mubr.bf16.mxu0 %v1844_v33  ;;  %1240 = vmatprep.mubr.bf16.mxu1 %v1844_v33 }
  0x53   : > { %1113 = vmatpush1.bf16.msra.mxu0 %v1762_v16  ;;  %1215 = vmatpush1.bf16.msra.mxu1 %v1765_v17  ;;  %v375_v16 = vsub.s32 3, %v362_v11  ;;  %v364_v17 = vrot.slane %v359_v14, %v363_v12 }
  0x54   : > { %1114 = vmatprep.subr.bf16.mxu0 %v1770_v18  ;;  %1216 = vmatprep.subr.bf16.mxu1 %v1773_v19  ;;  %v1271_v18 = vld [vmem:[%s2379_s3] sm:$0xf]  ;;  %v372_v19 = vrot.slane %v359_v14, %v371_v13 }
  0x55   : > { %v2310_v24 = vrot.slane %v1271_v18, %v363_v12  ;;  %v2314_v27 = vrot.slane %v1271_v18, %v367_v15 }
  0x57   : > { %1115 = vmatpush1.bf16.msra.mxu0 %v1768_v20  ;;  %1217 = vmatpush1.bf16.msra.mxu1 %v1771_v21  ;;  %v1305_v20 = vld [vmem:[%s2380_s4] sm:$0xf]  ;;  %v2306_v21 = vrot.slane %v359_v14, %v367_v15 }
  0x58   : > { %1116 = vmatprep.subr.bf16.mxu0 %v1776_v22  ;;  %1218 = vmatprep.subr.bf16.mxu1 %v1779_v23  ;;  %v2308_v22 = vrot.slane %v359_v14, %v375_v16 }
  0x5b   : > { %1117 = vmatpush1.bf16.msra.mxu0 %v1774_v26  ;;  %1219 = vmatpush1.bf16.msra.mxu1 %v1777_v28  ;;  %v2312_v26 = vrot.slane %v1271_v18, %v371_v13  ;;  %v2316_v28 = vrot.slane %v1271_v18, %v375_v16 }
  0x5c   : > { %1118 = vmatprep.subr.bf16.mxu0 %v1782_v29  ;;  %1220 = vmatprep.subr.bf16.mxu1 %v1785_v30  ;;  %v2318_v30 = vrot.slane %v1305_v20, %v363_v12 }
  0x5f   : > { %1119 = vmatpush1.bf16.msra.mxu0 %v1780_v31  ;;  %1221 = vmatpush1.bf16.msra.mxu1 %v1783_v32  ;;  %v2320_v32 = vrot.slane %v1305_v20, %v371_v13 }
  0x60   : > { %1120 = vmatprep.subr.bf16.mxu0 %v1788_v34  ;;  %1222 = vmatprep.subr.bf16.mxu1 %v1791_v35 }
  0x63   : > { %1121 = vmatpush1.bf16.msra.mxu0 %v1786_v36  ;;  %1223 = vmatpush1.bf16.msra.mxu1 %v1789_v37  ;;  %v2323_v36 = vrot.slane %v1305_v20, %v367_v15 }
  0x64   : > { %1122 = vmatprep.subr.bf16.mxu0 %v1794_v38  ;;  %1224 = vmatprep.subr.bf16.mxu1 %v1797_v39  ;;  %v2326_v38 = vrot.slane %v1305_v20, %v375_v16 }
  0x67   : > { %1123 = vmatpush1.bf16.msra.mxu0 %v1792_v40  ;;  %1225 = vmatpush1.bf16.msra.mxu1 %v1795_v41 }
  0x68   : > { %1124 = vmatprep.subr.bf16.mxu0 %v1800_v42  ;;  %1226 = vmatprep.subr.bf16.mxu1 %v1803_v43 }
  0x6b   : > { %1125 = vmatpush1.bf16.msra.mxu0 %v1798_v44  ;;  %1227 = vmatpush1.bf16.msra.mxu1 %v1801_v45 }
  0x6c   : > { %1126 = vmatprep.subr.bf16.mxu0 %v1806_v46  ;;  %1228 = vmatprep.subr.bf16.mxu1 %v1809_v47 }
  0x6f   : > { %1127 = vmatpush1.bf16.msra.mxu0 %v1804_v48  ;;  %1229 = vmatpush1.bf16.msra.mxu1 %v1807_v49 }
  0x70   : > { %1128 = vmatprep.subr.bf16.mxu0 %v1812_v50  ;;  %1230 = vmatprep.subr.bf16.mxu1 %v1815_v51 }
  0x73   : > { %1129 = vmatpush1.bf16.msra.mxu0 %v1810_v52  ;;  %1231 = vmatpush1.bf16.msra.mxu1 %v1813_v53 }
  0x74   : > { %1130 = vmatprep.subr.bf16.mxu0 %v1818_v54  ;;  %1232 = vmatprep.subr.bf16.mxu1 %v1821_v55 }
  0x77   : > { %1131 = vmatpush1.bf16.msra.mxu0 %v1816_v56  ;;  %1233 = vmatpush1.bf16.msra.mxu1 %v1819_v57 }
  0x78   : > { %1132 = vmatprep.subr.bf16.mxu0 %v1824_v58  ;;  %1234 = vmatprep.subr.bf16.mxu1 %v1827_v59 }
  0x7b   : > { %1133 = vmatpush1.bf16.msra.mxu0 %v1822_v60  ;;  %1235 = vmatpush1.bf16.msra.mxu1 %v1825_v61 }
  0x7c   : > { %1134 = vmatprep.subr.bf16.mxu0 %v1832_v62  ;;  %1236 = vmatprep.subr.bf16.mxu1 %v1835_v63 }
  0x7f   : > { %1135 = vmatpush1.bf16.msra.mxu0 %v1830_v0  ;;  %1237 = vmatpush1.bf16.msra.mxu1 %v1833_v1 }
  0x80   : > { %1136 = vmatprep.subr.bf16.mxu0 %v1838_v2  ;;  %1238 = vmatprep.subr.bf16.mxu1 %v1841_v3 }
  0x83   : > { %1137 = vmatpush1.bf16.msra.mxu0 %v1836_v4  ;;  %1239 = vmatpush1.bf16.msra.mxu1 %v1839_v5 }
  0x86   : > { %1139 = vmatmul.mubr.bf16.vlgmr.msra.gmra.mrb[0].mxu0 %v1842_v7  ;;  %1241 = vmatmul.mubr.bf16.vlgmr.msra.gmra.mrb[0].mxu1 %v1842_v7 }
  0x87   : > { %1148 = vmatprep.mubr.bf16.mxu0 %v1465_v8  ;;  %1250 = vmatprep.mubr.bf16.mxu1 %v1465_v8 }
  0x8e   : > { %1149 = vmatmul.mubr.bf16.gmra.mrb[4].mxu0 %v1464_v9  ;;  %1251 = vmatmul.mubr.bf16.gmra.mrb[4].mxu1 %v1464_v9 }
 0x159   : > { %v1140_v23 = vpop.f32.mrb[0].mxu0  ;;  %v1242_v25 = vpop.f32.mrb[0].mxu1 }
 0x15a   : > { %v1608_v29 = vadd.f32 %v1140_v23, %v364_v17  ;;  %v1614_v31 = vadd.f32 %v1242_v25, %v372_v19  ;;  %v1142_v33 = vpop.f32.mrb[1].mxu0  ;;  %v1244_v34 = vpop.f32.mrb[1].mxu1 }
 0x15b   : > { %v1609_v35 = vadd.f32 %v1142_v33, %v2306_v21  ;;  %v1615_v37 = vadd.f32 %v1244_v34, %v2308_v22  ;;  %v1144_v39 = vpop.f32.mrb[2].mxu0  ;;  %v1246_v40 = vpop.f32.mrb[2].mxu1 }
 0x15c   : > { %v1259_v41 = vmax.f32 %v1608_v29, 0.0  ;;  %v1261_v42 = vmax.f32 %v1614_v31, 0.0  ;;  %v1610_v43 = vadd.f32 %v1144_v39, %v364_v17  ;;  %v1616_v44 = vadd.f32 %v1246_v40, %v372_v19  ;;  %v1146_v45 = vpop.f32.mrb[3].mxu0  ;;  %v1248_v46 = vpop.f32.mrb[3].mxu1 }
 0x15d   : > { %v1260_v47 = vmax.f32 %v1609_v35, 0.0  ;;  %v1262_v48 = vmax.f32 %v1615_v37, 0.0  ;;  %v1611_v49 = vadd.f32 %v1146_v45, %v2306_v21  ;;  %v1617_v50 = vadd.f32 %v1248_v46, %v2308_v22 }
 0x15e   : > { %v1293_v51 = vmul.f32 %v2310_v24, %v1259_v41  ;;  %v1295_v52 = vmul.f32 %v2312_v26, %v1261_v42  ;;  %v1263_v53 = vmax.f32 %v1610_v43, 0.0  ;;  %v1265_v54 = vmax.f32 %v1616_v44, 0.0  ;;  %v1390_v41 = vld [vmem:[%s2347_s27 + $0x20] sm:$0x77]  ;;  %v1393_v42 = vld [vmem:[%s2347_s27 + $0x28] sm:$0x77] }
 0x15f   : > { %v1294_v55 = vmul.f32 %v2314_v27, %v1260_v47  ;;  %v1296_v56 = vmul.f32 %v2316_v28, %v1262_v48  ;;  %v1264_v57 = vmax.f32 %v1611_v49, 0.0  ;;  %v1266_v58 = vmax.f32 %v1617_v50, 0.0 }
 0x160   : > { %v1327_v59 = vadd.f32 %v2318_v30, %v1293_v51  ;;  %v1329_v60 = vadd.f32 %v2320_v32, %v1295_v52  ;;  %v1297_v61 = vmul.f32 %v2310_v24, %v1263_v53  ;;  %v1299_v62 = vmul.f32 %v2312_v26, %v1265_v54 }
 0x161   : > { %v1328_v63 = vadd.f32 %v2323_v36, %v1294_v55  ;;  %v1330_v0 = vadd.f32 %v2326_v38, %v1296_v56  ;;  %v1298_v1 = vmul.f32 %v2314_v27, %v1264_v57  ;;  %v1300_v2 = vmul.f32 %v2316_v28, %v1266_v58  ;;  %v1150_v3 = vpop.f32.mrb[4].mxu0  ;;  %v1252_v4 = vpop.f32.mrb[4].mxu1 }
 0x162   : > { %v1331_v5 = vadd.f32 %v2318_v30, %v1297_v61  ;;  %v1333_v6 = vadd.f32 %v2320_v32, %v1299_v62  ;;  %v1612_v7 = vadd.f32 %v1150_v3, %v364_v17  ;;  %v1618_v8 = vadd.f32 %v1252_v4, %v372_v19  ;;  %v1152_v9 = vpop.f32.mrb[5].mxu0  ;;  %v1254_v10 = vpop.f32.mrb[5].mxu1 }
 0x163   : > { %v1602_v11 = vpack.c.bf16 %v1328_v63, %v1327_v59  ;;  %v1603_v12 = vpack.c.bf16 %v1330_v0, %v1329_v60  ;;  %v1332_v13 = vadd.f32 %v2323_v36, %v1298_v1  ;;  %v1334_v14 = vadd.f32 %v2326_v38, %v1300_v2  ;;  %v1154_v15 = vpop.f32.mrb[6].mxu0  ;;  %v1256_v16 = vpop.f32.mrb[6].mxu1 }
 0x164   : > { %v1267_v18 = vmax.f32 %v1612_v7, 0.0  ;;  %v1269_v20 = vmax.f32 %v1618_v8, 0.0  ;;  %v1613_v23 = vadd.f32 %v1152_v9, %v2306_v21  ;;  %v1619_v17 = vadd.f32 %v1254_v10, %v2308_v22  ;;  %v1155_v19 = vpop.f32.mrb[7].mxu0  ;;  %v1257_v25 = vpop.f32.mrb[7].mxu1 }
 0x165   : > { %1379 = vst [vmem:[%s2347_s27] sm:$0xff] %v1602_v11  ;;  %1380 = vst [vmem:[%s2347_s27 + $0x8] sm:$0xff] %v1603_v12  ;;  %v1604_v29 = vpack.c.bf16 %v1332_v13, %v1331_v5  ;;  %v1605_v31 = vpack.c.bf16 %v1334_v14, %v1333_v6 }
 0x166   : > { %v1301_v33 = vmul.f32 %v2310_v24, %v1267_v18  ;;  %v1303_v34 = vmul.f32 %v2312_v26, %v1269_v20  ;;  %v1268_v35 = vmax.f32 %v1613_v23, 0.0  ;;  %v1270_v37 = vmax.f32 %v1619_v17, 0.0 }
 0x167   : > { %1381 = vst [vmem:[%s2347_s27 + $0x10] sm:$0xff] %v1604_v29  ;;  %1382 = vst [vmem:[%s2347_s27 + $0x18] sm:$0xff] %v1605_v31 }
 0x168   : > { %v1335_v21 = vadd.f32 %v2318_v30, %v1301_v33  ;;  %v1337_v22 = vadd.f32 %v2320_v32, %v1303_v34  ;;  %v1302_v39 = vmul.f32 %v2314_v27, %v1268_v35  ;;  %v1304_v24 = vmul.f32 %v2316_v28, %v1270_v37 }
 0x16a   : > { %v1336_v26 = vadd.f32 %v2323_v36, %v1302_v39  ;;  %v1338_v40 = vadd.f32 %v2326_v38, %v1304_v24 }
 0x16c   : > { %v1606_v43 = vpack.c.bf16 %v1336_v26, %v1335_v21  ;;  %v1607_v44 = vpack.c.bf16 %v1338_v40, %v1337_v22 }
 0x16e   : > { %v1391_v45 = vsel %vm1389_vm6, %v1606_v43, %v1390_v41  ;;  %v1394_v46 = vsel %vm1389_vm6, %v1607_v44, %v1393_v42 }
 0x16f   : > { %1392 = vst [vmem:[%s2347_s27 + $0x20] sm:$0x77] %v1391_v45  ;;  %1395 = vst [vmem:[%s2347_s27 + $0x28] sm:$0x77] %v1394_v46 }
 0x170 PF: > { %s15_s18 = sadd.s32 1, %s1853_s18  }
 0x171   : > { %p12_p4 = scmp.ge.s32.totalorder %s15_s18, 4  }
 0x173   :  { %14 = sbr.rel (!%p12_p4) target bundleno = 1 (0x1), region = 70 }

// kernel: _lambda_.20
= control target key start
LH: loop header
LB: loop body
LE: loop exit
PB: predicated region body
PF: predicated region fallthrough
CT: control target
= control target key end

     0   :  { %15 = vsyncpa [#allocation3], 0  ;;  %v4516_v36 = vmov 1983009808   ;;  %v40_v38 = vlaneseq  ;;  %s5924_s0 = inlined_call_operand.vmem [shape: f32[2,1024], index: 0, kind: input, shape index: {}]   ;;  %s5925_s1 = inlined_call_operand.vmem [shape: bf16[1024,512], index: 1, kind: input, shape index: {}]   ;;  %s5926_s2 = inlined_call_operand.vmem [shape: f32[1,512], index: 2, kind: input, shape index: {}]   ;;  %s5927_s3 = inlined_call_operand.vmem [shape: bf16[512,512], index: 3, kind: input, shape index: {}]   ;;  %s5928_s4 = inlined_call_operand.vmem [shape: f32[1,512], index: 4, kind: input, shape index: {}]   ;;  %s5929_s5 = inlined_call_operand.vmem [shape: bf16[512,128], index: 5, kind: input, shape index: {}]   ;;  %s5930_s6 = inlined_call_operand.vmem [shape: f32[1,128], index: 6, kind: input, shape index: {}]   ;;  %s5931_s7 = inlined_call_operand.hbm [shape: f32[2,128], index: 7, kind: output, shape index: {0}]   ;;  %s5932_s8 = inlined_call_operand.hbm [shape: f32[2,128], index: 8, kind: output, shape index: {1}]   ;;  %s5933_s9 = inlined_call_operand.vmem [shape: f32[2,512], index: 9, kind: output, shape index: {2}]  }
   0x1   :  { %v3854_v0 = vld [vmem:[%s5925_s1 + $0x4] ss:$16 sps:$4 sm:$0xff]   ;;  %v3856_v1 = vld [vmem:[%s5925_s1 + $0xc] ss:$16 sps:$4 sm:$0xff]   ;;  %v3858_v2 = vld [vmem:[%s5925_s1] ss:$16 sps:$4 sm:$0xff]   ;;  %v38_v37 = vunpack.c.l.s4 %v4516_v36 }
   0x2   :  { %1644 = vmatprep.subr.bf16.mxu0 %v3854_v0  ;;  %v3859_v3 = vld [vmem:[%s5925_s1 + $0x8] ss:$16 sps:$4 sm:$0xff]   ;;  %1808 = vmatprep.subr.bf16.mxu1 %v3856_v1  ;;  %v3860_v4 = vld [vmem:[%s5925_s1 + $0x24] ss:$16 sps:$4 sm:$0xff]   ;;  %v3862_v5 = vld [vmem:[%s5925_s1 + $0x2c] ss:$16 sps:$4 sm:$0xff]  }
   0x3   :  { %1645 = vmatpush1.bf16.msra.mxu0 %v3858_v2  ;;  %1809 = vmatpush1.bf16.msra.mxu1 %v3859_v3  ;;  %v3864_v6 = vld [vmem:[%s5925_s1 + $0x20] ss:$16 sps:$4 sm:$0xff]   ;;  %v3865_v7 = vld [vmem:[%s5925_s1 + $0x28] ss:$16 sps:$4 sm:$0xff]   ;;  %v3866_v8 = vld [vmem:[%s5925_s1 + $0x44] ss:$16 sps:$4 sm:$0xff]   ;;  %v39_v42 = vunpack.c.0.s8 %v38_v37 }
   0x4   :  { %1646 = vmatprep.subr.bf16.mxu0 %v3860_v4  ;;  %1810 = vmatprep.subr.bf16.mxu1 %v3862_v5  ;;  %v3868_v9 = vld [vmem:[%s5925_s1 + $0x4c] ss:$16 sps:$4 sm:$0xff]   ;;  %v3870_v10 = vld [vmem:[%s5925_s1 + $0x40] ss:$16 sps:$4 sm:$0xff]   ;;  %v3871_v11 = vld [vmem:[%s5925_s1 + $0x48] ss:$16 sps:$4 sm:$0xff]  }
   0x5   :  { %v3872_v12 = vld [vmem:[%s5925_s1 + $0x64] ss:$16 sps:$4 sm:$0xff]   ;;  %v3874_v13 = vld [vmem:[%s5925_s1 + $0x6c] ss:$16 sps:$4 sm:$0xff]   ;;  %v3876_v14 = vld [vmem:[%s5925_s1 + $0x60] ss:$16 sps:$4 sm:$0xff]  }
   0x6   :  { %v3877_v15 = vld [vmem:[%s5925_s1 + $0x68] ss:$16 sps:$4 sm:$0xff]   ;;  %v3878_v16 = vld [vmem:[%s5925_s1 + $0x84] ss:$16 sps:$4 sm:$0xff]   ;;  %v3880_v17 = vld [vmem:[%s5925_s1 + $0x8c] ss:$16 sps:$4 sm:$0xff]  }
   0x7   :  { %1647 = vmatpush1.bf16.msra.mxu0 %v3864_v6  ;;  %1811 = vmatpush1.bf16.msra.mxu1 %v3865_v7  ;;  %v3882_v18 = vld [vmem:[%s5925_s1 + $0x80] ss:$16 sps:$4 sm:$0xff]   ;;  %v3883_v19 = vld [vmem:[%s5925_s1 + $0x88] ss:$16 sps:$4 sm:$0xff]   ;;  %v3884_v20 = vld [vmem:[%s5925_s1 + $0xa4] ss:$16 sps:$4 sm:$0xff]  }
   0x8   :  { %1648 = vmatprep.subr.bf16.mxu0 %v3866_v8  ;;  %1812 = vmatprep.subr.bf16.mxu1 %v3868_v9  ;;  %v3886_v21 = vld [vmem:[%s5925_s1 + $0xac] ss:$16 sps:$4 sm:$0xff]   ;;  %v3888_v22 = vld [vmem:[%s5925_s1 + $0xa0] ss:$16 sps:$4 sm:$0xff]   ;;  %v3889_v23 = vld [vmem:[%s5925_s1 + $0xa8] ss:$16 sps:$4 sm:$0xff]  }
   0x9   :  { %v3890_v24 = vld [vmem:[%s5925_s1 + $0xc4] ss:$16 sps:$4 sm:$0xff]   ;;  %v3892_v25 = vld [vmem:[%s5925_s1 + $0xcc] ss:$16 sps:$4 sm:$0xff]   ;;  %v3894_v26 = vld [vmem:[%s5925_s1 + $0xc0] ss:$16 sps:$4 sm:$0xff]  }
   0xa   :  { %v3895_v27 = vld [vmem:[%s5925_s1 + $0xc8] ss:$16 sps:$4 sm:$0xff]   ;;  %v3896_v28 = vld [vmem:[%s5925_s1 + $0xe4] ss:$16 sps:$4 sm:$0xff]   ;;  %v3898_v29 = vld [vmem:[%s5925_s1 + $0xec] ss:$16 sps:$4 sm:$0xff]  }
   0xb   :  { %1649 = vmatpush1.bf16.msra.mxu0 %v3870_v10  ;;  %1813 = vmatpush1.bf16.msra.mxu1 %v3871_v11  ;;  %v3900_v30 = vld [vmem:[%s5925_s1 + $0xe0] ss:$16 sps:$4 sm:$0xff]   ;;  %v3901_v31 = vld [vmem:[%s5925_s1 + $0xe8] ss:$16 sps:$4 sm:$0xff]   ;;  %v3902_v32 = vld [vmem:[%s5925_s1 + $0x104] ss:$16 sps:$4 sm:$0xff]  }
   0xc   :  { %1650 = vmatprep.subr.bf16.mxu0 %v3872_v12  ;;  %1814 = vmatprep.subr.bf16.mxu1 %v3874_v13  ;;  %v3904_v33 = vld [vmem:[%s5925_s1 + $0x10c] ss:$16 sps:$4 sm:$0xff]   ;;  %v3906_v34 = vld [vmem:[%s5925_s1 + $0x100] ss:$16 sps:$4 sm:$0xff]   ;;  %v3907_v35 = vld [vmem:[%s5925_s1 + $0x108] ss:$16 sps:$4 sm:$0xff]  }
   0xd   :  { %v3908_v39 = vld [vmem:[%s5925_s1 + $0x124] ss:$16 sps:$4 sm:$0xff]   ;;  %v3910_v40 = vld [vmem:[%s5925_s1 + $0x12c] ss:$16 sps:$4 sm:$0xff]   ;;  %v3912_v41 = vld [vmem:[%s5925_s1 + $0x120] ss:$16 sps:$4 sm:$0xff]  }
   0xe   :  { %v4687_v43 = vshrl.u32 %v40_v38, 7  ;;  %v3913_v44 = vld [vmem:[%s5925_s1 + $0x128] ss:$16 sps:$4 sm:$0xff]   ;;  %v3914_v45 = vld [vmem:[%s5925_s1 + $0x144] ss:$16 sps:$4 sm:$0xff]  }
   0xf   :  { %1651 = vmatpush1.bf16.msra.mxu0 %v3876_v14  ;;  %1815 = vmatpush1.bf16.msra.mxu1 %v3877_v15  ;;  %v3916_v46 = vld [vmem:[%s5925_s1 + $0x14c] ss:$16 sps:$4 sm:$0xff]   ;;  %v3918_v47 = vld [vmem:[%s5925_s1 + $0x140] ss:$16 sps:$4 sm:$0xff]   ;;  %v3919_v48 = vld [vmem:[%s5925_s1 + $0x148] ss:$16 sps:$4 sm:$0xff]  }
  0x10   :  { %1652 = vmatprep.subr.bf16.mxu0 %v3878_v16  ;;  %1816 = vmatprep.subr.bf16.mxu1 %v3880_v17  ;;  %v4705_v49 = vsub.s32 %v39_v42, %v4687_v43  ;;  %v3920_v50 = vld [vmem:[%s5925_s1 + $0x164] ss:$16 sps:$4 sm:$0xff]   ;;  %v3922_v51 = vld [vmem:[%s5925_s1 + $0x16c] ss:$16 sps:$4 sm:$0xff]   ;;  %v3924_v53 = vld [vmem:[%s5925_s1 + $0x160] ss:$16 sps:$4 sm:$0xff]  }
  0x11   :  { %v32_v52 = vld [vmem:[%s5924_s0] sm:$0xff]  ;;  %v3925_v55 = vld [vmem:[%s5925_s1 + $0x168] ss:$16 sps:$4 sm:$0xff]   ;;  %v3928_v57 = vld [vmem:[%s5925_s1 + $0x18c] ss:$16 sps:$4 sm:$0xff]  }
  0x12   :  { %v43_v54 = vrot.slane %v32_v52, %v4705_v49  ;;  %v3926_v56 = vld [vmem:[%s5925_s1 + $0x184] ss:$16 sps:$4 sm:$0xff]   ;;  %v3930_v59 = vld [vmem:[%s5925_s1 + $0x180] ss:$16 sps:$4 sm:$0xff]   ;;  %v3931_v61 = vld [vmem:[%s5925_s1 + $0x188] ss:$16 sps:$4 sm:$0xff]   ;;  %v36_v4 = vcombine.high %v32_v52, %v32_v52 }
  0x13   :  { %1653 = vmatpush1.bf16.msra.mxu0 %v3882_v18  ;;  %1817 = vmatpush1.bf16.msra.mxu1 %v3883_v19  ;;  %v3932_v62 = vld [vmem:[%s5925_s1 + $0x1a4] ss:$16 sps:$4 sm:$0xff]   ;;  %v3934_v63 = vld [vmem:[%s5925_s1 + $0x1ac] ss:$16 sps:$4 sm:$0xff]   ;;  %v3936_v0 = vld [vmem:[%s5925_s1 + $0x1a0] ss:$16 sps:$4 sm:$0xff]  }
  0x14   :  { %1654 = vmatprep.subr.bf16.mxu0 %v3884_v20  ;;  %1818 = vmatprep.subr.bf16.mxu1 %v3886_v21  ;;  %v51_v58 = vcombine.high %v43_v54, %v43_v54  ;;  %v3937_v1 = vld [vmem:[%s5925_s1 + $0x1a8] ss:$16 sps:$4 sm:$0xff]   ;;  %v3938_v2 = vld [vmem:[%s5925_s1 + $0x1c4] ss:$16 sps:$4 sm:$0xff]   ;;  %v3940_v3 = vld [vmem:[%s5925_s1 + $0x1cc] ss:$16 sps:$4 sm:$0xff]   ;;  %v4766_v9 = vrot.slane %v36_v4, %v4705_v49  ;;  %v78_v16 = vpack.c.bf16 %v43_v54, %v43_v54 }
  0x15   :  { %v3942_v5 = vld [vmem:[%s5925_s1 + $0x1c0] ss:$16 sps:$4 sm:$0xff]   ;;  %v3943_v6 = vld [vmem:[%s5925_s1 + $0x1c8] ss:$16 sps:$4 sm:$0xff]   ;;  %v3944_v7 = vld [vmem:[%s5925_s1 + $0x1e4] ss:$16 sps:$4 sm:$0xff]  }
  0x16   :  { %v79_v60 = vpack.c.bf16 %v51_v58, %v51_v58  ;;  %v3946_v8 = vld [vmem:[%s5925_s1 + $0x1ec] ss:$16 sps:$4 sm:$0xff]   ;;  %v3948_v10 = vld [vmem:[%s5925_s1 + $0x1e0] ss:$16 sps:$4 sm:$0xff]   ;;  %v3949_v11 = vld [vmem:[%s5925_s1 + $0x1e8] ss:$16 sps:$4 sm:$0xff]   ;;  %v52_v14 = vcombine.high %v4766_v9, %v4766_v9 }
  0x17   :  { %1655 = vmatpush1.bf16.msra.mxu0 %v3888_v22  ;;  %1819 = vmatpush1.bf16.msra.mxu1 %v3889_v23  ;;  %v3953_v12 = vld [vmem:[%s5925_s1 + $0x204] ss:$16 sps:$4 sm:$0xff]   ;;  %v3956_v13 = vld [vmem:[%s5925_s1 + $0x20c] ss:$16 sps:$4 sm:$0xff]   ;;  %v3951_v15 = vld [vmem:[%s5925_s1 + $0x200] ss:$16 sps:$4 sm:$0xff]  }
  0x18   :  { %1656 = vmatprep.subr.bf16.mxu0 %v3890_v24  ;;  %1820 = vmatprep.subr.bf16.mxu1 %v3892_v25  ;;  %v3954_v17 = vld [vmem:[%s5925_s1 + $0x208] ss:$16 sps:$4 sm:$0xff]   ;;  %v3959_v18 = vld [vmem:[%s5925_s1 + $0x224] ss:$16 sps:$4 sm:$0xff]   ;;  %v3962_v19 = vld [vmem:[%s5925_s1 + $0x22c] ss:$16 sps:$4 sm:$0xff]   ;;  %v81_v20 = vpack.c.bf16 %v52_v14, %v52_v14 }
  0x19   :  { %1676 = vmatprep.mubr.bf16.mxu0 %v79_v60  ;;  %1840 = vmatprep.mubr.bf16.mxu1 %v79_v60  ;;  %v3957_v21 = vld [vmem:[%s5925_s1 + $0x220] ss:$16 sps:$4 sm:$0xff]   ;;  %v3960_v22 = vld [vmem:[%s5925_s1 + $0x228] ss:$16 sps:$4 sm:$0xff]   ;;  %v3965_v23 = vld [vmem:[%s5925_s1 + $0x244] ss:$16 sps:$4 sm:$0xff]  }
  0x1a   :  { %v3968_v24 = vld [vmem:[%s5925_s1 + $0x24c] ss:$16 sps:$4 sm:$0xff]   ;;  %v3963_v25 = vld [vmem:[%s5925_s1 + $0x240] ss:$16 sps:$4 sm:$0xff]   ;;  %v4007_v54 = vld [vmem:[%s5925_s1 + $0x324] ss:$16 sps:$4 sm:$0xff]  }
  0x1b   :  { %1657 = vmatpush1.bf16.msra.mxu0 %v3894_v26  ;;  %1821 = vmatpush1.bf16.msra.mxu1 %v3895_v27  ;;  %v3966_v26 = vld [vmem:[%s5925_s1 + $0x248] ss:$16 sps:$4 sm:$0xff]   ;;  %v3971_v27 = vld [vmem:[%s5925_s1 + $0x264] ss:$16 sps:$4 sm:$0xff]   ;;  %v3986_v36 = vld [vmem:[%s5925_s1 + $0x2ac] ss:$16 sps:$4 sm:$0xff]  }
  0x1c   :  { %1658 = vmatprep.subr.bf16.mxu0 %v3896_v28  ;;  %1822 = vmatprep.subr.bf16.mxu1 %v3898_v29  ;;  %v3974_v28 = vld [vmem:[%s5925_s1 + $0x26c] ss:$16 sps:$4 sm:$0xff]   ;;  %v3969_v29 = vld [vmem:[%s5925_s1 + $0x260] ss:$16 sps:$4 sm:$0xff]   ;;  %v4013_v58 = vld [vmem:[%s5925_s1 + $0x344] ss:$16 sps:$4 sm:$0xff]  }
  0x1d   :  { %v3981_v37 = vld [vmem:[%s5925_s1 + $0x2a0] ss:$16 sps:$4 sm:$0xff]   ;;  %v4038_v14 = vld [vmem:[%s5925_s1 + $0x3c8] ss:$16 sps:$4 sm:$0xff]  }
  0x1e   :  { %v3987_v42 = vld [vmem:[%s5925_s1 + $0x2c0] ss:$16 sps:$4 sm:$0xff]  }
  0x1f   :  { %1659 = vmatpush1.bf16.msra.mxu0 %v3900_v30  ;;  %1823 = vmatpush1.bf16.msra.mxu1 %v3901_v31  ;;  %v3972_v30 = vld [vmem:[%s5925_s1 + $0x268] ss:$16 sps:$4 sm:$0xff]   ;;  %v3977_v31 = vld [vmem:[%s5925_s1 + $0x284] ss:$16 sps:$4 sm:$0xff]   ;;  %v3999_v52 = vld [vmem:[%s5925_s1 + $0x300] ss:$16 sps:$4 sm:$0xff]  }
  0x20   :  { %1660 = vmatprep.subr.bf16.mxu0 %v3902_v32  ;;  %1824 = vmatprep.subr.bf16.mxu1 %v3904_v33  ;;  %v3980_v32 = vld [vmem:[%s5925_s1 + $0x28c] ss:$16 sps:$4 sm:$0xff]   ;;  %v3975_v33 = vld [vmem:[%s5925_s1 + $0x280] ss:$16 sps:$4 sm:$0xff]  }
  0x21   :  { %v4011_v60 = vld [vmem:[%s5925_s1 + $0x340] ss:$16 sps:$4 sm:$0xff]  }
  0x22   :  { %v4023_v4 = vld [vmem:[%s5925_s1 + $0x380] ss:$16 sps:$4 sm:$0xff]  }
  0x23   :  { %1661 = vmatpush1.bf16.msra.mxu0 %v3906_v34  ;;  %1825 = vmatpush1.bf16.msra.mxu1 %v3907_v35  ;;  %v3978_v34 = vld [vmem:[%s5925_s1 + $0x288] ss:$16 sps:$4 sm:$0xff]   ;;  %v3983_v35 = vld [vmem:[%s5925_s1 + $0x2a4] ss:$16 sps:$4 sm:$0xff]  }
  0x24   :  { %1662 = vmatprep.subr.bf16.mxu0 %v3908_v39  ;;  %1826 = vmatprep.subr.bf16.mxu1 %v3910_v40  ;;  %v3984_v39 = vld [vmem:[%s5925_s1 + $0x2a8] ss:$16 sps:$4 sm:$0xff]   ;;  %v3989_v40 = vld [vmem:[%s5925_s1 + $0x2c4] ss:$16 sps:$4 sm:$0xff]  }
  0x27   :  { %1663 = vmatpush1.bf16.msra.mxu0 %v3912_v41  ;;  %1827 = vmatpush1.bf16.msra.mxu1 %v3913_v44  ;;  %v3992_v41 = vld [vmem:[%s5925_s1 + $0x2cc] ss:$16 sps:$4 sm:$0xff]   ;;  %v3990_v44 = vld [vmem:[%s5925_s1 + $0x2c8] ss:$16 sps:$4 sm:$0xff]  }
  0x28   :  { %1664 = vmatprep.subr.bf16.mxu0 %v3914_v45  ;;  %1828 = vmatprep.subr.bf16.mxu1 %v3916_v46  ;;  %v3995_v45 = vld [vmem:[%s5925_s1 + $0x2e4] ss:$16 sps:$4 sm:$0xff]   ;;  %v3998_v46 = vld [vmem:[%s5925_s1 + $0x2ec] ss:$16 sps:$4 sm:$0xff]  }
  0x2b   :  { %1665 = vmatpush1.bf16.msra.mxu0 %v3918_v47  ;;  %1829 = vmatpush1.bf16.msra.mxu1 %v3919_v48  ;;  %v3993_v47 = vld [vmem:[%s5925_s1 + $0x2e0] ss:$16 sps:$4 sm:$0xff]   ;;  %v3996_v48 = vld [vmem:[%s5925_s1 + $0x2e8] ss:$16 sps:$4 sm:$0xff]  }
  0x2c   :  { %1666 = vmatprep.subr.bf16.mxu0 %v3920_v50  ;;  %1830 = vmatprep.subr.bf16.mxu1 %v3922_v51  ;;  %v4001_v50 = vld [vmem:[%s5925_s1 + $0x304] ss:$16 sps:$4 sm:$0xff]   ;;  %v4004_v51 = vld [vmem:[%s5925_s1 + $0x30c] ss:$16 sps:$4 sm:$0xff]  }
  0x2f   :  { %1667 = vmatpush1.bf16.msra.mxu0 %v3924_v53  ;;  %1831 = vmatpush1.bf16.msra.mxu1 %v3925_v55  ;;  %v4002_v53 = vld [vmem:[%s5925_s1 + $0x308] ss:$16 sps:$4 sm:$0xff]   ;;  %v4010_v55 = vld [vmem:[%s5925_s1 + $0x32c] ss:$16 sps:$4 sm:$0xff]  }
  0x30   :  { %1668 = vmatprep.subr.bf16.mxu0 %v3926_v56  ;;  %1832 = vmatprep.subr.bf16.mxu1 %v3928_v57  ;;  %v4005_v56 = vld [vmem:[%s5925_s1 + $0x320] ss:$16 sps:$4 sm:$0xff]   ;;  %v4008_v57 = vld [vmem:[%s5925_s1 + $0x328] ss:$16 sps:$4 sm:$0xff]  }
  0x33   :  { %1669 = vmatpush1.bf16.msra.mxu0 %v3930_v59  ;;  %1833 = vmatpush1.bf16.msra.mxu1 %v3931_v61  ;;  %v4016_v59 = vld [vmem:[%s5925_s1 + $0x34c] ss:$16 sps:$4 sm:$0xff]   ;;  %v4014_v61 = vld [vmem:[%s5925_s1 + $0x348] ss:$16 sps:$4 sm:$0xff]  }
  0x34   :  { %1670 = vmatprep.subr.bf16.mxu0 %v3932_v62  ;;  %1834 = vmatprep.subr.bf16.mxu1 %v3934_v63  ;;  %v4019_v62 = vld [vmem:[%s5925_s1 + $0x364] ss:$16 sps:$4 sm:$0xff]   ;;  %v4022_v63 = vld [vmem:[%s5925_s1 + $0x36c] ss:$16 sps:$4 sm:$0xff]  }
  0x37   :  { %1671 = vmatpush1.bf16.msra.mxu0 %v3936_v0  ;;  %1835 = vmatpush1.bf16.msra.mxu1 %v3937_v1  ;;  %v4017_v0 = vld [vmem:[%s5925_s1 + $0x360] ss:$16 sps:$4 sm:$0xff]   ;;  %v4020_v1 = vld [vmem:[%s5925_s1 + $0x368] ss:$16 sps:$4 sm:$0xff]  }
  0x38   :  { %1672 = vmatprep.subr.bf16.mxu0 %v3938_v2  ;;  %1836 = vmatprep.subr.bf16.mxu1 %v3940_v3  ;;  %v4025_v2 = vld [vmem:[%s5925_s1 + $0x384] ss:$16 sps:$4 sm:$0xff]   ;;  %v4028_v3 = vld [vmem:[%s5925_s1 + $0x38c] ss:$16 sps:$4 sm:$0xff]  }
  0x3b   :  { %1673 = vmatpush1.bf16.msra.mxu0 %v3942_v5  ;;  %1837 = vmatpush1.bf16.msra.mxu1 %v3943_v6  ;;  %v4026_v5 = vld [vmem:[%s5925_s1 + $0x388] ss:$16 sps:$4 sm:$0xff]   ;;  %v4031_v6 = vld [vmem:[%s5925_s1 + $0x3a4] ss:$16 sps:$4 sm:$0xff]  }
  0x3c   :  { %1674 = vmatprep.subr.bf16.mxu0 %v3944_v7  ;;  %1838 = vmatprep.subr.bf16.mxu1 %v3946_v8  ;;  %v4034_v7 = vld [vmem:[%s5925_s1 + $0x3ac] ss:$16 sps:$4 sm:$0xff]   ;;  %v4029_v8 = vld [vmem:[%s5925_s1 + $0x3a0] ss:$16 sps:$4 sm:$0xff]  }
  0x3f   :  { %1675 = vmatpush1.bf16.msra.mxu0 %v3948_v10  ;;  %1839 = vmatpush1.bf16.msra.mxu1 %v3949_v11  ;;  %v4032_v10 = vld [vmem:[%s5925_s1 + $0x3a8] ss:$16 sps:$4 sm:$0xff]   ;;  %v4037_v11 = vld [vmem:[%s5925_s1 + $0x3c4] ss:$16 sps:$4 sm:$0xff]  }
  0x40   :  { %1685 = vmatprep.subr.bf16.mxu0 %v3953_v12  ;;  %1849 = vmatprep.subr.bf16.mxu1 %v3956_v13  ;;  %v4040_v12 = vld [vmem:[%s5925_s1 + $0x3cc] ss:$16 sps:$4 sm:$0xff]   ;;  %v4035_v13 = vld [vmem:[%s5925_s1 + $0x3c0] ss:$16 sps:$4 sm:$0xff]  }
  0x42   :  { %1677 = vmatmul.mubr.bf16.vlgmr.msra.gmra.mrb[0].mxu0 %v78_v16  ;;  %1841 = vmatmul.mubr.bf16.vlgmr.msra.gmra.mrb[0].mxu1 %v78_v16  ;;  %v4046_v16 = vld [vmem:[%s5925_s1 + $0x3ec] ss:$16 sps:$4 sm:$0xff]  }
  0x43   :  { %1686 = vmatpush1.bf16.msra.mxu0 %v3951_v15  ;;  %1850 = vmatpush1.bf16.msra.mxu1 %v3954_v17  ;;  %v4043_v15 = vld [vmem:[%s5925_s1 + $0x3e4] ss:$16 sps:$4 sm:$0xff]   ;;  %v4041_v17 = vld [vmem:[%s5925_s1 + $0x3e0] ss:$16 sps:$4 sm:$0xff]  }
  0x44   :  { %1687 = vmatprep.subr.bf16.mxu0 %v3959_v18  ;;  %1851 = vmatprep.subr.bf16.mxu1 %v3962_v19  ;;  %v4044_v18 = vld [vmem:[%s5925_s1 + $0x3e8] ss:$16 sps:$4 sm:$0xff]   ;;  %v4049_v19 = vld [vmem:[%s5925_s1 + $0x404] ss:$16 sps:$4 sm:$0xff]  }
  0x45   :  { %1717 = vmatprep.mubr.bf16.mxu0 %v81_v20  ;;  %1881 = vmatprep.mubr.bf16.mxu1 %v81_v20  ;;  %v4052_v20 = vld [vmem:[%s5925_s1 + $0x40c] ss:$16 sps:$4 sm:$0xff]  }
  0x47   :  { %1688 = vmatpush1.bf16.msra.mxu0 %v3957_v21  ;;  %1852 = vmatpush1.bf16.msra.mxu1 %v3960_v22  ;;  %v4047_v21 = vld [vmem:[%s5925_s1 + $0x400] ss:$16 sps:$4 sm:$0xff]   ;;  %v80_v22 = vpack.c.bf16 %v4766_v9, %v4766_v9  ;;  %v4058_v9 = vld [vmem:[%s5925_s1 + $0x42c] ss:$16 sps:$4 sm:$0xff]  }
  0x48   :  { %1689 = vmatprep.subr.bf16.mxu0 %v3965_v23  ;;  %1853 = vmatprep.subr.bf16.mxu1 %v3968_v24  ;;  %v4050_v23 = vld [vmem:[%s5925_s1 + $0x408] ss:$16 sps:$4 sm:$0xff]  }
  0x49   :  { %v4985_v24 = vld [vmem:[%s5924_s0 + $0x8] sm:$0xff] }
  0x4b   :  { %1690 = vmatpush1.bf16.msra.mxu0 %v3963_v25  ;;  %1854 = vmatpush1.bf16.msra.mxu1 %v3966_v26  ;;  %v4055_v25 = vld [vmem:[%s5925_s1 + $0x424] ss:$16 sps:$4 sm:$0xff]   ;;  %v4995_v26 = vrot.slane %v4985_v24, %v4705_v49 }
  0x4c   :  { %1691 = vmatprep.subr.bf16.mxu0 %v3971_v27  ;;  %1855 = vmatprep.subr.bf16.mxu1 %v3974_v28  ;;  %v4053_v28 = vld [vmem:[%s5925_s1 + $0x420] ss:$16 sps:$4 sm:$0xff]  }
  0x4d   :  { %v68_v27 = vcombine.high %v4995_v26, %v4995_v26 }
  0x4f   :  { %1692 = vmatpush1.bf16.msra.mxu0 %v3969_v29  ;;  %1856 = vmatpush1.bf16.msra.mxu1 %v3972_v30  ;;  %v4056_v29 = vld [vmem:[%s5925_s1 + $0x428] ss:$16 sps:$4 sm:$0xff]   ;;  %v4061_v30 = vld [vmem:[%s5925_s1 + $0x444] ss:$16 sps:$4 sm:$0xff]  }
  0x50   :  { %1693 = vmatprep.subr.bf16.mxu0 %v3977_v31  ;;  %1857 = vmatprep.subr.bf16.mxu1 %v3980_v32  ;;  %v4064_v31 = vld [vmem:[%s5925_s1 + $0x44c] ss:$16 sps:$4 sm:$0xff]   ;;  %v83_v32 = vpack.c.bf16 %v68_v27, %v68_v27  ;;  %v4137_v27 = vld [vmem:[%s5925_s1 + $0x5e0] ss:$16 sps:$4 sm:$0xff]  }
  0x53   :  { %1694 = vmatpush1.bf16.msra.mxu0 %v3975_v33  ;;  %1858 = vmatpush1.bf16.msra.mxu1 %v3978_v34  ;;  %v4059_v33 = vld [vmem:[%s5925_s1 + $0x440] ss:$16 sps:$4 sm:$0xff]   ;;  %v4062_v34 = vld [vmem:[%s5925_s1 + $0x448] ss:$16 sps:$4 sm:$0xff]  }
  0x54   :  { %1695 = vmatprep.subr.bf16.mxu0 %v3983_v35  ;;  %1859 = vmatprep.subr.bf16.mxu1 %v3986_v36  ;;  %v4067_v35 = vld [vmem:[%s5925_s1 + $0x464] ss:$16 sps:$4 sm:$0xff]   ;;  %v4070_v36 = vld [vmem:[%s5925_s1 + $0x46c] ss:$16 sps:$4 sm:$0xff]  }
  0x57   :  { %1696 = vmatpush1.bf16.msra.mxu0 %v3981_v37  ;;  %1860 = vmatpush1.bf16.msra.mxu1 %v3984_v39  ;;  %v4065_v37 = vld [vmem:[%s5925_s1 + $0x460] ss:$16 sps:$4 sm:$0xff]   ;;  %v4068_v39 = vld [vmem:[%s5925_s1 + $0x468] ss:$16 sps:$4 sm:$0xff]  }
  0x58   :  { %1697 = vmatprep.subr.bf16.mxu0 %v3989_v40  ;;  %1861 = vmatprep.subr.bf16.mxu1 %v3992_v41  ;;  %v4073_v40 = vld [vmem:[%s5925_s1 + $0x484] ss:$16 sps:$4 sm:$0xff]   ;;  %v4076_v41 = vld [vmem:[%s5925_s1 + $0x48c] ss:$16 sps:$4 sm:$0xff]  }
  0x5b   :  { %1698 = vmatpush1.bf16.msra.mxu0 %v3987_v42  ;;  %1862 = vmatpush1.bf16.msra.mxu1 %v3990_v44  ;;  %v4071_v42 = vld [vmem:[%s5925_s1 + $0x480] ss:$16 sps:$4 sm:$0xff]   ;;  %v4074_v44 = vld [vmem:[%s5925_s1 + $0x488] ss:$16 sps:$4 sm:$0xff]  }
  0x5c   :  { %1699 = vmatprep.subr.bf16.mxu0 %v3995_v45  ;;  %1863 = vmatprep.subr.bf16.mxu1 %v3998_v46  ;;  %v4079_v45 = vld [vmem:[%s5925_s1 + $0x4a4] ss:$16 sps:$4 sm:$0xff]   ;;  %v4082_v46 = vld [vmem:[%s5925_s1 + $0x4ac] ss:$16 sps:$4 sm:$0xff]  }
  0x5f   :  { %1700 = vmatpush1.bf16.msra.mxu0 %v3993_v47  ;;  %1864 = vmatpush1.bf16.msra.mxu1 %v3996_v48  ;;  %v4077_v47 = vld [vmem:[%s5925_s1 + $0x4a0] ss:$16 sps:$4 sm:$0xff]   ;;  %v4080_v48 = vld [vmem:[%s5925_s1 + $0x4a8] ss:$16 sps:$4 sm:$0xff]  }
  0x60   :  { %1701 = vmatprep.subr.bf16.mxu0 %v4001_v50  ;;  %1865 = vmatprep.subr.bf16.mxu1 %v4004_v51  ;;  %v4085_v50 = vld [vmem:[%s5925_s1 + $0x4c4] ss:$16 sps:$4 sm:$0xff]   ;;  %v4088_v51 = vld [vmem:[%s5925_s1 + $0x4cc] ss:$16 sps:$4 sm:$0xff]  }
  0x63   :  { %1702 = vmatpush1.bf16.msra.mxu0 %v3999_v52  ;;  %1866 = vmatpush1.bf16.msra.mxu1 %v4002_v53  ;;  %v4083_v52 = vld [vmem:[%s5925_s1 + $0x4c0] ss:$16 sps:$4 sm:$0xff]   ;;  %v4086_v53 = vld [vmem:[%s5925_s1 + $0x4c8] ss:$16 sps:$4 sm:$0xff]  }
  0x64   :  { %1703 = vmatprep.subr.bf16.mxu0 %v4007_v54  ;;  %1867 = vmatprep.subr.bf16.mxu1 %v4010_v55  ;;  %v4091_v54 = vld [vmem:[%s5925_s1 + $0x4e4] ss:$16 sps:$4 sm:$0xff]   ;;  %v4094_v55 = vld [vmem:[%s5925_s1 + $0x4ec] ss:$16 sps:$4 sm:$0xff]  }
  0x67   :  { %1704 = vmatpush1.bf16.msra.mxu0 %v4005_v56  ;;  %1868 = vmatpush1.bf16.msra.mxu1 %v4008_v57  ;;  %v4089_v56 = vld [vmem:[%s5925_s1 + $0x4e0] ss:$16 sps:$4 sm:$0xff]   ;;  %v4092_v57 = vld [vmem:[%s5925_s1 + $0x4e8] ss:$16 sps:$4 sm:$0xff]  }
  0x68   :  { %1705 = vmatprep.subr.bf16.mxu0 %v4013_v58  ;;  %1869 = vmatprep.subr.bf16.mxu1 %v4016_v59  ;;  %v4097_v58 = vld [vmem:[%s5925_s1 + $0x504] ss:$16 sps:$4 sm:$0xff]   ;;  %v4100_v59 = vld [vmem:[%s5925_s1 + $0x50c] ss:$16 sps:$4 sm:$0xff]  }
  0x6b   :  { %1706 = vmatpush1.bf16.msra.mxu0 %v4011_v60  ;;  %1870 = vmatpush1.bf16.msra.mxu1 %v4014_v61  ;;  %v4095_v60 = vld [vmem:[%s5925_s1 + $0x500] ss:$16 sps:$4 sm:$0xff]   ;;  %v4098_v61 = vld [vmem:[%s5925_s1 + $0x508] ss:$16 sps:$4 sm:$0xff]  }
  0x6c   :  { %1707 = vmatprep.subr.bf16.mxu0 %v4019_v62  ;;  %1871 = vmatprep.subr.bf16.mxu1 %v4022_v63  ;;  %v4103_v62 = vld [vmem:[%s5925_s1 + $0x524] ss:$16 sps:$4 sm:$0xff]   ;;  %v4106_v63 = vld [vmem:[%s5925_s1 + $0x52c] ss:$16 sps:$4 sm:$0xff]  }
  0x6f   :  { %1708 = vmatpush1.bf16.msra.mxu0 %v4017_v0  ;;  %1872 = vmatpush1.bf16.msra.mxu1 %v4020_v1  ;;  %v4101_v0 = vld [vmem:[%s5925_s1 + $0x520] ss:$16 sps:$4 sm:$0xff]   ;;  %v4104_v1 = vld [vmem:[%s5925_s1 + $0x528] ss:$16 sps:$4 sm:$0xff]  }
  0x70   :  { %1709 = vmatprep.subr.bf16.mxu0 %v4025_v2  ;;  %1873 = vmatprep.subr.bf16.mxu1 %v4028_v3  ;;  %v4109_v2 = vld [vmem:[%s5925_s1 + $0x544] ss:$16 sps:$4 sm:$0xff]   ;;  %v4112_v3 = vld [vmem:[%s5925_s1 + $0x54c] ss:$16 sps:$4 sm:$0xff]  }
  0x73   :  { %1710 = vmatpush1.bf16.msra.mxu0 %v4023_v4  ;;  %1874 = vmatpush1.bf16.msra.mxu1 %v4026_v5  ;;  %v4107_v4 = vld [vmem:[%s5925_s1 + $0x540] ss:$16 sps:$4 sm:$0xff]   ;;  %v4110_v5 = vld [vmem:[%s5925_s1 + $0x548] ss:$16 sps:$4 sm:$0xff]  }
  0x74   :  { %1711 = vmatprep.subr.bf16.mxu0 %v4031_v6  ;;  %1875 = vmatprep.subr.bf16.mxu1 %v4034_v7  ;;  %v4115_v6 = vld [vmem:[%s5925_s1 + $0x564] ss:$16 sps:$4 sm:$0xff]   ;;  %v4118_v7 = vld [vmem:[%s5925_s1 + $0x56c] ss:$16 sps:$4 sm:$0xff]  }
  0x77   :  { %1712 = vmatpush1.bf16.msra.mxu0 %v4029_v8  ;;  %1876 = vmatpush1.bf16.msra.mxu1 %v4032_v10  ;;  %v4113_v8 = vld [vmem:[%s5925_s1 + $0x560] ss:$16 sps:$4 sm:$0xff]   ;;  %v4116_v10 = vld [vmem:[%s5925_s1 + $0x568] ss:$16 sps:$4 sm:$0xff]  }
  0x78   :  { %1713 = vmatprep.subr.bf16.mxu0 %v4037_v11  ;;  %1877 = vmatprep.subr.bf16.mxu1 %v4040_v12  ;;  %v4121_v11 = vld [vmem:[%s5925_s1 + $0x584] ss:$16 sps:$4 sm:$0xff]   ;;  %v4124_v12 = vld [vmem:[%s5925_s1 + $0x58c] ss:$16 sps:$4 sm:$0xff]  }
  0x7b   :  { %1714 = vmatpush1.bf16.msra.mxu0 %v4035_v13  ;;  %1878 = vmatpush1.bf16.msra.mxu1 %v4038_v14  ;;  %v4119_v13 = vld [vmem:[%s5925_s1 + $0x580] ss:$16 sps:$4 sm:$0xff]   ;;  %v4122_v14 = vld [vmem:[%s5925_s1 + $0x588] ss:$16 sps:$4 sm:$0xff]  }
  0x7c   :  { %1715 = vmatprep.subr.bf16.mxu0 %v4043_v15  ;;  %1879 = vmatprep.subr.bf16.mxu1 %v4046_v16  ;;  %v4127_v15 = vld [vmem:[%s5925_s1 + $0x5a4] ss:$16 sps:$4 sm:$0xff]   ;;  %v4130_v16 = vld [vmem:[%s5925_s1 + $0x5ac] ss:$16 sps:$4 sm:$0xff]  }
  0x7f   :  { %1716 = vmatpush1.bf16.msra.mxu0 %v4041_v17  ;;  %1880 = vmatpush1.bf16.msra.mxu1 %v4044_v18  ;;  %v4125_v17 = vld [vmem:[%s5925_s1 + $0x5a0] ss:$16 sps:$4 sm:$0xff]   ;;  %v4128_v18 = vld [vmem:[%s5925_s1 + $0x5a8] ss:$16 sps:$4 sm:$0xff]  }
  0x80   :  { %1726 = vmatprep.subr.bf16.mxu0 %v4049_v19  ;;  %1890 = vmatprep.subr.bf16.mxu1 %v4052_v20  ;;  %v4133_v19 = vld [vmem:[%s5925_s1 + $0x5c4] ss:$16 sps:$4 sm:$0xff]   ;;  %v4136_v20 = vld [vmem:[%s5925_s1 + $0x5cc] ss:$16 sps:$4 sm:$0xff]  }
  0x82   :  { %1718 = vmatmul.mubr.bf16.vlgmr.msra.gmra.mrb[0].mxu0 %v80_v22  ;;  %1882 = vmatmul.mubr.bf16.vlgmr.msra.gmra.mrb[0].mxu1 %v80_v22  ;;  %v4131_v22 = vld [vmem:[%s5925_s1 + $0x5c0] ss:$16 sps:$4 sm:$0xff]  }
  0x83   :  { %1727 = vmatpush1.bf16.msra.mxu0 %v4047_v21  ;;  %1891 = vmatpush1.bf16.msra.mxu1 %v4050_v23  ;;  %v53_v21 = vcombine.high %v4985_v24, %v4985_v24  ;;  %v4134_v23 = vld [vmem:[%s5925_s1 + $0x5c8] ss:$16 sps:$4 sm:$0xff]   ;;  %v4142_v24 = vld [vmem:[%s5925_s1 + $0x5ec] ss:$16 sps:$4 sm:$0xff]  }
  0x84   :  { %1728 = vmatprep.subr.bf16.mxu0 %v4055_v25  ;;  %1892 = vmatprep.subr.bf16.mxu1 %v4058_v9  ;;  %v4139_v25 = vld [vmem:[%s5925_s1 + $0x5e4] ss:$16 sps:$4 sm:$0xff]  }
  0x85   :  { %1758 = vmatprep.mubr.bf16.mxu0 %v83_v32  ;;  %1922 = vmatprep.mubr.bf16.mxu1 %v83_v32  ;;  %v5170_v9 = vrot.slane %v53_v21, %v4705_v49  ;;  %v82_v32 = vpack.c.bf16 %v4995_v26, %v4995_v26  ;;  %v4154_v26 = vld [vmem:[%s5925_s1 + $0x62c] ss:$16 sps:$4 sm:$0xff]   ;;  %v4215_v21 = vld [vmem:[%s5925_s1 + $0x780] ss:$16 sps:$4 sm:$0xff]  }
  0x87   :  { %1729 = vmatpush1.bf16.msra.mxu0 %v4053_v28  ;;  %1893 = vmatpush1.bf16.msra.mxu1 %v4056_v29  ;;  %v4140_v28 = vld [vmem:[%s5925_s1 + $0x5e8] ss:$16 sps:$4 sm:$0xff]   ;;  %v4145_v29 = vld [vmem:[%s5925_s1 + $0x604] ss:$16 sps:$4 sm:$0xff]  }
  0x88   :  { %1730 = vmatprep.subr.bf16.mxu0 %v4061_v30  ;;  %1894 = vmatprep.subr.bf16.mxu1 %v4064_v31  ;;  %v4148_v30 = vld [vmem:[%s5925_s1 + $0x60c] ss:$16 sps:$4 sm:$0xff]   ;;  %v69_v31 = vcombine.high %v5170_v9, %v5170_v9 }
  0x8b   :  { %1731 = vmatpush1.bf16.msra.mxu0 %v4059_v33  ;;  %1895 = vmatpush1.bf16.msra.mxu1 %v4062_v34  ;;  %v4143_v33 = vld [vmem:[%s5925_s1 + $0x600] ss:$16 sps:$4 sm:$0xff]   ;;  %v4146_v34 = vld [vmem:[%s5925_s1 + $0x608] ss:$16 sps:$4 sm:$0xff]  }
  0x8c   :  { %1732 = vmatprep.subr.bf16.mxu0 %v4067_v35  ;;  %1896 = vmatprep.subr.bf16.mxu1 %v4070_v36  ;;  %v4151_v35 = vld [vmem:[%s5925_s1 + $0x624] ss:$16 sps:$4 sm:$0xff]   ;;  %v85_v36 = vpack.c.bf16 %v69_v31, %v69_v31  ;;  %v4230_v31 = vld [vmem:[%s5925_s1 + $0x7c8] ss:$16 sps:$4 sm:$0xff]  }
  0x8f   :  { %1733 = vmatpush1.bf16.msra.mxu0 %v4065_v37  ;;  %1897 = vmatpush1.bf16.msra.mxu1 %v4068_v39  ;;  %v4149_v37 = vld [vmem:[%s5925_s1 + $0x620] ss:$16 sps:$4 sm:$0xff]   ;;  %v4152_v39 = vld [vmem:[%s5925_s1 + $0x628] ss:$16 sps:$4 sm:$0xff]  }
  0x90   :  { %1734 = vmatprep.subr.bf16.mxu0 %v4073_v40  ;;  %1898 = vmatprep.subr.bf16.mxu1 %v4076_v41  ;;  %v4157_v40 = vld [vmem:[%s5925_s1 + $0x644] ss:$16 sps:$4 sm:$0xff]   ;;  %v4160_v41 = vld [vmem:[%s5925_s1 + $0x64c] ss:$16 sps:$4 sm:$0xff]  }
  0x93   :  { %1735 = vmatpush1.bf16.msra.mxu0 %v4071_v42  ;;  %1899 = vmatpush1.bf16.msra.mxu1 %v4074_v44  ;;  %v4155_v42 = vld [vmem:[%s5925_s1 + $0x640] ss:$16 sps:$4 sm:$0xff]   ;;  %v4158_v44 = vld [vmem:[%s5925_s1 + $0x648] ss:$16 sps:$4 sm:$0xff]  }
  0x94   :  { %1736 = vmatprep.subr.bf16.mxu0 %v4079_v45  ;;  %1900 = vmatprep.subr.bf16.mxu1 %v4082_v46  ;;  %v4163_v45 = vld [vmem:[%s5925_s1 + $0x664] ss:$16 sps:$4 sm:$0xff]   ;;  %v4166_v46 = vld [vmem:[%s5925_s1 + $0x66c] ss:$16 sps:$4 sm:$0xff]  }
  0x97   :  { %1737 = vmatpush1.bf16.msra.mxu0 %v4077_v47  ;;  %1901 = vmatpush1.bf16.msra.mxu1 %v4080_v48  ;;  %v4161_v47 = vld [vmem:[%s5925_s1 + $0x660] ss:$16 sps:$4 sm:$0xff]   ;;  %v4164_v48 = vld [vmem:[%s5925_s1 + $0x668] ss:$16 sps:$4 sm:$0xff]  }
  0x98   :  { %1738 = vmatprep.subr.bf16.mxu0 %v4085_v50  ;;  %1902 = vmatprep.subr.bf16.mxu1 %v4088_v51  ;;  %v4169_v50 = vld [vmem:[%s5925_s1 + $0x684] ss:$16 sps:$4 sm:$0xff]   ;;  %v4172_v51 = vld [vmem:[%s5925_s1 + $0x68c] ss:$16 sps:$4 sm:$0xff]  }
  0x9b   :  { %1739 = vmatpush1.bf16.msra.mxu0 %v4083_v52  ;;  %1903 = vmatpush1.bf16.msra.mxu1 %v4086_v53  ;;  %v4167_v52 = vld [vmem:[%s5925_s1 + $0x680] ss:$16 sps:$4 sm:$0xff]   ;;  %v4170_v53 = vld [vmem:[%s5925_s1 + $0x688] ss:$16 sps:$4 sm:$0xff]  }
  0x9c   :  { %1740 = vmatprep.subr.bf16.mxu0 %v4091_v54  ;;  %1904 = vmatprep.subr.bf16.mxu1 %v4094_v55  ;;  %v4175_v54 = vld [vmem:[%s5925_s1 + $0x6a4] ss:$16 sps:$4 sm:$0xff]   ;;  %v4178_v55 = vld [vmem:[%s5925_s1 + $0x6ac] ss:$16 sps:$4 sm:$0xff]  }
  0x9f   :  { %1741 = vmatpush1.bf16.msra.mxu0 %v4089_v56  ;;  %1905 = vmatpush1.bf16.msra.mxu1 %v4092_v57  ;;  %v4173_v56 = vld [vmem:[%s5925_s1 + $0x6a0] ss:$16 sps:$4 sm:$0xff]   ;;  %v4176_v57 = vld [vmem:[%s5925_s1 + $0x6a8] ss:$16 sps:$4 sm:$0xff]  }
  0xa0   :  { %1742 = vmatprep.subr.bf16.mxu0 %v4097_v58  ;;  %1906 = vmatprep.subr.bf16.mxu1 %v4100_v59  ;;  %v4181_v58 = vld [vmem:[%s5925_s1 + $0x6c4] ss:$16 sps:$4 sm:$0xff]   ;;  %v4184_v59 = vld [vmem:[%s5925_s1 + $0x6cc] ss:$16 sps:$4 sm:$0xff]  }
  0xa3   :  { %1743 = vmatpush1.bf16.msra.mxu0 %v4095_v60  ;;  %1907 = vmatpush1.bf16.msra.mxu1 %v4098_v61  ;;  %v4179_v60 = vld [vmem:[%s5925_s1 + $0x6c0] ss:$16 sps:$4 sm:$0xff]   ;;  %v4182_v61 = vld [vmem:[%s5925_s1 + $0x6c8] ss:$16 sps:$4 sm:$0xff]  }
  0xa4   :  { %1744 = vmatprep.subr.bf16.mxu0 %v4103_v62  ;;  %1908 = vmatprep.subr.bf16.mxu1 %v4106_v63  ;;  %v4187_v62 = vld [vmem:[%s5925_s1 + $0x6e4] ss:$16 sps:$4 sm:$0xff]   ;;  %v4190_v63 = vld [vmem:[%s5925_s1 + $0x6ec] ss:$16 sps:$4 sm:$0xff]  }
  0xa7   :  { %1745 = vmatpush1.bf16.msra.mxu0 %v4101_v0  ;;  %1909 = vmatpush1.bf16.msra.mxu1 %v4104_v1  ;;  %v4185_v0 = vld [vmem:[%s5925_s1 + $0x6e0] ss:$16 sps:$4 sm:$0xff]   ;;  %v4188_v1 = vld [vmem:[%s5925_s1 + $0x6e8] ss:$16 sps:$4 sm:$0xff]  }
  0xa8   :  { %1746 = vmatprep.subr.bf16.mxu0 %v4109_v2  ;;  %1910 = vmatprep.subr.bf16.mxu1 %v4112_v3  ;;  %v4193_v2 = vld [vmem:[%s5925_s1 + $0x704] ss:$16 sps:$4 sm:$0xff]   ;;  %v4196_v3 = vld [vmem:[%s5925_s1 + $0x70c] ss:$16 sps:$4 sm:$0xff]  }
  0xab   :  { %1747 = vmatpush1.bf16.msra.mxu0 %v4107_v4  ;;  %1911 = vmatpush1.bf16.msra.mxu1 %v4110_v5  ;;  %v4191_v4 = vld [vmem:[%s5925_s1 + $0x700] ss:$16 sps:$4 sm:$0xff]   ;;  %v4194_v5 = vld [vmem:[%s5925_s1 + $0x708] ss:$16 sps:$4 sm:$0xff]  }
  0xac   :  { %1748 = vmatprep.subr.bf16.mxu0 %v4115_v6  ;;  %1912 = vmatprep.subr.bf16.mxu1 %v4118_v7  ;;  %v4199_v6 = vld [vmem:[%s5925_s1 + $0x724] ss:$16 sps:$4 sm:$0xff]   ;;  %v4202_v7 = vld [vmem:[%s5925_s1 + $0x72c] ss:$16 sps:$4 sm:$0xff]  }
  0xaf   :  { %1749 = vmatpush1.bf16.msra.mxu0 %v4113_v8  ;;  %1913 = vmatpush1.bf16.msra.mxu1 %v4116_v10  ;;  %v4197_v8 = vld [vmem:[%s5925_s1 + $0x720] ss:$16 sps:$4 sm:$0xff]   ;;  %v4200_v10 = vld [vmem:[%s5925_s1 + $0x728] ss:$16 sps:$4 sm:$0xff]  }
  0xb0   :  { %1750 = vmatprep.subr.bf16.mxu0 %v4121_v11  ;;  %1914 = vmatprep.subr.bf16.mxu1 %v4124_v12  ;;  %v4205_v11 = vld [vmem:[%s5925_s1 + $0x744] ss:$16 sps:$4 sm:$0xff]   ;;  %v4208_v12 = vld [vmem:[%s5925_s1 + $0x74c] ss:$16 sps:$4 sm:$0xff]  }
  0xb3   :  { %1751 = vmatpush1.bf16.msra.mxu0 %v4119_v13  ;;  %1915 = vmatpush1.bf16.msra.mxu1 %v4122_v14  ;;  %v4203_v13 = vld [vmem:[%s5925_s1 + $0x740] ss:$16 sps:$4 sm:$0xff]   ;;  %v4206_v14 = vld [vmem:[%s5925_s1 + $0x748] ss:$16 sps:$4 sm:$0xff]  }
  0xb4   :  { %1752 = vmatprep.subr.bf16.mxu0 %v4127_v15  ;;  %1916 = vmatprep.subr.bf16.mxu1 %v4130_v16  ;;  %v4211_v15 = vld [vmem:[%s5925_s1 + $0x764] ss:$16 sps:$4 sm:$0xff]   ;;  %v4214_v16 = vld [vmem:[%s5925_s1 + $0x76c] ss:$16 sps:$4 sm:$0xff]  }
  0xb7   :  { %1753 = vmatpush1.bf16.msra.mxu0 %v4125_v17  ;;  %1917 = vmatpush1.bf16.msra.mxu1 %v4128_v18  ;;  %v4209_v17 = vld [vmem:[%s5925_s1 + $0x760] ss:$16 sps:$4 sm:$0xff]   ;;  %v4212_v18 = vld [vmem:[%s5925_s1 + $0x768] ss:$16 sps:$4 sm:$0xff]  }
  0xb8   :  { %1754 = vmatprep.subr.bf16.mxu0 %v4133_v19  ;;  %1918 = vmatprep.subr.bf16.mxu1 %v4136_v20  ;;  %v4217_v19 = vld [vmem:[%s5925_s1 + $0x784] ss:$16 sps:$4 sm:$0xff]   ;;  %v4220_v20 = vld [vmem:[%s5925_s1 + $0x78c] ss:$16 sps:$4 sm:$0xff]  }
  0xbb   :  { %1755 = vmatpush1.bf16.msra.mxu0 %v4131_v22  ;;  %1919 = vmatpush1.bf16.msra.mxu1 %v4134_v23  ;;  %v4218_v22 = vld [vmem:[%s5925_s1 + $0x788] ss:$16 sps:$4 sm:$0xff]   ;;  %v4223_v23 = vld [vmem:[%s5925_s1 + $0x7a4] ss:$16 sps:$4 sm:$0xff]  }
  0xbc   :  { %1756 = vmatprep.subr.bf16.mxu0 %v4139_v25  ;;  %1920 = vmatprep.subr.bf16.mxu1 %v4142_v24  ;;  %v4226_v25 = vld [vmem:[%s5925_s1 + $0x7ac] ss:$16 sps:$4 sm:$0xff]   ;;  %v4221_v24 = vld [vmem:[%s5925_s1 + $0x7a0] ss:$16 sps:$4 sm:$0xff]  }
  0xbf   :  { %1757 = vmatpush1.bf16.msra.mxu0 %v4137_v27  ;;  %1921 = vmatpush1.bf16.msra.mxu1 %v4140_v28  ;;  %v4224_v27 = vld [vmem:[%s5925_s1 + $0x7a8] ss:$16 sps:$4 sm:$0xff]   ;;  %v4229_v28 = vld [vmem:[%s5925_s1 + $0x7c4] ss:$16 sps:$4 sm:$0xff]  }
  0xc0   :  { %1767 = vmatprep.subr.bf16.mxu0 %v4145_v29  ;;  %1931 = vmatprep.subr.bf16.mxu1 %v4148_v30  ;;  %v4232_v29 = vld [vmem:[%s5925_s1 + $0x7cc] ss:$16 sps:$4 sm:$0xff]   ;;  %v4227_v30 = vld [vmem:[%s5925_s1 + $0x7c0] ss:$16 sps:$4 sm:$0xff]  }
  0xc2   :  { %1759 = vmatmul.mubr.bf16.vlgmr.msra.gmra.mrb[0].mxu0 %v82_v32  ;;  %1923 = vmatmul.mubr.bf16.vlgmr.msra.gmra.mrb[0].mxu1 %v82_v32  ;;  %v4235_v32 = vld [vmem:[%s5925_s1 + $0x7e4] ss:$16 sps:$4 sm:$0xff]  }
  0xc3   :  { %1768 = vmatpush1.bf16.msra.mxu0 %v4143_v33  ;;  %1932 = vmatpush1.bf16.msra.mxu1 %v4146_v34  ;;  %v4238_v33 = vld [vmem:[%s5925_s1 + $0x7ec] ss:$16 sps:$4 sm:$0xff]   ;;  %v4233_v34 = vld [vmem:[%s5925_s1 + $0x7e0] ss:$16 sps:$4 sm:$0xff]  }
  0xc4   :  { %1769 = vmatprep.subr.bf16.mxu0 %v4151_v35  ;;  %1933 = vmatprep.subr.bf16.mxu1 %v4154_v26  ;;  %v4236_v35 = vld [vmem:[%s5925_s1 + $0x7e8] ss:$16 sps:$4 sm:$0xff]   ;;  %v4242_v26 = vld [vmem:[%s5927_s3 + $0x4] ss:$16 sps:$4 sm:$0xff]  }
  0xc5   :  { %1799 = vmatprep.mubr.bf16.mxu0 %v85_v36  ;;  %1963 = vmatprep.mubr.bf16.mxu1 %v85_v36  ;;  %v4245_v36 = vld [vmem:[%s5927_s3 + $0xc] ss:$16 sps:$4 sm:$0xff]  }
  0xc7   :  { %1770 = vmatpush1.bf16.msra.mxu0 %v4149_v37  ;;  %1934 = vmatpush1.bf16.msra.mxu1 %v4152_v39  ;;  %v84_v37 = vpack.c.bf16 %v5170_v9, %v5170_v9 }
  0xc8   :  { %1771 = vmatprep.subr.bf16.mxu0 %v4157_v40  ;;  %1935 = vmatprep.subr.bf16.mxu1 %v4160_v41 }
  0xcb   :  { %1772 = vmatpush1.bf16.msra.mxu0 %v4155_v42  ;;  %1936 = vmatpush1.bf16.msra.mxu1 %v4158_v44 }
  0xcc   :  { %1773 = vmatprep.subr.bf16.mxu0 %v4163_v45  ;;  %1937 = vmatprep.subr.bf16.mxu1 %v4166_v46 }
  0xcf   :  { %1774 = vmatpush1.bf16.msra.mxu0 %v4161_v47  ;;  %1938 = vmatpush1.bf16.msra.mxu1 %v4164_v48 }
  0xd0   :  { %1775 = vmatprep.subr.bf16.mxu0 %v4169_v50  ;;  %1939 = vmatprep.subr.bf16.mxu1 %v4172_v51 }
  0xd3   :  { %1776 = vmatpush1.bf16.msra.mxu0 %v4167_v52  ;;  %1940 = vmatpush1.bf16.msra.mxu1 %v4170_v53 }
  0xd4   :  { %1777 = vmatprep.subr.bf16.mxu0 %v4175_v54  ;;  %1941 = vmatprep.subr.bf16.mxu1 %v4178_v55 }
  0xd7   :  { %1778 = vmatpush1.bf16.msra.mxu0 %v4173_v56  ;;  %1942 = vmatpush1.bf16.msra.mxu1 %v4176_v57 }
  0xd8   :  { %1779 = vmatprep.subr.bf16.mxu0 %v4181_v58  ;;  %1943 = vmatprep.subr.bf16.mxu1 %v4184_v59 }
  0xdb   :  { %1780 = vmatpush1.bf16.msra.mxu0 %v4179_v60  ;;  %1944 = vmatpush1.bf16.msra.mxu1 %v4182_v61 }
  0xdc   :  { %1781 = vmatprep.subr.bf16.mxu0 %v4187_v62  ;;  %1945 = vmatprep.subr.bf16.mxu1 %v4190_v63 }
  0xdf   :  { %1782 = vmatpush1.bf16.msra.mxu0 %v4185_v0  ;;  %1946 = vmatpush1.bf16.msra.mxu1 %v4188_v1 }
  0xe0   :  { %1783 = vmatprep.subr.bf16.mxu0 %v4193_v2  ;;  %1947 = vmatprep.subr.bf16.mxu1 %v4196_v3 }
  0xe3   :  { %1784 = vmatpush1.bf16.msra.mxu0 %v4191_v4  ;;  %1948 = vmatpush1.bf16.msra.mxu1 %v4194_v5 }
  0xe4   :  { %1785 = vmatprep.subr.bf16.mxu0 %v4199_v6  ;;  %1949 = vmatprep.subr.bf16.mxu1 %v4202_v7 }
  0xe7   :  { %1786 = vmatpush1.bf16.msra.mxu0 %v4197_v8  ;;  %1950 = vmatpush1.bf16.msra.mxu1 %v4200_v10 }
  0xe8   :  { %1787 = vmatprep.subr.bf16.mxu0 %v4205_v11  ;;  %1951 = vmatprep.subr.bf16.mxu1 %v4208_v12 }
  0xeb   :  { %1788 = vmatpush1.bf16.msra.mxu0 %v4203_v13  ;;  %1952 = vmatpush1.bf16.msra.mxu1 %v4206_v14 }
  0xec   :  { %1789 = vmatprep.subr.bf16.mxu0 %v4211_v15  ;;  %1953 = vmatprep.subr.bf16.mxu1 %v4214_v16 }
  0xef   :  { %1790 = vmatpush1.bf16.msra.mxu0 %v4209_v17  ;;  %1954 = vmatpush1.bf16.msra.mxu1 %v4212_v18 }
  0xf0   :  { %1791 = vmatprep.subr.bf16.mxu0 %v4217_v19  ;;  %1955 = vmatprep.subr.bf16.mxu1 %v4220_v20 }
  0xf3   :  { %1792 = vmatpush1.bf16.msra.mxu0 %v4215_v21  ;;  %1956 = vmatpush1.bf16.msra.mxu1 %v4218_v22 }
  0xf4   :  { %1793 = vmatprep.subr.bf16.mxu0 %v4223_v23  ;;  %1957 = vmatprep.subr.bf16.mxu1 %v4226_v25 }
  0xf7   :  { %1794 = vmatpush1.bf16.msra.mxu0 %v4221_v24  ;;  %1958 = vmatpush1.bf16.msra.mxu1 %v4224_v27 }
  0xf8   :  { %1795 = vmatprep.subr.bf16.mxu0 %v4229_v28  ;;  %1959 = vmatprep.subr.bf16.mxu1 %v4232_v29 }
  0xfb   :  { %1796 = vmatpush1.bf16.msra.mxu0 %v4227_v30  ;;  %1960 = vmatpush1.bf16.msra.mxu1 %v4230_v31 }
  0xfc   :  { %1797 = vmatprep.subr.bf16.mxu0 %v4235_v32  ;;  %1961 = vmatprep.subr.bf16.mxu1 %v4238_v33 }
  0xfd   :  { %16 = vsyncpa [#allocation5], 0  ;;  %v4240_v39 = vld [vmem:[%s5927_s3] ss:$16 sps:$4 sm:$0xff]   ;;  %v4243_v40 = vld [vmem:[%s5927_s3 + $0x8] ss:$16 sps:$4 sm:$0xff]  }
  0xfe   :  { %v4248_v41 = vld [vmem:[%s5927_s3 + $0x24] ss:$16 sps:$4 sm:$0xff]   ;;  %v4251_v9 = vld [vmem:[%s5927_s3 + $0x2c] ss:$16 sps:$4 sm:$0xff]   ;;  %v4246_v42 = vld [vmem:[%s5927_s3 + $0x20] ss:$16 sps:$4 sm:$0xff]  }
  0xff   :  { %1798 = vmatpush1.bf16.msra.mxu0 %v4233_v34  ;;  %1962 = vmatpush1.bf16.msra.mxu1 %v4236_v35  ;;  %v4249_v44 = vld [vmem:[%s5927_s3 + $0x28] ss:$16 sps:$4 sm:$0xff]   ;;  %v4254_v45 = vld [vmem:[%s5927_s3 + $0x44] ss:$16 sps:$4 sm:$0xff]   ;;  %v4257_v46 = vld [vmem:[%s5927_s3 + $0x4c] ss:$16 sps:$4 sm:$0xff]  }
 0x100   :  { %2766 = vmatprep.subr.bf16.mxu0 %v4242_v26  ;;  %2848 = vmatprep.subr.bf16.mxu1 %v4245_v36  ;;  %v4252_v47 = vld [vmem:[%s5927_s3 + $0x40] ss:$16 sps:$4 sm:$0xff]   ;;  %v4255_v48 = vld [vmem:[%s5927_s3 + $0x48] ss:$16 sps:$4 sm:$0xff]   ;;  %v4260_v50 = vld [vmem:[%s5927_s3 + $0x64] ss:$16 sps:$4 sm:$0xff]  }
 0x101   :  { %v4263_v51 = vld [vmem:[%s5927_s3 + $0x6c] ss:$16 sps:$4 sm:$0xff]   ;;  %v4258_v52 = vld [vmem:[%s5927_s3 + $0x60] ss:$16 sps:$4 sm:$0xff]   ;;  %v4261_v53 = vld [vmem:[%s5927_s3 + $0x68] ss:$16 sps:$4 sm:$0xff]  }
 0x102   :  { %1800 = vmatmul.mubr.bf16.vlgmr.msra.gmra.mrb[0].mxu0 %v84_v37  ;;  %1964 = vmatmul.mubr.bf16.vlgmr.msra.gmra.mrb[0].mxu1 %v84_v37  ;;  %v4266_v54 = vld [vmem:[%s5927_s3 + $0x84] ss:$16 sps:$4 sm:$0xff]   ;;  %v4269_v55 = vld [vmem:[%s5927_s3 + $0x8c] ss:$16 sps:$4 sm:$0xff]   ;;  %v4264_v56 = vld [vmem:[%s5927_s3 + $0x80] ss:$16 sps:$4 sm:$0xff]  }
 0x103   :  { %2767 = vmatpush1.bf16.msra.mxu0 %v4240_v39  ;;  %2849 = vmatpush1.bf16.msra.mxu1 %v4243_v40  ;;  %v4267_v57 = vld [vmem:[%s5927_s3 + $0x88] ss:$16 sps:$4 sm:$0xff]   ;;  %v4272_v58 = vld [vmem:[%s5927_s3 + $0xa4] ss:$16 sps:$4 sm:$0xff]   ;;  %v4275_v59 = vld [vmem:[%s5927_s3 + $0xac] ss:$16 sps:$4 sm:$0xff]  }
 0x104   :  { %2768 = vmatprep.subr.bf16.mxu0 %v4248_v41  ;;  %2850 = vmatprep.subr.bf16.mxu1 %v4251_v9  ;;  %v4270_v60 = vld [vmem:[%s5927_s3 + $0xa0] ss:$16 sps:$4 sm:$0xff]   ;;  %v4273_v61 = vld [vmem:[%s5927_s3 + $0xa8] ss:$16 sps:$4 sm:$0xff]   ;;  %v4278_v62 = vld [vmem:[%s5927_s3 + $0xc4] ss:$16 sps:$4 sm:$0xff]  }
 0x105   :  { %v4281_v63 = vld [vmem:[%s5927_s3 + $0xcc] ss:$16 sps:$4 sm:$0xff]   ;;  %v4276_v0 = vld [vmem:[%s5927_s3 + $0xc0] ss:$16 sps:$4 sm:$0xff]   ;;  %v4279_v1 = vld [vmem:[%s5927_s3 + $0xc8] ss:$16 sps:$4 sm:$0xff]  }
 0x106   :  { %v4284_v2 = vld [vmem:[%s5927_s3 + $0xe4] ss:$16 sps:$4 sm:$0xff]   ;;  %v4287_v3 = vld [vmem:[%s5927_s3 + $0xec] ss:$16 sps:$4 sm:$0xff]   ;;  %v4282_v4 = vld [vmem:[%s5927_s3 + $0xe0] ss:$16 sps:$4 sm:$0xff]  }
 0x107   :  { %2769 = vmatpush1.bf16.msra.mxu0 %v4246_v42  ;;  %2851 = vmatpush1.bf16.msra.mxu1 %v4249_v44  ;;  %v4285_v5 = vld [vmem:[%s5927_s3 + $0xe8] ss:$16 sps:$4 sm:$0xff]   ;;  %v4290_v6 = vld [vmem:[%s5927_s3 + $0x104] ss:$16 sps:$4 sm:$0xff]   ;;  %v4293_v7 = vld [vmem:[%s5927_s3 + $0x10c] ss:$16 sps:$4 sm:$0xff]  }
 0x108   :  { %2770 = vmatprep.subr.bf16.mxu0 %v4254_v45  ;;  %2852 = vmatprep.subr.bf16.mxu1 %v4257_v46  ;;  %v4288_v8 = vld [vmem:[%s5927_s3 + $0x100] ss:$16 sps:$4 sm:$0xff]   ;;  %v4291_v10 = vld [vmem:[%s5927_s3 + $0x108] ss:$16 sps:$4 sm:$0xff]   ;;  %v4296_v11 = vld [vmem:[%s5927_s3 + $0x124] ss:$16 sps:$4 sm:$0xff]  }
 0x109   :  { %v4299_v12 = vld [vmem:[%s5927_s3 + $0x12c] ss:$16 sps:$4 sm:$0xff]   ;;  %v4294_v13 = vld [vmem:[%s5927_s3 + $0x120] ss:$16 sps:$4 sm:$0xff]   ;;  %v4297_v14 = vld [vmem:[%s5927_s3 + $0x128] ss:$16 sps:$4 sm:$0xff]  }
 0x10a   :  { %v4302_v15 = vld [vmem:[%s5927_s3 + $0x144] ss:$16 sps:$4 sm:$0xff]   ;;  %v4305_v16 = vld [vmem:[%s5927_s3 + $0x14c] ss:$16 sps:$4 sm:$0xff]   ;;  %v4300_v17 = vld [vmem:[%s5927_s3 + $0x140] ss:$16 sps:$4 sm:$0xff]  }
 0x10b   :  { %2771 = vmatpush1.bf16.msra.mxu0 %v4252_v47  ;;  %2853 = vmatpush1.bf16.msra.mxu1 %v4255_v48  ;;  %v4303_v18 = vld [vmem:[%s5927_s3 + $0x148] ss:$16 sps:$4 sm:$0xff]   ;;  %v4308_v19 = vld [vmem:[%s5927_s3 + $0x164] ss:$16 sps:$4 sm:$0xff]   ;;  %v4311_v20 = vld [vmem:[%s5927_s3 + $0x16c] ss:$16 sps:$4 sm:$0xff]  }
 0x10c   :  { %2772 = vmatprep.subr.bf16.mxu0 %v4260_v50  ;;  %2854 = vmatprep.subr.bf16.mxu1 %v4263_v51  ;;  %v4306_v21 = vld [vmem:[%s5927_s3 + $0x160] ss:$16 sps:$4 sm:$0xff]   ;;  %v4309_v22 = vld [vmem:[%s5927_s3 + $0x168] ss:$16 sps:$4 sm:$0xff]   ;;  %v4314_v23 = vld [vmem:[%s5927_s3 + $0x184] ss:$16 sps:$4 sm:$0xff]  }
 0x10d   :  { %v4317_v25 = vld [vmem:[%s5927_s3 + $0x18c] ss:$16 sps:$4 sm:$0xff]   ;;  %v4312_v24 = vld [vmem:[%s5927_s3 + $0x180] ss:$16 sps:$4 sm:$0xff]   ;;  %v4315_v27 = vld [vmem:[%s5927_s3 + $0x188] ss:$16 sps:$4 sm:$0xff]  }
 0x10e   :  { %v4320_v28 = vld [vmem:[%s5927_s3 + $0x1a4] ss:$16 sps:$4 sm:$0xff]   ;;  %v4323_v29 = vld [vmem:[%s5927_s3 + $0x1ac] ss:$16 sps:$4 sm:$0xff]   ;;  %v4318_v30 = vld [vmem:[%s5927_s3 + $0x1a0] ss:$16 sps:$4 sm:$0xff]  }
 0x10f   :  { %2773 = vmatpush1.bf16.msra.mxu0 %v4258_v52  ;;  %2855 = vmatpush1.bf16.msra.mxu1 %v4261_v53  ;;  %v4321_v31 = vld [vmem:[%s5927_s3 + $0x1a8] ss:$16 sps:$4 sm:$0xff]   ;;  %v4326_v32 = vld [vmem:[%s5927_s3 + $0x1c4] ss:$16 sps:$4 sm:$0xff]   ;;  %v4329_v33 = vld [vmem:[%s5927_s3 + $0x1cc] ss:$16 sps:$4 sm:$0xff]  }
 0x110   :  { %2774 = vmatprep.subr.bf16.mxu0 %v4266_v54  ;;  %2856 = vmatprep.subr.bf16.mxu1 %v4269_v55  ;;  %v4324_v34 = vld [vmem:[%s5927_s3 + $0x1c0] ss:$16 sps:$4 sm:$0xff]   ;;  %v4327_v35 = vld [vmem:[%s5927_s3 + $0x1c8] ss:$16 sps:$4 sm:$0xff]   ;;  %v4332_v26 = vld [vmem:[%s5927_s3 + $0x1e4] ss:$16 sps:$4 sm:$0xff]  }
 0x111   :  { %v4335_v36 = vld [vmem:[%s5927_s3 + $0x1ec] ss:$16 sps:$4 sm:$0xff]   ;;  %v4330_v37 = vld [vmem:[%s5927_s3 + $0x1e0] ss:$16 sps:$4 sm:$0xff]   ;;  %v4333_v39 = vld [vmem:[%s5927_s3 + $0x1e8] ss:$16 sps:$4 sm:$0xff]  }
 0x112   :  { %v4338_v40 = vld [vmem:[%s5927_s3 + $0x204] ss:$16 sps:$4 sm:$0xff]   ;;  %v4341_v41 = vld [vmem:[%s5927_s3 + $0x20c] ss:$16 sps:$4 sm:$0xff]   ;;  %v346_v9 = vsub.s32 0, %v4687_v43  ;;  %v350_v44 = vsub.s32 1, %v4687_v43 }
 0x113   :  { %2775 = vmatpush1.bf16.msra.mxu0 %v4264_v56  ;;  %2857 = vmatpush1.bf16.msra.mxu1 %v4267_v57  ;;  %v5578_v42 = vld [vmem:[%s5926_s2] sm:$0xf]  ;;  %v358_v45 = vsub.s32 3, %v4687_v43  ;;  %vm3305_vm1 = vcmask 1041408  }
 0x114   :  { %2776 = vmatprep.subr.bf16.mxu0 %v4272_v58  ;;  %2858 = vmatprep.subr.bf16.mxu1 %v4275_v59  ;;  %v347_v46 = vrot.slane %v5578_v42, %v346_v9  ;;  %v351_v47 = vrot.slane %v5578_v42, %v350_v44 }
 0x115   :  { %v359_v48 = vrot.slane %v5578_v42, %v358_v45 }
 0x117   :  { %2777 = vmatpush1.bf16.msra.mxu0 %v4270_v60  ;;  %2859 = vmatpush1.bf16.msra.mxu1 %v4273_v61 }
 0x118   :  { %2778 = vmatprep.subr.bf16.mxu0 %v4278_v62  ;;  %2860 = vmatprep.subr.bf16.mxu1 %v4281_v63  ;;  %v4336_v62 = vld [vmem:[%s5927_s3 + $0x200] ss:$16 sps:$4 sm:$0xff]   ;;  %v4339_v63 = vld [vmem:[%s5927_s3 + $0x208] ss:$16 sps:$4 sm:$0xff]  }
 0x11b   :  { %2779 = vmatpush1.bf16.msra.mxu0 %v4276_v0  ;;  %2861 = vmatpush1.bf16.msra.mxu1 %v4279_v1  ;;  %v4344_v1 = vld [vmem:[%s5927_s3 + $0x224] ss:$16 sps:$4 sm:$0xff]  }
 0x11c   :  { %2780 = vmatprep.subr.bf16.mxu0 %v4284_v2  ;;  %2862 = vmatprep.subr.bf16.mxu1 %v4287_v3  ;;  %v4347_v2 = vld [vmem:[%s5927_s3 + $0x22c] ss:$16 sps:$4 sm:$0xff]  }
 0x11f   :  { %2781 = vmatpush1.bf16.msra.mxu0 %v4282_v4  ;;  %2863 = vmatpush1.bf16.msra.mxu1 %v4285_v5  ;;  %v4342_v4 = vld [vmem:[%s5927_s3 + $0x220] ss:$16 sps:$4 sm:$0xff]   ;;  %v4345_v5 = vld [vmem:[%s5927_s3 + $0x228] ss:$16 sps:$4 sm:$0xff]  }
 0x120   :  { %2782 = vmatprep.subr.bf16.mxu0 %v4290_v6  ;;  %2864 = vmatprep.subr.bf16.mxu1 %v4293_v7  ;;  %v4350_v6 = vld [vmem:[%s5927_s3 + $0x244] ss:$16 sps:$4 sm:$0xff]   ;;  %v4353_v7 = vld [vmem:[%s5927_s3 + $0x24c] ss:$16 sps:$4 sm:$0xff]  }
 0x123   :  { %2783 = vmatpush1.bf16.msra.mxu0 %v4288_v8  ;;  %2865 = vmatpush1.bf16.msra.mxu1 %v4291_v10  ;;  %v4348_v8 = vld [vmem:[%s5927_s3 + $0x240] ss:$16 sps:$4 sm:$0xff]   ;;  %v4351_v10 = vld [vmem:[%s5927_s3 + $0x248] ss:$16 sps:$4 sm:$0xff]  }
 0x124   :  { %2784 = vmatprep.subr.bf16.mxu0 %v4296_v11  ;;  %2866 = vmatprep.subr.bf16.mxu1 %v4299_v12  ;;  %v4356_v11 = vld [vmem:[%s5927_s3 + $0x264] ss:$16 sps:$4 sm:$0xff]   ;;  %v4359_v12 = vld [vmem:[%s5927_s3 + $0x26c] ss:$16 sps:$4 sm:$0xff]  }
 0x127   :  { %2785 = vmatpush1.bf16.msra.mxu0 %v4294_v13  ;;  %2867 = vmatpush1.bf16.msra.mxu1 %v4297_v14  ;;  %v4354_v13 = vld [vmem:[%s5927_s3 + $0x260] ss:$16 sps:$4 sm:$0xff]   ;;  %v4357_v14 = vld [vmem:[%s5927_s3 + $0x268] ss:$16 sps:$4 sm:$0xff]  }
 0x128   :  { %2786 = vmatprep.subr.bf16.mxu0 %v4302_v15  ;;  %2868 = vmatprep.subr.bf16.mxu1 %v4305_v16  ;;  %v4362_v15 = vld [vmem:[%s5927_s3 + $0x284] ss:$16 sps:$4 sm:$0xff]   ;;  %v4365_v16 = vld [vmem:[%s5927_s3 + $0x28c] ss:$16 sps:$4 sm:$0xff]  }
 0x12b   :  { %2787 = vmatpush1.bf16.msra.mxu0 %v4300_v17  ;;  %2869 = vmatpush1.bf16.msra.mxu1 %v4303_v18  ;;  %v4360_v17 = vld [vmem:[%s5927_s3 + $0x280] ss:$16 sps:$4 sm:$0xff]   ;;  %v4363_v18 = vld [vmem:[%s5927_s3 + $0x288] ss:$16 sps:$4 sm:$0xff]  }
 0x12c   :  { %2788 = vmatprep.subr.bf16.mxu0 %v4308_v19  ;;  %2870 = vmatprep.subr.bf16.mxu1 %v4311_v20  ;;  %v4368_v19 = vld [vmem:[%s5927_s3 + $0x2a4] ss:$16 sps:$4 sm:$0xff]   ;;  %v4371_v20 = vld [vmem:[%s5927_s3 + $0x2ac] ss:$16 sps:$4 sm:$0xff]  }
 0x12f   :  { %2789 = vmatpush1.bf16.msra.mxu0 %v4306_v21  ;;  %2871 = vmatpush1.bf16.msra.mxu1 %v4309_v22  ;;  %v4366_v21 = vld [vmem:[%s5927_s3 + $0x2a0] ss:$16 sps:$4 sm:$0xff]   ;;  %v4369_v22 = vld [vmem:[%s5927_s3 + $0x2a8] ss:$16 sps:$4 sm:$0xff]  }
 0x130   :  { %2790 = vmatprep.subr.bf16.mxu0 %v4314_v23  ;;  %2872 = vmatprep.subr.bf16.mxu1 %v4317_v25  ;;  %v4374_v23 = vld [vmem:[%s5927_s3 + $0x2c4] ss:$16 sps:$4 sm:$0xff]   ;;  %v4377_v25 = vld [vmem:[%s5927_s3 + $0x2cc] ss:$16 sps:$4 sm:$0xff]  }
 0x133   :  { %2791 = vmatpush1.bf16.msra.mxu0 %v4312_v24  ;;  %2873 = vmatpush1.bf16.msra.mxu1 %v4315_v27  ;;  %v4372_v24 = vld [vmem:[%s5927_s3 + $0x2c0] ss:$16 sps:$4 sm:$0xff]   ;;  %v4375_v27 = vld [vmem:[%s5927_s3 + $0x2c8] ss:$16 sps:$4 sm:$0xff]  }
 0x134   :  { %2792 = vmatprep.subr.bf16.mxu0 %v4320_v28  ;;  %2874 = vmatprep.subr.bf16.mxu1 %v4323_v29  ;;  %v4380_v28 = vld [vmem:[%s5927_s3 + $0x2e4] ss:$16 sps:$4 sm:$0xff]   ;;  %v4383_v29 = vld [vmem:[%s5927_s3 + $0x2ec] ss:$16 sps:$4 sm:$0xff]  }
 0x137   :  { %2793 = vmatpush1.bf16.msra.mxu0 %v4318_v30  ;;  %2875 = vmatpush1.bf16.msra.mxu1 %v4321_v31  ;;  %v4378_v30 = vld [vmem:[%s5927_s3 + $0x2e0] ss:$16 sps:$4 sm:$0xff]   ;;  %v4381_v31 = vld [vmem:[%s5927_s3 + $0x2e8] ss:$16 sps:$4 sm:$0xff]  }
 0x138   :  { %2794 = vmatprep.subr.bf16.mxu0 %v4326_v32  ;;  %2876 = vmatprep.subr.bf16.mxu1 %v4329_v33  ;;  %v4386_v32 = vld [vmem:[%s5927_s3 + $0x304] ss:$16 sps:$4 sm:$0xff]   ;;  %v4389_v33 = vld [vmem:[%s5927_s3 + $0x30c] ss:$16 sps:$4 sm:$0xff]  }
 0x13b   :  { %2795 = vmatpush1.bf16.msra.mxu0 %v4324_v34  ;;  %2877 = vmatpush1.bf16.msra.mxu1 %v4327_v35  ;;  %v4384_v34 = vld [vmem:[%s5927_s3 + $0x300] ss:$16 sps:$4 sm:$0xff]   ;;  %v4387_v35 = vld [vmem:[%s5927_s3 + $0x308] ss:$16 sps:$4 sm:$0xff]  }
 0x13c   :  { %2796 = vmatprep.subr.bf16.mxu0 %v4332_v26  ;;  %2878 = vmatprep.subr.bf16.mxu1 %v4335_v36  ;;  %v4392_v26 = vld [vmem:[%s5927_s3 + $0x324] ss:$16 sps:$4 sm:$0xff]   ;;  %v4395_v36 = vld [vmem:[%s5927_s3 + $0x32c] ss:$16 sps:$4 sm:$0xff]  }
 0x13f   :  { %2797 = vmatpush1.bf16.msra.mxu0 %v4330_v37  ;;  %2879 = vmatpush1.bf16.msra.mxu1 %v4333_v39  ;;  %v4390_v37 = vld [vmem:[%s5927_s3 + $0x320] ss:$16 sps:$4 sm:$0xff]   ;;  %v4393_v39 = vld [vmem:[%s5927_s3 + $0x328] ss:$16 sps:$4 sm:$0xff]  }
 0x140   :  { %2807 = vmatprep.subr.bf16.mxu0 %v4338_v40  ;;  %2889 = vmatprep.subr.bf16.mxu1 %v4341_v41  ;;  %v4398_v40 = vld [vmem:[%s5927_s3 + $0x344] ss:$16 sps:$4 sm:$0xff]   ;;  %v4401_v41 = vld [vmem:[%s5927_s3 + $0x34c] ss:$16 sps:$4 sm:$0xff]  }
 0x1d5   :  { %v1801_v50 = vpop.f32.mrb[0].mxu0  ;;  %v5591_v51 = vpop.f32.mrb[0].mxu1 }
 0x1d6   :  { %v3811_v52 = vadd.f32 %v1801_v50, %v347_v46  ;;  %v1803_v53 = vpop.f32.mrb[1].mxu0  ;;  %v1967_v54 = vpop.f32.mrb[1].mxu1  ;;  %v4396_v46 = vld [vmem:[%s5927_s3 + $0x340] ss:$16 sps:$4 sm:$0xff]   ;;  %v4407_v50 = vld [vmem:[%s5927_s3 + $0x36c] ss:$16 sps:$4 sm:$0xff]  }
 0x1d7   :  { %v3812_v55 = vadd.f32 %v1803_v53, %v351_v47  ;;  %v1805_v56 = vpop.f32.mrb[2].mxu0  ;;  %v1969_v57 = vpop.f32.mrb[2].mxu1  ;;  %v3814_v58 = vadd.f32 %v1967_v54, %v359_v48  ;;  %v4399_v47 = vld [vmem:[%s5927_s3 + $0x348] ss:$16 sps:$4 sm:$0xff]   ;;  %v4404_v48 = vld [vmem:[%s5927_s3 + $0x364] ss:$16 sps:$4 sm:$0xff]  }
 0x1d8   :  { %v1806_v59 = vpop.f32.mrb[3].mxu0  ;;  %v1970_v60 = vpop.f32.mrb[3].mxu1  ;;  %v1972_v0 = vpack.c.bf16 %v3811_v52, %v3811_v52  ;;  %v4402_v52 = vld [vmem:[%s5927_s3 + $0x360] ss:$16 sps:$4 sm:$0xff]   ;;  %v4405_v53 = vld [vmem:[%s5927_s3 + $0x368] ss:$16 sps:$4 sm:$0xff]  }
 0x1d9   :  { %v1973_v61 = vpack.c.bf16 %v3812_v55, %v3812_v55  ;;  %v1975_v3 = vpack.c.bf16 %v3814_v58, %v3814_v58  ;;  %v4410_v54 = vld [vmem:[%s5927_s3 + $0x384] ss:$16 sps:$4 sm:$0xff]   ;;  %v4413_v55 = vld [vmem:[%s5927_s3 + $0x38c] ss:$16 sps:$4 sm:$0xff]   ;;  %v4408_v56 = vld [vmem:[%s5927_s3 + $0x380] ss:$16 sps:$4 sm:$0xff]  }
 0x1da   :  { %v4411_v57 = vld [vmem:[%s5927_s3 + $0x388] ss:$16 sps:$4 sm:$0xff]   ;;  %v4416_v58 = vld [vmem:[%s5927_s3 + $0x3a4] ss:$16 sps:$4 sm:$0xff]   ;;  %v4419_v59 = vld [vmem:[%s5927_s3 + $0x3ac] ss:$16 sps:$4 sm:$0xff]  }
 0x1db   :  { %2798 = vmatprep.mubr.bf16.mxu0 %v1973_v61  ;;  %2880 = vmatprep.mubr.bf16.mxu1 %v1973_v61  ;;  %v4414_v60 = vld [vmem:[%s5927_s3 + $0x3a0] ss:$16 sps:$4 sm:$0xff]   ;;  %v4417_v61 = vld [vmem:[%s5927_s3 + $0x3a8] ss:$16 sps:$4 sm:$0xff]  }
 0x1dc   :  { %2799 = vmatmul.mubr.bf16.vlgmr.msra.gmra.mrb[4].mxu0 %v1972_v0  ;;  %2881 = vmatmul.mubr.bf16.vlgmr.msra.gmra.mrb[4].mxu1 %v1972_v0  ;;  %v4425_v0 = vld [vmem:[%s5927_s3 + $0x3cc] ss:$16 sps:$4 sm:$0xff]  }
 0x1dd   :  { %2808 = vmatpush1.bf16.msra.mxu0 %v4336_v62  ;;  %2890 = vmatpush1.bf16.msra.mxu1 %v4339_v63  ;;  %v354_v62 = vsub.s32 2, %v4687_v43  ;;  %v4422_v63 = vld [vmem:[%s5927_s3 + $0x3c4] ss:$16 sps:$4 sm:$0xff]  }
 0x1de   :  { %2839 = vmatprep.mubr.bf16.mxu0 %v1975_v3  ;;  %2921 = vmatprep.mubr.bf16.mxu1 %v1975_v3 }
 0x1df   :  { %2809 = vmatprep.subr.bf16.mxu0 %v4344_v1  ;;  %2891 = vmatprep.subr.bf16.mxu1 %v4347_v2  ;;  %v4420_v1 = vld [vmem:[%s5927_s3 + $0x3c0] ss:$16 sps:$4 sm:$0xff]   ;;  %v4423_v2 = vld [vmem:[%s5927_s3 + $0x3c8] ss:$16 sps:$4 sm:$0xff]   ;;  %v355_v3 = vrot.slane %v5578_v42, %v354_v62 }
 0x1e0   :  { %v4429_v42 = vld [vmem:[%s5927_s3 + $0x3e8] ss:$16 sps:$4 sm:$0xff]  }
 0x1e1   :  { %2810 = vmatpush1.bf16.msra.mxu0 %v4342_v4  ;;  %2892 = vmatpush1.bf16.msra.mxu1 %v4345_v5  ;;  %v4428_v4 = vld [vmem:[%s5927_s3 + $0x3e4] ss:$16 sps:$4 sm:$0xff]   ;;  %v4431_v5 = vld [vmem:[%s5927_s3 + $0x3ec] ss:$16 sps:$4 sm:$0xff]  }
 0x1e2   :  { %2811 = vmatprep.subr.bf16.mxu0 %v4350_v6  ;;  %2893 = vmatprep.subr.bf16.mxu1 %v4353_v7  ;;  %v4426_v6 = vld [vmem:[%s5927_s3 + $0x3e0] ss:$16 sps:$4 sm:$0xff]   ;;  %v3813_v7 = vadd.f32 %v5591_v51, %v355_v3 }
 0x1e3   :  { %v4435_v51 = vld [vmem:[%s5929_s5 + $0x80] sm:$0xff]  }
 0x1e5   :  { %2812 = vmatpush1.bf16.msra.mxu0 %v4348_v8  ;;  %2894 = vmatpush1.bf16.msra.mxu1 %v4351_v10  ;;  %v4432_v8 = vld [vmem:[%s5929_s5 + $0x40] sm:$0xff]  }
 0x1e6   :  { %2813 = vmatprep.subr.bf16.mxu0 %v4356_v11  ;;  %2895 = vmatprep.subr.bf16.mxu1 %v4359_v12  ;;  %v4433_v10 = vld [vmem:[%s5929_s5 + $0xc0] sm:$0xff]   ;;  %v1974_v12 = vpack.c.bf16 %v3813_v7, %v3813_v7 }
 0x1e7   :  { %v4434_v11 = vld [vmem:[%s5929_s5] sm:$0xff]  }
 0x1e8   :  { %v3734_v7 = vld [vmem:[%s5930_s6] ss:$0 sm:$0xff]  ;;  %s4517_s6 = smov [#allocation2]  }
 0x1e9   :  { %2814 = vmatpush1.bf16.msra.mxu0 %v4354_v13  ;;  %2896 = vmatpush1.bf16.msra.mxu1 %v4357_v14  ;;  %v4436_v13 = vld [vmem:[%s5929_s5 + $0x48] sm:$0xff]  }
 0x1ea   :  { %2815 = vmatprep.subr.bf16.mxu0 %v4362_v15  ;;  %2897 = vmatprep.subr.bf16.mxu1 %v4365_v16  ;;  %v4437_v14 = vld [vmem:[%s5929_s5 + $0xc8] sm:$0xff]  }
 0x1eb   :  { %v4438_v15 = vld [vmem:[%s5929_s5 + $0x8] sm:$0xff]  }
 0x1ec   :  { %v4439_v16 = vld [vmem:[%s5929_s5 + $0x88] sm:$0xff]  }
 0x1ed   :  { %2816 = vmatpush1.bf16.msra.mxu0 %v4360_v17  ;;  %2898 = vmatpush1.bf16.msra.mxu1 %v4363_v18  ;;  %v4440_v17 = vld [vmem:[%s5929_s5 + $0x50] sm:$0xff]  }
 0x1ee   :  { %2817 = vmatprep.subr.bf16.mxu0 %v4368_v19  ;;  %2899 = vmatprep.subr.bf16.mxu1 %v4371_v20  ;;  %v4441_v18 = vld [vmem:[%s5929_s5 + $0xd0] sm:$0xff]  }
 0x1ef   :  { %v4442_v19 = vld [vmem:[%s5929_s5 + $0x10] sm:$0xff]  }
 0x1f0   :  { %v4443_v20 = vld [vmem:[%s5929_s5 + $0x90] sm:$0xff]  }
 0x1f1   :  { %2818 = vmatpush1.bf16.msra.mxu0 %v4366_v21  ;;  %2900 = vmatpush1.bf16.msra.mxu1 %v4369_v22  ;;  %v4444_v21 = vld [vmem:[%s5929_s5 + $0x58] sm:$0xff]  }
 0x1f2   :  { %2819 = vmatprep.subr.bf16.mxu0 %v4374_v23  ;;  %2901 = vmatprep.subr.bf16.mxu1 %v4377_v25  ;;  %v4445_v22 = vld [vmem:[%s5929_s5 + $0xd8] sm:$0xff]  }
 0x1f3   :  { %v4446_v23 = vld [vmem:[%s5929_s5 + $0x18] sm:$0xff]  }
 0x1f4   :  { %v4447_v25 = vld [vmem:[%s5929_s5 + $0x98] sm:$0xff]  }
 0x1f5   :  { %2820 = vmatpush1.bf16.msra.mxu0 %v4372_v24  ;;  %2902 = vmatpush1.bf16.msra.mxu1 %v4375_v27  ;;  %v4448_v24 = vld [vmem:[%s5929_s5 + $0x60] sm:$0xff]  }
 0x1f6   :  { %2821 = vmatprep.subr.bf16.mxu0 %v4380_v28  ;;  %2903 = vmatprep.subr.bf16.mxu1 %v4383_v29  ;;  %v4449_v27 = vld [vmem:[%s5929_s5 + $0xe0] sm:$0xff]  }
 0x1f7   :  { %v4450_v28 = vld [vmem:[%s5929_s5 + $0x20] sm:$0xff]  }
 0x1f8   :  { %v4451_v29 = vld [vmem:[%s5929_s5 + $0xa0] sm:$0xff]  }
 0x1f9   :  { %2822 = vmatpush1.bf16.msra.mxu0 %v4378_v30  ;;  %2904 = vmatpush1.bf16.msra.mxu1 %v4381_v31  ;;  %v4452_v30 = vld [vmem:[%s5929_s5 + $0x68] sm:$0xff]  }
 0x1fa   :  { %2823 = vmatprep.subr.bf16.mxu0 %v4386_v32  ;;  %2905 = vmatprep.subr.bf16.mxu1 %v4389_v33  ;;  %v4453_v31 = vld [vmem:[%s5929_s5 + $0xe8] sm:$0xff]  }
 0x1fb   :  { %v4454_v32 = vld [vmem:[%s5929_s5 + $0x28] sm:$0xff]  }
 0x1fc   :  { %v4455_v33 = vld [vmem:[%s5929_s5 + $0xa8] sm:$0xff]  }
 0x1fd   :  { %2824 = vmatpush1.bf16.msra.mxu0 %v4384_v34  ;;  %2906 = vmatpush1.bf16.msra.mxu1 %v4387_v35  ;;  %v4456_v34 = vld [vmem:[%s5929_s5 + $0x70] sm:$0xff]  }
 0x1fe   :  { %2825 = vmatprep.subr.bf16.mxu0 %v4392_v26  ;;  %2907 = vmatprep.subr.bf16.mxu1 %v4395_v36  ;;  %v4457_v35 = vld [vmem:[%s5929_s5 + $0xf0] sm:$0xff]  }
 0x1ff   :  { %v4458_v26 = vld [vmem:[%s5929_s5 + $0x30] sm:$0xff]  }
 0x200   :  { %v4459_v36 = vld [vmem:[%s5929_s5 + $0xb0] sm:$0xff]  }
 0x201   :  { %2826 = vmatpush1.bf16.msra.mxu0 %v4390_v37  ;;  %2908 = vmatpush1.bf16.msra.mxu1 %v4393_v39  ;;  %v4460_v37 = vld [vmem:[%s5929_s5 + $0x78] sm:$0xff]  }
 0x202   :  { %2827 = vmatprep.subr.bf16.mxu0 %v4398_v40  ;;  %2909 = vmatprep.subr.bf16.mxu1 %v4401_v41  ;;  %v4461_v39 = vld [vmem:[%s5929_s5 + $0xf8] sm:$0xff]  }
 0x203   :  { %v4462_v40 = vld [vmem:[%s5929_s5 + $0x38] sm:$0xff]  }
 0x204   :  { %v4463_v41 = vld [vmem:[%s5929_s5 + $0xb8] sm:$0xff]  }
 0x205   :  { %2828 = vmatpush1.bf16.msra.mxu0 %v4396_v46  ;;  %2910 = vmatpush1.bf16.msra.mxu1 %v4399_v47  ;;  %v2104_v46 = vld [vmem:[%s5928_s4] sm:$0xf] }
 0x206   :  { %2829 = vmatprep.subr.bf16.mxu0 %v4404_v48  ;;  %2911 = vmatprep.subr.bf16.mxu1 %v4407_v50  ;;  %v2109_v47 = vrot.slane %v2104_v46, %v346_v9  ;;  %v2117_v48 = vrot.slane %v2104_v46, %v354_v62  ;;  %v2113_v50 = vrot.slane %v2104_v46, %v350_v44 }
 0x209   :  { %2830 = vmatpush1.bf16.msra.mxu0 %v4402_v52  ;;  %2912 = vmatpush1.bf16.msra.mxu1 %v4405_v53  ;;  %v2121_v52 = vrot.slane %v2104_v46, %v358_v45 }
 0x20a   :  { %2831 = vmatprep.subr.bf16.mxu0 %v4410_v54  ;;  %2913 = vmatprep.subr.bf16.mxu1 %v4413_v55 }
 0x20d   :  { %2832 = vmatpush1.bf16.msra.mxu0 %v4408_v56  ;;  %2914 = vmatpush1.bf16.msra.mxu1 %v4411_v57 }
 0x20e   :  { %2833 = vmatprep.subr.bf16.mxu0 %v4416_v58  ;;  %2915 = vmatprep.subr.bf16.mxu1 %v4419_v59 }
 0x211   :  { %2834 = vmatpush1.bf16.msra.mxu0 %v4414_v60  ;;  %2916 = vmatpush1.bf16.msra.mxu1 %v4417_v61 }
 0x212   :  { %2835 = vmatprep.subr.bf16.mxu0 %v4422_v63  ;;  %2917 = vmatprep.subr.bf16.mxu1 %v4425_v0 }
 0x215   :  { %2836 = vmatpush1.bf16.msra.mxu0 %v4420_v1  ;;  %2918 = vmatpush1.bf16.msra.mxu1 %v4423_v2 }
 0x216   :  { %2837 = vmatprep.subr.bf16.mxu0 %v4428_v4  ;;  %2919 = vmatprep.subr.bf16.mxu1 %v4431_v5 }
 0x219   :  { %2838 = vmatpush1.bf16.msra.mxu0 %v4426_v6  ;;  %2920 = vmatpush1.bf16.msra.mxu1 %v4429_v42 }
 0x21a   :  { %3767 = vmatprep.subr.bf16.mxu0 %v4432_v8  ;;  %3789 = vmatprep.subr.bf16.mxu1 %v4433_v10 }
 0x21c   :  { %2840 = vmatmul.mubr.bf16.vlgmr.msra.gmra.mrb[4].mxu0 %v1974_v12  ;;  %2922 = vmatmul.mubr.bf16.vlgmr.msra.gmra.mrb[4].mxu1 %v1974_v12 }
 0x21d   :  { %3768 = vmatpush3.bf16.msra.mxu0 %v4434_v11  ;;  %3790 = vmatpush3.bf16.msra.mxu1 %v4435_v51  ;;  %v3302_v11 = vand.u32 127, %v40_v38 }
 0x21e   :  { %3769 = vmatprep.subr.bf16.mxu0 %v4436_v13  ;;  %3791 = vmatprep.subr.bf16.mxu1 %v4437_v14 }
 0x21f   :  { %vm3303_vm0 = vcmp.lt.s32.totalorder %v3302_v11, 4 }
 0x221   :  { %3770 = vmatpush3.bf16.msra.mxu0 %v4438_v15  ;;  %3792 = vmatpush3.bf16.msra.mxu1 %v4439_v16 }
 0x222   :  { %3771 = vmatprep.subr.bf16.mxu0 %v4440_v17  ;;  %3793 = vmatprep.subr.bf16.mxu1 %v4441_v18 }
 0x225   :  { %3772 = vmatpush3.bf16.msra.mxu0 %v4442_v19  ;;  %3794 = vmatpush3.bf16.msra.mxu1 %v4443_v20 }
 0x226   :  { %3773 = vmatprep.subr.bf16.mxu0 %v4444_v21  ;;  %3795 = vmatprep.subr.bf16.mxu1 %v4445_v22 }
 0x229   :  { %3774 = vmatpush3.bf16.msra.mxu0 %v4446_v23  ;;  %3796 = vmatpush3.bf16.msra.mxu1 %v4447_v25 }
 0x22a   :  { %3775 = vmatprep.subr.bf16.mxu0 %v4448_v24  ;;  %3797 = vmatprep.subr.bf16.mxu1 %v4449_v27 }
 0x22d   :  { %3776 = vmatpush3.bf16.msra.mxu0 %v4450_v28  ;;  %3798 = vmatpush3.bf16.msra.mxu1 %v4451_v29 }
 0x22e   :  { %3777 = vmatprep.subr.bf16.mxu0 %v4452_v30  ;;  %3799 = vmatprep.subr.bf16.mxu1 %v4453_v31 }
 0x231   :  { %3778 = vmatpush3.bf16.msra.mxu0 %v4454_v32  ;;  %3800 = vmatpush3.bf16.msra.mxu1 %v4455_v33 }
 0x232   :  { %3779 = vmatprep.subr.bf16.mxu0 %v4456_v34  ;;  %3801 = vmatprep.subr.bf16.mxu1 %v4457_v35 }
 0x235   :  { %3780 = vmatpush3.bf16.msra.mxu0 %v4458_v26  ;;  %3802 = vmatpush3.bf16.msra.mxu1 %v4459_v36 }
 0x236   :  { %3781 = vmatprep.subr.bf16.mxu0 %v4460_v37  ;;  %3803 = vmatprep.subr.bf16.mxu1 %v4461_v39 }
 0x239   :  { %3782 = vmatpush3.bf16.msra.mxu0 %v4462_v40  ;;  %3804 = vmatpush3.bf16.msra.mxu1 %v4463_v41 }
 0x2ef   :  { %v2841_v53 = vpop.f32.mrb[4].mxu0  ;;  %v2923_v54 = vpop.f32.mrb[4].mxu1 }
 0x2f0   :  { %v3815_v55 = vadd.f32 %v2841_v53, %v2109_v47  ;;  %v3817_v56 = vadd.f32 %v2923_v54, %v2117_v48  ;;  %v2843_v57 = vpop.f32.mrb[5].mxu0  ;;  %v2925_v58 = vpop.f32.mrb[5].mxu1 }
 0x2f1   :  { %v3816_v59 = vadd.f32 %v2843_v57, %v2113_v50  ;;  %v3818_v60 = vadd.f32 %v2925_v58, %v2121_v52  ;;  %v2845_v61 = vpop.f32.mrb[6].mxu0  ;;  %v2927_v63 = vpop.f32.mrb[6].mxu1 }
 0x2f2   :  { %v2846_v9 = vpop.f32.mrb[7].mxu0  ;;  %v2928_v0 = vpop.f32.mrb[7].mxu1  ;;  %v2930_v44 = vpack.c.bf16 %v3815_v55, %v3815_v55  ;;  %v2932_v4 = vpack.c.bf16 %v3817_v56, %v3817_v56 }
 0x2f3   :  { %v2931_v1 = vpack.c.bf16 %v3816_v59, %v3816_v59  ;;  %v3281_v62 = vcombine.low %v3815_v55, %v3816_v59  ;;  %v2933_v2 = vpack.c.bf16 %v3818_v60, %v3818_v60  ;;  %v3282_v3 = vcombine.low %v3817_v56, %v3818_v60 }
 0x2f5   :  { %v3289_v43 = vrot.slane %v3281_v62, %v4705_v49  ;;  %v3296_v45 = vrot.slane %v3282_v3, %v4705_v49  ;;  %3229 = vmatprep.mubr.bf16.mxu0 %v2931_v1  ;;  %3269 = vmatprep.mubr.bf16.mxu1 %v2933_v2 }
 0x2f6   :  { %3230 = vmatmul.mubr.bf16.vlgmr.msra.gmra.mrb[8].mxu0 %v2930_v44  ;;  %3270 = vmatmul.mubr.bf16.vlgmr.msra.gmra.mrb[8].mxu1 %v2932_v4 }
 0x2f7   :  { %v3297_v5 = vcombine.low %v3289_v43, %v3296_v45 }
 0x2f9   :  { %3299 = vst [vmem:[%s5933_s9] sm:$0xff] %v3297_v5  ;;  %s3324_s9 = sshll.u32 %s4517_s6, 4  ;;  %s3325_s9 = int_to_ptr.vmem [resolvable:$true] %s3324_s9 }
 0x2fa   :  { %s4468_s24 = scalar_lea.vmem %s3325_s9, 32  ;;  %p4473_p1 = scmp.lt.s32.totalorder %s3325_s9, %s3325_s9 }
 0x2fb   :  { %p4469_p0 = scmp.ne.s32.totalorder %s3325_s9, %s4468_s24  ;;  %p4474_p2 = scmp.lt.s32.totalorder %s4468_s24, %s4468_s24 }
 0x2fd   :  { %p4475_p3 = por %p4474_p2, %p4473_p1 }
 0x2ff   :  { %p4476_p4 = pnand %p4475_p3, %p4469_p0 }
 0x3c9   :  { %v3783_v6 = vpop.f32.mrb[8].mxu0  ;;  %v3805_v42 = vpop.f32.mrb[8].mxu1 }
 0x3ca   :  { %v3784_v8 = vpop.f32.mrb[9].mxu0  ;;  %v3806_v10 = vpop.f32.mrb[9].mxu1 }
 0x3cb   :  { %v3785_v49 = vadd.f32 %v3784_v8, %v3783_v6  ;;  %v3807_v51 = vadd.f32 %v3806_v10, %v3805_v42  ;;  %v3786_v12 = vpop.f32.mrb[10].mxu0  ;;  %v3808_v13 = vpop.f32.mrb[10].mxu1 }
 0x3cc   :  { %v3787_v14 = vpop.f32.mrb[11].mxu0  ;;  %v3809_v15 = vpop.f32.mrb[11].mxu1 }
 0x3cd   :  { %v3232_v16 = vadd.f32 %v3785_v49, %v3734_v7 }
 0x3cf   :  { %v3272_v17 = vadd.f32 %v3807_v51, %v3232_v16 }
 0x3d1   :  { %3300 = vst [vmem:[#allocation2] sm:$0x3] %v3272_v17  ;;  %v3304_v18 = vsel %vm3303_vm0, %v3272_v17, -1e+30 }
 0x3d2   :  { %v3306_v19 = vsel %vm3305_vm1, %v3304_v18, -inf }
 0x3d3   :  { %3307 = vmax.xlane.f32.xlu0 %v3306_v19 }
 0x460   :  { %v3308_v20 = vpop.xlane.xlu0 %3307 }
 0x461   :  { %v3309_v21 = vsub.f32 %v3304_v18, %v3308_v20 }
 0x463   :  { %v3310_v22 = vmul.f32 1.442695, %v3309_v21 }
 0x465   :  { %4464 = vpow2.f32 %v3310_v22 }
 0x46f   :  { %v4465_v23 = vpop.eup %4464 }
 0x470   :  { %v3312_v38 = vsel %vm3305_vm1, %v4465_v23, 0.0 }
 0x471   :  { %3313 = vadd.xlane.f32.xlu0 %v3312_v38 }
 0x472   :  { %4479 = shalt.err (!%p4476_p4)
}
 0x473   :  { %s4480_s2 = scalar_lea.hbm %s5931_s7, 32 }
 0x474   :  { %p4481_p5 = scmp.ne.s32.totalorder %s5931_s7, %s4480_s2  ;;  %p4484_p6 = scmp.lt.u32.totalorder %s4480_s2, %s5931_s7 }
 0x476   :  { %p4486_p7 = pnand %p4484_p6, %p4481_p5 }
 0x478   :  { %4489 = shalt.err (!%p4486_p7)
}
 0x479   :  { %3327 = dma.vmem_to_hbm [thread:$0]  %s3325_s9, 32, %s5931_s7, [#allocation3]  }
 0x47a   :  { %s4518_s11 = smov [#allocation4]  }
 0x47b   :  { %s3334_s12 = sshll.u32 %s4518_s11, 4  ;;  %s3335_s12 = int_to_ptr.vmem [resolvable:$true] %s3334_s12 }
 0x47c   :  { %s4490_s13 = scalar_lea.vmem %s3335_s12, 32  ;;  %p4495_p9 = scmp.lt.s32.totalorder %s3335_s12, %s3335_s12 }
 0x47d   :  { %p4491_p8 = scmp.ne.s32.totalorder %s3335_s12, %s4490_s13  ;;  %p4496_p10 = scmp.lt.s32.totalorder %s4490_s13, %s4490_s13 }
 0x47f   :  { %p4497_p11 = por %p4496_p10, %p4495_p9 }
 0x481   :  { %p4498_p12 = pnand %p4497_p11, %p4491_p8 }
 0x4fe   :  { %v3314_v25 = vpop.xlane.xlu0 %3313 }
 0x4ff   :  { %4466 = vrcp.f32 %v3314_v25 }
 0x509   :  { %v4467_v24 = vpop.eup %4466 }
 0x50a   :  { %v3316_v27 = vmul.f32 %v4467_v24, %v4465_v23 }
 0x50c   :  { %3317 = vst [vmem:[#allocation4] sm:$0x3] %v3316_v27 }
 0x50d   :  { %4501 = shalt.err (!%p4498_p12)
}
 0x50e   :  { %s4502_s14 = scalar_lea.hbm %s5932_s8, 32 }
 0x50f   :  { %p4503_p13 = scmp.ne.s32.totalorder %s5932_s8, %s4502_s14  ;;  %p4506_p0 = scmp.lt.u32.totalorder %s4502_s14, %s5932_s8 }
 0x511   :  { %p4508_p1 = pnand %p4506_p0, %p4503_p13 }
 0x513   :  { %4511 = shalt.err (!%p4508_p1)
}
 0x514   :  { %3337 = dma.vmem_to_hbm [thread:$0]  %s3335_s12, 32, %s5932_s8, [#allocation5]  }
 0x515   :  { %4512 = dma.done.wait [#allocation3], 32  }
 0x516   :  { %4513 = vsyncadd [#allocation3], 4294967264 }
 0x517   :  { %4514 = dma.done.wait [#allocation5], 32  }
 0x518   :  { %4515 = vsyncadd [#allocation5], 4294967264 }
 0x519   :  { %3348 = vsyncpa [#allocation3], 1 }
 0x51a   :  { %3349 = vsyncpa [#allocation5], 1 }

// kernel: _lambda_.16
= control target key start
LH: loop header
LB: loop body
LE: loop exit
PB: predicated region body
PF: predicated region fallthrough
CT: control target
= control target key end

     0   :  { %s3262_s18 = smov 0   ;;  %s4212_s0 = inlined_call_operand.vmem [shape: bf16[2,24,512], index: 0, kind: input, shape index: {}]   ;;  %s4213_s1 = inlined_call_operand.vmem [shape: bf16[1024,512], index: 1, kind: input, shape index: {}]   ;;  %s4214_s2 = inlined_call_operand.vmem [shape: f32[1,512], index: 2, kind: input, shape index: {}]   ;;  %s4215_s3 = inlined_call_operand.vmem [shape: f32[1,512], index: 3, kind: input, shape index: {}]   ;;  %s4216_s4 = inlined_call_operand.vmem [shape: f32[1,512], index: 4, kind: input, shape index: {}]   ;;  %s4217_s5 = inlined_call_operand.vmem [shape: bf16[2,21,512], index: 5, kind: output, shape index: {}]  }
   0x1 LB: > { %s2511_s19 = sadd.s32 4294967295, %s3230_s18   ;;  %p2515_p0 = scmp.ge.s32.totalorder %s3230_s18, 1  ;;  %s3230_s18 = sphi %s3262_s18, %s15_s18  }
   0x2   : > { %p187_p1 = scmp.lt.s32.totalorder %s3230_s18, 3 }
   0x4   : > { %p188_p2 = pnand %p2515_p0, %p187_p1 }
   0x5   : > { %v2829_v0 = vld [vmem:[%s4213_s1 + $0x404] ss:$16 sps:$4 sm:$0xff] (!%p188_p2)   ;;  %v2831_v1 = vld [vmem:[%s4213_s1 + $0x40c] ss:$16 sps:$4 sm:$0xff] (!%p188_p2)   ;;  %v2833_v2 = vld [vmem:[%s4213_s1 + $0x400] ss:$16 sps:$4 sm:$0xff] (!%p188_p2)  }
   0x6   : > { %191 = sbr.rel (%p188_p2) target bundleno = 498 (0x1f2), region = 40  ;;  %1230 = vmatprep.subr.bf16.mxu0 (!%p188_p2), %v2829_v0  ;;  %v2834_v3 = vld [vmem:[%s4213_s1 + $0x408] ss:$16 sps:$4 sm:$0xff] (!%p188_p2)   ;;  %1332 = vmatprep.subr.bf16.mxu1 (!%p188_p2), %v2831_v1  ;;  %v2835_v4 = vld [vmem:[%s4213_s1 + $0x424] ss:$16 sps:$4 sm:$0xff] (!%p188_p2)   ;;  %p215_p3 = scmp.lt.s32.totalorder (!%p188_p2), %s2511_s19, 1 }
   0x7   : > { %1231 = vmatpush1.bf16.msra.mxu0 (!%p188_p2), %v2833_v2  ;;  %1333 = vmatpush1.bf16.msra.mxu1 (!%p188_p2), %v2834_v3  ;;  %v2837_v5 = vld [vmem:[%s4213_s1 + $0x42c] ss:$16 sps:$4 sm:$0xff] (!%p188_p2)   ;;  %v2839_v6 = vld [vmem:[%s4213_s1 + $0x420] ss:$16 sps:$4 sm:$0xff] (!%p188_p2)   ;;  %v2840_v7 = vld [vmem:[%s4213_s1 + $0x428] ss:$16 sps:$4 sm:$0xff] (!%p188_p2)  }
   0x8   : > { %1232 = vmatprep.subr.bf16.mxu0 (!%p188_p2), %v2835_v4  ;;  %1334 = vmatprep.subr.bf16.mxu1 (!%p188_p2), %v2837_v5  ;;  %v2841_v8 = vld [vmem:[%s4213_s1 + $0x444] ss:$16 sps:$4 sm:$0xff] (!%p188_p2)   ;;  %v2843_v9 = vld [vmem:[%s4213_s1 + $0x44c] ss:$16 sps:$4 sm:$0xff] (!%p188_p2)   ;;  %v2845_v10 = vld [vmem:[%s4213_s1 + $0x440] ss:$16 sps:$4 sm:$0xff] (!%p188_p2)  }
   0x9   : > { %v2846_v11 = vld [vmem:[%s4213_s1 + $0x448] ss:$16 sps:$4 sm:$0xff] (!%p188_p2)   ;;  %v2847_v12 = vld [vmem:[%s4213_s1 + $0x464] ss:$16 sps:$4 sm:$0xff] (!%p188_p2)   ;;  %v2849_v13 = vld [vmem:[%s4213_s1 + $0x46c] ss:$16 sps:$4 sm:$0xff] (!%p188_p2)  }
   0xa   : > { %v2851_v14 = vld [vmem:[%s4213_s1 + $0x460] ss:$16 sps:$4 sm:$0xff] (!%p188_p2)   ;;  %v2852_v15 = vld [vmem:[%s4213_s1 + $0x468] ss:$16 sps:$4 sm:$0xff] (!%p188_p2)   ;;  %v2853_v16 = vld [vmem:[%s4213_s1 + $0x484] ss:$16 sps:$4 sm:$0xff] (!%p188_p2)  }
   0xb   : > { %1233 = vmatpush1.bf16.msra.mxu0 (!%p188_p2), %v2839_v6  ;;  %1335 = vmatpush1.bf16.msra.mxu1 (!%p188_p2), %v2840_v7  ;;  %v2855_v17 = vld [vmem:[%s4213_s1 + $0x48c] ss:$16 sps:$4 sm:$0xff] (!%p188_p2)   ;;  %v2857_v18 = vld [vmem:[%s4213_s1 + $0x480] ss:$16 sps:$4 sm:$0xff] (!%p188_p2)   ;;  %v2858_v19 = vld [vmem:[%s4213_s1 + $0x488] ss:$16 sps:$4 sm:$0xff] (!%p188_p2)  }
   0xc   : > { %1234 = vmatprep.subr.bf16.mxu0 (!%p188_p2), %v2841_v8  ;;  %1336 = vmatprep.subr.bf16.mxu1 (!%p188_p2), %v2843_v9  ;;  %v2859_v20 = vld [vmem:[%s4213_s1 + $0x4a4] ss:$16 sps:$4 sm:$0xff] (!%p188_p2)   ;;  %v2861_v21 = vld [vmem:[%s4213_s1 + $0x4ac] ss:$16 sps:$4 sm:$0xff] (!%p188_p2)   ;;  %v2863_v22 = vld [vmem:[%s4213_s1 + $0x4a0] ss:$16 sps:$4 sm:$0xff] (!%p188_p2)  }
   0xd   : > { %v2864_v23 = vld [vmem:[%s4213_s1 + $0x4a8] ss:$16 sps:$4 sm:$0xff]   ;;  %v2865_v24 = vld [vmem:[%s4213_s1 + $0x4c4] ss:$16 sps:$4 sm:$0xff]   ;;  %v2867_v25 = vld [vmem:[%s4213_s1 + $0x4cc] ss:$16 sps:$4 sm:$0xff]  }
   0xe   : > { %v2869_v26 = vld [vmem:[%s4213_s1 + $0x4c0] ss:$16 sps:$4 sm:$0xff]   ;;  %v2870_v27 = vld [vmem:[%s4213_s1 + $0x4c8] ss:$16 sps:$4 sm:$0xff]   ;;  %v2871_v28 = vld [vmem:[%s4213_s1 + $0x4e4] ss:$16 sps:$4 sm:$0xff]  }
   0xf   : > { %1235 = vmatpush1.bf16.msra.mxu0 %v2845_v10  ;;  %1337 = vmatpush1.bf16.msra.mxu1 %v2846_v11  ;;  %v2873_v29 = vld [vmem:[%s4213_s1 + $0x4ec] ss:$16 sps:$4 sm:$0xff]   ;;  %v2875_v30 = vld [vmem:[%s4213_s1 + $0x4e0] ss:$16 sps:$4 sm:$0xff]   ;;  %v2876_v31 = vld [vmem:[%s4213_s1 + $0x4e8] ss:$16 sps:$4 sm:$0xff]  }
  0x10   : > { %1236 = vmatprep.subr.bf16.mxu0 %v2847_v12  ;;  %1338 = vmatprep.subr.bf16.mxu1 %v2849_v13  ;;  %v2877_v32 = vld [vmem:[%s4213_s1 + $0x504] ss:$16 sps:$4 sm:$0xff]   ;;  %v2879_v33 = vld [vmem:[%s4213_s1 + $0x50c] ss:$16 sps:$4 sm:$0xff]   ;;  %v2881_v34 = vld [vmem:[%s4213_s1 + $0x500] ss:$16 sps:$4 sm:$0xff]  }
  0x11   : > { %v2882_v35 = vld [vmem:[%s4213_s1 + $0x508] ss:$16 sps:$4 sm:$0xff]   ;;  %v2883_v36 = vld [vmem:[%s4213_s1 + $0x524] ss:$16 sps:$4 sm:$0xff]   ;;  %s4219_s19 = smov (!%p215_p3, %s2511_s19), 1  ;;  %vm2444_vm1 = vcmask 1042432  }
  0x12   : > { %v2885_v37 = vld [vmem:[%s4213_s1 + $0x52c] ss:$16 sps:$4 sm:$0xff]   ;;  %v2887_v38 = vld [vmem:[%s4213_s1 + $0x520] ss:$16 sps:$4 sm:$0xff]   ;;  %v2888_v39 = vld [vmem:[%s4213_s1 + $0x528] ss:$16 sps:$4 sm:$0xff]  }
  0x13   : > { %1237 = vmatpush1.bf16.msra.mxu0 %v2851_v14  ;;  %1339 = vmatpush1.bf16.msra.mxu1 %v2852_v15  ;;  %v2889_v40 = vld [vmem:[%s4213_s1 + $0x544] ss:$16 sps:$4 sm:$0xff]   ;;  %s2820_s8 = smul.u32 48, %s4219_s19  ;;  %v2891_v41 = vld [vmem:[%s4213_s1 + $0x54c] ss:$16 sps:$4 sm:$0xff]   ;;  %vm2447_vm3 = vcmask 1046532  }
  0x14   : > { %1238 = vmatprep.subr.bf16.mxu0 %v2853_v16  ;;  %1340 = vmatprep.subr.bf16.mxu1 %v2855_v17  ;;  %v2893_v42 = vld [vmem:[%s4213_s1 + $0x540] ss:$16 sps:$4 sm:$0xff]   ;;  %v2894_v43 = vld [vmem:[%s4213_s1 + $0x548] ss:$16 sps:$4 sm:$0xff]   ;;  %v2895_v44 = vld [vmem:[%s4213_s1 + $0x564] ss:$16 sps:$4 sm:$0xff]  }
  0x15   : > { %s3417_s21 = scalar_lea.vmem %s4212_s0, %s2820_s8  ;;  %v2897_v45 = vld [vmem:[%s4213_s1 + $0x56c] ss:$16 sps:$4 sm:$0xff]   ;;  %v2899_v46 = vld [vmem:[%s4213_s1 + $0x560] ss:$16 sps:$4 sm:$0xff]   ;;  %v2900_v49 = vld [vmem:[%s4213_s1 + $0x568] ss:$16 sps:$4 sm:$0xff]   ;;  %s4176_s26 = scalar_lea.vmem %s4217_s5, %s2820_s8 }
  0x16   : > { %v229_v47 = vld [vmem:[%s3417_s21 + $0x20] sm:$0xff]  ;;  %v2903_v52 = vld [vmem:[%s4213_s1 + $0x58c] ss:$16 sps:$4 sm:$0xff]   ;;  %v2906_v58 = vld [vmem:[%s4213_s1 + $0x588] ss:$16 sps:$4 sm:$0xff]  }
  0x17   : > { %1239 = vmatpush1.bf16.msra.mxu0 %v2857_v18  ;;  %1341 = vmatpush1.bf16.msra.mxu1 %v2858_v19  ;;  %v3427_v48 = vld [vmem:[%s3417_s21 + $0x4] ss:$16 sps:$4 sm:$0xff]   ;;  %v3432_v50 = vcombine.high %v229_v47, %v229_v47  ;;  %v2905_v57 = vld [vmem:[%s4213_s1 + $0x580] ss:$16 sps:$4 sm:$0xff]   ;;  %v3450_v61 = vcombine.low %v229_v47, %v229_v47  ;;  %v2909_v2 = vld [vmem:[%s4213_s1 + $0x5ac] ss:$16 sps:$4 sm:$0xff]  }
  0x18   : > { %1240 = vmatprep.subr.bf16.mxu0 %v2859_v20  ;;  %1342 = vmatprep.subr.bf16.mxu1 %v2861_v21  ;;  %v2901_v51 = vld [vmem:[%s4213_s1 + $0x584] ss:$16 sps:$4 sm:$0xff]   ;;  %v532_v53 = vshrl.u32 %v3427_v48, 16  ;;  %v535_v54 = vshll.u32 %v3427_v48, 16  ;;  %v2934_v1 = vld [vmem:[%s3417_s21] ss:$16 sps:$4 sm:$0xff]  }
  0x19   : > { %v540_v55 = vshrl.u32 %v3432_v50, 16  ;;  %v543_v56 = vshll.u32 %v3432_v50, 16  ;;  %v2907_v62 = vld [vmem:[%s4213_s1 + $0x5a4] ss:$16 sps:$4 sm:$0xff]   ;;  %vm513_vm0 = vsmask.f32 6400 }
  0x1a   : > { %v534_v59 = vrot.slane %v532_v53, 1  ;;  %v537_v60 = vrot.slane %v535_v54, 2  ;;  %v2911_v5 = vld [vmem:[%s4213_s1 + $0x5a0] ss:$16 sps:$4 sm:$0xff]   ;;  %v2912_v6 = vld [vmem:[%s4213_s1 + $0x5a8] ss:$16 sps:$4 sm:$0xff]   ;;  %vm2448_vm5 = vmand %vm2447_vm3, %vm513_vm0 }
  0x1b   : > { %1241 = vmatpush1.bf16.msra.mxu0 %v2863_v22  ;;  %1343 = vmatpush1.bf16.msra.mxu1 %v2864_v23  ;;  %v542_v63 = vrot.slane %v540_v55, 1  ;;  %v545_v0 = vrot.slane %v543_v56, 2  ;;  %v523_v7 = vshrl.u32 %v3450_v61, 16  ;;  %v515_v9 = vshrl.u32 %v2934_v1, 16  ;;  %v2913_v12 = vld [vmem:[%s4213_s1 + $0x5c4] ss:$16 sps:$4 sm:$0xff]  }
  0x1c   : > { %1242 = vmatprep.subr.bf16.mxu0 %v2865_v24  ;;  %1344 = vmatprep.subr.bf16.mxu1 %v2867_v25  ;;  %v538_v3 = vor.u32 %v537_v60, %v534_v59  ;;  %v518_v10 = vshll.u32 %v2934_v1, 16  ;;  %v526_v11 = vshll.u32 %v3450_v61, 16  ;;  %v2915_v13 = vld [vmem:[%s4213_s1 + $0x5cc] ss:$16 sps:$4 sm:$0xff]   ;;  %v2917_v14 = vld [vmem:[%s4213_s1 + $0x5c0] ss:$16 sps:$4 sm:$0xff]  }
  0x1d   : > { %v546_v4 = vor.u32 %v545_v0, %v542_v63  ;;  %v2918_v15 = vld [vmem:[%s4213_s1 + $0x5c8] ss:$16 sps:$4 sm:$0xff]   ;;  %v2919_v16 = vld [vmem:[%s4213_s1 + $0x5e4] ss:$16 sps:$4 sm:$0xff]   ;;  %v517_v17 = vrot.slane %v515_v9, 1  ;;  %v525_v19 = vrot.slane %v523_v7, 1 }
  0x1e   : > { %v520_v18 = vrot.slane %v518_v10, 2  ;;  %v528_v20 = vrot.slane %v526_v11, 2  ;;  %v2921_v21 = vld [vmem:[%s4213_s1 + $0x5ec] ss:$16 sps:$4 sm:$0xff]   ;;  %v2923_v22 = vld [vmem:[%s4213_s1 + $0x5e0] ss:$16 sps:$4 sm:$0xff]  }
  0x1f   : > { %1243 = vmatpush1.bf16.msra.mxu0 %v2869_v26  ;;  %1345 = vmatpush1.bf16.msra.mxu1 %v2870_v27  ;;  %v547_v8 = vsel %vm513_vm0, %v538_v3, %v546_v4  ;;  %v2924_v23 = vld [vmem:[%s4213_s1 + $0x5e8] ss:$16 sps:$4 sm:$0xff]   ;;  %v2930_v24 = vld [vmem:[%s4213_s1 + $0x604] ss:$16 sps:$4 sm:$0xff]   ;;  %v2933_v27 = vld [vmem:[%s4213_s1 + $0x60c] ss:$16 sps:$4 sm:$0xff]  }
  0x20   : > { %1244 = vmatprep.subr.bf16.mxu0 %v2871_v28  ;;  %1346 = vmatprep.subr.bf16.mxu1 %v2873_v29  ;;  %v521_v25 = vor.u32 %v520_v18, %v517_v17  ;;  %v529_v26 = vor.u32 %v528_v20, %v525_v19  ;;  %v2928_v28 = vld [vmem:[%s4213_s1 + $0x600] ss:$16 sps:$4 sm:$0xff]   ;;  %v2931_v29 = vld [vmem:[%s4213_s1 + $0x608] ss:$16 sps:$4 sm:$0xff]   ;;  %v2962_v47 = vld [vmem:[%s4213_s1 + $0x6a4] ss:$16 sps:$4 sm:$0xff]  }
  0x21   : > { %1262 = vmatprep.mubr.bf16.mxu0 %v547_v8  ;;  %1364 = vmatprep.mubr.bf16.mxu1 %v547_v8  ;;  %v2968_v53 = vld [vmem:[%s4213_s1 + $0x6c4] ss:$16 sps:$4 sm:$0xff]   ;;  %v2971_v54 = vld [vmem:[%s4213_s1 + $0x6cc] ss:$16 sps:$4 sm:$0xff]   ;;  %v2966_v55 = vld [vmem:[%s4213_s1 + $0x6c0] ss:$16 sps:$4 sm:$0xff]  }
  0x22   : > { %v2969_v56 = vld [vmem:[%s4213_s1 + $0x6c8] ss:$16 sps:$4 sm:$0xff]   ;;  %v3585_v60 = vld [vmem:[%s3417_s21 + $0xc] ss:$16 sps:$4 sm:$0xff]   ;;  %v2972_v63 = vld [vmem:[%s4213_s1 + $0x6e0] ss:$16 sps:$4 sm:$0xff]  }
  0x23   : > { %1245 = vmatpush1.bf16.msra.mxu0 %v2875_v30  ;;  %1347 = vmatpush1.bf16.msra.mxu1 %v2876_v31  ;;  %v530_v30 = vsel %vm513_vm0, %v521_v25, %v529_v26  ;;  %v2938_v31 = vld [vmem:[%s4213_s1 + $0x624] ss:$16 sps:$4 sm:$0xff]   ;;  %v230_v59 = vld [vmem:[%s3417_s21 + $0x28] sm:$0xff]  ;;  %v566_v1 = vshrl.u32 %v3585_v60, 16  ;;  %v2978_v11 = vld [vmem:[%s4213_s1 + $0x700] ss:$16 sps:$4 sm:$0xff]  }
  0x24   : > { %1246 = vmatprep.subr.bf16.mxu0 %v2877_v32  ;;  %1348 = vmatprep.subr.bf16.mxu1 %v2879_v33  ;;  %v2941_v32 = vld [vmem:[%s4213_s1 + $0x62c] ss:$16 sps:$4 sm:$0xff]   ;;  %v2936_v33 = vld [vmem:[%s4213_s1 + $0x620] ss:$16 sps:$4 sm:$0xff]   ;;  %v2975_v0 = vld [vmem:[%s4213_s1 + $0x6e8] ss:$16 sps:$4 sm:$0xff]  }
  0x25   : > { %v568_v7 = vrot.slane %v566_v1, 1  ;;  %v2984_v18 = vld [vmem:[%s4213_s1 + $0x720] ss:$16 sps:$4 sm:$0xff]   ;;  %v2987_v19 = vld [vmem:[%s4213_s1 + $0x728] ss:$16 sps:$4 sm:$0xff]  }
  0x26   : > { %v2992_v20 = vld [vmem:[%s4213_s1 + $0x744] ss:$16 sps:$4 sm:$0xff]   ;;  %v3001_v25 = vld [vmem:[%s4213_s1 + $0x76c] ss:$16 sps:$4 sm:$0xff]   ;;  %v3034_v1 = vld [vmem:[%s4213_s1 + $0x8] ss:$16 sps:$4 sm:$0xff]  }
  0x27   : > { %1247 = vmatpush1.bf16.msra.mxu0 %v2881_v34  ;;  %1349 = vmatpush1.bf16.msra.mxu1 %v2882_v35  ;;  %v2939_v34 = vld [vmem:[%s4213_s1 + $0x628] ss:$16 sps:$4 sm:$0xff]   ;;  %v2944_v35 = vld [vmem:[%s4213_s1 + $0x644] ss:$16 sps:$4 sm:$0xff]   ;;  %vm2445_vm2 = vsmask.f32 2304 }
  0x28   : > { %1248 = vmatprep.subr.bf16.mxu0 %v2883_v36  ;;  %1350 = vmatprep.subr.bf16.mxu1 %v2885_v37  ;;  %v2947_v36 = vld [vmem:[%s4213_s1 + $0x64c] ss:$16 sps:$4 sm:$0xff]   ;;  %v2942_v37 = vld [vmem:[%s4213_s1 + $0x640] ss:$16 sps:$4 sm:$0xff]   ;;  %vm2446_vm4 = vmand %vm2444_vm1, %vm2445_vm2 }
  0x29   : > { %vm2449_vm6 = vmor %vm2448_vm5, %vm2446_vm4 }
  0x2b   : > { %1249 = vmatpush1.bf16.msra.mxu0 %v2887_v38  ;;  %1351 = vmatpush1.bf16.msra.mxu1 %v2888_v39  ;;  %v2945_v38 = vld [vmem:[%s4213_s1 + $0x648] ss:$16 sps:$4 sm:$0xff]   ;;  %v2950_v39 = vld [vmem:[%s4213_s1 + $0x664] ss:$16 sps:$4 sm:$0xff]  }
  0x2c   : > { %1250 = vmatprep.subr.bf16.mxu0 %v2889_v40  ;;  %1352 = vmatprep.subr.bf16.mxu1 %v2891_v41  ;;  %v2953_v40 = vld [vmem:[%s4213_s1 + $0x66c] ss:$16 sps:$4 sm:$0xff]   ;;  %v2948_v41 = vld [vmem:[%s4213_s1 + $0x660] ss:$16 sps:$4 sm:$0xff]  }
  0x2f   : > { %1251 = vmatpush1.bf16.msra.mxu0 %v2893_v42  ;;  %1353 = vmatpush1.bf16.msra.mxu1 %v2894_v43  ;;  %v2951_v42 = vld [vmem:[%s4213_s1 + $0x668] ss:$16 sps:$4 sm:$0xff]   ;;  %v2956_v43 = vld [vmem:[%s4213_s1 + $0x684] ss:$16 sps:$4 sm:$0xff]  }
  0x30   : > { %1252 = vmatprep.subr.bf16.mxu0 %v2895_v44  ;;  %1354 = vmatprep.subr.bf16.mxu1 %v2897_v45  ;;  %v2959_v44 = vld [vmem:[%s4213_s1 + $0x68c] ss:$16 sps:$4 sm:$0xff]   ;;  %v2954_v45 = vld [vmem:[%s4213_s1 + $0x680] ss:$16 sps:$4 sm:$0xff]  }
  0x33   : > { %1253 = vmatpush1.bf16.msra.mxu0 %v2899_v46  ;;  %1355 = vmatpush1.bf16.msra.mxu1 %v2900_v49  ;;  %v2957_v46 = vld [vmem:[%s4213_s1 + $0x688] ss:$16 sps:$4 sm:$0xff]   ;;  %v2965_v49 = vld [vmem:[%s4213_s1 + $0x6ac] ss:$16 sps:$4 sm:$0xff]  }
  0x34   : > { %1254 = vmatprep.subr.bf16.mxu0 %v2901_v51  ;;  %1356 = vmatprep.subr.bf16.mxu1 %v2903_v52  ;;  %v2960_v51 = vld [vmem:[%s4213_s1 + $0x6a0] ss:$16 sps:$4 sm:$0xff]   ;;  %v2963_v52 = vld [vmem:[%s4213_s1 + $0x6a8] ss:$16 sps:$4 sm:$0xff]  }
  0x37   : > { %1255 = vmatpush1.bf16.msra.mxu0 %v2905_v57  ;;  %1357 = vmatpush1.bf16.msra.mxu1 %v2906_v58  ;;  %v2974_v57 = vld [vmem:[%s4213_s1 + $0x6e4] ss:$16 sps:$4 sm:$0xff]   ;;  %v2977_v58 = vld [vmem:[%s4213_s1 + $0x6ec] ss:$16 sps:$4 sm:$0xff]  }
  0x38   : > { %1256 = vmatprep.subr.bf16.mxu0 %v2907_v62  ;;  %1358 = vmatprep.subr.bf16.mxu1 %v2909_v2  ;;  %v3587_v62 = vcombine.high %v230_v59, %v230_v59  ;;  %v569_v2 = vshll.u32 %v3585_v60, 16 }
  0x3a   : > { %v574_v3 = vshrl.u32 %v3587_v62, 16  ;;  %v571_v8 = vrot.slane %v569_v2, 2  ;;  %v3039_v2 = vld [vmem:[%s4213_s1 + $0x24] ss:$16 sps:$4 sm:$0xff]  }
  0x3b   : > { %1257 = vmatpush1.bf16.msra.mxu0 %v2911_v5  ;;  %1359 = vmatpush1.bf16.msra.mxu1 %v2912_v6  ;;  %v2980_v5 = vld [vmem:[%s4213_s1 + $0x704] ss:$16 sps:$4 sm:$0xff]   ;;  %v2983_v6 = vld [vmem:[%s4213_s1 + $0x70c] ss:$16 sps:$4 sm:$0xff]  }
  0x3c   : > { %1258 = vmatprep.subr.bf16.mxu0 %v2913_v12  ;;  %1360 = vmatprep.subr.bf16.mxu1 %v2915_v13  ;;  %v576_v9 = vrot.slane %v574_v3, 1  ;;  %v2981_v12 = vld [vmem:[%s4213_s1 + $0x708] ss:$16 sps:$4 sm:$0xff]   ;;  %v572_v13 = vor.u32 %v571_v8, %v568_v7  ;;  %v3042_v3 = vld [vmem:[%s4213_s1 + $0x2c] ss:$16 sps:$4 sm:$0xff]  }
  0x3d   : > { %v3048_v7 = vld [vmem:[%s4213_s1 + $0x4c] ss:$16 sps:$4 sm:$0xff]   ;;  %v3043_v8 = vld [vmem:[%s4213_s1 + $0x40] ss:$16 sps:$4 sm:$0xff]  }
  0x3f   : > { %1259 = vmatpush1.bf16.msra.mxu0 %v2917_v14  ;;  %1361 = vmatpush1.bf16.msra.mxu1 %v2918_v15  ;;  %v2986_v15 = vld [vmem:[%s4213_s1 + $0x724] ss:$16 sps:$4 sm:$0xff]  }
  0x40   : > { %1260 = vmatprep.subr.bf16.mxu0 %v2919_v16  ;;  %1362 = vmatprep.subr.bf16.mxu1 %v2921_v21  ;;  %v2989_v16 = vld [vmem:[%s4213_s1 + $0x72c] ss:$16 sps:$4 sm:$0xff]  }
  0x41   : > { %v2995_v21 = vld [vmem:[%s4213_s1 + $0x74c] ss:$16 sps:$4 sm:$0xff]  }
  0x43   : > { %1261 = vmatpush1.bf16.msra.mxu0 %v2923_v22  ;;  %1363 = vmatpush1.bf16.msra.mxu1 %v2924_v23  ;;  %v2990_v22 = vld [vmem:[%s4213_s1 + $0x740] ss:$16 sps:$4 sm:$0xff]   ;;  %v2993_v23 = vld [vmem:[%s4213_s1 + $0x748] ss:$16 sps:$4 sm:$0xff]  }
  0x44   : > { %1281 = vmatprep.subr.bf16.mxu0 %v2930_v24  ;;  %1383 = vmatprep.subr.bf16.mxu1 %v2933_v27  ;;  %v2998_v24 = vld [vmem:[%s4213_s1 + $0x764] ss:$16 sps:$4 sm:$0xff]   ;;  %v2999_v27 = vld [vmem:[%s4213_s1 + $0x768] ss:$16 sps:$4 sm:$0xff]  }
  0x46   : > { %1263 = vmatmul.mubr.bf16.vlgmr.msra.gmra.mrb[0].mxu0 %v530_v30  ;;  %1365 = vmatmul.mubr.bf16.vlgmr.msra.gmra.mrb[0].mxu1 %v530_v30  ;;  %v3002_v30 = vld [vmem:[%s4213_s1 + $0x780] ss:$16 sps:$4 sm:$0xff]  }
  0x47   : > { %1282 = vmatpush1.bf16.msra.mxu0 %v2928_v28  ;;  %1384 = vmatpush1.bf16.msra.mxu1 %v2931_v29  ;;  %v3004_v28 = vld [vmem:[%s4213_s1 + $0x784] ss:$16 sps:$4 sm:$0xff]   ;;  %v3007_v29 = vld [vmem:[%s4213_s1 + $0x78c] ss:$16 sps:$4 sm:$0xff]  }
  0x48   : > { %1283 = vmatprep.subr.bf16.mxu0 %v2938_v31  ;;  %1385 = vmatprep.subr.bf16.mxu1 %v2941_v32  ;;  %v3005_v31 = vld [vmem:[%s4213_s1 + $0x788] ss:$16 sps:$4 sm:$0xff]  }
  0x49   : > { %1272 = vmatprep.mubr.bf16.mxu0 %v546_v4  ;;  %1374 = vmatprep.mubr.bf16.mxu1 %v546_v4  ;;  %v577_v4 = vshll.u32 %v3587_v62, 16  ;;  %v3664_v32 = vld [vmem:[%s3417_s21 + $0x8] ss:$16 sps:$4 sm:$0xff]  }
  0x4b   : > { %1284 = vmatpush1.bf16.msra.mxu0 %v2936_v33  ;;  %1386 = vmatpush1.bf16.msra.mxu1 %v2939_v34  ;;  %v579_v10 = vrot.slane %v577_v4, 2  ;;  %v3666_v33 = vcombine.low %v230_v59, %v230_v59  ;;  %v3010_v34 = vld [vmem:[%s4213_s1 + $0x7a4] ss:$16 sps:$4 sm:$0xff]   ;;  %v3036_v59 = vld [vmem:[%s4213_s1 + $0xc] ss:$16 sps:$4 sm:$0xff]  }
  0x4c   : > { %1285 = vmatprep.subr.bf16.mxu0 %v2944_v35  ;;  %1387 = vmatprep.subr.bf16.mxu1 %v2947_v36  ;;  %v3013_v35 = vld [vmem:[%s4213_s1 + $0x7ac] ss:$16 sps:$4 sm:$0xff]   ;;  %v3008_v36 = vld [vmem:[%s4213_s1 + $0x7a0] ss:$16 sps:$4 sm:$0xff]  }
  0x4d   : > { %v3611_v14 = vor.u32 %v579_v10, %v576_v9  ;;  %v3037_v4 = vld [vmem:[%s4213_s1 + $0x20] ss:$16 sps:$4 sm:$0xff]   ;;  %v3046_v9 = vld [vmem:[%s4213_s1 + $0x48] ss:$16 sps:$4 sm:$0xff]   ;;  %v3051_v10 = vld [vmem:[%s4213_s1 + $0x64] ss:$16 sps:$4 sm:$0xff]  }
  0x4e   : > { %1273 = vmatmul.mubr.bf16.gmra.mrb[4].mxu0 %v529_v26  ;;  %1375 = vmatmul.mubr.bf16.gmra.mrb[4].mxu1 %v529_v26  ;;  %v2996_v26 = vld [vmem:[%s4213_s1 + $0x760] ss:$16 sps:$4 sm:$0xff]  }
  0x4f   : > { %1286 = vmatpush1.bf16.msra.mxu0 %v2942_v37  ;;  %1388 = vmatpush1.bf16.msra.mxu1 %v2945_v38  ;;  %v581_v17 = vsel %vm513_vm0, %v572_v13, %v3611_v14  ;;  %v3011_v37 = vld [vmem:[%s4213_s1 + $0x7a8] ss:$16 sps:$4 sm:$0xff]   ;;  %v549_v38 = vshrl.u32 %v3664_v32, 16 }
  0x50   : > { %1287 = vmatprep.subr.bf16.mxu0 %v2950_v39  ;;  %1389 = vmatprep.subr.bf16.mxu1 %v2953_v40  ;;  %v552_v39 = vshll.u32 %v3664_v32, 16  ;;  %v557_v40 = vshrl.u32 %v3666_v33, 16  ;;  %v3052_v13 = vld [vmem:[%s4213_s1 + $0x68] ss:$16 sps:$4 sm:$0xff]  }
  0x51   : > { %1313 = vmatprep.mubr.bf16.mxu0 %v581_v17  ;;  %1415 = vmatprep.mubr.bf16.mxu1 %v581_v17  ;;  %v3058_v17 = vld [vmem:[%s4213_s1 + $0x88] ss:$16 sps:$4 sm:$0xff]  }
  0x53   : > { %1288 = vmatpush1.bf16.msra.mxu0 %v2948_v41  ;;  %1390 = vmatpush1.bf16.msra.mxu1 %v2951_v42  ;;  %v560_v41 = vshll.u32 %v3666_v33, 16  ;;  %v3016_v42 = vld [vmem:[%s4213_s1 + $0x7c4] ss:$16 sps:$4 sm:$0xff]  }
  0x54   : > { %1289 = vmatprep.subr.bf16.mxu0 %v2956_v43  ;;  %1391 = vmatprep.subr.bf16.mxu1 %v2959_v44  ;;  %v3019_v43 = vld [vmem:[%s4213_s1 + $0x7cc] ss:$16 sps:$4 sm:$0xff]   ;;  %v3014_v44 = vld [vmem:[%s4213_s1 + $0x7c0] ss:$16 sps:$4 sm:$0xff]  }
  0x57   : > { %1290 = vmatpush1.bf16.msra.mxu0 %v2954_v45  ;;  %1392 = vmatpush1.bf16.msra.mxu1 %v2957_v46  ;;  %v3017_v45 = vld [vmem:[%s4213_s1 + $0x7c8] ss:$16 sps:$4 sm:$0xff]   ;;  %v551_v46 = vrot.slane %v549_v38, 1 }
  0x58   : > { %1291 = vmatprep.subr.bf16.mxu0 %v2962_v47  ;;  %1393 = vmatprep.subr.bf16.mxu1 %v2965_v49  ;;  %v554_v47 = vrot.slane %v552_v39, 2  ;;  %v559_v49 = vrot.slane %v557_v40, 1  ;;  %v3088_v38 = vld [vmem:[%s4213_s1 + $0x128] ss:$16 sps:$4 sm:$0xff]   ;;  %v3093_v39 = vld [vmem:[%s4213_s1 + $0x144] ss:$16 sps:$4 sm:$0xff]  }
  0x59   : > { %v3096_v40 = vld [vmem:[%s4213_s1 + $0x14c] ss:$16 sps:$4 sm:$0xff]  }
  0x5b   : > { %1292 = vmatpush1.bf16.msra.mxu0 %v2960_v51  ;;  %1394 = vmatpush1.bf16.msra.mxu1 %v2963_v52  ;;  %v562_v51 = vrot.slane %v560_v41, 2  ;;  %v3022_v52 = vld [vmem:[%s4213_s1 + $0x7e4] ss:$16 sps:$4 sm:$0xff]   ;;  %v3091_v41 = vld [vmem:[%s4213_s1 + $0x140] ss:$16 sps:$4 sm:$0xff]  }
  0x5c   : > { %1293 = vmatprep.subr.bf16.mxu0 %v2968_v53  ;;  %1395 = vmatprep.subr.bf16.mxu1 %v2971_v54  ;;  %v3025_v53 = vld [vmem:[%s4213_s1 + $0x7ec] ss:$16 sps:$4 sm:$0xff]   ;;  %v3020_v54 = vld [vmem:[%s4213_s1 + $0x7e0] ss:$16 sps:$4 sm:$0xff]  }
  0x5f   : > { %1294 = vmatpush1.bf16.msra.mxu0 %v2966_v55  ;;  %1396 = vmatpush1.bf16.msra.mxu1 %v2969_v56  ;;  %v3023_v55 = vld [vmem:[%s4213_s1 + $0x7e8] ss:$16 sps:$4 sm:$0xff]   ;;  %v555_v56 = vor.u32 %v554_v47, %v551_v46  ;;  %v3105_v47 = vld [vmem:[%s4213_s1 + $0x184] ss:$16 sps:$4 sm:$0xff]  }
  0x60   : > { %1295 = vmatprep.subr.bf16.mxu0 %v2974_v57  ;;  %1397 = vmatprep.subr.bf16.mxu1 %v2977_v58  ;;  %v563_v57 = vor.u32 %v562_v51, %v559_v49  ;;  %v3033_v58 = vld [vmem:[%s4213_s1 + $0x4] ss:$16 sps:$4 sm:$0xff]   ;;  %v3100_v46 = vld [vmem:[%s4213_s1 + $0x168] ss:$16 sps:$4 sm:$0xff]   ;;  %v3108_v49 = vld [vmem:[%s4213_s1 + $0x18c] ss:$16 sps:$4 sm:$0xff]  }
  0x61   : > { %v3103_v51 = vld [vmem:[%s4213_s1 + $0x180] ss:$16 sps:$4 sm:$0xff]  }
  0x63   : > { %1296 = vmatpush1.bf16.msra.mxu0 %v2972_v63  ;;  %1398 = vmatpush1.bf16.msra.mxu1 %v2975_v0  ;;  %v564_v63 = vsel %vm513_vm0, %v555_v56, %v563_v57  ;;  %v3031_v0 = vld [vmem:[%s4213_s1] ss:$16 sps:$4 sm:$0xff]   ;;  %v3112_v56 = vld [vmem:[%s4213_s1 + $0x1a8] ss:$16 sps:$4 sm:$0xff]  }
  0x64   : > { %1297 = vmatprep.subr.bf16.mxu0 %v2980_v5  ;;  %1399 = vmatprep.subr.bf16.mxu1 %v2983_v6  ;;  %v3040_v5 = vld [vmem:[%s4213_s1 + $0x28] ss:$16 sps:$4 sm:$0xff]   ;;  %v3045_v6 = vld [vmem:[%s4213_s1 + $0x44] ss:$16 sps:$4 sm:$0xff]  }
  0x67   : > { %1298 = vmatpush1.bf16.msra.mxu0 %v2978_v11  ;;  %1400 = vmatpush1.bf16.msra.mxu1 %v2981_v12  ;;  %v3054_v11 = vld [vmem:[%s4213_s1 + $0x6c] ss:$16 sps:$4 sm:$0xff]   ;;  %v3049_v12 = vld [vmem:[%s4213_s1 + $0x60] ss:$16 sps:$4 sm:$0xff]  }
  0x68   : > { %1299 = vmatprep.subr.bf16.mxu0 %v2986_v15  ;;  %1401 = vmatprep.subr.bf16.mxu1 %v2989_v16  ;;  %v3060_v15 = vld [vmem:[%s4213_s1 + $0x8c] ss:$16 sps:$4 sm:$0xff]   ;;  %v3055_v16 = vld [vmem:[%s4213_s1 + $0x80] ss:$16 sps:$4 sm:$0xff]  }
  0x6b   : > { %1300 = vmatpush1.bf16.msra.mxu0 %v2984_v18  ;;  %1402 = vmatpush1.bf16.msra.mxu1 %v2987_v19  ;;  %v3063_v18 = vld [vmem:[%s4213_s1 + $0xa4] ss:$16 sps:$4 sm:$0xff]   ;;  %v3061_v19 = vld [vmem:[%s4213_s1 + $0xa0] ss:$16 sps:$4 sm:$0xff]  }
  0x6c   : > { %1301 = vmatprep.subr.bf16.mxu0 %v2992_v20  ;;  %1403 = vmatprep.subr.bf16.mxu1 %v2995_v21  ;;  %v3064_v20 = vld [vmem:[%s4213_s1 + $0xa8] ss:$16 sps:$4 sm:$0xff]   ;;  %v3069_v21 = vld [vmem:[%s4213_s1 + $0xc4] ss:$16 sps:$4 sm:$0xff]  }
  0x6f   : > { %1302 = vmatpush1.bf16.msra.mxu0 %v2990_v22  ;;  %1404 = vmatpush1.bf16.msra.mxu1 %v2993_v23  ;;  %v3072_v22 = vld [vmem:[%s4213_s1 + $0xcc] ss:$16 sps:$4 sm:$0xff]   ;;  %v3067_v23 = vld [vmem:[%s4213_s1 + $0xc0] ss:$16 sps:$4 sm:$0xff]  }
  0x70   : > { %1303 = vmatprep.subr.bf16.mxu0 %v2998_v24  ;;  %1405 = vmatprep.subr.bf16.mxu1 %v3001_v25  ;;  %v3070_v24 = vld [vmem:[%s4213_s1 + $0xc8] ss:$16 sps:$4 sm:$0xff]   ;;  %v3075_v25 = vld [vmem:[%s4213_s1 + $0xe4] ss:$16 sps:$4 sm:$0xff]  }
  0x73   : > { %1304 = vmatpush1.bf16.msra.mxu0 %v2996_v26  ;;  %1406 = vmatpush1.bf16.msra.mxu1 %v2999_v27  ;;  %v3078_v26 = vld [vmem:[%s4213_s1 + $0xec] ss:$16 sps:$4 sm:$0xff]   ;;  %v3073_v27 = vld [vmem:[%s4213_s1 + $0xe0] ss:$16 sps:$4 sm:$0xff]  }
  0x74   : > { %1305 = vmatprep.subr.bf16.mxu0 %v3004_v28  ;;  %1407 = vmatprep.subr.bf16.mxu1 %v3007_v29  ;;  %v3076_v28 = vld [vmem:[%s4213_s1 + $0xe8] ss:$16 sps:$4 sm:$0xff]   ;;  %v3081_v29 = vld [vmem:[%s4213_s1 + $0x104] ss:$16 sps:$4 sm:$0xff]  }
  0x77   : > { %1306 = vmatpush1.bf16.msra.mxu0 %v3002_v30  ;;  %1408 = vmatpush1.bf16.msra.mxu1 %v3005_v31  ;;  %v3084_v30 = vld [vmem:[%s4213_s1 + $0x10c] ss:$16 sps:$4 sm:$0xff]   ;;  %v3079_v31 = vld [vmem:[%s4213_s1 + $0x100] ss:$16 sps:$4 sm:$0xff]  }
  0x78   : > { %1307 = vmatprep.subr.bf16.mxu0 %v3010_v34  ;;  %1409 = vmatprep.subr.bf16.mxu1 %v3013_v35  ;;  %v3082_v34 = vld [vmem:[%s4213_s1 + $0x108] ss:$16 sps:$4 sm:$0xff]   ;;  %v3087_v35 = vld [vmem:[%s4213_s1 + $0x124] ss:$16 sps:$4 sm:$0xff]  }
  0x7b   : > { %1308 = vmatpush1.bf16.msra.mxu0 %v3008_v36  ;;  %1410 = vmatpush1.bf16.msra.mxu1 %v3011_v37  ;;  %v3090_v36 = vld [vmem:[%s4213_s1 + $0x12c] ss:$16 sps:$4 sm:$0xff]   ;;  %v3085_v37 = vld [vmem:[%s4213_s1 + $0x120] ss:$16 sps:$4 sm:$0xff]  }
  0x7c   : > { %1309 = vmatprep.subr.bf16.mxu0 %v3016_v42  ;;  %1411 = vmatprep.subr.bf16.mxu1 %v3019_v43  ;;  %v3094_v42 = vld [vmem:[%s4213_s1 + $0x148] ss:$16 sps:$4 sm:$0xff]   ;;  %v3099_v43 = vld [vmem:[%s4213_s1 + $0x164] ss:$16 sps:$4 sm:$0xff]  }
  0x7f   : > { %1310 = vmatpush1.bf16.msra.mxu0 %v3014_v44  ;;  %1412 = vmatpush1.bf16.msra.mxu1 %v3017_v45  ;;  %v3102_v44 = vld [vmem:[%s4213_s1 + $0x16c] ss:$16 sps:$4 sm:$0xff]   ;;  %v3097_v45 = vld [vmem:[%s4213_s1 + $0x160] ss:$16 sps:$4 sm:$0xff]  }
  0x80   : > { %1311 = vmatprep.subr.bf16.mxu0 %v3022_v52  ;;  %1413 = vmatprep.subr.bf16.mxu1 %v3025_v53  ;;  %v3106_v52 = vld [vmem:[%s4213_s1 + $0x188] ss:$16 sps:$4 sm:$0xff]   ;;  %v3111_v53 = vld [vmem:[%s4213_s1 + $0x1a4] ss:$16 sps:$4 sm:$0xff]  }
  0x83   : > { %1312 = vmatpush1.bf16.msra.mxu0 %v3020_v54  ;;  %1414 = vmatpush1.bf16.msra.mxu1 %v3023_v55  ;;  %v3114_v54 = vld [vmem:[%s4213_s1 + $0x1ac] ss:$16 sps:$4 sm:$0xff]   ;;  %v3109_v55 = vld [vmem:[%s4213_s1 + $0x1a0] ss:$16 sps:$4 sm:$0xff]  }
  0x84   : > { %2082 = vmatprep.subr.bf16.mxu0 %v3033_v58  ;;  %2184 = vmatprep.subr.bf16.mxu1 %v3036_v59  ;;  %v3120_v58 = vld [vmem:[%s4213_s1 + $0x1cc] ss:$16 sps:$4 sm:$0xff]   ;;  %v3115_v59 = vld [vmem:[%s4213_s1 + $0x1c0] ss:$16 sps:$4 sm:$0xff]  }
  0x86   : > { %1314 = vmatmul.mubr.bf16.vlgmr.msra.gmra.mrb[0].mxu0 %v564_v63  ;;  %1416 = vmatmul.mubr.bf16.vlgmr.msra.gmra.mrb[0].mxu1 %v564_v63  ;;  %v3118_v63 = vld [vmem:[%s4213_s1 + $0x1c8] ss:$16 sps:$4 sm:$0xff]  }
  0x87   : > { %2083 = vmatpush1.bf16.msra.mxu0 %v3031_v0  ;;  %2185 = vmatpush1.bf16.msra.mxu1 %v3034_v1  ;;  %v3123_v0 = vld [vmem:[%s4213_s1 + $0x1e4] ss:$16 sps:$4 sm:$0xff]   ;;  %v3126_v1 = vld [vmem:[%s4213_s1 + $0x1ec] ss:$16 sps:$4 sm:$0xff]  }
  0x88   : > { %2084 = vmatprep.subr.bf16.mxu0 %v3039_v2  ;;  %2186 = vmatprep.subr.bf16.mxu1 %v3042_v3  ;;  %v3121_v2 = vld [vmem:[%s4213_s1 + $0x1e0] ss:$16 sps:$4 sm:$0xff]   ;;  %v3124_v3 = vld [vmem:[%s4213_s1 + $0x1e8] ss:$16 sps:$4 sm:$0xff]  }
  0x89   : > { %1323 = vmatprep.mubr.bf16.mxu0 %v3611_v14  ;;  %1425 = vmatprep.mubr.bf16.mxu1 %v3611_v14  ;;  %v3057_v14 = vld [vmem:[%s4213_s1 + $0x84] ss:$16 sps:$4 sm:$0xff]  }
  0x8b   : > { %2085 = vmatpush1.bf16.msra.mxu0 %v3037_v4  ;;  %2187 = vmatpush1.bf16.msra.mxu1 %v3040_v5  ;;  %v3129_v4 = vld [vmem:[%s4213_s1 + $0x204] ss:$16 sps:$4 sm:$0xff]   ;;  %v3132_v5 = vld [vmem:[%s4213_s1 + $0x20c] ss:$16 sps:$4 sm:$0xff]  }
  0x8c   : > { %2086 = vmatprep.subr.bf16.mxu0 %v3045_v6  ;;  %2188 = vmatprep.subr.bf16.mxu1 %v3048_v7  ;;  %v3127_v6 = vld [vmem:[%s4213_s1 + $0x200] ss:$16 sps:$4 sm:$0xff]   ;;  %v3130_v7 = vld [vmem:[%s4213_s1 + $0x208] ss:$16 sps:$4 sm:$0xff]  }
  0x8e   : > { %1324 = vmatmul.mubr.bf16.gmra.mrb[8].mxu0 %v563_v57  ;;  %1426 = vmatmul.mubr.bf16.gmra.mrb[8].mxu1 %v563_v57  ;;  %v3117_v57 = vld [vmem:[%s4213_s1 + $0x1c4] ss:$16 sps:$4 sm:$0xff]  }
  0x8f   : > { %2087 = vmatpush1.bf16.msra.mxu0 %v3043_v8  ;;  %2189 = vmatpush1.bf16.msra.mxu1 %v3046_v9  ;;  %v3135_v8 = vld [vmem:[%s4213_s1 + $0x224] ss:$16 sps:$4 sm:$0xff]   ;;  %v3138_v9 = vld [vmem:[%s4213_s1 + $0x22c] ss:$16 sps:$4 sm:$0xff]  }
  0x90   : > { %2088 = vmatprep.subr.bf16.mxu0 %v3051_v10  ;;  %2190 = vmatprep.subr.bf16.mxu1 %v3054_v11  ;;  %v3223_v10 = vld [vmem:[%s3417_s21] ss:$16 sps:$4 sm:$0xff]  }
  0x91   : > { %2114 = vmatprep.mubr.bf16.mxu0 %v3427_v48  ;;  %2216 = vmatprep.mubr.bf16.mxu1 %v3427_v48  ;;  %v3066_v48 = vld [vmem:[%s4213_s1 + $0xac] ss:$16 sps:$4 sm:$0xff]   ;;  %v3133_v11 = vld [vmem:[%s4213_s1 + $0x220] ss:$16 sps:$4 sm:$0xff]  }
  0x93   : > { %2089 = vmatpush1.bf16.msra.mxu0 %v3049_v12  ;;  %2191 = vmatpush1.bf16.msra.mxu1 %v3052_v13  ;;  %v3136_v12 = vld [vmem:[%s4213_s1 + $0x228] ss:$16 sps:$4 sm:$0xff]   ;;  %v3141_v13 = vld [vmem:[%s4213_s1 + $0x244] ss:$16 sps:$4 sm:$0xff]  }
  0x94   : > { %2090 = vmatprep.subr.bf16.mxu0 %v3057_v14  ;;  %2192 = vmatprep.subr.bf16.mxu1 %v3060_v15  ;;  %v3144_v14 = vld [vmem:[%s4213_s1 + $0x24c] ss:$16 sps:$4 sm:$0xff]   ;;  %v3139_v15 = vld [vmem:[%s4213_s1 + $0x240] ss:$16 sps:$4 sm:$0xff]  }
  0x97   : > { %2091 = vmatpush1.bf16.msra.mxu0 %v3055_v16  ;;  %2193 = vmatpush1.bf16.msra.mxu1 %v3058_v17  ;;  %v3142_v16 = vld [vmem:[%s4213_s1 + $0x248] ss:$16 sps:$4 sm:$0xff]   ;;  %v3147_v17 = vld [vmem:[%s4213_s1 + $0x264] ss:$16 sps:$4 sm:$0xff]  }
  0x98   : > { %2092 = vmatprep.subr.bf16.mxu0 %v3063_v18  ;;  %2194 = vmatprep.subr.bf16.mxu1 %v3066_v48  ;;  %v3145_v18 = vld [vmem:[%s4213_s1 + $0x260] ss:$16 sps:$4 sm:$0xff]   ;;  %v3148_v48 = vld [vmem:[%s4213_s1 + $0x268] ss:$16 sps:$4 sm:$0xff]  }
  0x9b   : > { %2093 = vmatpush1.bf16.msra.mxu0 %v3061_v19  ;;  %2195 = vmatpush1.bf16.msra.mxu1 %v3064_v20  ;;  %v3153_v19 = vld [vmem:[%s4213_s1 + $0x284] ss:$16 sps:$4 sm:$0xff]   ;;  %v3151_v20 = vld [vmem:[%s4213_s1 + $0x280] ss:$16 sps:$4 sm:$0xff]  }
  0x9c   : > { %2094 = vmatprep.subr.bf16.mxu0 %v3069_v21  ;;  %2196 = vmatprep.subr.bf16.mxu1 %v3072_v22  ;;  %v3154_v21 = vld [vmem:[%s4213_s1 + $0x288] ss:$16 sps:$4 sm:$0xff]   ;;  %v3159_v22 = vld [vmem:[%s4213_s1 + $0x2a4] ss:$16 sps:$4 sm:$0xff]  }
  0x9f   : > { %2095 = vmatpush1.bf16.msra.mxu0 %v3067_v23  ;;  %2197 = vmatpush1.bf16.msra.mxu1 %v3070_v24  ;;  %v3157_v23 = vld [vmem:[%s4213_s1 + $0x2a0] ss:$16 sps:$4 sm:$0xff]   ;;  %v3160_v24 = vld [vmem:[%s4213_s1 + $0x2a8] ss:$16 sps:$4 sm:$0xff]  }
  0xa0   : > { %2096 = vmatprep.subr.bf16.mxu0 %v3075_v25  ;;  %2198 = vmatprep.subr.bf16.mxu1 %v3078_v26  ;;  %v3165_v25 = vld [vmem:[%s4213_s1 + $0x2c4] ss:$16 sps:$4 sm:$0xff]   ;;  %v3168_v26 = vld [vmem:[%s4213_s1 + $0x2cc] ss:$16 sps:$4 sm:$0xff]  }
  0xa3   : > { %2097 = vmatpush1.bf16.msra.mxu0 %v3073_v27  ;;  %2199 = vmatpush1.bf16.msra.mxu1 %v3076_v28  ;;  %v3163_v27 = vld [vmem:[%s4213_s1 + $0x2c0] ss:$16 sps:$4 sm:$0xff]   ;;  %v3166_v28 = vld [vmem:[%s4213_s1 + $0x2c8] ss:$16 sps:$4 sm:$0xff]  }
  0xa4   : > { %2098 = vmatprep.subr.bf16.mxu0 %v3081_v29  ;;  %2200 = vmatprep.subr.bf16.mxu1 %v3084_v30  ;;  %v3171_v29 = vld [vmem:[%s4213_s1 + $0x2e4] ss:$16 sps:$4 sm:$0xff]   ;;  %v3174_v30 = vld [vmem:[%s4213_s1 + $0x2ec] ss:$16 sps:$4 sm:$0xff]  }
  0xa7   : > { %2099 = vmatpush1.bf16.msra.mxu0 %v3079_v31  ;;  %2201 = vmatpush1.bf16.msra.mxu1 %v3082_v34  ;;  %v3169_v31 = vld [vmem:[%s4213_s1 + $0x2e0] ss:$16 sps:$4 sm:$0xff]   ;;  %v3172_v34 = vld [vmem:[%s4213_s1 + $0x2e8] ss:$16 sps:$4 sm:$0xff]  }
  0xa8   : > { %2100 = vmatprep.subr.bf16.mxu0 %v3087_v35  ;;  %2202 = vmatprep.subr.bf16.mxu1 %v3090_v36  ;;  %v3177_v35 = vld [vmem:[%s4213_s1 + $0x304] ss:$16 sps:$4 sm:$0xff]   ;;  %v3180_v36 = vld [vmem:[%s4213_s1 + $0x30c] ss:$16 sps:$4 sm:$0xff]  }
  0xab   : > { %2101 = vmatpush1.bf16.msra.mxu0 %v3085_v37  ;;  %2203 = vmatpush1.bf16.msra.mxu1 %v3088_v38  ;;  %v3175_v37 = vld [vmem:[%s4213_s1 + $0x300] ss:$16 sps:$4 sm:$0xff]   ;;  %v3178_v38 = vld [vmem:[%s4213_s1 + $0x308] ss:$16 sps:$4 sm:$0xff]  }
  0xac   : > { %2102 = vmatprep.subr.bf16.mxu0 %v3093_v39  ;;  %2204 = vmatprep.subr.bf16.mxu1 %v3096_v40  ;;  %v3183_v39 = vld [vmem:[%s4213_s1 + $0x324] ss:$16 sps:$4 sm:$0xff]   ;;  %v3186_v40 = vld [vmem:[%s4213_s1 + $0x32c] ss:$16 sps:$4 sm:$0xff]  }
  0xaf   : > { %2103 = vmatpush1.bf16.msra.mxu0 %v3091_v41  ;;  %2205 = vmatpush1.bf16.msra.mxu1 %v3094_v42  ;;  %v3181_v41 = vld [vmem:[%s4213_s1 + $0x320] ss:$16 sps:$4 sm:$0xff]   ;;  %v3184_v42 = vld [vmem:[%s4213_s1 + $0x328] ss:$16 sps:$4 sm:$0xff]  }
  0xb0   : > { %2104 = vmatprep.subr.bf16.mxu0 %v3099_v43  ;;  %2206 = vmatprep.subr.bf16.mxu1 %v3102_v44  ;;  %v3189_v43 = vld [vmem:[%s4213_s1 + $0x344] ss:$16 sps:$4 sm:$0xff]   ;;  %v3192_v44 = vld [vmem:[%s4213_s1 + $0x34c] ss:$16 sps:$4 sm:$0xff]  }
  0xb3   : > { %2105 = vmatpush1.bf16.msra.mxu0 %v3097_v45  ;;  %2207 = vmatpush1.bf16.msra.mxu1 %v3100_v46  ;;  %v3187_v45 = vld [vmem:[%s4213_s1 + $0x340] ss:$16 sps:$4 sm:$0xff]   ;;  %v3190_v46 = vld [vmem:[%s4213_s1 + $0x348] ss:$16 sps:$4 sm:$0xff]  }
  0xb4   : > { %2106 = vmatprep.subr.bf16.mxu0 %v3105_v47  ;;  %2208 = vmatprep.subr.bf16.mxu1 %v3108_v49  ;;  %v3195_v47 = vld [vmem:[%s4213_s1 + $0x364] ss:$16 sps:$4 sm:$0xff]   ;;  %v3198_v49 = vld [vmem:[%s4213_s1 + $0x36c] ss:$16 sps:$4 sm:$0xff]  }
  0xb7   : > { %2107 = vmatpush1.bf16.msra.mxu0 %v3103_v51  ;;  %2209 = vmatpush1.bf16.msra.mxu1 %v3106_v52  ;;  %v3193_v51 = vld [vmem:[%s4213_s1 + $0x360] ss:$16 sps:$4 sm:$0xff]   ;;  %v3196_v52 = vld [vmem:[%s4213_s1 + $0x368] ss:$16 sps:$4 sm:$0xff]  }
  0xb8   : > { %2108 = vmatprep.subr.bf16.mxu0 %v3111_v53  ;;  %2210 = vmatprep.subr.bf16.mxu1 %v3114_v54  ;;  %v3201_v53 = vld [vmem:[%s4213_s1 + $0x384] ss:$16 sps:$4 sm:$0xff]   ;;  %v3204_v54 = vld [vmem:[%s4213_s1 + $0x38c] ss:$16 sps:$4 sm:$0xff]  }
  0xbb   : > { %2109 = vmatpush1.bf16.msra.mxu0 %v3109_v55  ;;  %2211 = vmatpush1.bf16.msra.mxu1 %v3112_v56  ;;  %v3199_v55 = vld [vmem:[%s4213_s1 + $0x380] ss:$16 sps:$4 sm:$0xff]   ;;  %v3202_v56 = vld [vmem:[%s4213_s1 + $0x388] ss:$16 sps:$4 sm:$0xff]  }
  0xbc   : > { %2110 = vmatprep.subr.bf16.mxu0 %v3117_v57  ;;  %2212 = vmatprep.subr.bf16.mxu1 %v3120_v58  ;;  %v3207_v57 = vld [vmem:[%s4213_s1 + $0x3a4] ss:$16 sps:$4 sm:$0xff]   ;;  %v3210_v58 = vld [vmem:[%s4213_s1 + $0x3ac] ss:$16 sps:$4 sm:$0xff]  }
  0xbf   : > { %2111 = vmatpush1.bf16.msra.mxu0 %v3115_v59  ;;  %2213 = vmatpush1.bf16.msra.mxu1 %v3118_v63  ;;  %v3205_v59 = vld [vmem:[%s4213_s1 + $0x3a0] ss:$16 sps:$4 sm:$0xff]   ;;  %v3208_v63 = vld [vmem:[%s4213_s1 + $0x3a8] ss:$16 sps:$4 sm:$0xff]  }
  0xc0   : > { %2112 = vmatprep.subr.bf16.mxu0 %v3123_v0  ;;  %2214 = vmatprep.subr.bf16.mxu1 %v3126_v1  ;;  %v3213_v0 = vld [vmem:[%s4213_s1 + $0x3c4] ss:$16 sps:$4 sm:$0xff]   ;;  %v3216_v1 = vld [vmem:[%s4213_s1 + $0x3cc] ss:$16 sps:$4 sm:$0xff]  }
  0xc3   : > { %2113 = vmatpush1.bf16.msra.mxu0 %v3121_v2  ;;  %2215 = vmatpush1.bf16.msra.mxu1 %v3124_v3  ;;  %v3211_v2 = vld [vmem:[%s4213_s1 + $0x3c0] ss:$16 sps:$4 sm:$0xff]   ;;  %v3214_v3 = vld [vmem:[%s4213_s1 + $0x3c8] ss:$16 sps:$4 sm:$0xff]  }
  0xc4   : > { %2133 = vmatprep.subr.bf16.mxu0 %v3129_v4  ;;  %2235 = vmatprep.subr.bf16.mxu1 %v3132_v5  ;;  %v3219_v4 = vld [vmem:[%s4213_s1 + $0x3e4] ss:$16 sps:$4 sm:$0xff]   ;;  %v3222_v5 = vld [vmem:[%s4213_s1 + $0x3ec] ss:$16 sps:$4 sm:$0xff]  }
  0xc6   : > { %2115 = vmatmul.mubr.bf16.vlgmr.msra.gmra.mrb[0].mxu0 %v3223_v10  ;;  %2217 = vmatmul.mubr.bf16.vlgmr.msra.gmra.mrb[0].mxu1 %v3223_v10 }
  0xc7   : > { %2134 = vmatpush1.bf16.msra.mxu0 %v3127_v6  ;;  %2236 = vmatpush1.bf16.msra.mxu1 %v3130_v7  ;;  %v3217_v6 = vld [vmem:[%s4213_s1 + $0x3e0] ss:$16 sps:$4 sm:$0xff]   ;;  %v3220_v7 = vld [vmem:[%s4213_s1 + $0x3e8] ss:$16 sps:$4 sm:$0xff]  }
  0xc8   : > { %2135 = vmatprep.subr.bf16.mxu0 %v3135_v8  ;;  %2237 = vmatprep.subr.bf16.mxu1 %v3138_v9 }
  0xc9   : > { %2124 = vmatprep.mubr.bf16.mxu0 %v3432_v50  ;;  %2226 = vmatprep.mubr.bf16.mxu1 %v3432_v50  ;;  %v3150_v50 = vld [vmem:[%s4213_s1 + $0x26c] ss:$16 sps:$4 sm:$0xff]  }
  0xcb   : > { %2136 = vmatpush1.bf16.msra.mxu0 %v3133_v11  ;;  %2238 = vmatpush1.bf16.msra.mxu1 %v3136_v12 }
  0xcc   : > { %2137 = vmatprep.subr.bf16.mxu0 %v3141_v13  ;;  %2239 = vmatprep.subr.bf16.mxu1 %v3144_v14 }
  0xce   : > { %2125 = vmatmul.mubr.bf16.gmra.mrb[12].mxu0 %v3450_v61  ;;  %2227 = vmatmul.mubr.bf16.gmra.mrb[12].mxu1 %v3450_v61  ;;  %v3156_v61 = vld [vmem:[%s4213_s1 + $0x28c] ss:$16 sps:$4 sm:$0xff]  }
  0xcf   : > { %2138 = vmatpush1.bf16.msra.mxu0 %v3139_v15  ;;  %2240 = vmatpush1.bf16.msra.mxu1 %v3142_v16 }
  0xd0   : > { %2139 = vmatprep.subr.bf16.mxu0 %v3147_v17  ;;  %2241 = vmatprep.subr.bf16.mxu1 %v3150_v50 }
  0xd1   : > { %2165 = vmatprep.mubr.bf16.mxu0 %v3585_v60  ;;  %2267 = vmatprep.mubr.bf16.mxu1 %v3585_v60  ;;  %v3162_v60 = vld [vmem:[%s4213_s1 + $0x2ac] ss:$16 sps:$4 sm:$0xff]  }
  0xd3   : > { %2140 = vmatpush1.bf16.msra.mxu0 %v3145_v18  ;;  %2242 = vmatpush1.bf16.msra.mxu1 %v3148_v48 }
  0xd4   : > { %2141 = vmatprep.subr.bf16.mxu0 %v3153_v19  ;;  %2243 = vmatprep.subr.bf16.mxu1 %v3156_v61 }
  0xd7   : > { %2142 = vmatpush1.bf16.msra.mxu0 %v3151_v20  ;;  %2244 = vmatpush1.bf16.msra.mxu1 %v3154_v21 }
  0xd8   : > { %2143 = vmatprep.subr.bf16.mxu0 %v3159_v22  ;;  %2245 = vmatprep.subr.bf16.mxu1 %v3162_v60 }
  0xdb   : > { %2144 = vmatpush1.bf16.msra.mxu0 %v3157_v23  ;;  %2246 = vmatpush1.bf16.msra.mxu1 %v3160_v24 }
  0xdc   : > { %2145 = vmatprep.subr.bf16.mxu0 %v3165_v25  ;;  %2247 = vmatprep.subr.bf16.mxu1 %v3168_v26 }
  0xdf   : > { %2146 = vmatpush1.bf16.msra.mxu0 %v3163_v27  ;;  %2248 = vmatpush1.bf16.msra.mxu1 %v3166_v28 }
  0xe0   : > { %2147 = vmatprep.subr.bf16.mxu0 %v3171_v29  ;;  %2249 = vmatprep.subr.bf16.mxu1 %v3174_v30 }
  0xe3   : > { %2148 = vmatpush1.bf16.msra.mxu0 %v3169_v31  ;;  %2250 = vmatpush1.bf16.msra.mxu1 %v3172_v34 }
  0xe4   : > { %2149 = vmatprep.subr.bf16.mxu0 %v3177_v35  ;;  %2251 = vmatprep.subr.bf16.mxu1 %v3180_v36  ;;  %v2288_v35 = vlaneseq }
  0xe6   : > { %v2289_v36 = vshrl.u32 %v2288_v35, 7 }
  0xe7   : > { %2150 = vmatpush1.bf16.msra.mxu0 %v3175_v37  ;;  %2252 = vmatpush1.bf16.msra.mxu1 %v3178_v38 }
  0xe8   : > { %2151 = vmatprep.subr.bf16.mxu0 %v3183_v39  ;;  %2253 = vmatprep.subr.bf16.mxu1 %v3186_v40  ;;  %v2290_v37 = vsub.s32 0, %v2289_v36  ;;  %v2298_v38 = vsub.s32 2, %v2289_v36  ;;  %v2286_v39 = vld [vmem:[%s4214_s2] sm:$0xf]  ;;  %v2294_v40 = vsub.s32 1, %v2289_v36 }
  0xeb   : > { %2152 = vmatpush1.bf16.msra.mxu0 %v3181_v41  ;;  %2254 = vmatpush1.bf16.msra.mxu1 %v3184_v42  ;;  %v2302_v41 = vsub.s32 3, %v2289_v36  ;;  %v4121_v42 = vrot.slane %v2286_v39, %v2290_v37 }
  0xec   : > { %2153 = vmatprep.subr.bf16.mxu0 %v3189_v43  ;;  %2255 = vmatprep.subr.bf16.mxu1 %v3192_v44  ;;  %v2332_v43 = vld [vmem:[%s4215_s3] sm:$0xf]  ;;  %v4126_v44 = vrot.slane %v2286_v39, %v2298_v38 }
  0xef   : > { %2154 = vmatpush1.bf16.msra.mxu0 %v3187_v45  ;;  %2256 = vmatpush1.bf16.msra.mxu1 %v3190_v46  ;;  %v2366_v45 = vld [vmem:[%s4216_s4] sm:$0xf]  ;;  %v4131_v46 = vrot.slane %v2286_v39, %v2294_v40 }
  0xf0   : > { %2155 = vmatprep.subr.bf16.mxu0 %v3195_v47  ;;  %2257 = vmatprep.subr.bf16.mxu1 %v3198_v49  ;;  %v4133_v47 = vrot.slane %v2286_v39, %v2302_v41 }
  0xf3   : > { %2156 = vmatpush1.bf16.msra.mxu0 %v3193_v51  ;;  %2258 = vmatpush1.bf16.msra.mxu1 %v3196_v52  ;;  %v4135_v51 = vrot.slane %v2332_v43, %v2290_v37 }
  0xf4   : > { %2157 = vmatprep.subr.bf16.mxu0 %v3201_v53  ;;  %2259 = vmatprep.subr.bf16.mxu1 %v3204_v54  ;;  %v4137_v53 = vrot.slane %v2332_v43, %v2298_v38  ;;  %v4139_v54 = vrot.slane %v2332_v43, %v2294_v40 }
  0xf7   : > { %2158 = vmatpush1.bf16.msra.mxu0 %v3199_v55  ;;  %2260 = vmatpush1.bf16.msra.mxu1 %v3202_v56  ;;  %v4141_v55 = vrot.slane %v2332_v43, %v2302_v41 }
  0xf8   : > { %2159 = vmatprep.subr.bf16.mxu0 %v3207_v57  ;;  %2261 = vmatprep.subr.bf16.mxu1 %v3210_v58  ;;  %v4144_v57 = vrot.slane %v2366_v45, %v2290_v37 }
  0xfb   : > { %2160 = vmatpush1.bf16.msra.mxu0 %v3205_v59  ;;  %2262 = vmatpush1.bf16.msra.mxu1 %v3208_v63  ;;  %v4147_v59 = vrot.slane %v2366_v45, %v2298_v38 }
  0xfc   : > { %2161 = vmatprep.subr.bf16.mxu0 %v3213_v0  ;;  %2263 = vmatprep.subr.bf16.mxu1 %v3216_v1 }
  0xff   : > { %2162 = vmatpush1.bf16.msra.mxu0 %v3211_v2  ;;  %2264 = vmatpush1.bf16.msra.mxu1 %v3214_v3  ;;  %v4150_v2 = vrot.slane %v2366_v45, %v2294_v40 }
 0x100   : > { %2163 = vmatprep.subr.bf16.mxu0 %v3219_v4  ;;  %2265 = vmatprep.subr.bf16.mxu1 %v3222_v5  ;;  %v4153_v4 = vrot.slane %v2366_v45, %v2302_v41 }
 0x103   : > { %2164 = vmatpush1.bf16.msra.mxu0 %v3217_v6  ;;  %2266 = vmatpush1.bf16.msra.mxu1 %v3220_v7 }
 0x106   : > { %2166 = vmatmul.mubr.bf16.vlgmr.msra.gmra.mrb[0].mxu0 %v3664_v32  ;;  %2268 = vmatmul.mubr.bf16.vlgmr.msra.gmra.mrb[0].mxu1 %v3664_v32 }
 0x107   : > { %2175 = vmatprep.mubr.bf16.mxu0 %v3587_v62  ;;  %2277 = vmatprep.mubr.bf16.mxu1 %v3587_v62 }
 0x10e   : > { %2176 = vmatmul.mubr.bf16.gmra.mrb[16].mxu0 %v3666_v33  ;;  %2278 = vmatmul.mubr.bf16.gmra.mrb[16].mxu1 %v3666_v33 }
 0x121   : > { %v1274_v8 = vpop.f32.mrb[4].mxu0  ;;  %v1376_v9 = vpop.f32.mrb[4].mxu1 }
 0x122   : > { %v1276_v10 = vpop.f32.mrb[5].mxu0  ;;  %v1378_v11 = vpop.f32.mrb[5].mxu1 }
 0x123   : > { %v1278_v12 = vpop.f32.mrb[6].mxu0  ;;  %v1380_v13 = vpop.f32.mrb[6].mxu1 }
 0x124   : > { %v1279_v14 = vpop.f32.mrb[7].mxu0  ;;  %v1381_v15 = vpop.f32.mrb[7].mxu1 }
 0x161   : > { %v1325_v16 = vpop.f32.mrb[8].mxu0  ;;  %v1427_v17 = vpop.f32.mrb[8].mxu1 }
 0x162   : > { %v1326_v50 = vadd.f32 %v1325_v16, %v1274_v8  ;;  %v1428_v32 = vadd.f32 %v1427_v17, %v1376_v9  ;;  %v1327_v18 = vpop.f32.mrb[9].mxu0  ;;  %v1429_v48 = vpop.f32.mrb[9].mxu1 }
 0x163   : > { %v1328_v19 = vadd.f32 %v1327_v18, %v1276_v10  ;;  %v1430_v62 = vadd.f32 %v1429_v48, %v1378_v11  ;;  %v1329_v61 = vpop.f32.mrb[10].mxu0  ;;  %v1431_v20 = vpop.f32.mrb[10].mxu1 }
 0x164   : > { %v1330_v21 = vpop.f32.mrb[11].mxu0  ;;  %v1432_v33 = vpop.f32.mrb[11].mxu1 }
 0x1a1   : > { %v2126_v22 = vpop.f32.mrb[12].mxu0  ;;  %v2228_v60 = vpop.f32.mrb[12].mxu1 }
 0x1a2   : > { %v4110_v23 = vadd.f32 %v2126_v22, %v1326_v50  ;;  %v4112_v24 = vadd.f32 %v2228_v60, %v1428_v32  ;;  %v2128_v25 = vpop.f32.mrb[13].mxu0  ;;  %v2230_v26 = vpop.f32.mrb[13].mxu1 }
 0x1a3   : > { %v4114_v27 = vadd.f32 %v2128_v25, %v1328_v19  ;;  %v4116_v28 = vadd.f32 %v2230_v26, %v1430_v62  ;;  %v2130_v29 = vpop.f32.mrb[14].mxu0  ;;  %v2232_v30 = vpop.f32.mrb[14].mxu1 }
 0x1a4   : > { %v2131_v31 = vpop.f32.mrb[15].mxu0  ;;  %v2233_v34 = vpop.f32.mrb[15].mxu1 }
 0x1d9   : > { %v2167_v49 = vpop.f32.mrb[0].mxu0  ;;  %v2269_v52 = vpop.f32.mrb[0].mxu1 }
 0x1da   : > { %v2308_v56 = vadd.f32 %v4121_v42, %v2167_v49  ;;  %v2310_v58 = vadd.f32 %v4126_v44, %v2269_v52  ;;  %v2169_v63 = vpop.f32.mrb[1].mxu0  ;;  %v2271_v0 = vpop.f32.mrb[1].mxu1 }
 0x1db   : > { %v2309_v1 = vadd.f32 %v4131_v46, %v2169_v63  ;;  %v2311_v3 = vadd.f32 %v4133_v47, %v2271_v0  ;;  %v2171_v5 = vpop.f32.mrb[2].mxu0  ;;  %v2273_v6 = vpop.f32.mrb[2].mxu1 }
 0x1dc   : > { %v2320_v7 = vmax.f32 %v2308_v56, 0.0  ;;  %v2322_v8 = vmax.f32 %v2310_v58, 0.0  ;;  %v2312_v9 = vadd.f32 %v4121_v42, %v2171_v5  ;;  %v2314_v10 = vadd.f32 %v4126_v44, %v2273_v6  ;;  %v2173_v11 = vpop.f32.mrb[3].mxu0  ;;  %v2275_v12 = vpop.f32.mrb[3].mxu1 }
 0x1dd   : > { %v2321_v13 = vmax.f32 %v2309_v1, 0.0  ;;  %v2323_v14 = vmax.f32 %v2311_v3, 0.0  ;;  %v2313_v15 = vadd.f32 %v4131_v46, %v2173_v11  ;;  %v2315_v16 = vadd.f32 %v4133_v47, %v2275_v12  ;;  %v2450_v11 = vld [vmem:[%s4176_s26 + $0x20] sm:$0x77]  ;;  %v2453_v12 = vld [vmem:[%s4176_s26 + $0x28] sm:$0x77] }
 0x1de   : > { %v2354_v17 = vmul.f32 %v4135_v51, %v2320_v7  ;;  %v2356_v50 = vmul.f32 %v4137_v53, %v2322_v8  ;;  %v2324_v32 = vmax.f32 %v2312_v9, 0.0  ;;  %v2326_v18 = vmax.f32 %v2314_v10, 0.0 }
 0x1df   : > { %v2355_v48 = vmul.f32 %v4139_v54, %v2321_v13  ;;  %v2357_v19 = vmul.f32 %v4141_v55, %v2323_v14  ;;  %v2325_v62 = vmax.f32 %v2313_v15, 0.0  ;;  %v2327_v61 = vmax.f32 %v2315_v16, 0.0 }
 0x1e0   : > { %v2388_v20 = vadd.f32 %v4144_v57, %v2354_v17  ;;  %v2390_v21 = vadd.f32 %v4147_v59, %v2356_v50  ;;  %v2358_v33 = vmul.f32 %v4135_v51, %v2324_v32  ;;  %v2360_v22 = vmul.f32 %v4137_v53, %v2326_v18 }
 0x1e1   : > { %v2389_v60 = vadd.f32 %v4150_v2, %v2355_v48  ;;  %v2391_v25 = vadd.f32 %v4153_v4, %v2357_v19  ;;  %v2359_v26 = vmul.f32 %v4139_v54, %v2325_v62  ;;  %v2361_v29 = vmul.f32 %v4141_v55, %v2327_v61  ;;  %v2177_v30 = vpop.f32.mrb[16].mxu0  ;;  %v2279_v31 = vpop.f32.mrb[16].mxu1 }
 0x1e2   : > { %v2392_v34 = vadd.f32 %v4144_v57, %v2358_v33  ;;  %v2394_v35 = vadd.f32 %v4147_v59, %v2360_v22  ;;  %v2178_v36 = vadd.f32 %v2177_v30, %v4110_v23  ;;  %v2280_v37 = vadd.f32 %v2279_v31, %v4112_v24  ;;  %v2179_v38 = vpop.f32.mrb[17].mxu0  ;;  %v2281_v39 = vpop.f32.mrb[17].mxu1 }
 0x1e3   : > { %v2790_v40 = vpack.c.bf16 %v2389_v60, %v2388_v20  ;;  %v2791_v41 = vpack.c.bf16 %v2391_v25, %v2390_v21  ;;  %v2393_v43 = vadd.f32 %v4150_v2, %v2359_v26  ;;  %v2395_v45 = vadd.f32 %v4153_v4, %v2361_v29  ;;  %v2181_v49 = vpop.f32.mrb[18].mxu0  ;;  %v2283_v52 = vpop.f32.mrb[18].mxu1 }
 0x1e4   : > { %v2316_v56 = vadd.f32 %v4121_v42, %v2178_v36  ;;  %v2318_v58 = vadd.f32 %v4126_v44, %v2280_v37  ;;  %v2180_v23 = vadd.f32 %v2179_v38, %v4114_v27  ;;  %v2282_v24 = vadd.f32 %v2281_v39, %v4116_v28  ;;  %v2182_v63 = vpop.f32.mrb[19].mxu0  ;;  %v2284_v0 = vpop.f32.mrb[19].mxu1 }
 0x1e5   : > { %2440 = vst [vmem:[%s4176_s26] sm:$0xff] %v2790_v40  ;;  %2441 = vst [vmem:[%s4176_s26 + $0x8] sm:$0xff] %v2791_v41  ;;  %v2792_v1 = vpack.c.bf16 %v2393_v43, %v2392_v34  ;;  %v2793_v3 = vpack.c.bf16 %v2395_v45, %v2394_v35 }
 0x1e6   : > { %v2328_v5 = vmax.f32 %v2316_v56, 0.0  ;;  %v2330_v6 = vmax.f32 %v2318_v58, 0.0  ;;  %v2317_v42 = vadd.f32 %v4131_v46, %v2180_v23  ;;  %v2319_v44 = vadd.f32 %v4133_v47, %v2282_v24 }
 0x1e7   : > { %2442 = vst [vmem:[%s4176_s26 + $0x10] sm:$0xff] %v2792_v1  ;;  %2443 = vst [vmem:[%s4176_s26 + $0x18] sm:$0xff] %v2793_v3 }
 0x1e8   : > { %v2362_v27 = vmul.f32 %v4135_v51, %v2328_v5  ;;  %v2364_v28 = vmul.f32 %v4137_v53, %v2330_v6  ;;  %v2329_v7 = vmax.f32 %v2317_v42, 0.0  ;;  %v2331_v8 = vmax.f32 %v2319_v44, 0.0 }
 0x1ea   : > { %v2396_v46 = vadd.f32 %v4144_v57, %v2362_v27  ;;  %v2398_v47 = vadd.f32 %v4147_v59, %v2364_v28  ;;  %v2363_v9 = vmul.f32 %v4139_v54, %v2329_v7  ;;  %v2365_v10 = vmul.f32 %v4141_v55, %v2331_v8 }
 0x1ec   : > { %v2397_v51 = vadd.f32 %v4150_v2, %v2363_v9  ;;  %v2399_v53 = vadd.f32 %v4153_v4, %v2365_v10 }
 0x1ee   : > { %v2794_v13 = vpack.c.bf16 %v2397_v51, %v2396_v46  ;;  %v2795_v14 = vpack.c.bf16 %v2399_v53, %v2398_v47 }
 0x1f0   : > { %v2451_v15 = vsel %vm2449_vm6, %v2794_v13, %v2450_v11  ;;  %v2454_v16 = vsel %vm2449_vm6, %v2795_v14, %v2453_v12 }
 0x1f1   : > { %2452 = vst [vmem:[%s4176_s26 + $0x20] sm:$0x77] %v2451_v15  ;;  %2455 = vst [vmem:[%s4176_s26 + $0x28] sm:$0x77] %v2454_v16 }
 0x1f2 PF: > { %s15_s18 = sadd.s32 1, %s3230_s18  }
 0x1f3   : > { %p12_p4 = scmp.ge.s32.totalorder %s15_s18, 4  }
 0x1f5   :  { %14 = sbr.rel (!%p12_p4) target bundleno = 1 (0x1), region = 70 }

// kernel: _lambda_.22
= control target key start
LH: loop header
LB: loop body
LE: loop exit
PB: predicated region body
PF: predicated region fallthrough
CT: control target
= control target key end

     0   :  { %s1910_s12 = smov 0   ;;  %s2301_s0 = inlined_call_operand.vmem [shape: f32[2,10,544], index: 0, kind: input, shape index: {}]   ;;  %s2302_s1 = inlined_call_operand.vmem [shape: bf16[1632,128], index: 1, kind: input, shape index: {}]   ;;  %s2303_s2 = inlined_call_operand.vmem [shape: f32[1,128], index: 2, kind: input, shape index: {}]   ;;  %s2304_s3 = inlined_call_operand.vmem [shape: f32[2,8,128], index: 3, kind: output, shape index: {}]  }
   0x1 LB: > { %s1487_s13 = sadd.s32 4294967295, %s1886_s12   ;;  %p1491_p0 = scmp.ge.s32.totalorder %s1886_s12, 1  ;;  %s1886_s12 = sphi %s1910_s12, %s13_s12  }
   0x2   : > { %p137_p1 = scmp.lt.s32.totalorder %s1886_s12, 3 }
   0x4   : > { %p138_p2 = pnand %p1491_p0, %p137_p1 }
   0x5   : > { %v1778_v0 = vld [vmem:[%s2302_s1 + $0x150] sm:$0xff] (!%p138_p2)   ;;  %v1782_v4 = vld [vmem:[%s2302_s1 + $0x158] sm:$0xff] (!%p138_p2)   ;;  %v1786_v8 = vld [vmem:[%s2302_s1 + $0x160] sm:$0xff] (!%p138_p2)   ;;  %p160_p3 = scmp.lt.s32.totalorder (!%p138_p2), %s1487_s13, 1  ;;  %v1888_v39 = vmov (!%p138_p2), 0.0   ;;  %vm1889_vm0 = vmmov (!%p138_p2), 0  }
   0x6   : > { %141 = sbr.rel (%p138_p2) target bundleno = 340 (0x154), region = 32  ;;  %v1779_v1 = vld [vmem:[%s2302_s1 + $0x1d0] sm:$0xff] (!%p138_p2)   ;;  %1602 = vmatprep.subr.bf16.mxu0 (!%p138_p2), %v1778_v0  ;;  %v1783_v5 = vld [vmem:[%s2302_s1 + $0x1d8] sm:$0xff] (!%p138_p2)   ;;  %v1787_v9 = vld [vmem:[%s2302_s1 + $0x1e0] sm:$0xff] (!%p138_p2)   ;;  %vm564_vm1 = vcmask (!%p138_p2), 261120  }
   0x7   : > { %v1780_v2 = vld [vmem:[%s2302_s1 + $0x110] sm:$0xff] (!%p138_p2)   ;;  %1624 = vmatprep.subr.bf16.mxu1 (!%p138_p2), %v1779_v1  ;;  %v1784_v6 = vld [vmem:[%s2302_s1 + $0x118] sm:$0xff] (!%p138_p2)   ;;  %v1788_v10 = vld [vmem:[%s2302_s1 + $0x120] sm:$0xff] (!%p138_p2)  }
   0x8   : > { %v1781_v3 = vld [vmem:[%s2302_s1 + $0x190] sm:$0xff] (!%p138_p2)   ;;  %1603 = vmatpush3.bf16.msra.mxu0 (!%p138_p2), %v1780_v2  ;;  %v1785_v7 = vld [vmem:[%s2302_s1 + $0x198] sm:$0xff] (!%p138_p2)   ;;  %v1789_v11 = vld [vmem:[%s2302_s1 + $0x1a0] sm:$0xff] (!%p138_p2)  }
   0x9   : > { %1625 = vmatpush3.bf16.msra.mxu1 (!%p138_p2), %v1781_v3  ;;  %1604 = vmatprep.subr.bf16.mxu0 (!%p138_p2), %v1782_v4  ;;  %v1790_v12 = vld [vmem:[%s2302_s1 + $0x168] sm:$0xff] (!%p138_p2)   ;;  %v1794_v16 = vld [vmem:[%s2302_s1 + $0x170] sm:$0xff] (!%p138_p2)   ;;  %v1798_v20 = vld [vmem:[%s2302_s1 + $0x178] sm:$0xff] (!%p138_p2)  }
   0xa   : > { %1626 = vmatprep.subr.bf16.mxu1 (!%p138_p2), %v1783_v5  ;;  %v1791_v13 = vld [vmem:[%s2302_s1 + $0x1e8] sm:$0xff] (!%p138_p2)   ;;  %v1795_v17 = vld [vmem:[%s2302_s1 + $0x1f0] sm:$0xff] (!%p138_p2)   ;;  %v1799_v21 = vld [vmem:[%s2302_s1 + $0x1f8] sm:$0xff] (!%p138_p2)  }
   0xb   : > { %v1792_v14 = vld [vmem:[%s2302_s1 + $0x128] sm:$0xff] (!%p138_p2)   ;;  %v1796_v18 = vld [vmem:[%s2302_s1 + $0x130] sm:$0xff] (!%p138_p2)   ;;  %v1800_v22 = vld [vmem:[%s2302_s1 + $0x138] sm:$0xff] (!%p138_p2)  }
   0xc   : > { %1605 = vmatpush3.bf16.msra.mxu0 (!%p138_p2), %v1784_v6  ;;  %v1793_v15 = vld [vmem:[%s2302_s1 + $0x1a8] sm:$0xff] (!%p138_p2)   ;;  %v1797_v19 = vld [vmem:[%s2302_s1 + $0x1b0] sm:$0xff] (!%p138_p2)   ;;  %v1801_v23 = vld [vmem:[%s2302_s1 + $0x1b8] sm:$0xff] (!%p138_p2)  }
   0xd   : > { %1627 = vmatpush3.bf16.msra.mxu1 %v1785_v7  ;;  %1606 = vmatprep.subr.bf16.mxu0 %v1786_v8  ;;  %s2306_s13 = smov (!%p160_p3, %s1487_s13), 1  ;;  %v1802_v24 = vld [vmem:[%s2302_s1 + $0x180] sm:$0xff]   ;;  %v1806_v28 = vld [vmem:[%s2302_s1 + $0x188] sm:$0xff]   ;;  %v1811_v55 = vld [vmem:[%s2302_s1 + $0x210] sm:$0xff]  }
   0xe   : > { %1628 = vmatprep.subr.bf16.mxu1 %v1787_v9  ;;  %v1803_v25 = vld [vmem:[%s2302_s1 + $0x200] sm:$0xff]   ;;  %s1767_s16 = smul.u32 80, %s2306_s13  ;;  %v1807_v29 = vld [vmem:[%s2302_s1 + $0x208] sm:$0xff]   ;;  %v1814_v1 = vld [vmem:[%s2302_s1 + $0x218] sm:$0xff]   ;;  %s1493_s24 = sshll.u32 %s2306_s13, 3 }
   0xf   : > { %v1804_v26 = vld [vmem:[%s2302_s1 + $0x140] sm:$0xff]   ;;  %v1808_v30 = vld [vmem:[%s2302_s1 + $0x148] sm:$0xff]   ;;  %v1816_v9 = vld [vmem:[%s2302_s1 + $0x50] sm:$0xff]  }
  0x10   : > { %1607 = vmatpush3.bf16.msra.mxu0 %v1788_v10  ;;  %v1805_v27 = vld [vmem:[%s2302_s1 + $0x1c0] sm:$0xff]   ;;  %s2018_s27 = scalar_lea.vmem %s2301_s0, %s1767_s16  ;;  %v1809_v31 = vld [vmem:[%s2302_s1 + $0x1c8] sm:$0xff]   ;;  %v1818_v10 = vld [vmem:[%s2302_s1 + $0x10] sm:$0xff]  }
  0x11   : > { %1629 = vmatpush3.bf16.msra.mxu1 %v1789_v11  ;;  %1608 = vmatprep.subr.bf16.mxu0 %v1790_v12  ;;  %v171_v32 = vld [vmem:[%s2018_s27 + $0x8] sm:$0xff]  ;;  %v176_v33 = vld [vmem:[%s2018_s27 + $0x30] sm:$0x3]  ;;  %v173_v34 = vld [vmem:[%s2018_s27 + $0x18] sm:$0xff] }
  0x12   : > { %1630 = vmatprep.subr.bf16.mxu1 %v1791_v13  ;;  %v2029_v35 = vpack.c.bf16 %v176_v33, %v171_v32  ;;  %v178_v36 = vld [vmem:[%s2018_s27 + $0x40] sm:$0x3]  ;;  %v175_v38 = vld [vmem:[%s2018_s27 + $0x28] sm:$0x3]  ;;  %v172_v42 = vld [vmem:[%s2018_s27 + $0x10] sm:$0xff] }
  0x13   : > { %v170_v37 = vld [vmem:[%s2018_s27] sm:$0xff]  ;;  %v2035_v40 = vpack.c.bf16 %v178_v36, %v173_v34  ;;  %v177_v43 = vld [vmem:[%s2018_s27 + $0x38] sm:$0x3]  ;;  %v1813_v63 = vld [vmem:[%s2302_s1 + $0x48] sm:$0xff]  }
  0x14   : > { %1609 = vmatpush3.bf16.msra.mxu0 %v1792_v14  ;;  %v2037_v41 = vpack.c.bf16 %v175_v38, %v170_v37  ;;  %v329_v44 = vshrl.u32 %v2029_v35, 16  ;;  %v331_v45 = vshll.u32 %v2029_v35, 16  ;;  %v2043_v46 = vpack.c.bf16 %v177_v43, %v172_v42  ;;  %v1810_v47 = vld [vmem:[%s2302_s1 + $0x40] sm:$0xff]   ;;  %v179_v3 = vld [vmem:[%s2018_s27 + $0x48] sm:$0x3]  ;;  %v1820_v13 = vld [vmem:[%s2302_s1 + $0x58] sm:$0xff]  }
  0x15   : > { %1631 = vmatpush3.bf16.msra.mxu1 %v1793_v15  ;;  %1610 = vmatprep.subr.bf16.mxu0 %v1794_v16  ;;  %v343_v48 = vshrl.u32 %v2035_v40, 16  ;;  %v345_v49 = vshll.u32 %v2035_v40, 16  ;;  %v1812_v60 = vld [vmem:[%s2302_s1] sm:$0xff]   ;;  %v1815_v4 = vld [vmem:[%s2302_s1 + $0x8] sm:$0xff]   ;;  %v1822_v16 = vld [vmem:[%s2302_s1 + $0x18] sm:$0xff]  }
  0x16   : > { %1632 = vmatprep.subr.bf16.mxu1 %v1795_v17  ;;  %v322_v50 = vshrl.u32 %v2037_v41, 16  ;;  %v324_v51 = vshll.u32 %v2037_v41, 16  ;;  %v333_v52 = vrot.slane %v331_v45, 1  ;;  %v336_v53 = vshrl.u32 %v2043_v46, 16  ;;  %v174_v2 = vld [vmem:[%s2018_s27 + $0x20] sm:$0xff]  ;;  %v1821_v15 = vld [vmem:[%s2302_s1 + $0xc8] sm:$0xff]   ;;  %s168_s27 = scalar_lea.vmem %s2304_s3, %s1493_s24 }
  0x17   : > { %v338_v54 = vshll.u32 %v2043_v46, 16  ;;  %v347_v56 = vrot.slane %v345_v49, 1  ;;  %v2071_v5 = vpack.c.bf16 %v179_v3, %v174_v2  ;;  %v1817_v6 = vld [vmem:[%s2302_s1 + $0xc0] sm:$0xff]   ;;  %v1823_v17 = vld [vmem:[%s2302_s1 + $0x88] sm:$0xff]   ;;  %v1838_v32 = vld [vmem:[%s2302_s1 + $0x38] sm:$0xff]  }
  0x18   : > { %1611 = vmatpush3.bf16.msra.mxu0 %v1796_v18  ;;  %v326_v57 = vrot.slane %v324_v51, 1  ;;  %v334_v58 = vor.u32 %v333_v52, %v329_v44  ;;  %v1819_v12 = vld [vmem:[%s2302_s1 + $0x80] sm:$0xff]   ;;  %v1839_v33 = vld [vmem:[%s2302_s1 + $0xa8] sm:$0xff]   ;;  %v1840_v34 = vld [vmem:[%s2302_s1 + $0xf0] sm:$0xff]   ;;  %v1088_v51 = vrot.slane %v2029_v35, 1 }
  0x19   : > { %1633 = vmatpush3.bf16.msra.mxu1 %v1797_v19  ;;  %1612 = vmatprep.subr.bf16.mxu0 %v1798_v20  ;;  %v340_v59 = vrot.slane %v338_v54, 1  ;;  %v348_v61 = vor.u32 %v347_v56, %v343_v48  ;;  %v350_v7 = vshrl.u32 %v2071_v5, 16  ;;  %v352_v8 = vshll.u32 %v2071_v5, 16  ;;  %v1824_v18 = vld [vmem:[%s2302_s1 + $0x60] sm:$0xff]   ;;  %v1825_v19 = vld [vmem:[%s2302_s1 + $0xd0] sm:$0xff]   ;;  %v1843_v38 = vld [vmem:[%s2302_s1 + $0xf8] sm:$0xff]  }
  0x1a   : > { %1634 = vmatprep.subr.bf16.mxu1 %v1799_v21  ;;  %v327_v62 = vor.u32 %v326_v57, %v322_v50  ;;  %600 = vmatprep.mubr.bf16.mxu0 %v334_v58  ;;  %v1826_v20 = vld [vmem:[%s2302_s1 + $0x20] sm:$0xff]   ;;  %v1827_v21 = vld [vmem:[%s2302_s1 + $0x90] sm:$0xff]   ;;  %v1844_v42 = vld [vmem:[%s2302_s1 + $0xb8] sm:$0xff]  }
  0x1b   : > { %v341_v0 = vor.u32 %v340_v59, %v336_v53  ;;  %640 = vmatprep.mubr.bf16.mxu1 %v348_v61  ;;  %v354_v11 = vrot.slane %v352_v8, 1  ;;  %v1841_v36 = vld [vmem:[%s2302_s1 + $0xb0] sm:$0xff]   ;;  %v1842_v37 = vld [vmem:[%s2302_s1 + $0x100] sm:$0xff]   ;;  %v1845_v43 = vld [vmem:[%s2302_s1 + $0x108] sm:$0xff]   ;;  %v1090_v53 = vrot.slane %v2035_v40, 1 }
  0x1c   : > { %1613 = vmatpush3.bf16.msra.mxu0 %v1800_v22  ;;  %v1828_v22 = vld [vmem:[%s2302_s1 + $0x68] sm:$0xff]   ;;  %v1846_v44 = vld [vmem:[%s2302_s1 + $0x260] sm:$0xff]   ;;  %v1857_v56 = vld [vmem:[%s2302_s1 + $0x2b0] sm:$0xff]  }
  0x1d   : > { %1635 = vmatpush3.bf16.msra.mxu1 %v1801_v23  ;;  %1614 = vmatprep.subr.bf16.mxu0 %v1802_v24  ;;  %v355_v14 = vor.u32 %v354_v11, %v350_v7  ;;  %v1829_v23 = vld [vmem:[%s2302_s1 + $0xd8] sm:$0xff]   ;;  %v1830_v24 = vld [vmem:[%s2302_s1 + $0x28] sm:$0xff]   ;;  %v1847_v45 = vld [vmem:[%s2302_s1 + $0x2e0] sm:$0xff]  }
  0x1e   : > { %1636 = vmatprep.subr.bf16.mxu1 %v1803_v25  ;;  %v1831_v25 = vld [vmem:[%s2302_s1 + $0x98] sm:$0xff]   ;;  %v1849_v48 = vld [vmem:[%s2302_s1 + $0x2a0] sm:$0xff]   ;;  %v1850_v49 = vld [vmem:[%s2302_s1 + $0x268] sm:$0xff]  }
  0x1f   : > { %v1851_v50 = vld [vmem:[%s2302_s1 + $0x2e8] sm:$0xff]   ;;  %v1858_v57 = vld [vmem:[%s2302_s1 + $0x278] sm:$0xff]   ;;  %v1862_v61 = vld [vmem:[%s2302_s1 + $0x280] sm:$0xff]  }
  0x20   : > { %1615 = vmatpush3.bf16.msra.mxu0 %v1804_v26  ;;  %v1832_v26 = vld [vmem:[%s2302_s1 + $0x70] sm:$0xff]   ;;  %v1852_v52 = vld [vmem:[%s2302_s1 + $0x228] sm:$0xff]   ;;  %v1859_v58 = vld [vmem:[%s2302_s1 + $0x2f8] sm:$0xff]  }
  0x21   : > { %1637 = vmatpush3.bf16.msra.mxu1 %v1805_v27  ;;  %1616 = vmatprep.subr.bf16.mxu0 %v1806_v28  ;;  %v1833_v27 = vld [vmem:[%s2302_s1 + $0xe0] sm:$0xff]   ;;  %v1834_v28 = vld [vmem:[%s2302_s1 + $0x30] sm:$0xff]   ;;  %v1853_v54 = vld [vmem:[%s2302_s1 + $0x2a8] sm:$0xff]  }
  0x22   : > { %1638 = vmatprep.subr.bf16.mxu1 %v1807_v29  ;;  %v1835_v29 = vld [vmem:[%s2302_s1 + $0xa0] sm:$0xff]   ;;  %v1860_v59 = vld [vmem:[%s2302_s1 + $0x238] sm:$0xff]   ;;  %v1867_v2 = vld [vmem:[%s2302_s1 + $0x308] sm:$0xff]  }
  0x23   : > { %v1868_v3 = vld [vmem:[%s2302_s1 + $0x248] sm:$0xff]   ;;  %v1871_v7 = vld [vmem:[%s2302_s1 + $0x310] sm:$0xff]   ;;  %v1875_v11 = vld [vmem:[%s2302_s1 + $0x318] sm:$0xff]  }
  0x24   : > { %1617 = vmatpush3.bf16.msra.mxu0 %v1808_v30  ;;  %v1836_v30 = vld [vmem:[%s2302_s1 + $0x78] sm:$0xff]   ;;  %v1872_v8 = vld [vmem:[%s2302_s1 + $0x250] sm:$0xff]  }
  0x25   : > { %1639 = vmatpush3.bf16.msra.mxu1 %v1809_v31  ;;  %1743 = vmatprep.subr.bf16.mxu0 %v1888_v39  ;;  %v1837_v31 = vld [vmem:[%s2302_s1 + $0xe8] sm:$0xff]  }
  0x26   : > { %1649 = vmatprep.subr.bf16.mxu1 %v1810_v47  ;;  %v1848_v47 = vld [vmem:[%s2302_s1 + $0x220] sm:$0xff]  }
  0x27   : > { %601 = vmatmul.mubr.bf16.vlgmr.msra.gmra.mrb[0].mxu0 %v327_v62  ;;  %v1863_v62 = vld [vmem:[%s2302_s1 + $0x300] sm:$0xff]  }
  0x28   : > { %641 = vmatmul.mubr.bf16.vlgmr.msra.gmra.mrb[0].mxu1 %v341_v0  ;;  %1744 = vmatpush3.bf16.msra.mxu0 %v1811_v55  ;;  %v1856_v55 = vld [vmem:[%s2302_s1 + $0x230] sm:$0xff]   ;;  %v1865_v0 = vld [vmem:[%s2302_s1 + $0x2c0] sm:$0xff]  }
  0x29   : > { %1650 = vmatpush3.bf16.msra.mxu1 %v1812_v60  ;;  %1745 = vmatprep.subr.bf16.mxu0 %v1888_v39  ;;  %v1861_v60 = vld [vmem:[%s2302_s1 + $0x2b8] sm:$0xff]  }
  0x2a   : > { %1651 = vmatprep.subr.bf16.mxu1 %v1813_v63  ;;  %1747 = vmatprep.mubr.msk.bf16.mxu0 %vm1889_vm0, %v1888_v39  ;;  %v1864_v63 = vld [vmem:[%s2302_s1 + $0x240] sm:$0xff]  }
  0x2b   : > { %926 = vmatprep.mubr.bf16.mxu1 %v2029_v35  ;;  %v1854_v35 = vld [vmem:[%s2302_s1 + $0x270] sm:$0xff]  }
  0x2c   : > { %1746 = vmatpush3.bf16.msra.mxu0 %v1814_v1  ;;  %v1866_v1 = vld [vmem:[%s2302_s1 + $0x288] sm:$0xff]  }
  0x2d   : > { %1652 = vmatpush3.bf16.msra.mxu1 %v1815_v4  ;;  %1671 = vmatprep.subr.bf16.mxu0 %v1817_v6  ;;  %v1869_v4 = vld [vmem:[%s2302_s1 + $0x2c8] sm:$0xff]   ;;  %v1870_v6 = vld [vmem:[%s2302_s1 + $0x290] sm:$0xff]  }
  0x2e   : > { %1653 = vmatprep.subr.bf16.mxu1 %v1816_v9  ;;  %v1873_v9 = vld [vmem:[%s2302_s1 + $0x2d0] sm:$0xff]  }
  0x2f   : > { %1748 = vmatmul.mubr.msk.bf16.vlgmr.msra.gmra.mrb[4].mxu0 %vm564_vm1, %v355_v14  ;;  %v1087_v14 = vrot.slane %v2037_v41, 1 }
  0x30   : > { %1672 = vmatpush3.bf16.msra.mxu0 %v1819_v12  ;;  %966 = vmatprep.mubr.bf16.mxu0 %v2035_v40  ;;  %v1855_v40 = vld [vmem:[%s2302_s1 + $0x2f0] sm:$0xff]   ;;  %v1876_v12 = vld [vmem:[%s2302_s1 + $0x258] sm:$0xff]  }
  0x31   : > { %1654 = vmatpush3.bf16.msra.mxu1 %v1818_v10  ;;  %1673 = vmatprep.subr.bf16.mxu0 %v1821_v15  ;;  %v1874_v10 = vld [vmem:[%s2302_s1 + $0x298] sm:$0xff]   ;;  %v1089_v15 = vrot.slane %v2043_v46, 1 }
  0x32   : > { %1655 = vmatprep.subr.bf16.mxu1 %v1820_v13  ;;  %v1877_v13 = vld [vmem:[%s2302_s1 + $0x2d8] sm:$0xff]  }
  0x34   : > { %1674 = vmatpush3.bf16.msra.mxu0 %v1823_v17  ;;  %v1879_v17 = vld [vmem:[%s2302_s1 + $0x328] sm:$0xff]  }
  0x35   : > { %1656 = vmatpush3.bf16.msra.mxu1 %v1822_v16  ;;  %1675 = vmatprep.subr.bf16.mxu0 %v1825_v19  ;;  %v1878_v16 = vld [vmem:[%s2302_s1 + $0x320] sm:$0xff]  }
  0x36   : > { %1657 = vmatprep.subr.bf16.mxu1 %v1824_v18 }
  0x38   : > { %1676 = vmatpush3.bf16.msra.mxu0 %v1827_v21 }
  0x39   : > { %1658 = vmatpush3.bf16.msra.mxu1 %v1826_v20  ;;  %1677 = vmatprep.subr.bf16.mxu0 %v1829_v23 }
  0x3a   : > { %1659 = vmatprep.subr.bf16.mxu1 %v1828_v22 }
  0x3c   : > { %1678 = vmatpush3.bf16.msra.mxu0 %v1831_v25 }
  0x3d   : > { %1660 = vmatpush3.bf16.msra.mxu1 %v1830_v24  ;;  %1679 = vmatprep.subr.bf16.mxu0 %v1833_v27 }
  0x3e   : > { %1661 = vmatprep.subr.bf16.mxu1 %v1832_v26 }
  0x40   : > { %1680 = vmatpush3.bf16.msra.mxu0 %v1835_v29 }
  0x41   : > { %1662 = vmatpush3.bf16.msra.mxu1 %v1834_v28  ;;  %1681 = vmatprep.subr.bf16.mxu0 %v1837_v31 }
  0x42   : > { %1663 = vmatprep.subr.bf16.mxu1 %v1836_v30 }
  0x44   : > { %1682 = vmatpush3.bf16.msra.mxu0 %v1839_v33 }
  0x45   : > { %1664 = vmatpush3.bf16.msra.mxu1 %v1838_v32  ;;  %1683 = vmatprep.subr.bf16.mxu0 %v1840_v34 }
  0x46   : > { %1751 = vmatprep.subr.bf16.mxu1 %v1888_v39 }
  0x48   : > { %927 = vmatmul.mubr.bf16.vlgmr.msra.gmra.mrb[4].mxu1 %v2037_v41  ;;  %1684 = vmatpush3.bf16.msra.mxu0 %v1841_v36  ;;  %v1091_v41 = vrot.slane %v2071_v5, 1 }
  0x49   : > { %1752 = vmatpush3.bf16.msra.mxu1 %v1842_v37  ;;  %1685 = vmatprep.subr.bf16.mxu0 %v1843_v38 }
  0x4a   : > { %1753 = vmatprep.subr.bf16.mxu1 %v1888_v39  ;;  %1755 = vmatprep.mubr.msk.bf16.mxu1 %vm1889_vm0, %v1888_v39 }
  0x4c   : > { %1686 = vmatpush3.bf16.msra.mxu0 %v1844_v42 }
  0x4d   : > { %1754 = vmatpush3.bf16.msra.mxu1 %v1845_v43  ;;  %1696 = vmatprep.subr.bf16.mxu0 %v1846_v44 }
  0x4e   : > { %1718 = vmatprep.subr.bf16.mxu1 %v1847_v45 }
  0x4f   : > { %967 = vmatmul.mubr.bf16.vlgmr.msra.gmra.mrb[8].mxu0 %v2043_v46 }
  0x50   : > { %1756 = vmatmul.mubr.msk.bf16.vlgmr.msra.gmra.mrb[8].mxu1 %vm564_vm1, %v2071_v5  ;;  %1697 = vmatpush3.bf16.msra.mxu0 %v1848_v47 }
  0x51   : > { %1719 = vmatpush3.bf16.msra.mxu1 %v1849_v48  ;;  %1698 = vmatprep.subr.bf16.mxu0 %v1850_v49 }
  0x52   : > { %1720 = vmatprep.subr.bf16.mxu1 %v1851_v50  ;;  %1335 = vmatprep.mubr.bf16.mxu0 %v1088_v51 }
  0x53   : > { %1375 = vmatprep.mubr.bf16.mxu1 %v1090_v53 }
  0x54   : > { %1699 = vmatpush3.bf16.msra.mxu0 %v1852_v52 }
  0x55   : > { %1721 = vmatpush3.bf16.msra.mxu1 %v1853_v54  ;;  %1700 = vmatprep.subr.bf16.mxu0 %v1854_v35 }
  0x56   : > { %1722 = vmatprep.subr.bf16.mxu1 %v1855_v40 }
  0x58   : > { %1701 = vmatpush3.bf16.msra.mxu0 %v1856_v55 }
  0x59   : > { %1723 = vmatpush3.bf16.msra.mxu1 %v1857_v56  ;;  %1702 = vmatprep.subr.bf16.mxu0 %v1858_v57 }
  0x5a   : > { %1724 = vmatprep.subr.bf16.mxu1 %v1859_v58 }
  0x5c   : > { %1703 = vmatpush3.bf16.msra.mxu0 %v1860_v59 }
  0x5d   : > { %1725 = vmatpush3.bf16.msra.mxu1 %v1861_v60  ;;  %1704 = vmatprep.subr.bf16.mxu0 %v1862_v61 }
  0x5e   : > { %1726 = vmatprep.subr.bf16.mxu1 %v1863_v62 }
  0x60   : > { %1705 = vmatpush3.bf16.msra.mxu0 %v1864_v63 }
  0x61   : > { %1727 = vmatpush3.bf16.msra.mxu1 %v1865_v0  ;;  %1706 = vmatprep.subr.bf16.mxu0 %v1866_v1  ;;  %v1599_v1 = vld [vmem:[%s2303_s2] ss:$0 sm:$0xff] }
  0x62   : > { %1728 = vmatprep.subr.bf16.mxu1 %v1867_v2 }
  0x64   : > { %1707 = vmatpush3.bf16.msra.mxu0 %v1868_v3 }
  0x65   : > { %1729 = vmatpush3.bf16.msra.mxu1 %v1869_v4  ;;  %1708 = vmatprep.subr.bf16.mxu0 %v1870_v6 }
  0x66   : > { %1730 = vmatprep.subr.bf16.mxu1 %v1871_v7 }
  0x68   : > { %1709 = vmatpush3.bf16.msra.mxu0 %v1872_v8 }
  0x69   : > { %1731 = vmatpush3.bf16.msra.mxu1 %v1873_v9  ;;  %1710 = vmatprep.subr.bf16.mxu0 %v1874_v10 }
  0x6a   : > { %1732 = vmatprep.subr.bf16.mxu1 %v1875_v11 }
  0x6c   : > { %1711 = vmatpush3.bf16.msra.mxu0 %v1876_v12 }
  0x6d   : > { %1733 = vmatpush3.bf16.msra.mxu1 %v1877_v13  ;;  %1759 = vmatprep.subr.bf16.mxu0 %v1888_v39 }
  0x6f   : > { %1336 = vmatmul.mubr.bf16.vlgmr.msra.gmra.mrb[12].mxu0 %v1087_v14 }
  0x70   : > { %1376 = vmatmul.mubr.bf16.vlgmr.msra.gmra.mrb[12].mxu1 %v1089_v15  ;;  %1760 = vmatpush3.bf16.msra.mxu0 %v1878_v16 }
  0x71   : > { %1763 = vmatprep.mubr.msk.bf16.mxu0 %vm1889_vm0, %v1888_v39  ;;  %1761 = vmatprep.subr.bf16.mxu0 %v1888_v39 }
  0x74   : > { %1762 = vmatpush3.bf16.msra.mxu0 %v1879_v17 }
  0x77   : > { %1764 = vmatmul.mubr.msk.bf16.vlgmr.msra.gmra.mrb[16].mxu0 %vm564_vm1, %v1091_v41 }
  0xfa   : > { %v1618_v46 = vpop.f32.mrb[0].mxu0 }
  0xfb   : > { %v1640_v18 = vpop.f32.mrb[0].mxu1  ;;  %v1619_v19 = vpop.f32.mrb[1].mxu0 }
  0xfc   : > { %v1620_v20 = vadd.f32 %v1619_v19, %v1618_v46  ;;  %v1641_v21 = vpop.f32.mrb[1].mxu1  ;;  %v1621_v22 = vpop.f32.mrb[2].mxu0 }
  0xfd   : > { %v1642_v23 = vadd.f32 %v1641_v21, %v1640_v18  ;;  %v1622_v24 = vpop.f32.mrb[3].mxu0  ;;  %v1643_v25 = vpop.f32.mrb[2].mxu1 }
  0xfe   : > { %v1644_v26 = vpop.f32.mrb[3].mxu1 }
  0xff   : > { %v643_v27 = vadd.f32 %v1642_v23, %v1620_v20 }
 0x102   : > { %v682_v28 = vpop.f32.mrb[4].mxu0 }
 0x103   : > { %v683_v29 = vadd.f32 %v682_v28, %v643_v27  ;;  %v1749_v30 = vpop.f32.mrb[5].mxu0 }
 0x104   : > { %v685_v39 = vpop.f32.mrb[6].mxu0 }
 0x105   : > { %v1750_v31 = vpop.f32.mrb[7].mxu0 }
 0x11b   : > { %v1665_v5 = vpop.f32.mrb[4].mxu1 }
 0x11c   : > { %v1666_v32 = vpop.f32.mrb[5].mxu1 }
 0x11d   : > { %v1667_v33 = vadd.f32 %v1666_v32, %v1665_v5  ;;  %v1668_v34 = vpop.f32.mrb[6].mxu1 }
 0x11e   : > { %v1669_v36 = vpop.f32.mrb[7].mxu1 }
 0x11f   : > { %v929_v37 = vadd.f32 %v1667_v33, %v683_v29 }
 0x122   : > { %v1687_v38 = vpop.f32.mrb[8].mxu0 }
 0x123   : > { %v1008_v42 = vpop.f32.mrb[8].mxu1  ;;  %v1688_v43 = vpop.f32.mrb[9].mxu0 }
 0x124   : > { %v1757_v44 = vpop.f32.mrb[9].mxu1  ;;  %v1689_v45 = vadd.f32 %v1688_v43, %v1687_v38  ;;  %v1690_v47 = vpop.f32.mrb[10].mxu0 }
 0x125   : > { %v1011_v48 = vpop.f32.mrb[10].mxu1  ;;  %v1691_v49 = vpop.f32.mrb[11].mxu0 }
 0x126   : > { %v1758_v50 = vpop.f32.mrb[11].mxu1  ;;  %v969_v51 = vadd.f32 %v1689_v45, %v929_v37 }
 0x128   : > { %v1009_v52 = vadd.f32 %v1008_v42, %v969_v51 }
 0x142   : > { %v1712_v53 = vpop.f32.mrb[12].mxu0 }
 0x143   : > { %v1734_v54 = vpop.f32.mrb[12].mxu1  ;;  %v1713_v35 = vpop.f32.mrb[13].mxu0 }
 0x144   : > { %v1735_v40 = vpop.f32.mrb[13].mxu1  ;;  %v1714_v55 = vadd.f32 %v1713_v35, %v1712_v53  ;;  %v1715_v57 = vpop.f32.mrb[14].mxu0 }
 0x145   : > { %v1736_v56 = vadd.f32 %v1735_v40, %v1734_v54  ;;  %v1737_v58 = vpop.f32.mrb[14].mxu1  ;;  %v1716_v59 = vpop.f32.mrb[15].mxu0 }
 0x146   : > { %v1738_v60 = vpop.f32.mrb[15].mxu1 }
 0x147   : > { %v1378_v61 = vadd.f32 %v1736_v56, %v1714_v55 }
 0x14a   : > { %v1417_v62 = vpop.f32.mrb[16].mxu0 }
 0x14b   : > { %v1418_v63 = vadd.f32 %v1417_v62, %v1378_v61  ;;  %v1765_v0 = vpop.f32.mrb[17].mxu0 }
 0x14c   : > { %v1420_v2 = vpop.f32.mrb[18].mxu0 }
 0x14d   : > { %v1423_v3 = vadd.f32 %v1418_v63, %v1009_v52  ;;  %v1766_v4 = vpop.f32.mrb[19].mxu0 }
 0x14f   : > { %v1431_v6 = vadd.f32 %v1599_v1, %v1423_v3 }
 0x151   : > { %v1432_v7 = vmax.f32 %v1431_v6, 0.0 }
 0x153   : > { %1433 = vst [vmem:[%s168_s27] sm:$0xff] %v1432_v7 }
 0x154 PF: > { %s13_s12 = sadd.s32 1, %s1886_s12  }
 0x155   : > { %p10_p4 = scmp.ge.s32.totalorder %s13_s12, 4  }
 0x157   :  { %12 = sbr.rel (!%p10_p4) target bundleno = 1 (0x1), region = 62 }

// kernel: custom-call.10
= control target key start
LH: loop header
LB: loop body
LE: loop exit
PB: predicated region body
PF: predicated region fallthrough
CT: control target
= control target key end

     0   :  { %s6_s0 = inlined_call_operand.vmem [shape: f32[32,2,8], index: 0, kind: output, shape index: {}]  }

// kernel: custom-call.4
= control target key start
LH: loop header
LB: loop body
LE: loop exit
PB: predicated region body
PF: predicated region fallthrough
CT: control target
= control target key end

     0   :  { %s6_s0 = inlined_call_operand.vmem [shape: f32[2,8], index: 0, kind: output, shape index: {}]  }

// kernel: custom-call.9
= control target key start
LH: loop header
LB: loop body
LE: loop exit
PB: predicated region body
PF: predicated region fallthrough
CT: control target
= control target key end

     0   :  { %s6_s0 = inlined_call_operand.vmem [shape: f32[32,2,8], index: 0, kind: output, shape index: {}]  }

// kernel: _lambda_.23
= control target key start
LH: loop header
LB: loop body
LE: loop exit
PB: predicated region body
PF: predicated region fallthrough
CT: control target
= control target key end

     0   :  { %s523_s12 = smov 0   ;;  %s568_s0 = inlined_call_operand.vmem [shape: f32[2,10,32], index: 0, kind: input, shape index: {}]   ;;  %s569_s1 = inlined_call_operand.vmem [shape: bf16[96,128], index: 1, kind: input, shape index: {}]   ;;  %s570_s2 = inlined_call_operand.vmem [shape: f32[1,128], index: 2, kind: input, shape index: {}]   ;;  %s571_s3 = inlined_call_operand.vmem [shape: f32[2,8,128], index: 3, kind: output, shape index: {}]  }
   0x1 LB: > { %s423_s13 = sadd.s32 4294967295, %s499_s12   ;;  %p427_p0 = scmp.ge.s32.totalorder %s499_s12, 1  ;;  %s499_s12 = sphi %s523_s12, %s13_s12  }
   0x2   : > { %p137_p1 = scmp.lt.s32.totalorder %s499_s12, 3 }
   0x4   : > { %p138_p2 = pnand %p427_p0, %p137_p1 }
   0x5   : > { %v487_v0 = vld [vmem:[%s569_s1 + $0x10] sm:$0xff] (!%p138_p2)   ;;  %v501_v1 = vmov (!%p138_p2), 0.0   ;;  %v488_v2 = vld [vmem:[%s569_s1] sm:$0xff] (!%p138_p2)   ;;  %v489_v3 = vld [vmem:[%s569_s1 + $0x18] sm:$0xff] (!%p138_p2)   ;;  %vm502_vm0 = vmmov (!%p138_p2), 0   ;;  %p160_p3 = scmp.lt.s32.totalorder (!%p138_p2), %s423_s13, 1 }
   0x6   : > { %141 = sbr.rel (%p138_p2) target bundleno = 252 (0xfc), region = 32  ;;  %453 = vmatprep.subr.bf16.mxu0 (!%p138_p2), %v501_v1  ;;  %461 = vmatprep.subr.bf16.mxu1 (!%p138_p2), %v501_v1  ;;  %v490_v4 = vld [vmem:[%s569_s1 + $0x8] sm:$0xff] (!%p138_p2)   ;;  %vm200_vm1 = vcmask (!%p138_p2), 261120   ;;  %v491_v11 = vld [vmem:[%s569_s1 + $0x20] sm:$0xff] (!%p138_p2)  }
   0x7   : > { %454 = vmatpush3.bf16.msra.mxu0 (!%p138_p2), %v487_v0  ;;  %457 = vmatprep.mubr.msk.bf16.mxu0 (!%p138_p2), %vm502_vm0, %v501_v1  ;;  %v492_v13 = vld [vmem:[%s569_s1 + $0x28] sm:$0xff] (!%p138_p2)   ;;  %v440_v25 = vld [vmem:[%s570_s2] ss:$0 sm:$0xff] (!%p138_p2) }
   0x8   : > { %462 = vmatpush3.bf16.msra.mxu1 (!%p138_p2), %v488_v2  ;;  %455 = vmatprep.subr.bf16.mxu0 (!%p138_p2), %v501_v1 }
   0x9   : > { %463 = vmatprep.subr.bf16.mxu1 (!%p138_p2), %v501_v1  ;;  %465 = vmatprep.mubr.msk.bf16.mxu1 (!%p138_p2), %vm502_vm0, %v501_v1 }
   0xb   : > { %456 = vmatpush3.bf16.msra.mxu0 (!%p138_p2), %v489_v3 }
   0xc   : > { %464 = vmatpush3.bf16.msra.mxu1 (!%p138_p2), %v490_v4  ;;  %469 = vmatprep.subr.bf16.mxu0 (!%p138_p2), %v501_v1 }
   0xd   : > { %s573_s13 = smov (!%p160_p3, %s423_s13), 1 }
   0xe   : > { %s443_s22 = sshll.u32 %s573_s13, 4  ;;  %s430_s5 = sshll.u32 %s573_s13, 3 }
   0xf   : > { %s164_s25 = scalar_lea.vmem %s568_s0, %s443_s22  ;;  %s168_s8 = scalar_lea.vmem %s571_s3, %s430_s5 }
  0x10   : > { %v170_v5 = vld [vmem:[%s164_s25] sm:$0xff]  ;;  %v171_v6 = vld [vmem:[%s164_s25 + $0x8] sm:$0x3] }
  0x11   : > { %v172_v7 = vpack.c.bf16 %v171_v6, %v170_v5 }
  0x13   : > { %v182_v8 = vshrl.u32 %v172_v7, 16  ;;  %v184_v9 = vshll.u32 %v172_v7, 16  ;;  %466 = vmatmul.mubr.msk.bf16.vlgmr.msra.gmra.mrb[0].mxu1 %vm200_vm1, %v172_v7  ;;  %v303_v14 = vrot.slane %v172_v7, 1 }
  0x15   : > { %v186_v10 = vrot.slane %v184_v9, 1 }
  0x17   : > { %v187_v12 = vor.u32 %v186_v10, %v182_v8 }
  0x19   : > { %458 = vmatmul.mubr.msk.bf16.vlgmr.msra.gmra.mrb[0].mxu0 %vm200_vm1, %v187_v12 }
  0x1a   : > { %470 = vmatpush3.bf16.msra.mxu0 %v491_v11  ;;  %473 = vmatprep.mubr.msk.bf16.mxu0 %vm502_vm0, %v501_v1 }
  0x1b   : > { %471 = vmatprep.subr.bf16.mxu0 %v501_v1 }
  0x1e   : > { %472 = vmatpush3.bf16.msra.mxu0 %v492_v13 }
  0x21   : > { %474 = vmatmul.mubr.msk.bf16.vlgmr.msra.gmra.mrb[4].mxu0 %vm200_vm1, %v303_v14 }
  0xe6   : > { %v292_v15 = vpop.f32.mrb[0].mxu1 }
  0xe7   : > { %v467_v16 = vpop.f32.mrb[1].mxu1 }
  0xe8   : > { %v295_v17 = vpop.f32.mrb[2].mxu1 }
  0xe9   : > { %v468_v18 = vpop.f32.mrb[3].mxu1 }
  0xec   : > { %v238_v19 = vpop.f32.mrb[0].mxu0 }
  0xed   : > { %v293_v20 = vadd.f32 %v292_v15, %v238_v19  ;;  %v459_v21 = vpop.f32.mrb[1].mxu0 }
  0xee   : > { %v241_v22 = vpop.f32.mrb[2].mxu0 }
  0xef   : > { %v460_v23 = vpop.f32.mrb[3].mxu0 }
  0xf4   : > { %v353_v24 = vpop.f32.mrb[4].mxu0 }
  0xf5   : > { %v359_v26 = vadd.f32 %v353_v24, %v293_v20  ;;  %v475_v27 = vpop.f32.mrb[5].mxu0 }
  0xf6   : > { %v356_v28 = vpop.f32.mrb[6].mxu0 }
  0xf7   : > { %v367_v29 = vadd.f32 %v440_v25, %v359_v26  ;;  %v476_v30 = vpop.f32.mrb[7].mxu0 }
  0xf9   : > { %v368_v31 = vmax.f32 %v367_v29, 0.0 }
  0xfb   : > { %369 = vst [vmem:[%s168_s8] sm:$0xff] %v368_v31 }
  0xfc PF: > { %s13_s12 = sadd.s32 1, %s499_s12  }
  0xfd   : > { %p10_p4 = scmp.ge.s32.totalorder %s13_s12, 4  }
  0xff   :  { %12 = sbr.rel (!%p10_p4) target bundleno = 1 (0x1), region = 62 }

// kernel: _lambda_.27
= control target key start
LH: loop header
LB: loop body
LE: loop exit
PB: predicated region body
PF: predicated region fallthrough
CT: control target
= control target key end

     0   :  { %s631_s9 = smov 0   ;;  %s633_s10 = smov 0   ;;  %s698_s0 = inlined_call_operand.vmem [shape: bf16[2,128,8], index: 0, kind: input, shape index: {}]   ;;  %s699_s1 = inlined_call_operand.vmem [shape: bf16[2,8,128], index: 1, kind: input, shape index: {}]   ;;  %s700_s2 = inlined_call_operand.vmem [shape: f32[2,128,128], index: 2, kind: output, shape index: {}]  }
   0x1   :  { %s635_s11 = smov 0  }
   0x2 LB: > { %s24_s12 = sadd.s32 1, %s610_s10  ;;  %p503_p0 = scmp.ge.s32.totalorder %s614_s11, 1  ;;  %s614_s11 = sphi %s635_s11, %s12_s11   ;;  %s610_s10 = sphi %s633_s10, %s702_s10   ;;  %s606_s9 = sphi %s631_s9, %s701_s9  }
   0x3   : > { %p26_p1 = scmp.ge.s32.totalorder %s24_s12, 2  ;;  %p142_p2 = scmp.lt.s32.totalorder %s614_s11, 3 }
   0x5   : > { %s704_s12 = smov (%p26_p1, %s24_s12), 0  ;;  %p143_p3 = pnand %p503_p0, %p142_p2 }
   0x6   : > { %p177_p4 = scmp.lt.s32.totalorder (!%p143_p3), %s606_s9, 1  ;;  %vm283_vm0 = vcmask (!%p143_p3), 1043456   ;;  %vm258_vm1 = vcmask (!%p143_p3), 64512  }
   0x7   : > { %146 = sbr.rel (%p143_p3) target bundleno = 246 (0xf6), region = 28 }
   0xe   : > { %s706_s9 = smov (!%p177_p4, %s606_s9), 1 }
   0xf   : > { %s527_s13 = sshll.u32 %s706_s9, 6  ;;  %s506_s14 = sshll.u32 %s706_s9, 2 }
  0x10   : > { %s184_s17 = scalar_lea.vmem %s698_s0, %s527_s13  ;;  %s189_s20 = scalar_lea.vmem %s699_s1, %s506_s14 }
  0x11   : > { %v217_v0 = vld [vmem:[%s189_s20] sm:$0xf]  ;;  %v586_v4 = vld [vmem:[%s184_s17 + $0x8] sm:$0xff]   ;;  %v588_v6 = vld [vmem:[%s184_s17 + $0x10] sm:$0xff]   ;;  %s528_s21 = sshll.u32 %s706_s9, 7 }
  0x12   : > { %v584_v1 = vld [vmem:[%s184_s17] sm:$0xff]   ;;  %558 = vmatprep.subr.msk.bf16.mxu0 %vm283_vm0, %v217_v0  ;;  %559 = vmatprep.subr.msk.bf16.mxu1 %vm283_vm0, %v217_v0  ;;  %v285_v2 = vsel %vm283_vm0, %v217_v0, 0  ;;  %v587_v5 = vld [vmem:[%s184_s17 + $0x28] sm:$0xff]   ;;  %v589_v7 = vld [vmem:[%s184_s17 + $0x30] sm:$0xff]   ;;  %s671_s24 = scalar_lea.vmem %s700_s2, %s528_s21 }
  0x13   : > { %v585_v3 = vld [vmem:[%s184_s17 + $0x20] sm:$0xff]   ;;  %539 = vmatpush3.bf16.msra.mxu0 %v285_v2  ;;  %557 = vmatpush3.bf16.msra.mxu1 %v285_v2  ;;  %v590_v8 = vld [vmem:[%s184_s17 + $0x18] sm:$0xff]  }
  0x14   : > { %540 = vmatprep.mubr.msk.bf16.mxu0 %vm258_vm1, %v584_v1  ;;  %548 = vmatprep.mubr.msk.bf16.mxu1 %vm258_vm1, %v585_v3  ;;  %v591_v9 = vld [vmem:[%s184_s17 + $0x38] sm:$0xff]  }
  0x16   : > { %541 = vmatmul.mubr.msk.bf16.vlgmr.msra.gmra.mrb[0].mxu0 %vm258_vm1, %v586_v4  ;;  %549 = vmatmul.mubr.msk.bf16.vlgmr.msra.gmra.mrb[0].mxu1 %vm258_vm1, %v587_v5 }
  0x17   : > { %544 = vmatprep.mubr.msk.bf16.mxu0 %vm258_vm1, %v588_v6  ;;  %552 = vmatprep.mubr.msk.bf16.mxu1 %vm258_vm1, %v589_v7 }
  0x1e   : > { %545 = vmatmul.mubr.msk.bf16.gmra.mrb[4].mxu0 %vm258_vm1, %v590_v8  ;;  %553 = vmatmul.mubr.msk.bf16.gmra.mrb[4].mxu1 %vm258_vm1, %v591_v9 }
  0xe9   : > { %v542_v10 = vpop.f32.mrb[0].mxu0  ;;  %v550_v11 = vpop.f32.mrb[0].mxu1 }
  0xea   : > { %386 = vst [vmem:[%s671_s24 + $0x10] sm:$0xff] %v542_v10  ;;  %v321_v12 = vpop.f32.mrb[1].mxu0  ;;  %394 = vst [vmem:[%s671_s24 + $0x50] sm:$0xff] %v550_v11  ;;  %v353_v13 = vpop.f32.mrb[1].mxu1 }
  0xeb   : > { %384 = vst [vmem:[%s671_s24] sm:$0xff] %v321_v12  ;;  %v543_v14 = vpop.f32.mrb[2].mxu0  ;;  %392 = vst [vmem:[%s671_s24 + $0x40] sm:$0xff] %v353_v13  ;;  %v551_v15 = vpop.f32.mrb[2].mxu1 }
  0xec   : > { %387 = vst [vmem:[%s671_s24 + $0x18] sm:$0xff] %v543_v14  ;;  %v324_v16 = vpop.f32.mrb[3].mxu0  ;;  %395 = vst [vmem:[%s671_s24 + $0x58] sm:$0xff] %v551_v15  ;;  %v356_v17 = vpop.f32.mrb[3].mxu1 }
  0xed   : > { %385 = vst [vmem:[%s671_s24 + $0x8] sm:$0xff] %v324_v16  ;;  %393 = vst [vmem:[%s671_s24 + $0x48] sm:$0xff] %v356_v17 }
  0xf1   : > { %v546_v18 = vpop.f32.mrb[4].mxu0  ;;  %v554_v19 = vpop.f32.mrb[4].mxu1 }
  0xf2   : > { %390 = vst [vmem:[%s671_s24 + $0x30] sm:$0xff] %v546_v18  ;;  %v337_v20 = vpop.f32.mrb[5].mxu0  ;;  %398 = vst [vmem:[%s671_s24 + $0x70] sm:$0xff] %v554_v19  ;;  %v369_v21 = vpop.f32.mrb[5].mxu1 }
  0xf3   : > { %388 = vst [vmem:[%s671_s24 + $0x20] sm:$0xff] %v337_v20  ;;  %v547_v22 = vpop.f32.mrb[6].mxu0  ;;  %396 = vst [vmem:[%s671_s24 + $0x60] sm:$0xff] %v369_v21  ;;  %v555_v23 = vpop.f32.mrb[6].mxu1 }
  0xf4   : > { %391 = vst [vmem:[%s671_s24 + $0x38] sm:$0xff] %v547_v22  ;;  %v340_v24 = vpop.f32.mrb[7].mxu0  ;;  %399 = vst [vmem:[%s671_s24 + $0x78] sm:$0xff] %v555_v23  ;;  %v372_v25 = vpop.f32.mrb[7].mxu1 }
  0xf5   : > { %389 = vst [vmem:[%s671_s24 + $0x28] sm:$0xff] %v340_v24  ;;  %397 = vst [vmem:[%s671_s24 + $0x68] sm:$0xff] %v372_v25 }
  0xf6 PF: > { %s12_s11 = sadd.s32 1, %s614_s11   ;;  %s701_s9 = smov %s610_s10 }
  0xf7   : > { %p9_p5 = scmp.ge.s32.totalorder %s12_s11, 4   ;;  %s702_s10 = smov %s704_s12 }
  0xf9   :  { %11 = sbr.rel (!%p9_p5) target bundleno = 2 (0x2), region = 61 }

// kernel: _lambda_.25
= control target key start
LH: loop header
LB: loop body
LE: loop exit
PB: predicated region body
PF: predicated region fallthrough
CT: control target
= control target key end

     0   :  { %vm42_vm0 = vcmask 130048   ;;  %v120_v13 = vlaneseq  ;;  %s397_s1 = inlined_call_operand.vmem [shape: bf16[16,128], index: 1, kind: input, shape index: {}]   ;;  %s398_s0 = inlined_call_operand.vmem [shape: f32[64,16], index: 0, kind: input, shape index: {}]   ;;  %s399_s2 = inlined_call_operand.vmem [shape: f32[1,128], index: 2, kind: input, shape index: {}]   ;;  %s400_s3 = inlined_call_operand.vmem [shape: f32[64,128], index: 3, kind: output, shape index: {}]  }
   0x1   :  { %v246_v0 = vld [vmem:[%s397_s1] sm:$0xff]   ;;  %v16_v2 = vld [vmem:[%s398_s0 + $0x8] sm:$0xff]  ;;  %v17_v3 = vld [vmem:[%s398_s0 + $0x10] sm:$0xff] }
   0x2   :  { %v15_v1 = vld [vmem:[%s398_s0] sm:$0xff]  ;;  %234 = vmatprep.subr.bf16.mxu0 %v246_v0  ;;  %244 = vmatprep.subr.bf16.mxu1 %v246_v0  ;;  %v18_v5 = vld [vmem:[%s398_s0 + $0x18] sm:$0xff]  ;;  %v20_v7 = vld [vmem:[%s398_s0 + $0x28] sm:$0xff]  ;;  %v121_v14 = vand.u32 127, %v120_v13 }
   0x3   :  { %v23_v4 = vpack.c.bf16 %v16_v2, %v15_v1  ;;  %v19_v6 = vld [vmem:[%s398_s0 + $0x20] sm:$0xff]  ;;  %235 = vmatpush3.bf16.msra.mxu0 %v246_v0  ;;  %245 = vmatpush3.bf16.msra.mxu1 %v246_v0  ;;  %v24_v8 = vpack.c.bf16 %v18_v5, %v17_v3  ;;  %v21_v10 = vld [vmem:[%s398_s0 + $0x30] sm:$0xff]  ;;  %v22_v11 = vld [vmem:[%s398_s0 + $0x38] sm:$0xff] }
   0x4   :  { %v25_v9 = vpack.c.bf16 %v20_v7, %v19_v6  ;;  %v26_v12 = vpack.c.bf16 %v22_v11, %v21_v10  ;;  %v223_v15 = vld [vmem:[%s399_s2] ss:$0 sm:$0xff]  ;;  %vm122_vm1 = vcmp.lt.s32.totalorder %v121_v14, 11 }
   0x5   :  { %236 = vmatprep.mubr.msk.bf16.mxu0 %vm42_vm0, %v23_v4 }
   0x6   :  { %240 = vmatprep.mubr.msk.bf16.mxu1 %vm42_vm0, %v25_v9  ;;  %237 = vmatmul.mubr.msk.bf16.vlgmr.msra.gmra.mrb[0].mxu0 %vm42_vm0, %v24_v8 }
   0x7   :  { %241 = vmatmul.mubr.msk.bf16.vlgmr.msra.gmra.mrb[0].mxu1 %vm42_vm0, %v26_v12 }
  0xd9   :  { %v238_v16 = vpop.f32.mrb[0].mxu0 }
  0xda   :  { %v242_v17 = vpop.f32.mrb[0].mxu1  ;;  %v98_v18 = vadd.f32 %v238_v16, %v223_v15  ;;  %v89_v19 = vpop.f32.mrb[1].mxu0 }
  0xdb   :  { %v105_v20 = vpop.f32.mrb[1].mxu1  ;;  %v90_v21 = vadd.f32 %v223_v15, %v89_v19  ;;  %v239_v22 = vpop.f32.mrb[2].mxu0  ;;  %v114_v36 = vadd.f32 %v242_v17, %v223_v15 }
  0xdc   :  { %v106_v23 = vadd.f32 %v223_v15, %v105_v20  ;;  %v243_v24 = vpop.f32.mrb[2].mxu1  ;;  %v101_v25 = vadd.f32 %v239_v22, %v223_v15  ;;  %v92_v26 = vpop.f32.mrb[3].mxu0  ;;  %v125_v28 = vsel %vm122_vm1, %v98_v18, -1e+30 }
  0xdd   :  { %v108_v27 = vpop.f32.mrb[3].mxu1  ;;  %135 = vmax.xlane.f32.xlu1 %v125_v28  ;;  %v123_v29 = vsel %vm122_vm1, %v90_v21, -1e+30  ;;  %v93_v33 = vadd.f32 %v223_v15, %v92_v26  ;;  %v117_v34 = vadd.f32 %v243_v24, %v223_v15  ;;  %v129_v39 = vsel %vm122_vm1, %v114_v36, -1e+30 }
  0xde   :  { %131 = vmax.xlane.f32.xlu0 %v123_v29  ;;  %v127_v30 = vsel %vm122_vm1, %v106_v23, -1e+30  ;;  %v109_v31 = vadd.f32 %v223_v15, %v108_v27  ;;  %v126_v32 = vsel %vm122_vm1, %v101_v25, -1e+30 }
  0xdf   :  { %v124_v37 = vsel %vm122_vm1, %v93_v33, -1e+30  ;;  %v130_v38 = vsel %vm122_vm1, %v117_v34, -1e+30 }
  0xe0   :  { %v128_v35 = vsel %vm122_vm1, %v109_v31, -1e+30 }
  0xe1   :  { %137 = vmax.xlane.f32.xlu1 %v126_v32 }
  0xe2   :  { %139 = vmax.xlane.f32.xlu0 %v127_v30 }
  0xe5   :  { %141 = vmax.xlane.f32.xlu1 %v128_v35 }
  0xe6   :  { %133 = vmax.xlane.f32.xlu0 %v124_v37 }
  0xe9   :  { %145 = vmax.xlane.f32.xlu1 %v130_v38 }
  0xea   :  { %143 = vmax.xlane.f32.xlu0 %v129_v39 }
 0x16a   :  { %v136_v40 = vpop.xlane.xlu1 %135 }
 0x16b   :  { %v341_v41 = vsub.f32 %v125_v28, %v136_v40  ;;  %v132_v42 = vpop.xlane.xlu0 %131 }
 0x16c   :  { %v343_v43 = vsub.f32 %v123_v29, %v132_v42 }
 0x16d   :  { %v159_v44 = vmul.f32 1.442695, %v341_v41 }
 0x16e   :  { %v155_v45 = vmul.f32 1.442695, %v343_v43  ;;  %v138_v46 = vpop.xlane.xlu1 %137 }
 0x16f   :  { %247 = vpow2.f32 %v159_v44  ;;  %v347_v47 = vsub.f32 %v126_v32, %v138_v46  ;;  %v140_v48 = vpop.xlane.xlu0 %139 }
 0x170   :  { %v349_v49 = vsub.f32 %v127_v30, %v140_v48  ;;  %249 = vpow2.f32 %v155_v45 }
 0x171   :  { %v161_v50 = vmul.f32 1.442695, %v347_v47 }
 0x172   :  { %v142_v51 = vpop.xlane.xlu1 %141  ;;  %v163_v52 = vmul.f32 1.442695, %v349_v49 }
 0x173   :  { %251 = vpow2.f32 %v161_v50  ;;  %v353_v53 = vsub.f32 %v128_v35, %v142_v51  ;;  %v134_v54 = vpop.xlane.xlu0 %133 }
 0x174   :  { %v355_v55 = vsub.f32 %v124_v37, %v134_v54  ;;  %253 = vpow2.f32 %v163_v52 }
 0x175   :  { %v165_v58 = vmul.f32 1.442695, %v353_v53 }
 0x176   :  { %v157_v56 = vmul.f32 1.442695, %v355_v55  ;;  %v146_v57 = vpop.xlane.xlu1 %145 }
 0x177   :  { %v144_v59 = vpop.xlane.xlu0 %143  ;;  %v359_v60 = vsub.f32 %v130_v38, %v146_v57 }
 0x178   :  { %255 = vpow2.f32 %v157_v56  ;;  %v361_v61 = vsub.f32 %v129_v39, %v144_v59 }
 0x179   :  { %v248_v62 = vpop.eup %247  ;;  %257 = vpow2.f32 %v165_v58  ;;  %v169_v1 = vmul.f32 1.442695, %v359_v60 }
 0x17a   :  { %v167_v63 = vmul.f32 1.442695, %v361_v61  ;;  %175 = vadd.xlane.f32.xlu0 %v248_v62  ;;  %v250_v0 = vpop.eup %249 }
 0x17c   :  { %259 = vpow2.f32 %v167_v63 }
 0x17d   :  { %v252_v2 = vpop.eup %251  ;;  %261 = vpow2.f32 %v169_v1 }
 0x17e   :  { %177 = vadd.xlane.f32.xlu1 %v252_v2  ;;  %171 = vadd.xlane.f32.xlu0 %v250_v0  ;;  %v254_v3 = vpop.eup %253 }
 0x182   :  { %v256_v4 = vpop.eup %255  ;;  %179 = vadd.xlane.f32.xlu0 %v254_v3 }
 0x183   :  { %173 = vadd.xlane.f32.xlu1 %v256_v4  ;;  %v258_v5 = vpop.eup %257 }
 0x186   :  { %v260_v6 = vpop.eup %259 }
 0x187   :  { %181 = vadd.xlane.f32.xlu1 %v258_v5  ;;  %183 = vadd.xlane.f32.xlu0 %v260_v6  ;;  %v262_v7 = vpop.eup %261 }
 0x18b   :  { %185 = vadd.xlane.f32.xlu1 %v262_v7 }
 0x207   :  { %v176_v8 = vpop.xlane.xlu0 %175 }
 0x208   :  { %263 = vlog2.f32 %v176_v8 }
 0x20b   :  { %v178_v9 = vpop.xlane.xlu1 %177  ;;  %v172_v10 = vpop.xlane.xlu0 %171 }
 0x20c   :  { %265 = vlog2.f32 %v178_v9 }
 0x20d   :  { %267 = vlog2.f32 %v172_v10 }
 0x20f   :  { %v180_v11 = vpop.xlane.xlu0 %179 }
 0x210   :  { %269 = vlog2.f32 %v180_v11  ;;  %v174_v12 = vpop.xlane.xlu1 %173 }
 0x211   :  { %271 = vlog2.f32 %v174_v12 }
 0x212   :  { %v264_v13 = vpop.eup %263 }
 0x213   :  { %v192_v14 = vmul.f32 0.6931472, %v264_v13 }
 0x214   :  { %v182_v15 = vpop.xlane.xlu1 %181  ;;  %v184_v16 = vpop.xlane.xlu0 %183 }
 0x215   :  { %v205_v17 = vsub.f32 %v341_v41, %v192_v14  ;;  %273 = vlog2.f32 %v182_v15 }
 0x216   :  { %v266_v18 = vpop.eup %265  ;;  %275 = vlog2.f32 %v184_v16 }
 0x217   :  { %v268_v19 = vpop.eup %267  ;;  %213 = vst [vmem:[%s400_s3 + $0x10] sm:$0xff] %v205_v17  ;;  %v194_v20 = vmul.f32 0.6931472, %v266_v18 }
 0x218   :  { %v188_v21 = vmul.f32 0.6931472, %v268_v19  ;;  %v186_v22 = vpop.xlane.xlu1 %185 }
 0x219   :  { %v206_v23 = vsub.f32 %v347_v47, %v194_v20  ;;  %277 = vlog2.f32 %v186_v22 }
 0x21a   :  { %v270_v24 = vpop.eup %269  ;;  %v203_v25 = vsub.f32 %v343_v43, %v188_v21 }
 0x21b   :  { %v272_v26 = vpop.eup %271  ;;  %214 = vst [vmem:[%s400_s3 + $0x18] sm:$0xff] %v206_v23  ;;  %v196_v27 = vmul.f32 0.6931472, %v270_v24 }
 0x21c   :  { %211 = vst [vmem:[%s400_s3] sm:$0xff] %v203_v25  ;;  %v190_v28 = vmul.f32 0.6931472, %v272_v26 }
 0x21d   :  { %v207_v29 = vsub.f32 %v349_v49, %v196_v27 }
 0x21e   :  { %v204_v30 = vsub.f32 %v355_v55, %v190_v28 }
 0x21f   :  { %v274_v31 = vpop.eup %273  ;;  %215 = vst [vmem:[%s400_s3 + $0x20] sm:$0xff] %v207_v29 }
 0x220   :  { %v276_v32 = vpop.eup %275  ;;  %212 = vst [vmem:[%s400_s3 + $0x8] sm:$0xff] %v204_v30  ;;  %v198_v33 = vmul.f32 0.6931472, %v274_v31 }
 0x221   :  { %v200_v34 = vmul.f32 0.6931472, %v276_v32 }
 0x222   :  { %v208_v35 = vsub.f32 %v353_v53, %v198_v33 }
 0x223   :  { %v278_v36 = vpop.eup %277  ;;  %v209_v37 = vsub.f32 %v361_v61, %v200_v34 }
 0x224   :  { %216 = vst [vmem:[%s400_s3 + $0x28] sm:$0xff] %v208_v35  ;;  %v202_v38 = vmul.f32 0.6931472, %v278_v36 }
 0x225   :  { %217 = vst [vmem:[%s400_s3 + $0x30] sm:$0xff] %v209_v37 }
 0x226   :  { %v210_v39 = vsub.f32 %v359_v60, %v202_v38 }
 0x228   :  { %218 = vst [vmem:[%s400_s3 + $0x38] sm:$0xff] %v210_v39 }

// kernel: _lambda_.24
= control target key start
LH: loop header
LB: loop body
LE: loop exit
PB: predicated region body
PF: predicated region fallthrough
CT: control target
= control target key end

     0   :  { %v111_v0 = vmov 0.0   ;;  %vm112_vm0 = vmmov 0   ;;  %vm41_vm1 = vcmask 261120   ;;  %s154_s1 = inlined_call_operand.vmem [shape: bf16[32,128], index: 1, kind: input, shape index: {}]   ;;  %s155_s0 = inlined_call_operand.vmem [shape: f32[16,32], index: 0, kind: input, shape index: {}]   ;;  %s156_s2 = inlined_call_operand.vmem [shape: f32[1,128], index: 2, kind: input, shape index: {}]   ;;  %s157_s3 = inlined_call_operand.vmem [shape: f32[16,128], index: 3, kind: output, shape index: {}]  }
   0x1   :  { %99 = vmatprep.subr.bf16.mxu0 %v111_v0  ;;  %v109_v1 = vld [vmem:[%s154_s1] sm:$0xff]   ;;  %103 = vmatprep.mubr.msk.bf16.mxu0 %vm112_vm0, %v111_v0  ;;  %v110_v2 = vld [vmem:[%s154_s1 + $0x8] sm:$0xff]  }
   0x2   :  { %100 = vmatpush3.bf16.msra.mxu0 %v109_v1  ;;  %v15_v3 = vld [vmem:[%s155_s0] sm:$0xff]  ;;  %v16_v4 = vld [vmem:[%s155_s0 + $0x8] sm:$0xff] }
   0x3   :  { %101 = vmatprep.subr.bf16.mxu0 %v111_v0  ;;  %v17_v5 = vpack.c.bf16 %v16_v4, %v15_v3  ;;  %v92_v6 = vld [vmem:[%s156_s2] ss:$0 sm:$0xff] }
   0x6   :  { %102 = vmatpush3.bf16.msra.mxu0 %v110_v2 }
   0x9   :  { %104 = vmatmul.mubr.msk.bf16.vlgmr.msra.gmra.mrb[0].mxu0 %vm41_vm1, %v17_v5 }
  0xdc   :  { %v79_v7 = vpop.f32.mrb[0].mxu0 }
  0xdd   :  { %v80_v8 = vadd.f32 %v92_v6, %v79_v7  ;;  %v105_v9 = vpop.f32.mrb[1].mxu0 }
  0xde   :  { %v82_v10 = vpop.f32.mrb[2].mxu0 }
  0xdf   :  { %86 = vst [vmem:[%s157_s3] sm:$0xff] %v80_v8  ;;  %v83_v11 = vadd.f32 %v92_v6, %v82_v10  ;;  %v106_v12 = vpop.f32.mrb[3].mxu0 }
  0xe1   :  { %87 = vst [vmem:[%s157_s3 + $0x8] sm:$0xff] %v83_v11 }

</bundles_post_ra>
